<compile_context>
chip_gen: v7x
topology: tpu7x:2x2x1
jax: 0.10.0
libtpu: 0.0.40
codegen_flags: <defaults>
</compile_context>

<pallas_src>
import functools
import math

import jax
import jax.numpy as jnp
import numpy as np
from jax import lax
from jax.experimental import pallas as pl
from jax.experimental.pallas import tpu as pltpu

SEQ = 8                         # tokens per sequence
NSEQ = 16                       # independent sequences in the batch
SEQ_PER_BLOCK = 8               # sequences per grid step
TB = SEQ_PER_BLOCK * SEQ        # 64 tokens per grid step (matmul M)
NBLK = NSEQ // SEQ_PER_BLOCK    # grid size
D_MODEL = 32
D_STATE = 16
D_CONV = 4
EXPAND = 2
D_INNER = EXPAND * D_MODEL              # 64
DT_RANK = math.ceil(D_MODEL / 16)       # 2
INTER = 64
XDT_N = 128                             # x_proj ⊕ dt_proj output, lane-padded 96 -> 128
EPS = 1e-5


def _sigmoid(x):
    # tanh form: rides the EUP, no fp32 divide (v5e-friendly).
    return 0.5 * (1.0 + jnp.tanh(0.5 * x))


def _silu(x):
    return x * _sigmoid(x)


def _softplus(x):
    # stable softplus; exp argument clamped so the untaken branch never overflows
    return jnp.where(x > 20.0, x, jnp.log(1.0 + jnp.exp(jnp.minimum(x, 20.0))))


def _layernorm(x, w, b):
    mu = jnp.mean(x, axis=-1, keepdims=True)
    var = jnp.mean((x - mu) ** 2, axis=-1, keepdims=True)
    return (x - mu) * lax.rsqrt(var + EPS) * w + b


def samba_y_decoder_kernel(
    x_ref,                 # (TB, D_MODEL)               fp32 hidden states (8 sequences)
    ln1_w_ref, ln1_b_ref,  # (1, D_MODEL)                input_layernorm
    in_wt_ref,             # (D_MODEL, 2*D_INNER)        in_proj weight^T   (bf16)
    conv_wt_ref,           # (D_CONV, D_INNER)           depthwise conv w^T (fp32)
    conv_b_ref,            # (1, D_INNER)
    xdt_wt_ref,            # (D_INNER, XDT_N)            x_proj⊕dt_proj^T, lane-padded (bf16)
    dt_bias_ref,           # (1, D_INNER)                dt_proj bias (skip_bias_add)
    At_ref,                # (D_STATE, D_INNER)          A^T (D_INNER on lanes)
    Dp_ref,                # (1, D_INNER)
    out_wt_ref,            # (D_INNER, D_MODEL)          out_proj weight^T  (bf16)
    ln2_w_ref, ln2_b_ref,  # (1, D_MODEL)                post_attention_layernorm
    fc1_wt_ref,            # (D_MODEL, 2*INTER)          (bf16)
    fc2_wt_ref,            # (INTER, D_MODEL)            (bf16)
    out_ref,               # (TB, D_MODEL)               fp32
    y_scr,                 # (TB, D_INNER)               fp32 VMEM scratch (scan readout)
    *, roll_mode,          # +1 / -1: pltpu.roll direction, 0: concat fallback
):
    x = x_ref[...]                                       # residual (fp32)

    # ---- input layernorm ----
    h = _layernorm(x, ln1_w_ref[...], ln1_b_ref[...])

    # ---- Phi4Mamba (prefill, zero initial conv/ssm state) ----
    proj = jnp.dot(h.astype(jnp.bfloat16), in_wt_ref[...],
                   preferred_element_type=jnp.float32)   # (TB, 2*D_INNER)
    xs = proj[:, :D_INNER]
    gate = proj[:, D_INNER:]

    # causal depthwise conv1d (+bias, silu): shifted vreg copies via roll + mask.
    # tpos = token index inside its own sequence -> masking keeps the shift
    # causal AND stops it from leaking across sequence boundaries.
    tpos = lax.broadcasted_iota(jnp.int32, (TB, D_INNER), 0) & (SEQ - 1)
    cw = conv_wt_ref[...]
    acc = xs * cw[D_CONV - 1:D_CONV, :]
    for k in range(D_CONV - 1):
        shift = D_CONV - 1 - k                           # 3, 2, 1
        if roll_mode != 0:
            amt = shift if roll_mode > 0 else TB - shift
            shifted = pltpu.roll(xs, amt, axis=0)        # XLU sublane rotate
        else:
            shifted = jnp.concatenate(
                [jnp.zeros((shift, D_INNER), jnp.float32), xs[:TB - shift, :]],
                axis=0)
        shifted = jnp.where(tpos >= shift, shifted, 0.0)
        acc = acc + shifted * cw[k:k + 1, :]
    x_conv = _silu(acc + conv_b_ref[...])

    # fused x_proj + dt_proj: one lane-padded MXU matmul -> [delta_pre | B | C | 0]
    ssm = jnp.dot(x_conv.astype(jnp.bfloat16), xdt_wt_ref[...],
                  preferred_element_type=jnp.float32)    # (TB, 128)
    delta = _softplus(ssm[:, :D_INNER] + dt_bias_ref[...])          # (TB, 64)
    Bm = ssm[:, D_INNER:D_INNER + D_STATE]                           # (TB, 16)
    Cm = ssm[:, D_INNER + D_STATE:D_INNER + 2 * D_STATE]             # (TB, 16)
    du = delta * x_conv                                              # (TB, 64)

    At = At_ref[...]                                                 # (16, 64)

    # selective scan: state (D_STATE, D_INNER) with D_INNER on lanes; dA/dBu are
    # computed per step (no (SEQ,16,64) temporaries), state resets per sequence,
    # readout rows are written straight into VMEM scratch (no concatenate).
    for b in range(SEQ_PER_BLOCK):
        state = jnp.zeros((D_STATE, D_INNER), jnp.float32)
        for t in range(SEQ):                             # static unroll
            r = b * SEQ + t
            dA = jnp.exp(delta[r:r + 1, :] * At)                         # (16, 64)
            dBu = (du[r:r + 1, None, :] *
                   Bm[r:r + 1, :, None]).reshape(D_STATE, D_INNER)       # (16, 64)
            ccol = Cm[r:r + 1, :, None].reshape(D_STATE, 1)              # (16, 1)
            state = state * dA + dBu
            y_scr[pl.ds(r, 1), :] = jnp.sum(state * ccol, axis=0,
                                            keepdims=True)               # (1, 64)

    y = y_scr[...] + x_conv * Dp_ref[...]                # + D * u
    y = y * _silu(gate)                                  # z-gating (yoco_kv=False)

    attn_out = jnp.dot(y.astype(jnp.bfloat16), out_wt_ref[...],
                       preferred_element_type=jnp.float32)   # (TB, D_MODEL)

    # ---- residual + post_attention_layernorm + GLU MLP ----
    h1 = x + attn_out
    hn = _layernorm(h1, ln2_w_ref[...], ln2_b_ref[...])
    y1 = jnp.dot(hn.astype(jnp.bfloat16), fc1_wt_ref[...],
                 preferred_element_type=jnp.float32)
    g = y1[:, :INTER]
    v = y1[:, INTER:]
    mlp = jnp.dot((v * _silu(g)).astype(jnp.bfloat16), fc2_wt_ref[...],
                  preferred_element_type=jnp.float32)
    out_ref[...] = h1 + mlp


def _detect_roll_mode():
    """One-time probe that pins pltpu.roll's sublane-rotate direction.

    Returns +1 if roll(x, s, axis=0)[i] == x[i-s] (jnp.roll convention),
    -1 if the direction is reversed, 0 if the op is unavailable (the conv
    then falls back to masked concatenate shifts)."""
    try:
        def probe(x_ref, o_ref):
            o_ref[...] = pltpu.roll(x_ref[...], 1, axis=0)

        xp = lax.broadcasted_iota(jnp.float32, (8, 128), 0)
        out = np.asarray(jax.block_until_ready(pl.pallas_call(
            probe,
            in_specs=[pl.BlockSpec(memory_space=pltpu.MemorySpace.VMEM)],
            out_specs=pl.BlockSpec(memory_space=pltpu.MemorySpace.VMEM),
            out_shape=jax.ShapeDtypeStruct((8, 128), jnp.float32))(xp)))
        if out[1, 0] == 0.0:
            return 1
        if out[1, 0] == 2.0:
            return -1
        return 0
    except Exception:   # noqa: BLE001 - any lowering/runtime issue -> fallback
        return 0


_ROLL_MODE = None


def _roll_mode():
    global _ROLL_MODE
    if _ROLL_MODE is None:
        _ROLL_MODE = _detect_roll_mode()
    return _ROLL_MODE


ARG_KEYS = ('ln1_w', 'ln1_b', 'in_wt', 'conv_wt', 'conv_b', 'xdt_wt',
            'dt_bias', 'At', 'D', 'out_wt', 'ln2_w', 'ln2_b', 'fc1_wt',
            'fc2_wt')


def samba_y_decoder_layer(x, params):
    """x: (NSEQ*SEQ, D_MODEL) fp32 — NSEQ independent sequences of SEQ tokens."""
    args = (x,) + tuple(params[k] for k in ARG_KEYS)
    kernel = functools.partial(samba_y_decoder_kernel, roll_mode=_roll_mode())

    in_specs = [pl.BlockSpec((TB, D_MODEL), lambda g: (g, 0))]
    # weights: full-array blocks with constant index maps -> DMA'd once, resident
    in_specs += [pl.BlockSpec(a.shape, lambda g: (0, 0)) for a in args[1:]]

    grid_spec = pltpu.PrefetchScalarGridSpec(
        num_scalar_prefetch=0,
        grid=(NBLK,),
        in_specs=in_specs,
        out_specs=pl.BlockSpec((TB, D_MODEL), lambda g: (g, 0)),
        scratch_shapes=[pltpu.VMEM((TB, D_INNER), jnp.float32)],
    )
    return pl.pallas_call(
        kernel,
        grid_spec=grid_spec,
        out_shape=jax.ShapeDtypeStruct((NSEQ * SEQ, D_MODEL), jnp.float32),
        compiler_params=pltpu.CompilerParams(
            dimension_semantics=("parallel",)),
    )(*args)


def reference_forward(x, p):
    """Pure-JAX mirror of the PyTorch forward (same bf16-MXU / fp32-elementwise
    precision choices and the same dt_proj-into-x_proj precomposition)."""
    h = _layernorm(x, p['ln1_w'], p['ln1_b'])
    proj = jnp.dot(h.astype(jnp.bfloat16), p['in_wt'],
                   preferred_element_type=jnp.float32)
    xs, gate = proj[:, :D_INNER], proj[:, D_INNER:]

    xs_b = xs.reshape(NSEQ, SEQ, D_INNER)
    pad = jnp.concatenate(
        [jnp.zeros((NSEQ, D_CONV - 1, D_INNER), jnp.float32), xs_b], axis=1)
    acc = jnp.zeros_like(xs_b)
    for k in range(D_CONV):
        acc = acc + pad[:, k:k + SEQ, :] * p['conv_wt'][k][None, None, :]
    x_conv = _silu(acc + p['conv_b'])
    x_conv2 = x_conv.reshape(NSEQ * SEQ, D_INNER)

    ssm = jnp.dot(x_conv2.astype(jnp.bfloat16), p['xdt_wt'],
                  preferred_element_type=jnp.float32)
    delta = _softplus(ssm[:, :D_INNER] + p['dt_bias'])
    Bm = ssm[:, D_INNER:D_INNER + D_STATE]
    Cm = ssm[:, D_INNER + D_STATE:D_INNER + 2 * D_STATE]

    A = p['At'].T                                        # (D_INNER, D_STATE)
    delta_b = delta.reshape(NSEQ, SEQ, D_INNER)
    du_b = (delta * x_conv2).reshape(NSEQ, SEQ, D_INNER)
    Bm_b = Bm.reshape(NSEQ, SEQ, D_STATE)
    Cm_b = Cm.reshape(NSEQ, SEQ, D_STATE)

    dA = jnp.exp(delta_b[..., None] * A[None, None, :, :])
    dBu = du_b[..., None] * Bm_b[:, :, None, :]

    def step(state, inp):
        dA_t, dBu_t = inp
        state = state * dA_t + dBu_t
        return state, state

    _, states = jax.lax.scan(
        step, jnp.zeros((NSEQ, D_INNER, D_STATE), jnp.float32),
        (jnp.swapaxes(dA, 0, 1), jnp.swapaxes(dBu, 0, 1)))
    # states: (SEQ, NSEQ, D_INNER, D_STATE)
    y = jnp.einsum('tbds,bts->btd', states, Cm_b).reshape(NSEQ * SEQ, D_INNER)
    y = y + x_conv2 * p['D']
    y = y * _silu(gate)
    attn_out = jnp.dot(y.astype(jnp.bfloat16), p['out_wt'],
                       preferred_element_type=jnp.float32)

    h1 = x + attn_out
    hn = _layernorm(h1, p['ln2_w'], p['ln2_b'])
    y1 = jnp.dot(hn.astype(jnp.bfloat16), p['fc1_wt'],
                 preferred_element_type=jnp.float32)
    mlp = jnp.dot((y1[:, INTER:] * _silu(y1[:, :INTER])).astype(jnp.bfloat16),
                  p['fc2_wt'], preferred_element_type=jnp.float32)
    return h1 + mlp


if __name__ == "__main__":
    key = jax.random.PRNGKey(0)
    ks = jax.random.split(key, 16)

    def nrm(k, shape, scale):
        return jax.random.normal(k, shape, jnp.float32) * scale

    bf16 = jnp.bfloat16

    # Raw Phi4Mamba parameters (module orientation), then host-side prep:
    # transpose for x @ W^T, precompose dt_proj into x_proj, lane-pad to 128,
    # store A^T so D_INNER rides the lane axis, cast MXU weights to bf16.
    xproj_wt = nrm(ks[5], (D_INNER, DT_RANK + 2 * D_STATE),
                   1.0 / math.sqrt(D_INNER))
    dtproj_wt = nrm(ks[6], (DT_RANK, D_INNER), 1.0 / math.sqrt(DT_RANK))
    xdt = jnp.concatenate(
        [xproj_wt[:, :DT_RANK] @ dtproj_wt, xproj_wt[:, DT_RANK:]], axis=1)
    xdt = jnp.pad(xdt, ((0, 0), (0, XDT_N - xdt.shape[1])))   # 96 -> 128 lanes
    A = -(jnp.abs(nrm(ks[8], (D_INNER, D_STATE), 1.0)) + 0.1)

    params = {
        'ln1_w': 1.0 + nrm(ks[0], (1, D_MODEL), 0.02),
        'ln1_b': nrm(ks[1], (1, D_MODEL), 0.02),
        'in_wt': nrm(ks[2], (D_MODEL, 2 * D_INNER),
                     1.0 / math.sqrt(D_MODEL)).astype(bf16),
        'conv_wt': nrm(ks[3], (D_CONV, D_INNER), 0.5),
        'conv_b': nrm(ks[4], (1, D_INNER), 0.1),
        'xdt_wt': xdt.astype(bf16),
        'dt_bias': nrm(ks[7], (1, D_INNER), 0.1),
        'At': A.T,                                   # (D_STATE, D_INNER) fp32
        'D': jnp.ones((1, D_INNER), jnp.float32),    # torch.ones(d_inner)
        'out_wt': nrm(ks[9], (D_INNER, D_MODEL),
                      1.0 / math.sqrt(D_INNER)).astype(bf16),
        'ln2_w': 1.0 + nrm(ks[10], (1, D_MODEL), 0.02),
        'ln2_b': nrm(ks[11], (1, D_MODEL), 0.02),
        'fc1_wt': nrm(ks[12], (D_MODEL, 2 * INTER),
                      1.0 / math.sqrt(D_MODEL)).astype(bf16),
        'fc2_wt': nrm(ks[13], (INTER, D_MODEL),
                      1.0 / math.sqrt(INTER)).astype(bf16),
    }
    x = nrm(ks[14], (NSEQ * SEQ, D_MODEL), 1.0)

    out = jax.block_until_ready(samba_y_decoder_layer(x, params))
    ref = reference_forward(x, params)
    np.testing.assert_allclose(np.asarray(out), np.asarray(ref),
                               rtol=5e-3, atol=5e-3)
    print("KERNEL_OK")
</pallas_src>

<mosaic_0001>
module attributes {stable_mosaic.version = 11 : i64} {
  func.func @probe(%arg0: memref<8x128xf32, #tpu.memory_space<vmem>>, %arg1: memref<8x128xf32, #tpu.memory_space<vmem>>) attributes {dimension_semantics = [], scalar_prefetch = 0 : i64, scratch_operands = 0 : i64, tpu.core_type = #tpu.core_type<tc>} {
    %c0 = arith.constant 0 : index
    %c0_0 = arith.constant 0 : index
    %0 = vector.load %arg0[%c0, %c0_0] : memref<8x128xf32, #tpu.memory_space<vmem>>, vector<8x128xf32>
    %c1_i32 = arith.constant 1 : i32
    %1 = tpu.dynamic_rotate %0 by %c1_i32 dim 0 : vector<8x128xf32>, i32 -> vector<8x128xf32>
    %c0_1 = arith.constant 0 : index
    %c0_2 = arith.constant 0 : index
    %2 = vector.load %arg1[%c0_1, %c0_2] : memref<8x128xf32, #tpu.memory_space<vmem>>, vector<8x128xf32>
    tpu.vector_store %arg1[%c0_1, %c0_2], %1 {strides = array<i32>} : memref<8x128xf32, #tpu.memory_space<vmem>>, vector<8x128xf32>,
    return
  }
}

module attributes {stable_mosaic.version = 11 : i64} {
  func.func @samba_y_decoder_kernel(%arg0: i32, %arg1: memref<64x32xf32, #tpu.memory_space<vmem>>, %arg2: memref<1x32xf32, #tpu.memory_space<vmem>>, %arg3: memref<1x32xf32, #tpu.memory_space<vmem>>, %arg4: memref<32x128xbf16, #tpu.memory_space<vmem>>, %arg5: memref<4x64xf32, #tpu.memory_space<vmem>>, %arg6: memref<1x64xf32, #tpu.memory_space<vmem>>, %arg7: memref<64x128xbf16, #tpu.memory_space<vmem>>, %arg8: memref<1x64xf32, #tpu.memory_space<vmem>>, %arg9: memref<16x64xf32, #tpu.memory_space<vmem>>, %arg10: memref<1x64xf32, #tpu.memory_space<vmem>>, %arg11: memref<64x32xbf16, #tpu.memory_space<vmem>>, %arg12: memref<1x32xf32, #tpu.memory_space<vmem>>, %arg13: memref<1x32xf32, #tpu.memory_space<vmem>>, %arg14: memref<32x128xbf16, #tpu.memory_space<vmem>>, %arg15: memref<64x32xbf16, #tpu.memory_space<vmem>>, %arg16: memref<64x32xf32, #tpu.memory_space<vmem>>, %arg17: memref<64x64xf32, #tpu.memory_space<vmem>>) attributes {dimension_semantics = [#tpu.dimension_semantics<parallel>], iteration_bounds = array<i64: 2>, scalar_prefetch = 0 : i64, scratch_operands = 1 : i64, tpu.core_type = #tpu.core_type<tc>, window_params = [{transform_indices = @transform_0, window_bounds = array<i64: 64, 32>}, {pipeline_mode = #tpu.pipeline_mode<synchronous>, transform_indices = @transform_1, window_bounds = array<i64: 1, 32>}, {pipeline_mode = #tpu.pipeline_mode<synchronous>, transform_indices = @transform_2, window_bounds = array<i64: 1, 32>}, {pipeline_mode = #tpu.pipeline_mode<synchronous>, transform_indices = @transform_3, window_bounds = array<i64: 32, 128>}, {pipeline_mode = #tpu.pipeline_mode<synchronous>, transform_indices = @transform_4, window_bounds = array<i64: 4, 64>}, {pipeline_mode = #tpu.pipeline_mode<synchronous>, transform_indices = @transform_5, window_bounds = array<i64: 1, 64>}, {pipeline_mode = #tpu.pipeline_mode<synchronous>, transform_indices = @transform_6, window_bounds = array<i64: 64, 128>}, {pipeline_mode = #tpu.pipeline_mode<synchronous>, transform_indices = @transform_7, window_bounds = array<i64: 1, 64>}, {pipeline_mode = #tpu.pipeline_mode<synchronous>, transform_indices = @transform_8, window_bounds = array<i64: 16, 64>}, {pipeline_mode = #tpu.pipeline_mode<synchronous>, transform_indices = @transform_9, window_bounds = array<i64: 1, 64>}, {pipeline_mode = #tpu.pipeline_mode<synchronous>, transform_indices = @transform_10, window_bounds = array<i64: 64, 32>}, {pipeline_mode = #tpu.pipeline_mode<synchronous>, transform_indices = @transform_11, window_bounds = array<i64: 1, 32>}, {pipeline_mode = #tpu.pipeline_mode<synchronous>, transform_indices = @transform_12, window_bounds = array<i64: 1, 32>}, {pipeline_mode = #tpu.pipeline_mode<synchronous>, transform_indices = @transform_13, window_bounds = array<i64: 32, 128>}, {pipeline_mode = #tpu.pipeline_mode<synchronous>, transform_indices = @transform_14, window_bounds = array<i64: 64, 32>}, {transform_indices = @transform_15, window_bounds = array<i64: 64, 32>}]} {
    %c0 = arith.constant 0 : index
    %c0_0 = arith.constant 0 : index
    %0 = vector.load %arg1[%c0, %c0_0] : memref<64x32xf32, #tpu.memory_space<vmem>>, vector<64x32xf32>
    %c0_1 = arith.constant 0 : index
    %c0_2 = arith.constant 0 : index
    %1 = vector.load %arg2[%c0_1, %c0_2] : memref<1x32xf32, #tpu.memory_space<vmem>>, vector<1x32xf32>
    %c0_3 = arith.constant 0 : index
    %c0_4 = arith.constant 0 : index
    %2 = vector.load %arg3[%c0_3, %c0_4] : memref<1x32xf32, #tpu.memory_space<vmem>>, vector<1x32xf32>
    %cst = arith.constant dense<0.000000e+00> : vector<64xf32>
    %3 = vector.multi_reduction <add>, %0, %cst [1] : vector<64x32xf32> to vector<64xf32>
    %4 = vector.shape_cast %3 : vector<64xf32> to vector<64x1xf32>
    %cst_5 = arith.constant 3.200000e+01 : f32
    %5 = vector.broadcast %cst_5 : f32 to vector<64x1xf32>
    %6 = arith.divf %4, %5 : vector<64x1xf32>
    %7 = vector.broadcast %6 : vector<64x1xf32> to vector<64x32xf32>
    %8 = arith.subf %0, %7 : vector<64x32xf32>
    %9 = arith.mulf %8, %8 : vector<64x32xf32>
    %cst_6 = arith.constant dense<0.000000e+00> : vector<64xf32>
    %10 = vector.multi_reduction <add>, %9, %cst_6 [1] : vector<64x32xf32> to vector<64xf32>
    %11 = vector.shape_cast %10 : vector<64xf32> to vector<64x1xf32>
    %cst_7 = arith.constant 3.200000e+01 : f32
    %12 = vector.broadcast %cst_7 : f32 to vector<64x1xf32>
    %13 = arith.divf %11, %12 : vector<64x1xf32>
    %14 = vector.broadcast %6 : vector<64x1xf32> to vector<64x32xf32>
    %15 = arith.subf %0, %14 : vector<64x32xf32>
    %cst_8 = arith.constant 9.99999974E-6 : f32
    %16 = vector.broadcast %cst_8 : f32 to vector<64x1xf32>
    %17 = arith.addf %13, %16 : vector<64x1xf32>
    %18 = math.rsqrt %17 : vector<64x1xf32>
    %19 = vector.broadcast %18 : vector<64x1xf32> to vector<64x32xf32>
    %20 = arith.mulf %15, %19 : vector<64x32xf32>
    %21 = vector.broadcast %1 : vector<1x32xf32> to vector<64x32xf32>
    %22 = arith.mulf %20, %21 : vector<64x32xf32>
    %23 = vector.broadcast %2 : vector<1x32xf32> to vector<64x32xf32>
    %24 = arith.addf %22, %23 : vector<64x32xf32>
    %25 = arith.truncf %24 : vector<64x32xf32> to vector<64x32xbf16>
    %c0_9 = arith.constant 0 : index
    %c0_10 = arith.constant 0 : index
    %26 = vector.load %arg4[%c0_9, %c0_10] : memref<32x128xbf16, #tpu.memory_space<vmem>>, vector<32x128xbf16>
    %cst_11 = arith.constant dense<0.000000e+00> : vector<64x128xf32>
    %27 = tpu.matmul %25, %26, %cst_11 {dimension_numbers = #tpu.dot_dimension_numbers<[1], [0], [0], [1], [0, 0, 1, 1], [], []>} : vector<64x32xbf16>, vector<32x128xbf16>, vector<64x128xf32> -> vector<64x128xf32>
    %28 = vector.extract_strided_slice %27 {offsets = [0, 0], sizes = [64, 64], strides = [1, 1]} : vector<64x128xf32> to vector<64x64xf32>
    %29 = vector.extract_strided_slice %27 {offsets = [0, 64], sizes = [64, 64], strides = [1, 1]} : vector<64x128xf32> to vector<64x64xf32>
    %30 = tpu.iota {dimensions = array<i32: 0>} : vector<64x64xi32>
    %c7_i32 = arith.constant 7 : i32
    %31 = vector.broadcast %c7_i32 : i32 to vector<64x64xi32>
    %32 = arith.andi %30, %31 : vector<64x64xi32>
    %c0_12 = arith.constant 0 : index
    %c0_13 = arith.constant 0 : index
    %33 = vector.load %arg5[%c0_12, %c0_13] : memref<4x64xf32, #tpu.memory_space<vmem>>, vector<4x64xf32>
    %34 = vector.extract_strided_slice %33 {offsets = [3, 0], sizes = [1, 64], strides = [1, 1]} : vector<4x64xf32> to vector<1x64xf32>
    %35 = vector.broadcast %34 : vector<1x64xf32> to vector<64x64xf32>
    %36 = arith.mulf %28, %35 : vector<64x64xf32>
    %cst_14 = arith.constant 0.000000e+00 : f32
    %37 = vector.broadcast %cst_14 : f32 to vector<3x64xf32>
    %38 = vector.extract_strided_slice %28 {offsets = [0, 0], sizes = [61, 64], strides = [1, 1]} : vector<64x64xf32> to vector<61x64xf32>
    %39 = tpu.concatenate %37, %38 in 0 : vector<3x64xf32>, vector<61x64xf32> -> vector<64x64xf32>
    %c3_i32 = arith.constant 3 : i32
    %40 = vector.broadcast %c3_i32 : i32 to vector<64x64xi32>
    %41 = arith.cmpi sge, %32, %40 : vector<64x64xi32>
    %cst_15 = arith.constant 0.000000e+00 : f32
    %42 = vector.broadcast %cst_15 : f32 to vector<64x64xf32>
    %43 = arith.select %41, %39, %42 : vector<64x64xi1>, vector<64x64xf32>
    %44 = vector.extract_strided_slice %33 {offsets = [0, 0], sizes = [1, 64], strides = [1, 1]} : vector<4x64xf32> to vector<1x64xf32>
    %45 = vector.broadcast %44 : vector<1x64xf32> to vector<64x64xf32>
    %46 = arith.mulf %43, %45 : vector<64x64xf32>
    %47 = arith.addf %36, %46 : vector<64x64xf32>
    %cst_16 = arith.constant 0.000000e+00 : f32
    %48 = vector.broadcast %cst_16 : f32 to vector<2x64xf32>
    %49 = vector.extract_strided_slice %28 {offsets = [0, 0], sizes = [62, 64], strides = [1, 1]} : vector<64x64xf32> to vector<62x64xf32>
    %50 = tpu.concatenate %48, %49 in 0 : vector<2x64xf32>, vector<62x64xf32> -> vector<64x64xf32>
    %c2_i32 = arith.constant 2 : i32
    %51 = vector.broadcast %c2_i32 : i32 to vector<64x64xi32>
    %52 = arith.cmpi sge, %32, %51 : vector<64x64xi32>
    %cst_17 = arith.constant 0.000000e+00 : f32
    %53 = vector.broadcast %cst_17 : f32 to vector<64x64xf32>
    %54 = arith.select %52, %50, %53 : vector<64x64xi1>, vector<64x64xf32>
    %55 = vector.extract_strided_slice %33 {offsets = [1, 0], sizes = [1, 64], strides = [1, 1]} : vector<4x64xf32> to vector<1x64xf32>
    %56 = vector.broadcast %55 : vector<1x64xf32> to vector<64x64xf32>
    %57 = arith.mulf %54, %56 : vector<64x64xf32>
    %58 = arith.addf %47, %57 : vector<64x64xf32>
    %cst_18 = arith.constant 0.000000e+00 : f32
    %59 = vector.broadcast %cst_18 : f32 to vector<1x64xf32>
    %60 = vector.extract_strided_slice %28 {offsets = [0, 0], sizes = [63, 64], strides = [1, 1]} : vector<64x64xf32> to vector<63x64xf32>
    %61 = tpu.concatenate %59, %60 in 0 : vector<1x64xf32>, vector<63x64xf32> -> vector<64x64xf32>
    %c1_i32 = arith.constant 1 : i32
    %62 = vector.broadcast %c1_i32 : i32 to vector<64x64xi32>
    %63 = arith.cmpi sge, %32, %62 : vector<64x64xi32>
    %cst_19 = arith.constant 0.000000e+00 : f32
    %64 = vector.broadcast %cst_19 : f32 to vector<64x64xf32>
    %65 = arith.select %63, %61, %64 : vector<64x64xi1>, vector<64x64xf32>
    %66 = vector.extract_strided_slice %33 {offsets = [2, 0], sizes = [1, 64], strides = [1, 1]} : vector<4x64xf32> to vector<1x64xf32>
    %67 = vector.broadcast %66 : vector<1x64xf32> to vector<64x64xf32>
    %68 = arith.mulf %65, %67 : vector<64x64xf32>
    %69 = arith.addf %58, %68 : vector<64x64xf32>
    %c0_20 = arith.constant 0 : index
    %c0_21 = arith.constant 0 : index
    %70 = vector.load %arg6[%c0_20, %c0_21] : memref<1x64xf32, #tpu.memory_space<vmem>>, vector<1x64xf32>
    %71 = vector.broadcast %70 : vector<1x64xf32> to vector<64x64xf32>
    %72 = arith.addf %69, %71 : vector<64x64xf32>
    %cst_22 = arith.constant 5.000000e-01 : f32
    %73 = vector.broadcast %cst_22 : f32 to vector<64x64xf32>
    %74 = arith.mulf %73, %72 : vector<64x64xf32>
    %75 = math.tanh %74 : vector<64x64xf32>
    %cst_23 = arith.constant 1.000000e+00 : f32
    %76 = vector.broadcast %cst_23 : f32 to vector<64x64xf32>
    %77 = arith.addf %76, %75 : vector<64x64xf32>
    %cst_24 = arith.constant 5.000000e-01 : f32
    %78 = vector.broadcast %cst_24 : f32 to vector<64x64xf32>
    %79 = arith.mulf %78, %77 : vector<64x64xf32>
    %80 = arith.mulf %72, %79 : vector<64x64xf32>
    %81 = arith.truncf %80 : vector<64x64xf32> to vector<64x64xbf16>
    %c0_25 = arith.constant 0 : index
    %c0_26 = arith.constant 0 : index
    %82 = vector.load %arg7[%c0_25, %c0_26] : memref<64x128xbf16, #tpu.memory_space<vmem>>, vector<64x128xbf16>
    %cst_27 = arith.constant dense<0.000000e+00> : vector<64x128xf32>
    %83 = tpu.matmul %81, %82, %cst_27 {dimension_numbers = #tpu.dot_dimension_numbers<[1], [0], [0], [1], [0, 0, 1, 1], [], []>} : vector<64x64xbf16>, vector<64x128xbf16>, vector<64x128xf32> -> vector<64x128xf32>
    %84 = vector.extract_strided_slice %83 {offsets = [0, 0], sizes = [64, 64], strides = [1, 1]} : vector<64x128xf32> to vector<64x64xf32>
    %c0_28 = arith.constant 0 : index
    %c0_29 = arith.constant 0 : index
    %85 = vector.load %arg8[%c0_28, %c0_29] : memref<1x64xf32, #tpu.memory_space<vmem>>, vector<1x64xf32>
    %86 = vector.broadcast %85 : vector<1x64xf32> to vector<64x64xf32>
    %87 = arith.addf %84, %86 : vector<64x64xf32>
    %cst_30 = arith.constant 2.000000e+01 : f32
    %88 = vector.broadcast %cst_30 : f32 to vector<64x64xf32>
    %89 = arith.cmpf ogt, %87, %88 : vector<64x64xf32>
    %cst_31 = arith.constant 2.000000e+01 : f32
    %90 = vector.broadcast %cst_31 : f32 to vector<64x64xf32>
    %91 = arith.minimumf %87, %90 : vector<64x64xf32>
    %92 = math.exp %91 : vector<64x64xf32>
    %cst_32 = arith.constant 1.000000e+00 : f32
    %93 = vector.broadcast %cst_32 : f32 to vector<64x64xf32>
    %94 = arith.addf %93, %92 : vector<64x64xf32>
    %95 = math.log %94 : vector<64x64xf32>
    %96 = arith.select %89, %87, %95 : vector<64x64xi1>, vector<64x64xf32>
    %97 = vector.extract_strided_slice %83 {offsets = [0, 64], sizes = [64, 16], strides = [1, 1]} : vector<64x128xf32> to vector<64x16xf32>
    %98 = vector.extract_strided_slice %83 {offsets = [0, 80], sizes = [64, 16], strides = [1, 1]} : vector<64x128xf32> to vector<64x16xf32>
    %99 = arith.mulf %96, %80 : vector<64x64xf32>
    %c0_33 = arith.constant 0 : index
    %c0_34 = arith.constant 0 : index
    %100 = vector.load %arg9[%c0_33, %c0_34] : memref<16x64xf32, #tpu.memory_space<vmem>>, vector<16x64xf32>
    %cst_35 = arith.constant 0.000000e+00 : f32
    %101 = vector.broadcast %cst_35 : f32 to vector<16x64xf32>
    %102 = vector.extract_strided_slice %96 {offsets = [0, 0], sizes = [1, 64], strides = [1, 1]} : vector<64x64xf32> to vector<1x64xf32>
    %103 = vector.broadcast %102 : vector<1x64xf32> to vector<16x64xf32>
    %104 = arith.mulf %103, %100 : vector<16x64xf32>
    %105 = math.exp %104 : vector<16x64xf32>
    %106 = vector.extract_strided_slice %99 {offsets = [0, 0], sizes = [1, 64], strides = [1, 1]} : vector<64x64xf32> to vector<1x64xf32>
    %107 = vector.shape_cast %106 : vector<1x64xf32> to vector<1x1x64xf32>
    %108 = vector.extract_strided_slice %97 {offsets = [0, 0], sizes = [1, 16], strides = [1, 1]} : vector<64x16xf32> to vector<1x16xf32>
    %109 = vector.shape_cast %108 : vector<1x16xf32> to vector<1x16x1xf32>
    %110 = vector.broadcast %107 : vector<1x1x64xf32> to vector<1x16x64xf32>
    %111 = vector.broadcast %109 : vector<1x16x1xf32> to vector<1x16x64xf32>
    %112 = arith.mulf %110, %111 : vector<1x16x64xf32>
    %113 = vector.shape_cast %112 : vector<1x16x64xf32> to vector<16x64xf32>
    %114 = vector.extract_strided_slice %98 {offsets = [0, 0], sizes = [1, 16], strides = [1, 1]} : vector<64x16xf32> to vector<1x16xf32>
    %115 = vector.shape_cast %114 : vector<1x16xf32> to vector<1x16x1xf32>
    %116 = vector.shape_cast %115 : vector<1x16x1xf32> to vector<16x1xf32>
    %117 = arith.mulf %101, %105 : vector<16x64xf32>
    %118 = arith.addf %117, %113 : vector<16x64xf32>
    %119 = vector.broadcast %116 : vector<16x1xf32> to vector<16x64xf32>
    %120 = arith.mulf %118, %119 : vector<16x64xf32>
    %cst_36 = arith.constant dense<0.000000e+00> : vector<64xf32>
    %121 = vector.multi_reduction <add>, %120, %cst_36 [0] : vector<16x64xf32> to vector<64xf32>
    %122 = vector.shape_cast %121 : vector<64xf32> to vector<1x64xf32>
    %c0_37 = arith.constant 0 : index
    %c0_38 = arith.constant 0 : index
    %123 = vector.load %arg17[%c0_37, %c0_38] : memref<64x64xf32, #tpu.memory_space<vmem>>, vector<1x64xf32>
    tpu.vector_store %arg17[%c0_37, %c0_38], %122 {strides = array<i32>} : memref<64x64xf32, #tpu.memory_space<vmem>>, vector<1x64xf32>,
    %124 = vector.extract_strided_slice %96 {offsets = [1, 0], sizes = [1, 64], strides = [1, 1]} : vector<64x64xf32> to vector<1x64xf32>
    %125 = vector.broadcast %124 : vector<1x64xf32> to vector<16x64xf32>
    %126 = arith.mulf %125, %100 : vector<16x64xf32>
    %127 = math.exp %126 : vector<16x64xf32>
    %128 = vector.extract_strided_slice %99 {offsets = [1, 0], sizes = [1, 64], strides = [1, 1]} : vector<64x64xf32> to vector<1x64xf32>
    %129 = vector.shape_cast %128 : vector<1x64xf32> to vector<1x1x64xf32>
    %130 = vector.extract_strided_slice %97 {offsets = [1, 0], sizes = [1, 16], strides = [1, 1]} : vector<64x16xf32> to vector<1x16xf32>
    %131 = vector.shape_cast %130 : vector<1x16xf32> to vector<1x16x1xf32>
    %132 = vector.broadcast %129 : vector<1x1x64xf32> to vector<1x16x64xf32>
    %133 = vector.broadcast %131 : vector<1x16x1xf32> to vector<1x16x64xf32>
    %134 = arith.mulf %132, %133 : vector<1x16x64xf32>
    %135 = vector.shape_cast %134 : vector<1x16x64xf32> to vector<16x64xf32>
    %136 = vector.extract_strided_slice %98 {offsets = [1, 0], sizes = [1, 16], strides = [1, 1]} : vector<64x16xf32> to vector<1x16xf32>
    %137 = vector.shape_cast %136 : vector<1x16xf32> to vector<1x16x1xf32>
    %138 = vector.shape_cast %137 : vector<1x16x1xf32> to vector<16x1xf32>
    %139 = arith.mulf %118, %127 : vector<16x64xf32>
    %140 = arith.addf %139, %135 : vector<16x64xf32>
    %141 = vector.broadcast %138 : vector<16x1xf32> to vector<16x64xf32>
    %142 = arith.mulf %140, %141 : vector<16x64xf32>
    %cst_39 = arith.constant dense<0.000000e+00> : vector<64xf32>
    %143 = vector.multi_reduction <add>, %142, %cst_39 [0] : vector<16x64xf32> to vector<64xf32>
    %144 = vector.shape_cast %143 : vector<64xf32> to vector<1x64xf32>
    %c1 = arith.constant 1 : index
    %c0_40 = arith.constant 0 : index
    %145 = vector.load %arg17[%c1, %c0_40] : memref<64x64xf32, #tpu.memory_space<vmem>>, vector<1x64xf32>
    tpu.vector_store %arg17[%c1, %c0_40], %144 {strides = array<i32>} : memref<64x64xf32, #tpu.memory_space<vmem>>, vector<1x64xf32>,
    %146 = vector.extract_strided_slice %96 {offsets = [2, 0], sizes = [1, 64], strides = [1, 1]} : vector<64x64xf32> to vector<1x64xf32>
    %147 = vector.broadcast %146 : vector<1x64xf32> to vector<16x64xf32>
    %148 = arith.mulf %147, %100 : vector<16x64xf32>
    %149 = math.exp %148 : vector<16x64xf32>
    %150 = vector.extract_strided_slice %99 {offsets = [2, 0], sizes = [1, 64], strides = [1, 1]} : vector<64x64xf32> to vector<1x64xf32>
    %151 = vector.shape_cast %150 : vector<1x64xf32> to vector<1x1x64xf32>
    %152 = vector.extract_strided_slice %97 {offsets = [2, 0], sizes = [1, 16], strides = [1, 1]} : vector<64x16xf32> to vector<1x16xf32>
    %153 = vector.shape_cast %152 : vector<1x16xf32> to vector<1x16x1xf32>
    %154 = vector.broadcast %151 : vector<1x1x64xf32> to vector<1x16x64xf32>
    %155 = vector.broadcast %153 : vector<1x16x1xf32> to vector<1x16x64xf32>
    %156 = arith.mulf %154, %155 : vector<1x16x64xf32>
    %157 = vector.shape_cast %156 : vector<1x16x64xf32> to vector<16x64xf32>
    %158 = vector.extract_strided_slice %98 {offsets = [2, 0], sizes = [1, 16], strides = [1, 1]} : vector<64x16xf32> to vector<1x16xf32>
    %159 = vector.shape_cast %158 : vector<1x16xf32> to vector<1x16x1xf32>
    %160 = vector.shape_cast %159 : vector<1x16x1xf32> to vector<16x1xf32>
    %161 = arith.mulf %140, %149 : vector<16x64xf32>
    %162 = arith.addf %161, %157 : vector<16x64xf32>
    %163 = vector.broadcast %160 : vector<16x1xf32> to vector<16x64xf32>
    %164 = arith.mulf %162, %163 : vector<16x64xf32>
    %cst_41 = arith.constant dense<0.000000e+00> : vector<64xf32>
    %165 = vector.multi_reduction <add>, %164, %cst_41 [0] : vector<16x64xf32> to vector<64xf32>
    %166 = vector.shape_cast %165 : vector<64xf32> to vector<1x64xf32>
    %c2 = arith.constant 2 : index
    %c0_42 = arith.constant 0 : index
    %167 = vector.load %arg17[%c2, %c0_42] : memref<64x64xf32, #tpu.memory_space<vmem>>, vector<1x64xf32>
    tpu.vector_store %arg17[%c2, %c0_42], %166 {strides = array<i32>} : memref<64x64xf32, #tpu.memory_space<vmem>>, vector<1x64xf32>,
    %168 = vector.extract_strided_slice %96 {offsets = [3, 0], sizes = [1, 64], strides = [1, 1]} : vector<64x64xf32> to vector<1x64xf32>
    %169 = vector.broadcast %168 : vector<1x64xf32> to vector<16x64xf32>
    %170 = arith.mulf %169, %100 : vector<16x64xf32>
    %171 = math.exp %170 : vector<16x64xf32>
    %172 = vector.extract_strided_slice %99 {offsets = [3, 0], sizes = [1, 64], strides = [1, 1]} : vector<64x64xf32> to vector<1x64xf32>
    %173 = vector.shape_cast %172 : vector<1x64xf32> to vector<1x1x64xf32>
    %174 = vector.extract_strided_slice %97 {offsets = [3, 0], sizes = [1, 16], strides = [1, 1]} : vector<64x16xf32> to vector<1x16xf32>
    %175 = vector.shape_cast %174 : vector<1x16xf32> to vector<1x16x1xf32>
    %176 = vector.broadcast %173 : vector<1x1x64xf32> to vector<1x16x64xf32>
    %177 = vector.broadcast %175 : vector<1x16x1xf32> to vector<1x16x64xf32>
    %178 = arith.mulf %176, %177 : vector<1x16x64xf32>
    %179 = vector.shape_cast %178 : vector<1x16x64xf32> to vector<16x64xf32>
    %180 = vector.extract_strided_slice %98 {offsets = [3, 0], sizes = [1, 16], strides = [1, 1]} : vector<64x16xf32> to vector<1x16xf32>
    %181 = vector.shape_cast %180 : vector<1x16xf32> to vector<1x16x1xf32>
    %182 = vector.shape_cast %181 : vector<1x16x1xf32> to vector<16x1xf32>
    %183 = arith.mulf %162, %171 : vector<16x64xf32>
    %184 = arith.addf %183, %179 : vector<16x64xf32>
    %185 = vector.broadcast %182 : vector<16x1xf32> to vector<16x64xf32>
    %186 = arith.mulf %184, %185 : vector<16x64xf32>
    %cst_43 = arith.constant dense<0.000000e+00> : vector<64xf32>
    %187 = vector.multi_reduction <add>, %186, %cst_43 [0] : vector<16x64xf32> to vector<64xf32>
    %188 = vector.shape_cast %187 : vector<64xf32> to vector<1x64xf32>
    %c3 = arith.constant 3 : index
    %c0_44 = arith.constant 0 : index
    %189 = vector.load %arg17[%c3, %c0_44] : memref<64x64xf32, #tpu.memory_space<vmem>>, vector<1x64xf32>
    tpu.vector_store %arg17[%c3, %c0_44], %188 {strides = array<i32>} : memref<64x64xf32, #tpu.memory_space<vmem>>, vector<1x64xf32>,
    %190 = vector.extract_strided_slice %96 {offsets = [4, 0], sizes = [1, 64], strides = [1, 1]} : vector<64x64xf32> to vector<1x64xf32>
    %191 = vector.broadcast %190 : vector<1x64xf32> to vector<16x64xf32>
    %192 = arith.mulf %191, %100 : vector<16x64xf32>
    %193 = math.exp %192 : vector<16x64xf32>
    %194 = vector.extract_strided_slice %99 {offsets = [4, 0], sizes = [1, 64], strides = [1, 1]} : vector<64x64xf32> to vector<1x64xf32>
    %195 = vector.shape_cast %194 : vector<1x64xf32> to vector<1x1x64xf32>
    %196 = vector.extract_strided_slice %97 {offsets = [4, 0], sizes = [1, 16], strides = [1, 1]} : vector<64x16xf32> to vector<1x16xf32>
    %197 = vector.shape_cast %196 : vector<1x16xf32> to vector<1x16x1xf32>
    %198 = vector.broadcast %195 : vector<1x1x64xf32> to vector<1x16x64xf32>
    %199 = vector.broadcast %197 : vector<1x16x1xf32> to vector<1x16x64xf32>
    %200 = arith.mulf %198, %199 : vector<1x16x64xf32>
    %201 = vector.shape_cast %200 : vector<1x16x64xf32> to vector<16x64xf32>
    %202 = vector.extract_strided_slice %98 {offsets = [4, 0], sizes = [1, 16], strides = [1, 1]} : vector<64x16xf32> to vector<1x16xf32>
    %203 = vector.shape_cast %202 : vector<1x16xf32> to vector<1x16x1xf32>
    %204 = vector.shape_cast %203 : vector<1x16x1xf32> to vector<16x1xf32>
    %205 = arith.mulf %184, %193 : vector<16x64xf32>
    %206 = arith.addf %205, %201 : vector<16x64xf32>
    %207 = vector.broadcast %204 : vector<16x1xf32> to vector<16x64xf32>
    %208 = arith.mulf %206, %207 : vector<16x64xf32>
    %cst_45 = arith.constant dense<0.000000e+00> : vector<64xf32>
    %209 = vector.multi_reduction <add>, %208, %cst_45 [0] : vector<16x64xf32> to vector<64xf32>
    %210 = vector.shape_cast %209 : vector<64xf32> to vector<1x64xf32>
    %c4 = arith.constant 4 : index
    %c0_46 = arith.constant 0 : index
    %211 = vector.load %arg17[%c4, %c0_46] : memref<64x64xf32, #tpu.memory_space<vmem>>, vector<1x64xf32>
    tpu.vector_store %arg17[%c4, %c0_46], %210 {strides = array<i32>} : memref<64x64xf32, #tpu.memory_space<vmem>>, vector<1x64xf32>,
    %212 = vector.extract_strided_slice %96 {offsets = [5, 0], sizes = [1, 64], strides = [1, 1]} : vector<64x64xf32> to vector<1x64xf32>
    %213 = vector.broadcast %212 : vector<1x64xf32> to vector<16x64xf32>
    %214 = arith.mulf %213, %100 : vector<16x64xf32>
    %215 = math.exp %214 : vector<16x64xf32>
    %216 = vector.extract_strided_slice %99 {offsets = [5, 0], sizes = [1, 64], strides = [1, 1]} : vector<64x64xf32> to vector<1x64xf32>
    %217 = vector.shape_cast %216 : vector<1x64xf32> to vector<1x1x64xf32>
    %218 = vector.extract_strided_slice %97 {offsets = [5, 0], sizes = [1, 16], strides = [1, 1]} : vector<64x16xf32> to vector<1x16xf32>
    %219 = vector.shape_cast %218 : vector<1x16xf32> to vector<1x16x1xf32>
    %220 = vector.broadcast %217 : vector<1x1x64xf32> to vector<1x16x64xf32>
    %221 = vector.broadcast %219 : vector<1x16x1xf32> to vector<1x16x64xf32>
    %222 = arith.mulf %220, %221 : vector<1x16x64xf32>
    %223 = vector.shape_cast %222 : vector<1x16x64xf32> to vector<16x64xf32>
    %224 = vector.extract_strided_slice %98 {offsets = [5, 0], sizes = [1, 16], strides = [1, 1]} : vector<64x16xf32> to vector<1x16xf32>
    %225 = vector.shape_cast %224 : vector<1x16xf32> to vector<1x16x1xf32>
    %226 = vector.shape_cast %225 : vector<1x16x1xf32> to vector<16x1xf32>
    %227 = arith.mulf %206, %215 : vector<16x64xf32>
    %228 = arith.addf %227, %223 : vector<16x64xf32>
    %229 = vector.broadcast %226 : vector<16x1xf32> to vector<16x64xf32>
    %230 = arith.mulf %228, %229 : vector<16x64xf32>
    %cst_47 = arith.constant dense<0.000000e+00> : vector<64xf32>
    %231 = vector.multi_reduction <add>, %230, %cst_47 [0] : vector<16x64xf32> to vector<64xf32>
    %232 = vector.shape_cast %231 : vector<64xf32> to vector<1x64xf32>
    %c5 = arith.constant 5 : index
    %c0_48 = arith.constant 0 : index
    %233 = vector.load %arg17[%c5, %c0_48] : memref<64x64xf32, #tpu.memory_space<vmem>>, vector<1x64xf32>
    tpu.vector_store %arg17[%c5, %c0_48], %232 {strides = array<i32>} : memref<64x64xf32, #tpu.memory_space<vmem>>, vector<1x64xf32>,
    %234 = vector.extract_strided_slice %96 {offsets = [6, 0], sizes = [1, 64], strides = [1, 1]} : vector<64x64xf32> to vector<1x64xf32>
    %235 = vector.broadcast %234 : vector<1x64xf32> to vector<16x64xf32>
    %236 = arith.mulf %235, %100 : vector<16x64xf32>
    %237 = math.exp %236 : vector<16x64xf32>
    %238 = vector.extract_strided_slice %99 {offsets = [6, 0], sizes = [1, 64], strides = [1, 1]} : vector<64x64xf32> to vector<1x64xf32>
    %239 = vector.shape_cast %238 : vector<1x64xf32> to vector<1x1x64xf32>
    %240 = vector.extract_strided_slice %97 {offsets = [6, 0], sizes = [1, 16], strides = [1, 1]} : vector<64x16xf32> to vector<1x16xf32>
    %241 = vector.shape_cast %240 : vector<1x16xf32> to vector<1x16x1xf32>
    %242 = vector.broadcast %239 : vector<1x1x64xf32> to vector<1x16x64xf32>
    %243 = vector.broadcast %241 : vector<1x16x1xf32> to vector<1x16x64xf32>
    %244 = arith.mulf %242, %243 : vector<1x16x64xf32>
    %245 = vector.shape_cast %244 : vector<1x16x64xf32> to vector<16x64xf32>
    %246 = vector.extract_strided_slice %98 {offsets = [6, 0], sizes = [1, 16], strides = [1, 1]} : vector<64x16xf32> to vector<1x16xf32>
    %247 = vector.shape_cast %246 : vector<1x16xf32> to vector<1x16x1xf32>
    %248 = vector.shape_cast %247 : vector<1x16x1xf32> to vector<16x1xf32>
    %249 = arith.mulf %228, %237 : vector<16x64xf32>
    %250 = arith.addf %249, %245 : vector<16x64xf32>
    %251 = vector.broadcast %248 : vector<16x1xf32> to vector<16x64xf32>
    %252 = arith.mulf %250, %251 : vector<16x64xf32>
    %cst_49 = arith.constant dense<0.000000e+00> : vector<64xf32>
    %253 = vector.multi_reduction <add>, %252, %cst_49 [0] : vector<16x64xf32> to vector<64xf32>
    %254 = vector.shape_cast %253 : vector<64xf32> to vector<1x64xf32>
    %c6 = arith.constant 6 : index
    %c0_50 = arith.constant 0 : index
    %255 = vector.load %arg17[%c6, %c0_50] : memref<64x64xf32, #tpu.memory_space<vmem>>, vector<1x64xf32>
    tpu.vector_store %arg17[%c6, %c0_50], %254 {strides = array<i32>} : memref<64x64xf32, #tpu.memory_space<vmem>>, vector<1x64xf32>,
    %256 = vector.extract_strided_slice %96 {offsets = [7, 0], sizes = [1, 64], strides = [1, 1]} : vector<64x64xf32> to vector<1x64xf32>
    %257 = vector.broadcast %256 : vector<1x64xf32> to vector<16x64xf32>
    %258 = arith.mulf %257, %100 : vector<16x64xf32>
    %259 = math.exp %258 : vector<16x64xf32>
    %260 = vector.extract_strided_slice %99 {offsets = [7, 0], sizes = [1, 64], strides = [1, 1]} : vector<64x64xf32> to vector<1x64xf32>
    %261 = vector.shape_cast %260 : vector<1x64xf32> to vector<1x1x64xf32>
    %262 = vector.extract_strided_slice %97 {offsets = [7, 0], sizes = [1, 16], strides = [1, 1]} : vector<64x16xf32> to vector<1x16xf32>
    %263 = vector.shape_cast %262 : vector<1x16xf32> to vector<1x16x1xf32>
    %264 = vector.broadcast %261 : vector<1x1x64xf32> to vector<1x16x64xf32>
    %265 = vector.broadcast %263 : vector<1x16x1xf32> to vector<1x16x64xf32>
    %266 = arith.mulf %264, %265 : vector<1x16x64xf32>
    %267 = vector.shape_cast %266 : vector<1x16x64xf32> to vector<16x64xf32>
    %268 = vector.extract_strided_slice %98 {offsets = [7, 0], sizes = [1, 16], strides = [1, 1]} : vector<64x16xf32> to vector<1x16xf32>
    %269 = vector.shape_cast %268 : vector<1x16xf32> to vector<1x16x1xf32>
    %270 = vector.shape_cast %269 : vector<1x16x1xf32> to vector<16x1xf32>
    %271 = arith.mulf %250, %259 : vector<16x64xf32>
    %272 = arith.addf %271, %267 : vector<16x64xf32>
    %273 = vector.broadcast %270 : vector<16x1xf32> to vector<16x64xf32>
    %274 = arith.mulf %272, %273 : vector<16x64xf32>
    %cst_51 = arith.constant dense<0.000000e+00> : vector<64xf32>
    %275 = vector.multi_reduction <add>, %274, %cst_51 [0] : vector<16x64xf32> to vector<64xf32>
    %276 = vector.shape_cast %275 : vector<64xf32> to vector<1x64xf32>
    %c7 = arith.constant 7 : index
    %c0_52 = arith.constant 0 : index
    %277 = vector.load %arg17[%c7, %c0_52] : memref<64x64xf32, #tpu.memory_space<vmem>>, vector<1x64xf32>
    tpu.vector_store %arg17[%c7, %c0_52], %276 {strides = array<i32>} : memref<64x64xf32, #tpu.memory_space<vmem>>, vector<1x64xf32>,
    %cst_53 = arith.constant 0.000000e+00 : f32
    %278 = vector.broadcast %cst_53 : f32 to vector<16x64xf32>
    %279 = vector.extract_strided_slice %96 {offsets = [8, 0], sizes = [1, 64], strides = [1, 1]} : vector<64x64xf32> to vector<1x64xf32>
    %280 = vector.broadcast %279 : vector<1x64xf32> to vector<16x64xf32>
    %281 = arith.mulf %280, %100 : vector<16x64xf32>
    %282 = math.exp %281 : vector<16x64xf32>
    %283 = vector.extract_strided_slice %99 {offsets = [8, 0], sizes = [1, 64], strides = [1, 1]} : vector<64x64xf32> to vector<1x64xf32>
    %284 = vector.shape_cast %283 : vector<1x64xf32> to vector<1x1x64xf32>
    %285 = vector.extract_strided_slice %97 {offsets = [8, 0], sizes = [1, 16], strides = [1, 1]} : vector<64x16xf32> to vector<1x16xf32>
    %286 = vector.shape_cast %285 : vector<1x16xf32> to vector<1x16x1xf32>
    %287 = vector.broadcast %284 : vector<1x1x64xf32> to vector<1x16x64xf32>
    %288 = vector.broadcast %286 : vector<1x16x1xf32> to vector<1x16x64xf32>
    %289 = arith.mulf %287, %288 : vector<1x16x64xf32>
    %290 = vector.shape_cast %289 : vector<1x16x64xf32> to vector<16x64xf32>
    %291 = vector.extract_strided_slice %98 {offsets = [8, 0], sizes = [1, 16], strides = [1, 1]} : vector<64x16xf32> to vector<1x16xf32>
    %292 = vector.shape_cast %291 : vector<1x16xf32> to vector<1x16x1xf32>
    %293 = vector.shape_cast %292 : vector<1x16x1xf32> to vector<16x1xf32>
    %294 = arith.mulf %278, %282 : vector<16x64xf32>
    %295 = arith.addf %294, %290 : vector<16x64xf32>
    %296 = vector.broadcast %293 : vector<16x1xf32> to vector<16x64xf32>
    %297 = arith.mulf %295, %296 : vector<16x64xf32>
    %cst_54 = arith.constant dense<0.000000e+00> : vector<64xf32>
    %298 = vector.multi_reduction <add>, %297, %cst_54 [0] : vector<16x64xf32> to vector<64xf32>
    %299 = vector.shape_cast %298 : vector<64xf32> to vector<1x64xf32>
    %c8 = arith.constant 8 : index
    %c0_55 = arith.constant 0 : index
    %300 = vector.load %arg17[%c8, %c0_55] : memref<64x64xf32, #tpu.memory_space<vmem>>, vector<1x64xf32>
    tpu.vector_store %arg17[%c8, %c0_55], %299 {strides = array<i32>} : memref<64x64xf32, #tpu.memory_space<vmem>>, vector<1x64xf32>,
    %301 = vector.extract_strided_slice %96 {offsets = [9, 0], sizes = [1, 64], strides = [1, 1]} : vector<64x64xf32> to vector<1x64xf32>
    %302 = vector.broadcast %301 : vector<1x64xf32> to vector<16x64xf32>
    %303 = arith.mulf %302, %100 : vector<16x64xf32>
    %304 = math.exp %303 : vector<16x64xf32>
    %305 = vector.extract_strided_slice %99 {offsets = [9, 0], sizes = [1, 64], strides = [1, 1]} : vector<64x64xf32> to vector<1x64xf32>
    %306 = vector.shape_cast %305 : vector<1x64xf32> to vector<1x1x64xf32>
    %307 = vector.extract_strided_slice %97 {offsets = [9, 0], sizes = [1, 16], strides = [1, 1]} : vector<64x16xf32> to vector<1x16xf32>
    %308 = vector.shape_cast %307 : vector<1x16xf32> to vector<1x16x1xf32>
    %309 = vector.broadcast %306 : vector<1x1x64xf32> to vector<1x16x64xf32>
    %310 = vector.broadcast %308 : vector<1x16x1xf32> to vector<1x16x64xf32>
    %311 = arith.mulf %309, %310 : vector<1x16x64xf32>
    %312 = vector.shape_cast %311 : vector<1x16x64xf32> to vector<16x64xf32>
    %313 = vector.extract_strided_slice %98 {offsets = [9, 0], sizes = [1, 16], strides = [1, 1]} : vector<64x16xf32> to vector<1x16xf32>
    %314 = vector.shape_cast %313 : vector<1x16xf32> to vector<1x16x1xf32>
    %315 = vector.shape_cast %314 : vector<1x16x1xf32> to vector<16x1xf32>
    %316 = arith.mulf %295, %304 : vector<16x64xf32>
    %317 = arith.addf %316, %312 : vector<16x64xf32>
    %318 = vector.broadcast %315 : vector<16x1xf32> to vector<16x64xf32>
    %319 = arith.mulf %317, %318 : vector<16x64xf32>
    %cst_56 = arith.constant dense<0.000000e+00> : vector<64xf32>
    %320 = vector.multi_reduction <add>, %319, %cst_56 [0] : vector<16x64xf32> to vector<64xf32>
    %321 = vector.shape_cast %320 : vector<64xf32> to vector<1x64xf32>
    %c9 = arith.constant 9 : index
    %c0_57 = arith.constant 0 : index
    %322 = vector.load %arg17[%c9, %c0_57] : memref<64x64xf32, #tpu.memory_space<vmem>>, vector<1x64xf32>
    tpu.vector_store %arg17[%c9, %c0_57], %321 {strides = array<i32>} : memref<64x64xf32, #tpu.memory_space<vmem>>, vector<1x64xf32>,
    %323 = vector.extract_strided_slice %96 {offsets = [10, 0], sizes = [1, 64], strides = [1, 1]} : vector<64x64xf32> to vector<1x64xf32>
    %324 = vector.broadcast %323 : vector<1x64xf32> to vector<16x64xf32>
    %325 = arith.mulf %324, %100 : vector<16x64xf32>
    %326 = math.exp %325 : vector<16x64xf32>
    %327 = vector.extract_strided_slice %99 {offsets = [10, 0], sizes = [1, 64], strides = [1, 1]} : vector<64x64xf32> to vector<1x64xf32>
    %328 = vector.shape_cast %327 : vector<1x64xf32> to vector<1x1x64xf32>
    %329 = vector.extract_strided_slice %97 {offsets = [10, 0], sizes = [1, 16], strides = [1, 1]} : vector<64x16xf32> to vector<1x16xf32>
    %330 = vector.shape_cast %329 : vector<1x16xf32> to vector<1x16x1xf32>
    %331 = vector.broadcast %328 : vector<1x1x64xf32> to vector<1x16x64xf32>
    %332 = vector.broadcast %330 : vector<1x16x1xf32> to vector<1x16x64xf32>
    %333 = arith.mulf %331, %332 : vector<1x16x64xf32>
    %334 = vector.shape_cast %333 : vector<1x16x64xf32> to vector<16x64xf32>
    %335 = vector.extract_strided_slice %98 {offsets = [10, 0], sizes = [1, 16], strides = [1, 1]} : vector<64x16xf32> to vector<1x16xf32>
    %336 = vector.shape_cast %335 : vector<1x16xf32> to vector<1x16x1xf32>
    %337 = vector.shape_cast %336 : vector<1x16x1xf32> to vector<16x1xf32>
    %338 = arith.mulf %317, %326 : vector<16x64xf32>
    %339 = arith.addf %338, %334 : vector<16x64xf32>
    %340 = vector.broadcast %337 : vector<16x1xf32> to vector<16x64xf32>
    %341 = arith.mulf %339, %340 : vector<16x64xf32>
    %cst_58 = arith.constant dense<0.000000e+00> : vector<64xf32>
    %342 = vector.multi_reduction <add>, %341, %cst_58 [0] : vector<16x64xf32> to vector<64xf32>
    %343 = vector.shape_cast %342 : vector<64xf32> to vector<1x64xf32>
    %c10 = arith.constant 10 : index
    %c0_59 = arith.constant 0 : index
    %344 = vector.load %arg17[%c10, %c0_59] : memref<64x64xf32, #tpu.memory_space<vmem>>, vector<1x64xf32>
    tpu.vector_store %arg17[%c10, %c0_59], %343 {strides = array<i32>} : memref<64x64xf32, #tpu.memory_space<vmem>>, vector<1x64xf32>,
    %345 = vector.extract_strided_slice %96 {offsets = [11, 0], sizes = [1, 64], strides = [1, 1]} : vector<64x64xf32> to vector<1x64xf32>
    %346 = vector.broadcast %345 : vector<1x64xf32> to vector<16x64xf32>
    %347 = arith.mulf %346, %100 : vector<16x64xf32>
    %348 = math.exp %347 : vector<16x64xf32>
    %349 = vector.extract_strided_slice %99 {offsets = [11, 0], sizes = [1, 64], strides = [1, 1]} : vector<64x64xf32> to vector<1x64xf32>
    %350 = vector.shape_cast %349 : vector<1x64xf32> to vector<1x1x64xf32>
    %351 = vector.extract_strided_slice %97 {offsets = [11, 0], sizes = [1, 16], strides = [1, 1]} : vector<64x16xf32> to vector<1x16xf32>
    %352 = vector.shape_cast %351 : vector<1x16xf32> to vector<1x16x1xf32>
    %353 = vector.broadcast %350 : vector<1x1x64xf32> to vector<1x16x64xf32>
    %354 = vector.broadcast %352 : vector<1x16x1xf32> to vector<1x16x64xf32>
    %355 = arith.mulf %353, %354 : vector<1x16x64xf32>
    %356 = vector.shape_cast %355 : vector<1x16x64xf32> to vector<16x64xf32>
    %357 = vector.extract_strided_slice %98 {offsets = [11, 0], sizes = [1, 16], strides = [1, 1]} : vector<64x16xf32> to vector<1x16xf32>
    %358 = vector.shape_cast %357 : vector<1x16xf32> to vector<1x16x1xf32>
    %359 = vector.shape_cast %358 : vector<1x16x1xf32> to vector<16x1xf32>
    %360 = arith.mulf %339, %348 : vector<16x64xf32>
    %361 = arith.addf %360, %356 : vector<16x64xf32>
    %362 = vector.broadcast %359 : vector<16x1xf32> to vector<16x64xf32>
    %363 = arith.mulf %361, %362 : vector<16x64xf32>
    %cst_60 = arith.constant dense<0.000000e+00> : vector<64xf32>
    %364 = vector.multi_reduction <add>, %363, %cst_60 [0] : vector<16x64xf32> to vector<64xf32>
    %365 = vector.shape_cast %364 : vector<64xf32> to vector<1x64xf32>
    %c11 = arith.constant 11 : index
    %c0_61 = arith.constant 0 : index
    %366 = vector.load %arg17[%c11, %c0_61] : memref<64x64xf32, #tpu.memory_space<vmem>>, vector<1x64xf32>
    tpu.vector_store %arg17[%c11, %c0_61], %365 {strides = array<i32>} : memref<64x64xf32, #tpu.memory_space<vmem>>, vector<1x64xf32>,
    %367 = vector.extract_strided_slice %96 {offsets = [12, 0], sizes = [1, 64], strides = [1, 1]} : vector<64x64xf32> to vector<1x64xf32>
    %368 = vector.broadcast %367 : vector<1x64xf32> to vector<16x64xf32>
    %369 = arith.mulf %368, %100 : vector<16x64xf32>
    %370 = math.exp %369 : vector<16x64xf32>
    %371 = vector.extract_strided_slice %99 {offsets = [12, 0], sizes = [1, 64], strides = [1, 1]} : vector<64x64xf32> to vector<1x64xf32>
    %372 = vector.shape_cast %371 : vector<1x64xf32> to vector<1x1x64xf32>
    %373 = vector.extract_strided_slice %97 {offsets = [12, 0], sizes = [1, 16], strides = [1, 1]} : vector<64x16xf32> to vector<1x16xf32>
    %374 = vector.shape_cast %373 : vector<1x16xf32> to vector<1x16x1xf32>
    %375 = vector.broadcast %372 : vector<1x1x64xf32> to vector<1x16x64xf32>
    %376 = vector.broadcast %374 : vector<1x16x1xf32> to vector<1x16x64xf32>
    %377 = arith.mulf %375, %376 : vector<1x16x64xf32>
    %378 = vector.shape_cast %377 : vector<1x16x64xf32> to vector<16x64xf32>
    %379 = vector.extract_strided_slice %98 {offsets = [12, 0], sizes = [1, 16], strides = [1, 1]} : vector<64x16xf32> to vector<1x16xf32>
    %380 = vector.shape_cast %379 : vector<1x16xf32> to vector<1x16x1xf32>
    %381 = vector.shape_cast %380 : vector<1x16x1xf32> to vector<16x1xf32>
    %382 = arith.mulf %361, %370 : vector<16x64xf32>
    %383 = arith.addf %382, %378 : vector<16x64xf32>
    %384 = vector.broadcast %381 : vector<16x1xf32> to vector<16x64xf32>
    %385 = arith.mulf %383, %384 : vector<16x64xf32>
    %cst_62 = arith.constant dense<0.000000e+00> : vector<64xf32>
    %386 = vector.multi_reduction <add>, %385, %cst_62 [0] : vector<16x64xf32> to vector<64xf32>
    %387 = vector.shape_cast %386 : vector<64xf32> to vector<1x64xf32>
    %c12 = arith.constant 12 : index
    %c0_63 = arith.constant 0 : index
    %388 = vector.load %arg17[%c12, %c0_63] : memref<64x64xf32, #tpu.memory_space<vmem>>, vector<1x64xf32>
    tpu.vector_store %arg17[%c12, %c0_63], %387 {strides = array<i32>} : memref<64x64xf32, #tpu.memory_space<vmem>>, vector<1x64xf32>,
    %389 = vector.extract_strided_slice %96 {offsets = [13, 0], sizes = [1, 64], strides = [1, 1]} : vector<64x64xf32> to vector<1x64xf32>
    %390 = vector.broadcast %389 : vector<1x64xf32> to vector<16x64xf32>
    %391 = arith.mulf %390, %100 : vector<16x64xf32>
    %392 = math.exp %391 : vector<16x64xf32>
    %393 = vector.extract_strided_slice %99 {offsets = [13, 0], sizes = [1, 64], strides = [1, 1]} : vector<64x64xf32> to vector<1x64xf32>
    %394 = vector.shape_cast %393 : vector<1x64xf32> to vector<1x1x64xf32>
    %395 = vector.extract_strided_slice %97 {offsets = [13, 0], sizes = [1, 16], strides = [1, 1]} : vector<64x16xf32> to vector<1x16xf32>
    %396 = vector.shape_cast %395 : vector<1x16xf32> to vector<1x16x1xf32>
    %397 = vector.broadcast %394 : vector<1x1x64xf32> to vector<1x16x64xf32>
    %398 = vector.broadcast %396 : vector<1x16x1xf32> to vector<1x16x64xf32>
    %399 = arith.mulf %397, %398 : vector<1x16x64xf32>
    %400 = vector.shape_cast %399 : vector<1x16x64xf32> to vector<16x64xf32>
    %401 = vector.extract_strided_slice %98 {offsets = [13, 0], sizes = [1, 16], strides = [1, 1]} : vector<64x16xf32> to vector<1x16xf32>
    %402 = vector.shape_cast %401 : vector<1x16xf32> to vector<1x16x1xf32>
    %403 = vector.shape_cast %402 : vector<1x16x1xf32> to vector<16x1xf32>
    %404 = arith.mulf %383, %392 : vector<16x64xf32>
    %405 = arith.addf %404, %400 : vector<16x64xf32>
    %406 = vector.broadcast %403 : vector<16x1xf32> to vector<16x64xf32>
    %407 = arith.mulf %405, %406 : vector<16x64xf32>
    %cst_64 = arith.constant dense<0.000000e+00> : vector<64xf32>
    %408 = vector.multi_reduction <add>, %407, %cst_64 [0] : vector<16x64xf32> to vector<64xf32>
    %409 = vector.shape_cast %408 : vector<64xf32> to vector<1x64xf32>
    %c13 = arith.constant 13 : index
    %c0_65 = arith.constant 0 : index
    %410 = vector.load %arg17[%c13, %c0_65] : memref<64x64xf32, #tpu.memory_space<vmem>>, vector<1x64xf32>
    tpu.vector_store %arg17[%c13, %c0_65], %409 {strides = array<i32>} : memref<64x64xf32, #tpu.memory_space<vmem>>, vector<1x64xf32>,
    %411 = vector.extract_strided_slice %96 {offsets = [14, 0], sizes = [1, 64], strides = [1, 1]} : vector<64x64xf32> to vector<1x64xf32>
    %412 = vector.broadcast %411 : vector<1x64xf32> to vector<16x64xf32>
    %413 = arith.mulf %412, %100 : vector<16x64xf32>
    %414 = math.exp %413 : vector<16x64xf32>
    %415 = vector.extract_strided_slice %99 {offsets = [14, 0], sizes = [1, 64], strides = [1, 1]} : vector<64x64xf32> to vector<1x64xf32>
    %416 = vector.shape_cast %415 : vector<1x64xf32> to vector<1x1x64xf32>
    %417 = vector.extract_strided_slice %97 {offsets = [14, 0], sizes = [1, 16], strides = [1, 1]} : vector<64x16xf32> to vector<1x16xf32>
    %418 = vector.shape_cast %417 : vector<1x16xf32> to vector<1x16x1xf32>
    %419 = vector.broadcast %416 : vector<1x1x64xf32> to vector<1x16x64xf32>
    %420 = vector.broadcast %418 : vector<1x16x1xf32> to vector<1x16x64xf32>
    %421 = arith.mulf %419, %420 : vector<1x16x64xf32>
    %422 = vector.shape_cast %421 : vector<1x16x64xf32> to vector<16x64xf32>
    %423 = vector.extract_strided_slice %98 {offsets = [14, 0], sizes = [1, 16], strides = [1, 1]} : vector<64x16xf32> to vector<1x16xf32>
    %424 = vector.shape_cast %423 : vector<1x16xf32> to vector<1x16x1xf32>
    %425 = vector.shape_cast %424 : vector<1x16x1xf32> to vector<16x1xf32>
    %426 = arith.mulf %405, %414 : vector<16x64xf32>
    %427 = arith.addf %426, %422 : vector<16x64xf32>
    %428 = vector.broadcast %425 : vector<16x1xf32> to vector<16x64xf32>
    %429 = arith.mulf %427, %428 : vector<16x64xf32>
    %cst_66 = arith.constant dense<0.000000e+00> : vector<64xf32>
    %430 = vector.multi_reduction <add>, %429, %cst_66 [0] : vector<16x64xf32> to vector<64xf32>
    %431 = vector.shape_cast %430 : vector<64xf32> to vector<1x64xf32>
    %c14 = arith.constant 14 : index
    %c0_67 = arith.constant 0 : index
    %432 = vector.load %arg17[%c14, %c0_67] : memref<64x64xf32, #tpu.memory_space<vmem>>, vector<1x64xf32>
    tpu.vector_store %arg17[%c14, %c0_67], %431 {strides = array<i32>} : memref<64x64xf32, #tpu.memory_space<vmem>>, vector<1x64xf32>,
    %433 = vector.extract_strided_slice %96 {offsets = [15, 0], sizes = [1, 64], strides = [1, 1]} : vector<64x64xf32> to vector<1x64xf32>
    %434 = vector.broadcast %433 : vector<1x64xf32> to vector<16x64xf32>
    %435 = arith.mulf %434, %100 : vector<16x64xf32>
    %436 = math.exp %435 : vector<16x64xf32>
    %437 = vector.extract_strided_slice %99 {offsets = [15, 0], sizes = [1, 64], strides = [1, 1]} : vector<64x64xf32> to vector<1x64xf32>
    %438 = vector.shape_cast %437 : vector<1x64xf32> to vector<1x1x64xf32>
    %439 = vector.extract_strided_slice %97 {offsets = [15, 0], sizes = [1, 16], strides = [1, 1]} : vector<64x16xf32> to vector<1x16xf32>
    %440 = vector.shape_cast %439 : vector<1x16xf32> to vector<1x16x1xf32>
    %441 = vector.broadcast %438 : vector<1x1x64xf32> to vector<1x16x64xf32>
    %442 = vector.broadcast %440 : vector<1x16x1xf32> to vector<1x16x64xf32>
    %443 = arith.mulf %441, %442 : vector<1x16x64xf32>
    %444 = vector.shape_cast %443 : vector<1x16x64xf32> to vector<16x64xf32>
    %445 = vector.extract_strided_slice %98 {offsets = [15, 0], sizes = [1, 16], strides = [1, 1]} : vector<64x16xf32> to vector<1x16xf32>
    %446 = vector.shape_cast %445 : vector<1x16xf32> to vector<1x16x1xf32>
    %447 = vector.shape_cast %446 : vector<1x16x1xf32> to vector<16x1xf32>
    %448 = arith.mulf %427, %436 : vector<16x64xf32>
    %449 = arith.addf %448, %444 : vector<16x64xf32>
    %450 = vector.broadcast %447 : vector<16x1xf32> to vector<16x64xf32>
    %451 = arith.mulf %449, %450 : vector<16x64xf32>
    %cst_68 = arith.constant dense<0.000000e+00> : vector<64xf32>
    %452 = vector.multi_reduction <add>, %451, %cst_68 [0] : vector<16x64xf32> to vector<64xf32>
    %453 = vector.shape_cast %452 : vector<64xf32> to vector<1x64xf32>
    %c15 = arith.constant 15 : index
    %c0_69 = arith.constant 0 : index
    %454 = vector.load %arg17[%c15, %c0_69] : memref<64x64xf32, #tpu.memory_space<vmem>>, vector<1x64xf32>
    tpu.vector_store %arg17[%c15, %c0_69], %453 {strides = array<i32>} : memref<64x64xf32, #tpu.memory_space<vmem>>, vector<1x64xf32>,
    %cst_70 = arith.constant 0.000000e+00 : f32
    %455 = vector.broadcast %cst_70 : f32 to vector<16x64xf32>
    %456 = vector.extract_strided_slice %96 {offsets = [16, 0], sizes = [1, 64], strides = [1, 1]} : vector<64x64xf32> to vector<1x64xf32>
    %457 = vector.broadcast %456 : vector<1x64xf32> to vector<16x64xf32>
    %458 = arith.mulf %457, %100 : vector<16x64xf32>
    %459 = math.exp %458 : vector<16x64xf32>
    %460 = vector.extract_strided_slice %99 {offsets = [16, 0], sizes = [1, 64], strides = [1, 1]} : vector<64x64xf32> to vector<1x64xf32>
    %461 = vector.shape_cast %460 : vector<1x64xf32> to vector<1x1x64xf32>
    %462 = vector.extract_strided_slice %97 {offsets = [16, 0], sizes = [1, 16], strides = [1, 1]} : vector<64x16xf32> to vector<1x16xf32>
    %463 = vector.shape_cast %462 : vector<1x16xf32> to vector<1x16x1xf32>
    %464 = vector.broadcast %461 : vector<1x1x64xf32> to vector<1x16x64xf32>
    %465 = vector.broadcast %463 : vector<1x16x1xf32> to vector<1x16x64xf32>
    %466 = arith.mulf %464, %465 : vector<1x16x64xf32>
    %467 = vector.shape_cast %466 : vector<1x16x64xf32> to vector<16x64xf32>
    %468 = vector.extract_strided_slice %98 {offsets = [16, 0], sizes = [1, 16], strides = [1, 1]} : vector<64x16xf32> to vector<1x16xf32>
    %469 = vector.shape_cast %468 : vector<1x16xf32> to vector<1x16x1xf32>
    %470 = vector.shape_cast %469 : vector<1x16x1xf32> to vector<16x1xf32>
    %471 = arith.mulf %455, %459 : vector<16x64xf32>
    %472 = arith.addf %471, %467 : vector<16x64xf32>
    %473 = vector.broadcast %470 : vector<16x1xf32> to vector<16x64xf32>
    %474 = arith.mulf %472, %473 : vector<16x64xf32>
    %cst_71 = arith.constant dense<0.000000e+00> : vector<64xf32>
    %475 = vector.multi_reduction <add>, %474, %cst_71 [0] : vector<16x64xf32> to vector<64xf32>
    %476 = vector.shape_cast %475 : vector<64xf32> to vector<1x64xf32>
    %c16 = arith.constant 16 : index
    %c0_72 = arith.constant 0 : index
    %477 = vector.load %arg17[%c16, %c0_72] : memref<64x64xf32, #tpu.memory_space<vmem>>, vector<1x64xf32>
    tpu.vector_store %arg17[%c16, %c0_72], %476 {strides = array<i32>} : memref<64x64xf32, #tpu.memory_space<vmem>>, vector<1x64xf32>,
    %478 = vector.extract_strided_slice %96 {offsets = [17, 0], sizes = [1, 64], strides = [1, 1]} : vector<64x64xf32> to vector<1x64xf32>
    %479 = vector.broadcast %478 : vector<1x64xf32> to vector<16x64xf32>
    %480 = arith.mulf %479, %100 : vector<16x64xf32>
    %481 = math.exp %480 : vector<16x64xf32>
    %482 = vector.extract_strided_slice %99 {offsets = [17, 0], sizes = [1, 64], strides = [1, 1]} : vector<64x64xf32> to vector<1x64xf32>
    %483 = vector.shape_cast %482 : vector<1x64xf32> to vector<1x1x64xf32>
    %484 = vector.extract_strided_slice %97 {offsets = [17, 0], sizes = [1, 16], strides = [1, 1]} : vector<64x16xf32> to vector<1x16xf32>
    %485 = vector.shape_cast %484 : vector<1x16xf32> to vector<1x16x1xf32>
    %486 = vector.broadcast %483 : vector<1x1x64xf32> to vector<1x16x64xf32>
    %487 = vector.broadcast %485 : vector<1x16x1xf32> to vector<1x16x64xf32>
    %488 = arith.mulf %486, %487 : vector<1x16x64xf32>
    %489 = vector.shape_cast %488 : vector<1x16x64xf32> to vector<16x64xf32>
    %490 = vector.extract_strided_slice %98 {offsets = [17, 0], sizes = [1, 16], strides = [1, 1]} : vector<64x16xf32> to vector<1x16xf32>
    %491 = vector.shape_cast %490 : vector<1x16xf32> to vector<1x16x1xf32>
    %492 = vector.shape_cast %491 : vector<1x16x1xf32> to vector<16x1xf32>
    %493 = arith.mulf %472, %481 : vector<16x64xf32>
    %494 = arith.addf %493, %489 : vector<16x64xf32>
    %495 = vector.broadcast %492 : vector<16x1xf32> to vector<16x64xf32>
    %496 = arith.mulf %494, %495 : vector<16x64xf32>
    %cst_73 = arith.constant dense<0.000000e+00> : vector<64xf32>
    %497 = vector.multi_reduction <add>, %496, %cst_73 [0] : vector<16x64xf32> to vector<64xf32>
    %498 = vector.shape_cast %497 : vector<64xf32> to vector<1x64xf32>
    %c17 = arith.constant 17 : index
    %c0_74 = arith.constant 0 : index
    %499 = vector.load %arg17[%c17, %c0_74] : memref<64x64xf32, #tpu.memory_space<vmem>>, vector<1x64xf32>
    tpu.vector_store %arg17[%c17, %c0_74], %498 {strides = array<i32>} : memref<64x64xf32, #tpu.memory_space<vmem>>, vector<1x64xf32>,
    %500 = vector.extract_strided_slice %96 {offsets = [18, 0], sizes = [1, 64], strides = [1, 1]} : vector<64x64xf32> to vector<1x64xf32>
    %501 = vector.broadcast %500 : vector<1x64xf32> to vector<16x64xf32>
    %502 = arith.mulf %501, %100 : vector<16x64xf32>
    %503 = math.exp %502 : vector<16x64xf32>
    %504 = vector.extract_strided_slice %99 {offsets = [18, 0], sizes = [1, 64], strides = [1, 1]} : vector<64x64xf32> to vector<1x64xf32>
    %505 = vector.shape_cast %504 : vector<1x64xf32> to vector<1x1x64xf32>
    %506 = vector.extract_strided_slice %97 {offsets = [18, 0], sizes = [1, 16], strides = [1, 1]} : vector<64x16xf32> to vector<1x16xf32>
    %507 = vector.shape_cast %506 : vector<1x16xf32> to vector<1x16x1xf32>
    %508 = vector.broadcast %505 : vector<1x1x64xf32> to vector<1x16x64xf32>
    %509 = vector.broadcast %507 : vector<1x16x1xf32> to vector<1x16x64xf32>
    %510 = arith.mulf %508, %509 : vector<1x16x64xf32>
    %511 = vector.shape_cast %510 : vector<1x16x64xf32> to vector<16x64xf32>
    %512 = vector.extract_strided_slice %98 {offsets = [18, 0], sizes = [1, 16], strides = [1, 1]} : vector<64x16xf32> to vector<1x16xf32>
    %513 = vector.shape_cast %512 : vector<1x16xf32> to vector<1x16x1xf32>
    %514 = vector.shape_cast %513 : vector<1x16x1xf32> to vector<16x1xf32>
    %515 = arith.mulf %494, %503 : vector<16x64xf32>
    %516 = arith.addf %515, %511 : vector<16x64xf32>
    %517 = vector.broadcast %514 : vector<16x1xf32> to vector<16x64xf32>
    %518 = arith.mulf %516, %517 : vector<16x64xf32>
    %cst_75 = arith.constant dense<0.000000e+00> : vector<64xf32>
    %519 = vector.multi_reduction <add>, %518, %cst_75 [0] : vector<16x64xf32> to vector<64xf32>
    %520 = vector.shape_cast %519 : vector<64xf32> to vector<1x64xf32>
    %c18 = arith.constant 18 : index
    %c0_76 = arith.constant 0 : index
    %521 = vector.load %arg17[%c18, %c0_76] : memref<64x64xf32, #tpu.memory_space<vmem>>, vector<1x64xf32>
    tpu.vector_store %arg17[%c18, %c0_76], %520 {strides = array<i32>} : memref<64x64xf32, #tpu.memory_space<vmem>>, vector<1x64xf32>,
    %522 = vector.extract_strided_slice %96 {offsets = [19, 0], sizes = [1, 64], strides = [1, 1]} : vector<64x64xf32> to vector<1x64xf32>
    %523 = vector.broadcast %522 : vector<1x64xf32> to vector<16x64xf32>
    %524 = arith.mulf %523, %100 : vector<16x64xf32>
    %525 = math.exp %524 : vector<16x64xf32>
    %526 = vector.extract_strided_slice %99 {offsets = [19, 0], sizes = [1, 64], strides = [1, 1]} : vector<64x64xf32> to vector<1x64xf32>
    %527 = vector.shape_cast %526 : vector<1x64xf32> to vector<1x1x64xf32>
    %528 = vector.extract_strided_slice %97 {offsets = [19, 0], sizes = [1, 16], strides = [1, 1]} : vector<64x16xf32> to vector<1x16xf32>
    %529 = vector.shape_cast %528 : vector<1x16xf32> to vector<1x16x1xf32>
    %530 = vector.broadcast %527 : vector<1x1x64xf32> to vector<1x16x64xf32>
    %531 = vector.broadcast %529 : vector<1x16x1xf32> to vector<1x16x64xf32>
    %532 = arith.mulf %530, %531 : vector<1x16x64xf32>
    %533 = vector.shape_cast %532 : vector<1x16x64xf32> to vector<16x64xf32>
    %534 = vector.extract_strided_slice %98 {offsets = [19, 0], sizes = [1, 16], strides = [1, 1]} : vector<64x16xf32> to vector<1x16xf32>
    %535 = vector.shape_cast %534 : vector<1x16xf32> to vector<1x16x1xf32>
    %536 = vector.shape_cast %535 : vector<1x16x1xf32> to vector<16x1xf32>
    %537 = arith.mulf %516, %525 : vector<16x64xf32>
    %538 = arith.addf %537, %533 : vector<16x64xf32>
    %539 = vector.broadcast %536 : vector<16x1xf32> to vector<16x64xf32>
    %540 = arith.mulf %538, %539 : vector<16x64xf32>
    %cst_77 = arith.constant dense<0.000000e+00> : vector<64xf32>
    %541 = vector.multi_reduction <add>, %540, %cst_77 [0] : vector<16x64xf32> to vector<64xf32>
    %542 = vector.shape_cast %541 : vector<64xf32> to vector<1x64xf32>
    %c19 = arith.constant 19 : index
    %c0_78 = arith.constant 0 : index
    %543 = vector.load %arg17[%c19, %c0_78] : memref<64x64xf32, #tpu.memory_space<vmem>>, vector<1x64xf32>
    tpu.vector_store %arg17[%c19, %c0_78], %542 {strides = array<i32>} : memref<64x64xf32, #tpu.memory_space<vmem>>, vector<1x64xf32>,
    %544 = vector.extract_strided_slice %96 {offsets = [20, 0], sizes = [1, 64], strides = [1, 1]} : vector<64x64xf32> to vector<1x64xf32>
    %545 = vector.broadcast %544 : vector<1x64xf32> to vector<16x64xf32>
    %546 = arith.mulf %545, %100 : vector<16x64xf32>
    %547 = math.exp %546 : vector<16x64xf32>
    %548 = vector.extract_strided_slice %99 {offsets = [20, 0], sizes = [1, 64], strides = [1, 1]} : vector<64x64xf32> to vector<1x64xf32>
    %549 = vector.shape_cast %548 : vector<1x64xf32> to vector<1x1x64xf32>
    %550 = vector.extract_strided_slice %97 {offsets = [20, 0], sizes = [1, 16], strides = [1, 1]} : vector<64x16xf32> to vector<1x16xf32>
    %551 = vector.shape_cast %550 : vector<1x16xf32> to vector<1x16x1xf32>
    %552 = vector.broadcast %549 : vector<1x1x64xf32> to vector<1x16x64xf32>
    %553 = vector.broadcast %551 : vector<1x16x1xf32> to vector<1x16x64xf32>
    %554 = arith.mulf %552, %553 : vector<1x16x64xf32>
    %555 = vector.shape_cast %554 : vector<1x16x64xf32> to vector<16x64xf32>
    %556 = vector.extract_strided_slice %98 {offsets = [20, 0], sizes = [1, 16], strides = [1, 1]} : vector<64x16xf32> to vector<1x16xf32>
    %557 = vector.shape_cast %556 : vector<1x16xf32> to vector<1x16x1xf32>
    %558 = vector.shape_cast %557 : vector<1x16x1xf32> to vector<16x1xf32>
    %559 = arith.mulf %538, %547 : vector<16x64xf32>
    %560 = arith.addf %559, %555 : vector<16x64xf32>
    %561 = vector.broadcast %558 : vector<16x1xf32> to vector<16x64xf32>
    %562 = arith.mulf %560, %561 : vector<16x64xf32>
    %cst_79 = arith.constant dense<0.000000e+00> : vector<64xf32>
    %563 = vector.multi_reduction <add>, %562, %cst_79 [0] : vector<16x64xf32> to vector<64xf32>
    %564 = vector.shape_cast %563 : vector<64xf32> to vector<1x64xf32>
    %c20 = arith.constant 20 : index
    %c0_80 = arith.constant 0 : index
    %565 = vector.load %arg17[%c20, %c0_80] : memref<64x64xf32, #tpu.memory_space<vmem>>, vector<1x64xf32>
    tpu.vector_store %arg17[%c20, %c0_80], %564 {strides = array<i32>} : memref<64x64xf32, #tpu.memory_space<vmem>>, vector<1x64xf32>,
    %566 = vector.extract_strided_slice %96 {offsets = [21, 0], sizes = [1, 64], strides = [1, 1]} : vector<64x64xf32> to vector<1x64xf32>
    %567 = vector.broadcast %566 : vector<1x64xf32> to vector<16x64xf32>
    %568 = arith.mulf %567, %100 : vector<16x64xf32>
    %569 = math.exp %568 : vector<16x64xf32>
    %570 = vector.extract_strided_slice %99 {offsets = [21, 0], sizes = [1, 64], strides = [1, 1]} : vector<64x64xf32> to vector<1x64xf32>
    %571 = vector.shape_cast %570 : vector<1x64xf32> to vector<1x1x64xf32>
    %572 = vector.extract_strided_slice %97 {offsets = [21, 0], sizes = [1, 16], strides = [1, 1]} : vector<64x16xf32> to vector<1x16xf32>
    %573 = vector.shape_cast %572 : vector<1x16xf32> to vector<1x16x1xf32>
    %574 = vector.broadcast %571 : vector<1x1x64xf32> to vector<1x16x64xf32>
    %575 = vector.broadcast %573 : vector<1x16x1xf32> to vector<1x16x64xf32>
    %576 = arith.mulf %574, %575 : vector<1x16x64xf32>
    %577 = vector.shape_cast %576 : vector<1x16x64xf32> to vector<16x64xf32>
    %578 = vector.extract_strided_slice %98 {offsets = [21, 0], sizes = [1, 16], strides = [1, 1]} : vector<64x16xf32> to vector<1x16xf32>
    %579 = vector.shape_cast %578 : vector<1x16xf32> to vector<1x16x1xf32>
    %580 = vector.shape_cast %579 : vector<1x16x1xf32> to vector<16x1xf32>
    %581 = arith.mulf %560, %569 : vector<16x64xf32>
    %582 = arith.addf %581, %577 : vector<16x64xf32>
    %583 = vector.broadcast %580 : vector<16x1xf32> to vector<16x64xf32>
    %584 = arith.mulf %582, %583 : vector<16x64xf32>
    %cst_81 = arith.constant dense<0.000000e+00> : vector<64xf32>
    %585 = vector.multi_reduction <add>, %584, %cst_81 [0] : vector<16x64xf32> to vector<64xf32>
    %586 = vector.shape_cast %585 : vector<64xf32> to vector<1x64xf32>
    %c21 = arith.constant 21 : index
    %c0_82 = arith.constant 0 : index
    %587 = vector.load %arg17[%c21, %c0_82] : memref<64x64xf32, #tpu.memory_space<vmem>>, vector<1x64xf32>
    tpu.vector_store %arg17[%c21, %c0_82], %586 {strides = array<i32>} : memref<64x64xf32, #tpu.memory_space<vmem>>, vector<1x64xf32>,
    %588 = vector.extract_strided_slice %96 {offsets = [22, 0], sizes = [1, 64], strides = [1, 1]} : vector<64x64xf32> to vector<1x64xf32>
    %589 = vector.broadcast %588 : vector<1x64xf32> to vector<16x64xf32>
    %590 = arith.mulf %589, %100 : vector<16x64xf32>
    %591 = math.exp %590 : vector<16x64xf32>
    %592 = vector.extract_strided_slice %99 {offsets = [22, 0], sizes = [1, 64], strides = [1, 1]} : vector<64x64xf32> to vector<1x64xf32>
    %593 = vector.shape_cast %592 : vector<1x64xf32> to vector<1x1x64xf32>
    %594 = vector.extract_strided_slice %97 {offsets = [22, 0], sizes = [1, 16], strides = [1, 1]} : vector<64x16xf32> to vector<1x16xf32>
    %595 = vector.shape_cast %594 : vector<1x16xf32> to vector<1x16x1xf32>
    %596 = vector.broadcast %593 : vector<1x1x64xf32> to vector<1x16x64xf32>
    %597 = vector.broadcast %595 : vector<1x16x1xf32> to vector<1x16x64xf32>
    %598 = arith.mulf %596, %597 : vector<1x16x64xf32>
    %599 = vector.shape_cast %598 : vector<1x16x64xf32> to vector<16x64xf32>
    %600 = vector.extract_strided_slice %98 {offsets = [22, 0], sizes = [1, 16], strides = [1, 1]} : vector<64x16xf32> to vector<1x16xf32>
    %601 = vector.shape_cast %600 : vector<1x16xf32> to vector<1x16x1xf32>
    %602 = vector.shape_cast %601 : vector<1x16x1xf32> to vector<16x1xf32>
    %603 = arith.mulf %582, %591 : vector<16x64xf32>
    %604 = arith.addf %603, %599 : vector<16x64xf32>
    %605 = vector.broadcast %602 : vector<16x1xf32> to vector<16x64xf32>
    %606 = arith.mulf %604, %605 : vector<16x64xf32>
    %cst_83 = arith.constant dense<0.000000e+00> : vector<64xf32>
    %607 = vector.multi_reduction <add>, %606, %cst_83 [0] : vector<16x64xf32> to vector<64xf32>
    %608 = vector.shape_cast %607 : vector<64xf32> to vector<1x64xf32>
    %c22 = arith.constant 22 : index
    %c0_84 = arith.constant 0 : index
    %609 = vector.load %arg17[%c22, %c0_84] : memref<64x64xf32, #tpu.memory_space<vmem>>, vector<1x64xf32>
    tpu.vector_store %arg17[%c22, %c0_84], %608 {strides = array<i32>} : memref<64x64xf32, #tpu.memory_space<vmem>>, vector<1x64xf32>,
    %610 = vector.extract_strided_slice %96 {offsets = [23, 0], sizes = [1, 64], strides = [1, 1]} : vector<64x64xf32> to vector<1x64xf32>
    %611 = vector.broadcast %610 : vector<1x64xf32> to vector<16x64xf32>
    %612 = arith.mulf %611, %100 : vector<16x64xf32>
    %613 = math.exp %612 : vector<16x64xf32>
    %614 = vector.extract_strided_slice %99 {offsets = [23, 0], sizes = [1, 64], strides = [1, 1]} : vector<64x64xf32> to vector<1x64xf32>
    %615 = vector.shape_cast %614 : vector<1x64xf32> to vector<1x1x64xf32>
    %616 = vector.extract_strided_slice %97 {offsets = [23, 0], sizes = [1, 16], strides = [1, 1]} : vector<64x16xf32> to vector<1x16xf32>
    %617 = vector.shape_cast %616 : vector<1x16xf32> to vector<1x16x1xf32>
    %618 = vector.broadcast %615 : vector<1x1x64xf32> to vector<1x16x64xf32>
    %619 = vector.broadcast %617 : vector<1x16x1xf32> to vector<1x16x64xf32>
    %620 = arith.mulf %618, %619 : vector<1x16x64xf32>
    %621 = vector.shape_cast %620 : vector<1x16x64xf32> to vector<16x64xf32>
    %622 = vector.extract_strided_slice %98 {offsets = [23, 0], sizes = [1, 16], strides = [1, 1]} : vector<64x16xf32> to vector<1x16xf32>
    %623 = vector.shape_cast %622 : vector<1x16xf32> to vector<1x16x1xf32>
    %624 = vector.shape_cast %623 : vector<1x16x1xf32> to vector<16x1xf32>
    %625 = arith.mulf %604, %613 : vector<16x64xf32>
    %626 = arith.addf %625, %621 : vector<16x64xf32>
    %627 = vector.broadcast %624 : vector<16x1xf32> to vector<16x64xf32>
    %628 = arith.mulf %626, %627 : vector<16x64xf32>
    %cst_85 = arith.constant dense<0.000000e+00> : vector<64xf32>
    %629 = vector.multi_reduction <add>, %628, %cst_85 [0] : vector<16x64xf32> to vector<64xf32>
    %630 = vector.shape_cast %629 : vector<64xf32> to vector<1x64xf32>
    %c23 = arith.constant 23 : index
    %c0_86 = arith.constant 0 : index
    %631 = vector.load %arg17[%c23, %c0_86] : memref<64x64xf32, #tpu.memory_space<vmem>>, vector<1x64xf32>
    tpu.vector_store %arg17[%c23, %c0_86], %630 {strides = array<i32>} : memref<64x64xf32, #tpu.memory_space<vmem>>, vector<1x64xf32>,
    %cst_87 = arith.constant 0.000000e+00 : f32
    %632 = vector.broadcast %cst_87 : f32 to vector<16x64xf32>
    %633 = vector.extract_strided_slice %96 {offsets = [24, 0], sizes = [1, 64], strides = [1, 1]} : vector<64x64xf32> to vector<1x64xf32>
    %634 = vector.broadcast %633 : vector<1x64xf32> to vector<16x64xf32>
    %635 = arith.mulf %634, %100 : vector<16x64xf32>
    %636 = math.exp %635 : vector<16x64xf32>
    %637 = vector.extract_strided_slice %99 {offsets = [24, 0], sizes = [1, 64], strides = [1, 1]} : vector<64x64xf32> to vector<1x64xf32>
    %638 = vector.shape_cast %637 : vector<1x64xf32> to vector<1x1x64xf32>
    %639 = vector.extract_strided_slice %97 {offsets = [24, 0], sizes = [1, 16], strides = [1, 1]} : vector<64x16xf32> to vector<1x16xf32>
    %640 = vector.shape_cast %639 : vector<1x16xf32> to vector<1x16x1xf32>
    %641 = vector.broadcast %638 : vector<1x1x64xf32> to vector<1x16x64xf32>
    %642 = vector.broadcast %640 : vector<1x16x1xf32> to vector<1x16x64xf32>
    %643 = arith.mulf %641, %642 : vector<1x16x64xf32>
    %644 = vector.shape_cast %643 : vector<1x16x64xf32> to vector<16x64xf32>
    %645 = vector.extract_strided_slice %98 {offsets = [24, 0], sizes = [1, 16], strides = [1, 1]} : vector<64x16xf32> to vector<1x16xf32>
    %646 = vector.shape_cast %645 : vector<1x16xf32> to vector<1x16x1xf32>
    %647 = vector.shape_cast %646 : vector<1x16x1xf32> to vector<16x1xf32>
    %648 = arith.mulf %632, %636 : vector<16x64xf32>
    %649 = arith.addf %648, %644 : vector<16x64xf32>
    %650 = vector.broadcast %647 : vector<16x1xf32> to vector<16x64xf32>
    %651 = arith.mulf %649, %650 : vector<16x64xf32>
    %cst_88 = arith.constant dense<0.000000e+00> : vector<64xf32>
    %652 = vector.multi_reduction <add>, %651, %cst_88 [0] : vector<16x64xf32> to vector<64xf32>
    %653 = vector.shape_cast %652 : vector<64xf32> to vector<1x64xf32>
    %c24 = arith.constant 24 : index
    %c0_89 = arith.constant 0 : index
    %654 = vector.load %arg17[%c24, %c0_89] : memref<64x64xf32, #tpu.memory_space<vmem>>, vector<1x64xf32>
    tpu.vector_store %arg17[%c24, %c0_89], %653 {strides = array<i32>} : memref<64x64xf32, #tpu.memory_space<vmem>>, vector<1x64xf32>,
    %655 = vector.extract_strided_slice %96 {offsets = [25, 0], sizes = [1, 64], strides = [1, 1]} : vector<64x64xf32> to vector<1x64xf32>
    %656 = vector.broadcast %655 : vector<1x64xf32> to vector<16x64xf32>
    %657 = arith.mulf %656, %100 : vector<16x64xf32>
    %658 = math.exp %657 : vector<16x64xf32>
    %659 = vector.extract_strided_slice %99 {offsets = [25, 0], sizes = [1, 64], strides = [1, 1]} : vector<64x64xf32> to vector<1x64xf32>
    %660 = vector.shape_cast %659 : vector<1x64xf32> to vector<1x1x64xf32>
    %661 = vector.extract_strided_slice %97 {offsets = [25, 0], sizes = [1, 16], strides = [1, 1]} : vector<64x16xf32> to vector<1x16xf32>
    %662 = vector.shape_cast %661 : vector<1x16xf32> to vector<1x16x1xf32>
    %663 = vector.broadcast %660 : vector<1x1x64xf32> to vector<1x16x64xf32>
    %664 = vector.broadcast %662 : vector<1x16x1xf32> to vector<1x16x64xf32>
    %665 = arith.mulf %663, %664 : vector<1x16x64xf32>
    %666 = vector.shape_cast %665 : vector<1x16x64xf32> to vector<16x64xf32>
    %667 = vector.extract_strided_slice %98 {offsets = [25, 0], sizes = [1, 16], strides = [1, 1]} : vector<64x16xf32> to vector<1x16xf32>
    %668 = vector.shape_cast %667 : vector<1x16xf32> to vector<1x16x1xf32>
    %669 = vector.shape_cast %668 : vector<1x16x1xf32> to vector<16x1xf32>
    %670 = arith.mulf %649, %658 : vector<16x64xf32>
    %671 = arith.addf %670, %666 : vector<16x64xf32>
    %672 = vector.broadcast %669 : vector<16x1xf32> to vector<16x64xf32>
    %673 = arith.mulf %671, %672 : vector<16x64xf32>
    %cst_90 = arith.constant dense<0.000000e+00> : vector<64xf32>
    %674 = vector.multi_reduction <add>, %673, %cst_90 [0] : vector<16x64xf32> to vector<64xf32>
    %675 = vector.shape_cast %674 : vector<64xf32> to vector<1x64xf32>
    %c25 = arith.constant 25 : index
    %c0_91 = arith.constant 0 : index
    %676 = vector.load %arg17[%c25, %c0_91] : memref<64x64xf32, #tpu.memory_space<vmem>>, vector<1x64xf32>
    tpu.vector_store %arg17[%c25, %c0_91], %675 {strides = array<i32>} : memref<64x64xf32, #tpu.memory_space<vmem>>, vector<1x64xf32>,
    %677 = vector.extract_strided_slice %96 {offsets = [26, 0], sizes = [1, 64], strides = [1, 1]} : vector<64x64xf32> to vector<1x64xf32>
    %678 = vector.broadcast %677 : vector<1x64xf32> to vector<16x64xf32>
    %679 = arith.mulf %678, %100 : vector<16x64xf32>
    %680 = math.exp %679 : vector<16x64xf32>
    %681 = vector.extract_strided_slice %99 {offsets = [26, 0], sizes = [1, 64], strides = [1, 1]} : vector<64x64xf32> to vector<1x64xf32>
    %682 = vector.shape_cast %681 : vector<1x64xf32> to vector<1x1x64xf32>
    %683 = vector.extract_strided_slice %97 {offsets = [26, 0], sizes = [1, 16], strides = [1, 1]} : vector<64x16xf32> to vector<1x16xf32>
    %684 = vector.shape_cast %683 : vector<1x16xf32> to vector<1x16x1xf32>
    %685 = vector.broadcast %682 : vector<1x1x64xf32> to vector<1x16x64xf32>
    %686 = vector.broadcast %684 : vector<1x16x1xf32> to vector<1x16x64xf32>
    %687 = arith.mulf %685, %686 : vector<1x16x64xf32>
    %688 = vector.shape_cast %687 : vector<1x16x64xf32> to vector<16x64xf32>
    %689 = vector.extract_strided_slice %98 {offsets = [26, 0], sizes = [1, 16], strides = [1, 1]} : vector<64x16xf32> to vector<1x16xf32>
    %690 = vector.shape_cast %689 : vector<1x16xf32> to vector<1x16x1xf32>
    %691 = vector.shape_cast %690 : vector<1x16x1xf32> to vector<16x1xf32>
    %692 = arith.mulf %671, %680 : vector<16x64xf32>
    %693 = arith.addf %692, %688 : vector<16x64xf32>
    %694 = vector.broadcast %691 : vector<16x1xf32> to vector<16x64xf32>
    %695 = arith.mulf %693, %694 : vector<16x64xf32>
    %cst_92 = arith.constant dense<0.000000e+00> : vector<64xf32>
    %696 = vector.multi_reduction <add>, %695, %cst_92 [0] : vector<16x64xf32> to vector<64xf32>
    %697 = vector.shape_cast %696 : vector<64xf32> to vector<1x64xf32>
    %c26 = arith.constant 26 : index
    %c0_93 = arith.constant 0 : index
    %698 = vector.load %arg17[%c26, %c0_93] : memref<64x64xf32, #tpu.memory_space<vmem>>, vector<1x64xf32>
    tpu.vector_store %arg17[%c26, %c0_93], %697 {strides = array<i32>} : memref<64x64xf32, #tpu.memory_space<vmem>>, vector<1x64xf32>,
    %699 = vector.extract_strided_slice %96 {offsets = [27, 0], sizes = [1, 64], strides = [1, 1]} : vector<64x64xf32> to vector<1x64xf32>
    %700 = vector.broadcast %699 : vector<1x64xf32> to vector<16x64xf32>
    %701 = arith.mulf %700, %100 : vector<16x64xf32>
    %702 = math.exp %701 : vector<16x64xf32>
    %703 = vector.extract_strided_slice %99 {offsets = [27, 0], sizes = [1, 64], strides = [1, 1]} : vector<64x64xf32> to vector<1x64xf32>
    %704 = vector.shape_cast %703 : vector<1x64xf32> to vector<1x1x64xf32>
    %705 = vector.extract_strided_slice %97 {offsets = [27, 0], sizes = [1, 16], strides = [1, 1]} : vector<64x16xf32> to vector<1x16xf32>
    %706 = vector.shape_cast %705 : vector<1x16xf32> to vector<1x16x1xf32>
    %707 = vector.broadcast %704 : vector<1x1x64xf32> to vector<1x16x64xf32>
    %708 = vector.broadcast %706 : vector<1x16x1xf32> to vector<1x16x64xf32>
    %709 = arith.mulf %707, %708 : vector<1x16x64xf32>
    %710 = vector.shape_cast %709 : vector<1x16x64xf32> to vector<16x64xf32>
    %711 = vector.extract_strided_slice %98 {offsets = [27, 0], sizes = [1, 16], strides = [1, 1]} : vector<64x16xf32> to vector<1x16xf32>
    %712 = vector.shape_cast %711 : vector<1x16xf32> to vector<1x16x1xf32>
    %713 = vector.shape_cast %712 : vector<1x16x1xf32> to vector<16x1xf32>
    %714 = arith.mulf %693, %702 : vector<16x64xf32>
    %715 = arith.addf %714, %710 : vector<16x64xf32>
    %716 = vector.broadcast %713 : vector<16x1xf32> to vector<16x64xf32>
    %717 = arith.mulf %715, %716 : vector<16x64xf32>
    %cst_94 = arith.constant dense<0.000000e+00> : vector<64xf32>
    %718 = vector.multi_reduction <add>, %717, %cst_94 [0] : vector<16x64xf32> to vector<64xf32>
    %719 = vector.shape_cast %718 : vector<64xf32> to vector<1x64xf32>
    %c27 = arith.constant 27 : index
    %c0_95 = arith.constant 0 : index
    %720 = vector.load %arg17[%c27, %c0_95] : memref<64x64xf32, #tpu.memory_space<vmem>>, vector<1x64xf32>
    tpu.vector_store %arg17[%c27, %c0_95], %719 {strides = array<i32>} : memref<64x64xf32, #tpu.memory_space<vmem>>, vector<1x64xf32>,
    %721 = vector.extract_strided_slice %96 {offsets = [28, 0], sizes = [1, 64], strides = [1, 1]} : vector<64x64xf32> to vector<1x64xf32>
    %722 = vector.broadcast %721 : vector<1x64xf32> to vector<16x64xf32>
    %723 = arith.mulf %722, %100 : vector<16x64xf32>
    %724 = math.exp %723 : vector<16x64xf32>
    %725 = vector.extract_strided_slice %99 {offsets = [28, 0], sizes = [1, 64], strides = [1, 1]} : vector<64x64xf32> to vector<1x64xf32>
    %726 = vector.shape_cast %725 : vector<1x64xf32> to vector<1x1x64xf32>
    %727 = vector.extract_strided_slice %97 {offsets = [28, 0], sizes = [1, 16], strides = [1, 1]} : vector<64x16xf32> to vector<1x16xf32>
    %728 = vector.shape_cast %727 : vector<1x16xf32> to vector<1x16x1xf32>
    %729 = vector.broadcast %726 : vector<1x1x64xf32> to vector<1x16x64xf32>
    %730 = vector.broadcast %728 : vector<1x16x1xf32> to vector<1x16x64xf32>
    %731 = arith.mulf %729, %730 : vector<1x16x64xf32>
    %732 = vector.shape_cast %731 : vector<1x16x64xf32> to vector<16x64xf32>
    %733 = vector.extract_strided_slice %98 {offsets = [28, 0], sizes = [1, 16], strides = [1, 1]} : vector<64x16xf32> to vector<1x16xf32>
    %734 = vector.shape_cast %733 : vector<1x16xf32> to vector<1x16x1xf32>
    %735 = vector.shape_cast %734 : vector<1x16x1xf32> to vector<16x1xf32>
    %736 = arith.mulf %715, %724 : vector<16x64xf32>
    %737 = arith.addf %736, %732 : vector<16x64xf32>
    %738 = vector.broadcast %735 : vector<16x1xf32> to vector<16x64xf32>
    %739 = arith.mulf %737, %738 : vector<16x64xf32>
    %cst_96 = arith.constant dense<0.000000e+00> : vector<64xf32>
    %740 = vector.multi_reduction <add>, %739, %cst_96 [0] : vector<16x64xf32> to vector<64xf32>
    %741 = vector.shape_cast %740 : vector<64xf32> to vector<1x64xf32>
    %c28 = arith.constant 28 : index
    %c0_97 = arith.constant 0 : index
    %742 = vector.load %arg17[%c28, %c0_97] : memref<64x64xf32, #tpu.memory_space<vmem>>, vector<1x64xf32>
    tpu.vector_store %arg17[%c28, %c0_97], %741 {strides = array<i32>} : memref<64x64xf32, #tpu.memory_space<vmem>>, vector<1x64xf32>,
    %743 = vector.extract_strided_slice %96 {offsets = [29, 0], sizes = [1, 64], strides = [1, 1]} : vector<64x64xf32> to vector<1x64xf32>
    %744 = vector.broadcast %743 : vector<1x64xf32> to vector<16x64xf32>
    %745 = arith.mulf %744, %100 : vector<16x64xf32>
    %746 = math.exp %745 : vector<16x64xf32>
    %747 = vector.extract_strided_slice %99 {offsets = [29, 0], sizes = [1, 64], strides = [1, 1]} : vector<64x64xf32> to vector<1x64xf32>
    %748 = vector.shape_cast %747 : vector<1x64xf32> to vector<1x1x64xf32>
    %749 = vector.extract_strided_slice %97 {offsets = [29, 0], sizes = [1, 16], strides = [1, 1]} : vector<64x16xf32> to vector<1x16xf32>
    %750 = vector.shape_cast %749 : vector<1x16xf32> to vector<1x16x1xf32>
    %751 = vector.broadcast %748 : vector<1x1x64xf32> to vector<1x16x64xf32>
    %752 = vector.broadcast %750 : vector<1x16x1xf32> to vector<1x16x64xf32>
    %753 = arith.mulf %751, %752 : vector<1x16x64xf32>
    %754 = vector.shape_cast %753 : vector<1x16x64xf32> to vector<16x64xf32>
    %755 = vector.extract_strided_slice %98 {offsets = [29, 0], sizes = [1, 16], strides = [1, 1]} : vector<64x16xf32> to vector<1x16xf32>
    %756 = vector.shape_cast %755 : vector<1x16xf32> to vector<1x16x1xf32>
    %757 = vector.shape_cast %756 : vector<1x16x1xf32> to vector<16x1xf32>
    %758 = arith.mulf %737, %746 : vector<16x64xf32>
    %759 = arith.addf %758, %754 : vector<16x64xf32>
    %760 = vector.broadcast %757 : vector<16x1xf32> to vector<16x64xf32>
    %761 = arith.mulf %759, %760 : vector<16x64xf32>
    %cst_98 = arith.constant dense<0.000000e+00> : vector<64xf32>
    %762 = vector.multi_reduction <add>, %761, %cst_98 [0] : vector<16x64xf32> to vector<64xf32>
    %763 = vector.shape_cast %762 : vector<64xf32> to vector<1x64xf32>
    %c29 = arith.constant 29 : index
    %c0_99 = arith.constant 0 : index
    %764 = vector.load %arg17[%c29, %c0_99] : memref<64x64xf32, #tpu.memory_space<vmem>>, vector<1x64xf32>
    tpu.vector_store %arg17[%c29, %c0_99], %763 {strides = array<i32>} : memref<64x64xf32, #tpu.memory_space<vmem>>, vector<1x64xf32>,
    %765 = vector.extract_strided_slice %96 {offsets = [30, 0], sizes = [1, 64], strides = [1, 1]} : vector<64x64xf32> to vector<1x64xf32>
    %766 = vector.broadcast %765 : vector<1x64xf32> to vector<16x64xf32>
    %767 = arith.mulf %766, %100 : vector<16x64xf32>
    %768 = math.exp %767 : vector<16x64xf32>
    %769 = vector.extract_strided_slice %99 {offsets = [30, 0], sizes = [1, 64], strides = [1, 1]} : vector<64x64xf32> to vector<1x64xf32>
    %770 = vector.shape_cast %769 : vector<1x64xf32> to vector<1x1x64xf32>
    %771 = vector.extract_strided_slice %97 {offsets = [30, 0], sizes = [1, 16], strides = [1, 1]} : vector<64x16xf32> to vector<1x16xf32>
    %772 = vector.shape_cast %771 : vector<1x16xf32> to vector<1x16x1xf32>
    %773 = vector.broadcast %770 : vector<1x1x64xf32> to vector<1x16x64xf32>
    %774 = vector.broadcast %772 : vector<1x16x1xf32> to vector<1x16x64xf32>
    %775 = arith.mulf %773, %774 : vector<1x16x64xf32>
    %776 = vector.shape_cast %775 : vector<1x16x64xf32> to vector<16x64xf32>
    %777 = vector.extract_strided_slice %98 {offsets = [30, 0], sizes = [1, 16], strides = [1, 1]} : vector<64x16xf32> to vector<1x16xf32>
    %778 = vector.shape_cast %777 : vector<1x16xf32> to vector<1x16x1xf32>
    %779 = vector.shape_cast %778 : vector<1x16x1xf32> to vector<16x1xf32>
    %780 = arith.mulf %759, %768 : vector<16x64xf32>
    %781 = arith.addf %780, %776 : vector<16x64xf32>
    %782 = vector.broadcast %779 : vector<16x1xf32> to vector<16x64xf32>
    %783 = arith.mulf %781, %782 : vector<16x64xf32>
    %cst_100 = arith.constant dense<0.000000e+00> : vector<64xf32>
    %784 = vector.multi_reduction <add>, %783, %cst_100 [0] : vector<16x64xf32> to vector<64xf32>
    %785 = vector.shape_cast %784 : vector<64xf32> to vector<1x64xf32>
    %c30 = arith.constant 30 : index
    %c0_101 = arith.constant 0 : index
    %786 = vector.load %arg17[%c30, %c0_101] : memref<64x64xf32, #tpu.memory_space<vmem>>, vector<1x64xf32>
    tpu.vector_store %arg17[%c30, %c0_101], %785 {strides = array<i32>} : memref<64x64xf32, #tpu.memory_space<vmem>>, vector<1x64xf32>,
    %787 = vector.extract_strided_slice %96 {offsets = [31, 0], sizes = [1, 64], strides = [1, 1]} : vector<64x64xf32> to vector<1x64xf32>
    %788 = vector.broadcast %787 : vector<1x64xf32> to vector<16x64xf32>
    %789 = arith.mulf %788, %100 : vector<16x64xf32>
    %790 = math.exp %789 : vector<16x64xf32>
    %791 = vector.extract_strided_slice %99 {offsets = [31, 0], sizes = [1, 64], strides = [1, 1]} : vector<64x64xf32> to vector<1x64xf32>
    %792 = vector.shape_cast %791 : vector<1x64xf32> to vector<1x1x64xf32>
    %793 = vector.extract_strided_slice %97 {offsets = [31, 0], sizes = [1, 16], strides = [1, 1]} : vector<64x16xf32> to vector<1x16xf32>
    %794 = vector.shape_cast %793 : vector<1x16xf32> to vector<1x16x1xf32>
    %795 = vector.broadcast %792 : vector<1x1x64xf32> to vector<1x16x64xf32>
    %796 = vector.broadcast %794 : vector<1x16x1xf32> to vector<1x16x64xf32>
    %797 = arith.mulf %795, %796 : vector<1x16x64xf32>
    %798 = vector.shape_cast %797 : vector<1x16x64xf32> to vector<16x64xf32>
    %799 = vector.extract_strided_slice %98 {offsets = [31, 0], sizes = [1, 16], strides = [1, 1]} : vector<64x16xf32> to vector<1x16xf32>
    %800 = vector.shape_cast %799 : vector<1x16xf32> to vector<1x16x1xf32>
    %801 = vector.shape_cast %800 : vector<1x16x1xf32> to vector<16x1xf32>
    %802 = arith.mulf %781, %790 : vector<16x64xf32>
    %803 = arith.addf %802, %798 : vector<16x64xf32>
    %804 = vector.broadcast %801 : vector<16x1xf32> to vector<16x64xf32>
    %805 = arith.mulf %803, %804 : vector<16x64xf32>
    %cst_102 = arith.constant dense<0.000000e+00> : vector<64xf32>
    %806 = vector.multi_reduction <add>, %805, %cst_102 [0] : vector<16x64xf32> to vector<64xf32>
    %807 = vector.shape_cast %806 : vector<64xf32> to vector<1x64xf32>
    %c31 = arith.constant 31 : index
    %c0_103 = arith.constant 0 : index
    %808 = vector.load %arg17[%c31, %c0_103] : memref<64x64xf32, #tpu.memory_space<vmem>>, vector<1x64xf32>
    tpu.vector_store %arg17[%c31, %c0_103], %807 {strides = array<i32>} : memref<64x64xf32, #tpu.memory_space<vmem>>, vector<1x64xf32>,
    %cst_104 = arith.constant 0.000000e+00 : f32
    %809 = vector.broadcast %cst_104 : f32 to vector<16x64xf32>
    %810 = vector.extract_strided_slice %96 {offsets = [32, 0], sizes = [1, 64], strides = [1, 1]} : vector<64x64xf32> to vector<1x64xf32>
    %811 = vector.broadcast %810 : vector<1x64xf32> to vector<16x64xf32>
    %812 = arith.mulf %811, %100 : vector<16x64xf32>
    %813 = math.exp %812 : vector<16x64xf32>
    %814 = vector.extract_strided_slice %99 {offsets = [32, 0], sizes = [1, 64], strides = [1, 1]} : vector<64x64xf32> to vector<1x64xf32>
    %815 = vector.shape_cast %814 : vector<1x64xf32> to vector<1x1x64xf32>
    %816 = vector.extract_strided_slice %97 {offsets = [32, 0], sizes = [1, 16], strides = [1, 1]} : vector<64x16xf32> to vector<1x16xf32>
    %817 = vector.shape_cast %816 : vector<1x16xf32> to vector<1x16x1xf32>
    %818 = vector.broadcast %815 : vector<1x1x64xf32> to vector<1x16x64xf32>
    %819 = vector.broadcast %817 : vector<1x16x1xf32> to vector<1x16x64xf32>
    %820 = arith.mulf %818, %819 : vector<1x16x64xf32>
    %821 = vector.shape_cast %820 : vector<1x16x64xf32> to vector<16x64xf32>
    %822 = vector.extract_strided_slice %98 {offsets = [32, 0], sizes = [1, 16], strides = [1, 1]} : vector<64x16xf32> to vector<1x16xf32>
    %823 = vector.shape_cast %822 : vector<1x16xf32> to vector<1x16x1xf32>
    %824 = vector.shape_cast %823 : vector<1x16x1xf32> to vector<16x1xf32>
    %825 = arith.mulf %809, %813 : vector<16x64xf32>
    %826 = arith.addf %825, %821 : vector<16x64xf32>
    %827 = vector.broadcast %824 : vector<16x1xf32> to vector<16x64xf32>
    %828 = arith.mulf %826, %827 : vector<16x64xf32>
    %cst_105 = arith.constant dense<0.000000e+00> : vector<64xf32>
    %829 = vector.multi_reduction <add>, %828, %cst_105 [0] : vector<16x64xf32> to vector<64xf32>
    %830 = vector.shape_cast %829 : vector<64xf32> to vector<1x64xf32>
    %c32 = arith.constant 32 : index
    %c0_106 = arith.constant 0 : index
    %831 = vector.load %arg17[%c32, %c0_106] : memref<64x64xf32, #tpu.memory_space<vmem>>, vector<1x64xf32>
    tpu.vector_store %arg17[%c32, %c0_106], %830 {strides = array<i32>} : memref<64x64xf32, #tpu.memory_space<vmem>>, vector<1x64xf32>,
    %832 = vector.extract_strided_slice %96 {offsets = [33, 0], sizes = [1, 64], strides = [1, 1]} : vector<64x64xf32> to vector<1x64xf32>
    %833 = vector.broadcast %832 : vector<1x64xf32> to vector<16x64xf32>
    %834 = arith.mulf %833, %100 : vector<16x64xf32>
    %835 = math.exp %834 : vector<16x64xf32>
    %836 = vector.extract_strided_slice %99 {offsets = [33, 0], sizes = [1, 64], strides = [1, 1]} : vector<64x64xf32> to vector<1x64xf32>
    %837 = vector.shape_cast %836 : vector<1x64xf32> to vector<1x1x64xf32>
    %838 = vector.extract_strided_slice %97 {offsets = [33, 0], sizes = [1, 16], strides = [1, 1]} : vector<64x16xf32> to vector<1x16xf32>
    %839 = vector.shape_cast %838 : vector<1x16xf32> to vector<1x16x1xf32>
    %840 = vector.broadcast %837 : vector<1x1x64xf32> to vector<1x16x64xf32>
    %841 = vector.broadcast %839 : vector<1x16x1xf32> to vector<1x16x64xf32>
    %842 = arith.mulf %840, %841 : vector<1x16x64xf32>
    %843 = vector.shape_cast %842 : vector<1x16x64xf32> to vector<16x64xf32>
    %844 = vector.extract_strided_slice %98 {offsets = [33, 0], sizes = [1, 16], strides = [1, 1]} : vector<64x16xf32> to vector<1x16xf32>
    %845 = vector.shape_cast %844 : vector<1x16xf32> to vector<1x16x1xf32>
    %846 = vector.shape_cast %845 : vector<1x16x1xf32> to vector<16x1xf32>
    %847 = arith.mulf %826, %835 : vector<16x64xf32>
    %848 = arith.addf %847, %843 : vector<16x64xf32>
    %849 = vector.broadcast %846 : vector<16x1xf32> to vector<16x64xf32>
    %850 = arith.mulf %848, %849 : vector<16x64xf32>
    %cst_107 = arith.constant dense<0.000000e+00> : vector<64xf32>
    %851 = vector.multi_reduction <add>, %850, %cst_107 [0] : vector<16x64xf32> to vector<64xf32>
    %852 = vector.shape_cast %851 : vector<64xf32> to vector<1x64xf32>
    %c33 = arith.constant 33 : index
    %c0_108 = arith.constant 0 : index
    %853 = vector.load %arg17[%c33, %c0_108] : memref<64x64xf32, #tpu.memory_space<vmem>>, vector<1x64xf32>
    tpu.vector_store %arg17[%c33, %c0_108], %852 {strides = array<i32>} : memref<64x64xf32, #tpu.memory_space<vmem>>, vector<1x64xf32>,
    %854 = vector.extract_strided_slice %96 {offsets = [34, 0], sizes = [1, 64], strides = [1, 1]} : vector<64x64xf32> to vector<1x64xf32>
    %855 = vector.broadcast %854 : vector<1x64xf32> to vector<16x64xf32>
    %856 = arith.mulf %855, %100 : vector<16x64xf32>
    %857 = math.exp %856 : vector<16x64xf32>
    %858 = vector.extract_strided_slice %99 {offsets = [34, 0], sizes = [1, 64], strides = [1, 1]} : vector<64x64xf32> to vector<1x64xf32>
    %859 = vector.shape_cast %858 : vector<1x64xf32> to vector<1x1x64xf32>
    %860 = vector.extract_strided_slice %97 {offsets = [34, 0], sizes = [1, 16], strides = [1, 1]} : vector<64x16xf32> to vector<1x16xf32>
    %861 = vector.shape_cast %860 : vector<1x16xf32> to vector<1x16x1xf32>
    %862 = vector.broadcast %859 : vector<1x1x64xf32> to vector<1x16x64xf32>
    %863 = vector.broadcast %861 : vector<1x16x1xf32> to vector<1x16x64xf32>
    %864 = arith.mulf %862, %863 : vector<1x16x64xf32>
    %865 = vector.shape_cast %864 : vector<1x16x64xf32> to vector<16x64xf32>
    %866 = vector.extract_strided_slice %98 {offsets = [34, 0], sizes = [1, 16], strides = [1, 1]} : vector<64x16xf32> to vector<1x16xf32>
    %867 = vector.shape_cast %866 : vector<1x16xf32> to vector<1x16x1xf32>
    %868 = vector.shape_cast %867 : vector<1x16x1xf32> to vector<16x1xf32>
    %869 = arith.mulf %848, %857 : vector<16x64xf32>
    %870 = arith.addf %869, %865 : vector<16x64xf32>
    %871 = vector.broadcast %868 : vector<16x1xf32> to vector<16x64xf32>
    %872 = arith.mulf %870, %871 : vector<16x64xf32>
    %cst_109 = arith.constant dense<0.000000e+00> : vector<64xf32>
    %873 = vector.multi_reduction <add>, %872, %cst_109 [0] : vector<16x64xf32> to vector<64xf32>
    %874 = vector.shape_cast %873 : vector<64xf32> to vector<1x64xf32>
    %c34 = arith.constant 34 : index
    %c0_110 = arith.constant 0 : index
    %875 = vector.load %arg17[%c34, %c0_110] : memref<64x64xf32, #tpu.memory_space<vmem>>, vector<1x64xf32>
    tpu.vector_store %arg17[%c34, %c0_110], %874 {strides = array<i32>} : memref<64x64xf32, #tpu.memory_space<vmem>>, vector<1x64xf32>,
    %876 = vector.extract_strided_slice %96 {offsets = [35, 0], sizes = [1, 64], strides = [1, 1]} : vector<64x64xf32> to vector<1x64xf32>
    %877 = vector.broadcast %876 : vector<1x64xf32> to vector<16x64xf32>
    %878 = arith.mulf %877, %100 : vector<16x64xf32>
    %879 = math.exp %878 : vector<16x64xf32>
    %880 = vector.extract_strided_slice %99 {offsets = [35, 0], sizes = [1, 64], strides = [1, 1]} : vector<64x64xf32> to vector<1x64xf32>
    %881 = vector.shape_cast %880 : vector<1x64xf32> to vector<1x1x64xf32>
    %882 = vector.extract_strided_slice %97 {offsets = [35, 0], sizes = [1, 16], strides = [1, 1]} : vector<64x16xf32> to vector<1x16xf32>
    %883 = vector.shape_cast %882 : vector<1x16xf32> to vector<1x16x1xf32>
    %884 = vector.broadcast %881 : vector<1x1x64xf32> to vector<1x16x64xf32>
    %885 = vector.broadcast %883 : vector<1x16x1xf32> to vector<1x16x64xf32>
    %886 = arith.mulf %884, %885 : vector<1x16x64xf32>
    %887 = vector.shape_cast %886 : vector<1x16x64xf32> to vector<16x64xf32>
    %888 = vector.extract_strided_slice %98 {offsets = [35, 0], sizes = [1, 16], strides = [1, 1]} : vector<64x16xf32> to vector<1x16xf32>
    %889 = vector.shape_cast %888 : vector<1x16xf32> to vector<1x16x1xf32>
    %890 = vector.shape_cast %889 : vector<1x16x1xf32> to vector<16x1xf32>
    %891 = arith.mulf %870, %879 : vector<16x64xf32>
    %892 = arith.addf %891, %887 : vector<16x64xf32>
    %893 = vector.broadcast %890 : vector<16x1xf32> to vector<16x64xf32>
    %894 = arith.mulf %892, %893 : vector<16x64xf32>
    %cst_111 = arith.constant dense<0.000000e+00> : vector<64xf32>
    %895 = vector.multi_reduction <add>, %894, %cst_111 [0] : vector<16x64xf32> to vector<64xf32>
    %896 = vector.shape_cast %895 : vector<64xf32> to vector<1x64xf32>
    %c35 = arith.constant 35 : index
    %c0_112 = arith.constant 0 : index
    %897 = vector.load %arg17[%c35, %c0_112] : memref<64x64xf32, #tpu.memory_space<vmem>>, vector<1x64xf32>
    tpu.vector_store %arg17[%c35, %c0_112], %896 {strides = array<i32>} : memref<64x64xf32, #tpu.memory_space<vmem>>, vector<1x64xf32>,
    %898 = vector.extract_strided_slice %96 {offsets = [36, 0], sizes = [1, 64], strides = [1, 1]} : vector<64x64xf32> to vector<1x64xf32>
    %899 = vector.broadcast %898 : vector<1x64xf32> to vector<16x64xf32>
    %900 = arith.mulf %899, %100 : vector<16x64xf32>
    %901 = math.exp %900 : vector<16x64xf32>
    %902 = vector.extract_strided_slice %99 {offsets = [36, 0], sizes = [1, 64], strides = [1, 1]} : vector<64x64xf32> to vector<1x64xf32>
    %903 = vector.shape_cast %902 : vector<1x64xf32> to vector<1x1x64xf32>
    %904 = vector.extract_strided_slice %97 {offsets = [36, 0], sizes = [1, 16], strides = [1, 1]} : vector<64x16xf32> to vector<1x16xf32>
    %905 = vector.shape_cast %904 : vector<1x16xf32> to vector<1x16x1xf32>
    %906 = vector.broadcast %903 : vector<1x1x64xf32> to vector<1x16x64xf32>
    %907 = vector.broadcast %905 : vector<1x16x1xf32> to vector<1x16x64xf32>
    %908 = arith.mulf %906, %907 : vector<1x16x64xf32>
    %909 = vector.shape_cast %908 : vector<1x16x64xf32> to vector<16x64xf32>
    %910 = vector.extract_strided_slice %98 {offsets = [36, 0], sizes = [1, 16], strides = [1, 1]} : vector<64x16xf32> to vector<1x16xf32>
    %911 = vector.shape_cast %910 : vector<1x16xf32> to vector<1x16x1xf32>
    %912 = vector.shape_cast %911 : vector<1x16x1xf32> to vector<16x1xf32>
    %913 = arith.mulf %892, %901 : vector<16x64xf32>
    %914 = arith.addf %913, %909 : vector<16x64xf32>
    %915 = vector.broadcast %912 : vector<16x1xf32> to vector<16x64xf32>
    %916 = arith.mulf %914, %915 : vector<16x64xf32>
    %cst_113 = arith.constant dense<0.000000e+00> : vector<64xf32>
    %917 = vector.multi_reduction <add>, %916, %cst_113 [0] : vector<16x64xf32> to vector<64xf32>
    %918 = vector.shape_cast %917 : vector<64xf32> to vector<1x64xf32>
    %c36 = arith.constant 36 : index
    %c0_114 = arith.constant 0 : index
    %919 = vector.load %arg17[%c36, %c0_114] : memref<64x64xf32, #tpu.memory_space<vmem>>, vector<1x64xf32>
    tpu.vector_store %arg17[%c36, %c0_114], %918 {strides = array<i32>} : memref<64x64xf32, #tpu.memory_space<vmem>>, vector<1x64xf32>,
    %920 = vector.extract_strided_slice %96 {offsets = [37, 0], sizes = [1, 64], strides = [1, 1]} : vector<64x64xf32> to vector<1x64xf32>
    %921 = vector.broadcast %920 : vector<1x64xf32> to vector<16x64xf32>
    %922 = arith.mulf %921, %100 : vector<16x64xf32>
    %923 = math.exp %922 : vector<16x64xf32>
    %924 = vector.extract_strided_slice %99 {offsets = [37, 0], sizes = [1, 64], strides = [1, 1]} : vector<64x64xf32> to vector<1x64xf32>
    %925 = vector.shape_cast %924 : vector<1x64xf32> to vector<1x1x64xf32>
    %926 = vector.extract_strided_slice %97 {offsets = [37, 0], sizes = [1, 16], strides = [1, 1]} : vector<64x16xf32> to vector<1x16xf32>
    %927 = vector.shape_cast %926 : vector<1x16xf32> to vector<1x16x1xf32>
    %928 = vector.broadcast %925 : vector<1x1x64xf32> to vector<1x16x64xf32>
    %929 = vector.broadcast %927 : vector<1x16x1xf32> to vector<1x16x64xf32>
    %930 = arith.mulf %928, %929 : vector<1x16x64xf32>
    %931 = vector.shape_cast %930 : vector<1x16x64xf32> to vector<16x64xf32>
    %932 = vector.extract_strided_slice %98 {offsets = [37, 0], sizes = [1, 16], strides = [1, 1]} : vector<64x16xf32> to vector<1x16xf32>
    %933 = vector.shape_cast %932 : vector<1x16xf32> to vector<1x16x1xf32>
    %934 = vector.shape_cast %933 : vector<1x16x1xf32> to vector<16x1xf32>
    %935 = arith.mulf %914, %923 : vector<16x64xf32>
    %936 = arith.addf %935, %931 : vector<16x64xf32>
    %937 = vector.broadcast %934 : vector<16x1xf32> to vector<16x64xf32>
    %938 = arith.mulf %936, %937 : vector<16x64xf32>
    %cst_115 = arith.constant dense<0.000000e+00> : vector<64xf32>
    %939 = vector.multi_reduction <add>, %938, %cst_115 [0] : vector<16x64xf32> to vector<64xf32>
    %940 = vector.shape_cast %939 : vector<64xf32> to vector<1x64xf32>
    %c37 = arith.constant 37 : index
    %c0_116 = arith.constant 0 : index
    %941 = vector.load %arg17[%c37, %c0_116] : memref<64x64xf32, #tpu.memory_space<vmem>>, vector<1x64xf32>
    tpu.vector_store %arg17[%c37, %c0_116], %940 {strides = array<i32>} : memref<64x64xf32, #tpu.memory_space<vmem>>, vector<1x64xf32>,
    %942 = vector.extract_strided_slice %96 {offsets = [38, 0], sizes = [1, 64], strides = [1, 1]} : vector<64x64xf32> to vector<1x64xf32>
    %943 = vector.broadcast %942 : vector<1x64xf32> to vector<16x64xf32>
    %944 = arith.mulf %943, %100 : vector<16x64xf32>
    %945 = math.exp %944 : vector<16x64xf32>
    %946 = vector.extract_strided_slice %99 {offsets = [38, 0], sizes = [1, 64], strides = [1, 1]} : vector<64x64xf32> to vector<1x64xf32>
    %947 = vector.shape_cast %946 : vector<1x64xf32> to vector<1x1x64xf32>
    %948 = vector.extract_strided_slice %97 {offsets = [38, 0], sizes = [1, 16], strides = [1, 1]} : vector<64x16xf32> to vector<1x16xf32>
    %949 = vector.shape_cast %948 : vector<1x16xf32> to vector<1x16x1xf32>
    %950 = vector.broadcast %947 : vector<1x1x64xf32> to vector<1x16x64xf32>
    %951 = vector.broadcast %949 : vector<1x16x1xf32> to vector<1x16x64xf32>
    %952 = arith.mulf %950, %951 : vector<1x16x64xf32>
    %953 = vector.shape_cast %952 : vector<1x16x64xf32> to vector<16x64xf32>
    %954 = vector.extract_strided_slice %98 {offsets = [38, 0], sizes = [1, 16], strides = [1, 1]} : vector<64x16xf32> to vector<1x16xf32>
    %955 = vector.shape_cast %954 : vector<1x16xf32> to vector<1x16x1xf32>
    %956 = vector.shape_cast %955 : vector<1x16x1xf32> to vector<16x1xf32>
    %957 = arith.mulf %936, %945 : vector<16x64xf32>
    %958 = arith.addf %957, %953 : vector<16x64xf32>
    %959 = vector.broadcast %956 : vector<16x1xf32> to vector<16x64xf32>
    %960 = arith.mulf %958, %959 : vector<16x64xf32>
    %cst_117 = arith.constant dense<0.000000e+00> : vector<64xf32>
    %961 = vector.multi_reduction <add>, %960, %cst_117 [0] : vector<16x64xf32> to vector<64xf32>
    %962 = vector.shape_cast %961 : vector<64xf32> to vector<1x64xf32>
    %c38 = arith.constant 38 : index
    %c0_118 = arith.constant 0 : index
    %963 = vector.load %arg17[%c38, %c0_118] : memref<64x64xf32, #tpu.memory_space<vmem>>, vector<1x64xf32>
    tpu.vector_store %arg17[%c38, %c0_118], %962 {strides = array<i32>} : memref<64x64xf32, #tpu.memory_space<vmem>>, vector<1x64xf32>,
    %964 = vector.extract_strided_slice %96 {offsets = [39, 0], sizes = [1, 64], strides = [1, 1]} : vector<64x64xf32> to vector<1x64xf32>
    %965 = vector.broadcast %964 : vector<1x64xf32> to vector<16x64xf32>
    %966 = arith.mulf %965, %100 : vector<16x64xf32>
    %967 = math.exp %966 : vector<16x64xf32>
    %968 = vector.extract_strided_slice %99 {offsets = [39, 0], sizes = [1, 64], strides = [1, 1]} : vector<64x64xf32> to vector<1x64xf32>
    %969 = vector.shape_cast %968 : vector<1x64xf32> to vector<1x1x64xf32>
    %970 = vector.extract_strided_slice %97 {offsets = [39, 0], sizes = [1, 16], strides = [1, 1]} : vector<64x16xf32> to vector<1x16xf32>
    %971 = vector.shape_cast %970 : vector<1x16xf32> to vector<1x16x1xf32>
    %972 = vector.broadcast %969 : vector<1x1x64xf32> to vector<1x16x64xf32>
    %973 = vector.broadcast %971 : vector<1x16x1xf32> to vector<1x16x64xf32>
    %974 = arith.mulf %972, %973 : vector<1x16x64xf32>
    %975 = vector.shape_cast %974 : vector<1x16x64xf32> to vector<16x64xf32>
    %976 = vector.extract_strided_slice %98 {offsets = [39, 0], sizes = [1, 16], strides = [1, 1]} : vector<64x16xf32> to vector<1x16xf32>
    %977 = vector.shape_cast %976 : vector<1x16xf32> to vector<1x16x1xf32>
    %978 = vector.shape_cast %977 : vector<1x16x1xf32> to vector<16x1xf32>
    %979 = arith.mulf %958, %967 : vector<16x64xf32>
    %980 = arith.addf %979, %975 : vector<16x64xf32>
    %981 = vector.broadcast %978 : vector<16x1xf32> to vector<16x64xf32>
    %982 = arith.mulf %980, %981 : vector<16x64xf32>
    %cst_119 = arith.constant dense<0.000000e+00> : vector<64xf32>
    %983 = vector.multi_reduction <add>, %982, %cst_119 [0] : vector<16x64xf32> to vector<64xf32>
    %984 = vector.shape_cast %983 : vector<64xf32> to vector<1x64xf32>
    %c39 = arith.constant 39 : index
    %c0_120 = arith.constant 0 : index
    %985 = vector.load %arg17[%c39, %c0_120] : memref<64x64xf32, #tpu.memory_space<vmem>>, vector<1x64xf32>
    tpu.vector_store %arg17[%c39, %c0_120], %984 {strides = array<i32>} : memref<64x64xf32, #tpu.memory_space<vmem>>, vector<1x64xf32>,
    %cst_121 = arith.constant 0.000000e+00 : f32
    %986 = vector.broadcast %cst_121 : f32 to vector<16x64xf32>
    %987 = vector.extract_strided_slice %96 {offsets = [40, 0], sizes = [1, 64], strides = [1, 1]} : vector<64x64xf32> to vector<1x64xf32>
    %988 = vector.broadcast %987 : vector<1x64xf32> to vector<16x64xf32>
    %989 = arith.mulf %988, %100 : vector<16x64xf32>
    %990 = math.exp %989 : vector<16x64xf32>
    %991 = vector.extract_strided_slice %99 {offsets = [40, 0], sizes = [1, 64], strides = [1, 1]} : vector<64x64xf32> to vector<1x64xf32>
    %992 = vector.shape_cast %991 : vector<1x64xf32> to vector<1x1x64xf32>
    %993 = vector.extract_strided_slice %97 {offsets = [40, 0], sizes = [1, 16], strides = [1, 1]} : vector<64x16xf32> to vector<1x16xf32>
    %994 = vector.shape_cast %993 : vector<1x16xf32> to vector<1x16x1xf32>
    %995 = vector.broadcast %992 : vector<1x1x64xf32> to vector<1x16x64xf32>
    %996 = vector.broadcast %994 : vector<1x16x1xf32> to vector<1x16x64xf32>
    %997 = arith.mulf %995, %996 : vector<1x16x64xf32>
    %998 = vector.shape_cast %997 : vector<1x16x64xf32> to vector<16x64xf32>
    %999 = vector.extract_strided_slice %98 {offsets = [40, 0], sizes = [1, 16], strides = [1, 1]} : vector<64x16xf32> to vector<1x16xf32>
    %1000 = vector.shape_cast %999 : vector<1x16xf32> to vector<1x16x1xf32>
    %1001 = vector.shape_cast %1000 : vector<1x16x1xf32> to vector<16x1xf32>
    %1002 = arith.mulf %986, %990 : vector<16x64xf32>
    %1003 = arith.addf %1002, %998 : vector<16x64xf32>
    %1004 = vector.broadcast %1001 : vector<16x1xf32> to vector<16x64xf32>
    %1005 = arith.mulf %1003, %1004 : vector<16x64xf32>
    %cst_122 = arith.constant dense<0.000000e+00> : vector<64xf32>
    %1006 = vector.multi_reduction <add>, %1005, %cst_122 [0] : vector<16x64xf32> to vector<64xf32>
    %1007 = vector.shape_cast %1006 : vector<64xf32> to vector<1x64xf32>
    %c40 = arith.constant 40 : index
    %c0_123 = arith.constant 0 : index
    %1008 = vector.load %arg17[%c40, %c0_123] : memref<64x64xf32, #tpu.memory_space<vmem>>, vector<1x64xf32>
    tpu.vector_store %arg17[%c40, %c0_123], %1007 {strides = array<i32>} : memref<64x64xf32, #tpu.memory_space<vmem>>, vector<1x64xf32>,
    %1009 = vector.extract_strided_slice %96 {offsets = [41, 0], sizes = [1, 64], strides = [1, 1]} : vector<64x64xf32> to vector<1x64xf32>
    %1010 = vector.broadcast %1009 : vector<1x64xf32> to vector<16x64xf32>
    %1011 = arith.mulf %1010, %100 : vector<16x64xf32>
    %1012 = math.exp %1011 : vector<16x64xf32>
    %1013 = vector.extract_strided_slice %99 {offsets = [41, 0], sizes = [1, 64], strides = [1, 1]} : vector<64x64xf32> to vector<1x64xf32>
    %1014 = vector.shape_cast %1013 : vector<1x64xf32> to vector<1x1x64xf32>
    %1015 = vector.extract_strided_slice %97 {offsets = [41, 0], sizes = [1, 16], strides = [1, 1]} : vector<64x16xf32> to vector<1x16xf32>
    %1016 = vector.shape_cast %1015 : vector<1x16xf32> to vector<1x16x1xf32>
    %1017 = vector.broadcast %1014 : vector<1x1x64xf32> to vector<1x16x64xf32>
    %1018 = vector.broadcast %1016 : vector<1x16x1xf32> to vector<1x16x64xf32>
    %1019 = arith.mulf %1017, %1018 : vector<1x16x64xf32>
    %1020 = vector.shape_cast %1019 : vector<1x16x64xf32> to vector<16x64xf32>
    %1021 = vector.extract_strided_slice %98 {offsets = [41, 0], sizes = [1, 16], strides = [1, 1]} : vector<64x16xf32> to vector<1x16xf32>
    %1022 = vector.shape_cast %1021 : vector<1x16xf32> to vector<1x16x1xf32>
    %1023 = vector.shape_cast %1022 : vector<1x16x1xf32> to vector<16x1xf32>
    %1024 = arith.mulf %1003, %1012 : vector<16x64xf32>
    %1025 = arith.addf %1024, %1020 : vector<16x64xf32>
    %1026 = vector.broadcast %1023 : vector<16x1xf32> to vector<16x64xf32>
    %1027 = arith.mulf %1025, %1026 : vector<16x64xf32>
    %cst_124 = arith.constant dense<0.000000e+00> : vector<64xf32>
    %1028 = vector.multi_reduction <add>, %1027, %cst_124 [0] : vector<16x64xf32> to vector<64xf32>
    %1029 = vector.shape_cast %1028 : vector<64xf32> to vector<1x64xf32>
    %c41 = arith.constant 41 : index
    %c0_125 = arith.constant 0 : index
    %1030 = vector.load %arg17[%c41, %c0_125] : memref<64x64xf32, #tpu.memory_space<vmem>>, vector<1x64xf32>
    tpu.vector_store %arg17[%c41, %c0_125], %1029 {strides = array<i32>} : memref<64x64xf32, #tpu.memory_space<vmem>>, vector<1x64xf32>,
    %1031 = vector.extract_strided_slice %96 {offsets = [42, 0], sizes = [1, 64], strides = [1, 1]} : vector<64x64xf32> to vector<1x64xf32>
    %1032 = vector.broadcast %1031 : vector<1x64xf32> to vector<16x64xf32>
    %1033 = arith.mulf %1032, %100 : vector<16x64xf32>
    %1034 = math.exp %1033 : vector<16x64xf32>
    %1035 = vector.extract_strided_slice %99 {offsets = [42, 0], sizes = [1, 64], strides = [1, 1]} : vector<64x64xf32> to vector<1x64xf32>
    %1036 = vector.shape_cast %1035 : vector<1x64xf32> to vector<1x1x64xf32>
    %1037 = vector.extract_strided_slice %97 {offsets = [42, 0], sizes = [1, 16], strides = [1, 1]} : vector<64x16xf32> to vector<1x16xf32>
    %1038 = vector.shape_cast %1037 : vector<1x16xf32> to vector<1x16x1xf32>
    %1039 = vector.broadcast %1036 : vector<1x1x64xf32> to vector<1x16x64xf32>
    %1040 = vector.broadcast %1038 : vector<1x16x1xf32> to vector<1x16x64xf32>
    %1041 = arith.mulf %1039, %1040 : vector<1x16x64xf32>
    %1042 = vector.shape_cast %1041 : vector<1x16x64xf32> to vector<16x64xf32>
    %1043 = vector.extract_strided_slice %98 {offsets = [42, 0], sizes = [1, 16], strides = [1, 1]} : vector<64x16xf32> to vector<1x16xf32>
    %1044 = vector.shape_cast %1043 : vector<1x16xf32> to vector<1x16x1xf32>
    %1045 = vector.shape_cast %1044 : vector<1x16x1xf32> to vector<16x1xf32>
    %1046 = arith.mulf %1025, %1034 : vector<16x64xf32>
    %1047 = arith.addf %1046, %1042 : vector<16x64xf32>
    %1048 = vector.broadcast %1045 : vector<16x1xf32> to vector<16x64xf32>
    %1049 = arith.mulf %1047, %1048 : vector<16x64xf32>
    %cst_126 = arith.constant dense<0.000000e+00> : vector<64xf32>
    %1050 = vector.multi_reduction <add>, %1049, %cst_126 [0] : vector<16x64xf32> to vector<64xf32>
    %1051 = vector.shape_cast %1050 : vector<64xf32> to vector<1x64xf32>
    %c42 = arith.constant 42 : index
    %c0_127 = arith.constant 0 : index
    %1052 = vector.load %arg17[%c42, %c0_127] : memref<64x64xf32, #tpu.memory_space<vmem>>, vector<1x64xf32>
    tpu.vector_store %arg17[%c42, %c0_127], %1051 {strides = array<i32>} : memref<64x64xf32, #tpu.memory_space<vmem>>, vector<1x64xf32>,
    %1053 = vector.extract_strided_slice %96 {offsets = [43, 0], sizes = [1, 64], strides = [1, 1]} : vector<64x64xf32> to vector<1x64xf32>
    %1054 = vector.broadcast %1053 : vector<1x64xf32> to vector<16x64xf32>
    %1055 = arith.mulf %1054, %100 : vector<16x64xf32>
    %1056 = math.exp %1055 : vector<16x64xf32>
    %1057 = vector.extract_strided_slice %99 {offsets = [43, 0], sizes = [1, 64], strides = [1, 1]} : vector<64x64xf32> to vector<1x64xf32>
    %1058 = vector.shape_cast %1057 : vector<1x64xf32> to vector<1x1x64xf32>
    %1059 = vector.extract_strided_slice %97 {offsets = [43, 0], sizes = [1, 16], strides = [1, 1]} : vector<64x16xf32> to vector<1x16xf32>
    %1060 = vector.shape_cast %1059 : vector<1x16xf32> to vector<1x16x1xf32>
    %1061 = vector.broadcast %1058 : vector<1x1x64xf32> to vector<1x16x64xf32>
    %1062 = vector.broadcast %1060 : vector<1x16x1xf32> to vector<1x16x64xf32>
    %1063 = arith.mulf %1061, %1062 : vector<1x16x64xf32>
    %1064 = vector.shape_cast %1063 : vector<1x16x64xf32> to vector<16x64xf32>
    %1065 = vector.extract_strided_slice %98 {offsets = [43, 0], sizes = [1, 16], strides = [1, 1]} : vector<64x16xf32> to vector<1x16xf32>
    %1066 = vector.shape_cast %1065 : vector<1x16xf32> to vector<1x16x1xf32>
    %1067 = vector.shape_cast %1066 : vector<1x16x1xf32> to vector<16x1xf32>
    %1068 = arith.mulf %1047, %1056 : vector<16x64xf32>
    %1069 = arith.addf %1068, %1064 : vector<16x64xf32>
    %1070 = vector.broadcast %1067 : vector<16x1xf32> to vector<16x64xf32>
    %1071 = arith.mulf %1069, %1070 : vector<16x64xf32>
    %cst_128 = arith.constant dense<0.000000e+00> : vector<64xf32>
    %1072 = vector.multi_reduction <add>, %1071, %cst_128 [0] : vector<16x64xf32> to vector<64xf32>
    %1073 = vector.shape_cast %1072 : vector<64xf32> to vector<1x64xf32>
    %c43 = arith.constant 43 : index
    %c0_129 = arith.constant 0 : index
    %1074 = vector.load %arg17[%c43, %c0_129] : memref<64x64xf32, #tpu.memory_space<vmem>>, vector<1x64xf32>
    tpu.vector_store %arg17[%c43, %c0_129], %1073 {strides = array<i32>} : memref<64x64xf32, #tpu.memory_space<vmem>>, vector<1x64xf32>,
    %1075 = vector.extract_strided_slice %96 {offsets = [44, 0], sizes = [1, 64], strides = [1, 1]} : vector<64x64xf32> to vector<1x64xf32>
    %1076 = vector.broadcast %1075 : vector<1x64xf32> to vector<16x64xf32>
    %1077 = arith.mulf %1076, %100 : vector<16x64xf32>
    %1078 = math.exp %1077 : vector<16x64xf32>
    %1079 = vector.extract_strided_slice %99 {offsets = [44, 0], sizes = [1, 64], strides = [1, 1]} : vector<64x64xf32> to vector<1x64xf32>
    %1080 = vector.shape_cast %1079 : vector<1x64xf32> to vector<1x1x64xf32>
    %1081 = vector.extract_strided_slice %97 {offsets = [44, 0], sizes = [1, 16], strides = [1, 1]} : vector<64x16xf32> to vector<1x16xf32>
    %1082 = vector.shape_cast %1081 : vector<1x16xf32> to vector<1x16x1xf32>
    %1083 = vector.broadcast %1080 : vector<1x1x64xf32> to vector<1x16x64xf32>
    %1084 = vector.broadcast %1082 : vector<1x16x1xf32> to vector<1x16x64xf32>
    %1085 = arith.mulf %1083, %1084 : vector<1x16x64xf32>
    %1086 = vector.shape_cast %1085 : vector<1x16x64xf32> to vector<16x64xf32>
    %1087 = vector.extract_strided_slice %98 {offsets = [44, 0], sizes = [1, 16], strides = [1, 1]} : vector<64x16xf32> to vector<1x16xf32>
    %1088 = vector.shape_cast %1087 : vector<1x16xf32> to vector<1x16x1xf32>
    %1089 = vector.shape_cast %1088 : vector<1x16x1xf32> to vector<16x1xf32>
    %1090 = arith.mulf %1069, %1078 : vector<16x64xf32>
    %1091 = arith.addf %1090, %1086 : vector<16x64xf32>
    %1092 = vector.broadcast %1089 : vector<16x1xf32> to vector<16x64xf32>
    %1093 = arith.mulf %1091, %1092 : vector<16x64xf32>
    %cst_130 = arith.constant dense<0.000000e+00> : vector<64xf32>
    %1094 = vector.multi_reduction <add>, %1093, %cst_130 [0] : vector<16x64xf32> to vector<64xf32>
    %1095 = vector.shape_cast %1094 : vector<64xf32> to vector<1x64xf32>
    %c44 = arith.constant 44 : index
    %c0_131 = arith.constant 0 : index
    %1096 = vector.load %arg17[%c44, %c0_131] : memref<64x64xf32, #tpu.memory_space<vmem>>, vector<1x64xf32>
    tpu.vector_store %arg17[%c44, %c0_131], %1095 {strides = array<i32>} : memref<64x64xf32, #tpu.memory_space<vmem>>, vector<1x64xf32>,
    %1097 = vector.extract_strided_slice %96 {offsets = [45, 0], sizes = [1, 64], strides = [1, 1]} : vector<64x64xf32> to vector<1x64xf32>
    %1098 = vector.broadcast %1097 : vector<1x64xf32> to vector<16x64xf32>
    %1099 = arith.mulf %1098, %100 : vector<16x64xf32>
    %1100 = math.exp %1099 : vector<16x64xf32>
    %1101 = vector.extract_strided_slice %99 {offsets = [45, 0], sizes = [1, 64], strides = [1, 1]} : vector<64x64xf32> to vector<1x64xf32>
    %1102 = vector.shape_cast %1101 : vector<1x64xf32> to vector<1x1x64xf32>
    %1103 = vector.extract_strided_slice %97 {offsets = [45, 0], sizes = [1, 16], strides = [1, 1]} : vector<64x16xf32> to vector<1x16xf32>
    %1104 = vector.shape_cast %1103 : vector<1x16xf32> to vector<1x16x1xf32>
    %1105 = vector.broadcast %1102 : vector<1x1x64xf32> to vector<1x16x64xf32>
    %1106 = vector.broadcast %1104 : vector<1x16x1xf32> to vector<1x16x64xf32>
    %1107 = arith.mulf %1105, %1106 : vector<1x16x64xf32>
    %1108 = vector.shape_cast %1107 : vector<1x16x64xf32> to vector<16x64xf32>
    %1109 = vector.extract_strided_slice %98 {offsets = [45, 0], sizes = [1, 16], strides = [1, 1]} : vector<64x16xf32> to vector<1x16xf32>
    %1110 = vector.shape_cast %1109 : vector<1x16xf32> to vector<1x16x1xf32>
    %1111 = vector.shape_cast %1110 : vector<1x16x1xf32> to vector<16x1xf32>
    %1112 = arith.mulf %1091, %1100 : vector<16x64xf32>
    %1113 = arith.addf %1112, %1108 : vector<16x64xf32>
    %1114 = vector.broadcast %1111 : vector<16x1xf32> to vector<16x64xf32>
    %1115 = arith.mulf %1113, %1114 : vector<16x64xf32>
    %cst_132 = arith.constant dense<0.000000e+00> : vector<64xf32>
    %1116 = vector.multi_reduction <add>, %1115, %cst_132 [0] : vector<16x64xf32> to vector<64xf32>
    %1117 = vector.shape_cast %1116 : vector<64xf32> to vector<1x64xf32>
    %c45 = arith.constant 45 : index
    %c0_133 = arith.constant 0 : index
    %1118 = vector.load %arg17[%c45, %c0_133] : memref<64x64xf32, #tpu.memory_space<vmem>>, vector<1x64xf32>
    tpu.vector_store %arg17[%c45, %c0_133], %1117 {strides = array<i32>} : memref<64x64xf32, #tpu.memory_space<vmem>>, vector<1x64xf32>,
    %1119 = vector.extract_strided_slice %96 {offsets = [46, 0], sizes = [1, 64], strides = [1, 1]} : vector<64x64xf32> to vector<1x64xf32>
    %1120 = vector.broadcast %1119 : vector<1x64xf32> to vector<16x64xf32>
    %1121 = arith.mulf %1120, %100 : vector<16x64xf32>
    %1122 = math.exp %1121 : vector<16x64xf32>
    %1123 = vector.extract_strided_slice %99 {offsets = [46, 0], sizes = [1, 64], strides = [1, 1]} : vector<64x64xf32> to vector<1x64xf32>
    %1124 = vector.shape_cast %1123 : vector<1x64xf32> to vector<1x1x64xf32>
    %1125 = vector.extract_strided_slice %97 {offsets = [46, 0], sizes = [1, 16], strides = [1, 1]} : vector<64x16xf32> to vector<1x16xf32>
    %1126 = vector.shape_cast %1125 : vector<1x16xf32> to vector<1x16x1xf32>
    %1127 = vector.broadcast %1124 : vector<1x1x64xf32> to vector<1x16x64xf32>
    %1128 = vector.broadcast %1126 : vector<1x16x1xf32> to vector<1x16x64xf32>
    %1129 = arith.mulf %1127, %1128 : vector<1x16x64xf32>
    %1130 = vector.shape_cast %1129 : vector<1x16x64xf32> to vector<16x64xf32>
    %1131 = vector.extract_strided_slice %98 {offsets = [46, 0], sizes = [1, 16], strides = [1, 1]} : vector<64x16xf32> to vector<1x16xf32>
    %1132 = vector.shape_cast %1131 : vector<1x16xf32> to vector<1x16x1xf32>
    %1133 = vector.shape_cast %1132 : vector<1x16x1xf32> to vector<16x1xf32>
    %1134 = arith.mulf %1113, %1122 : vector<16x64xf32>
    %1135 = arith.addf %1134, %1130 : vector<16x64xf32>
    %1136 = vector.broadcast %1133 : vector<16x1xf32> to vector<16x64xf32>
    %1137 = arith.mulf %1135, %1136 : vector<16x64xf32>
    %cst_134 = arith.constant dense<0.000000e+00> : vector<64xf32>
    %1138 = vector.multi_reduction <add>, %1137, %cst_134 [0] : vector<16x64xf32> to vector<64xf32>
    %1139 = vector.shape_cast %1138 : vector<64xf32> to vector<1x64xf32>
    %c46 = arith.constant 46 : index
    %c0_135 = arith.constant 0 : index
    %1140 = vector.load %arg17[%c46, %c0_135] : memref<64x64xf32, #tpu.memory_space<vmem>>, vector<1x64xf32>
    tpu.vector_store %arg17[%c46, %c0_135], %1139 {strides = array<i32>} : memref<64x64xf32, #tpu.memory_space<vmem>>, vector<1x64xf32>,
    %1141 = vector.extract_strided_slice %96 {offsets = [47, 0], sizes = [1, 64], strides = [1, 1]} : vector<64x64xf32> to vector<1x64xf32>
    %1142 = vector.broadcast %1141 : vector<1x64xf32> to vector<16x64xf32>
    %1143 = arith.mulf %1142, %100 : vector<16x64xf32>
    %1144 = math.exp %1143 : vector<16x64xf32>
    %1145 = vector.extract_strided_slice %99 {offsets = [47, 0], sizes = [1, 64], strides = [1, 1]} : vector<64x64xf32> to vector<1x64xf32>
    %1146 = vector.shape_cast %1145 : vector<1x64xf32> to vector<1x1x64xf32>
    %1147 = vector.extract_strided_slice %97 {offsets = [47, 0], sizes = [1, 16], strides = [1, 1]} : vector<64x16xf32> to vector<1x16xf32>
    %1148 = vector.shape_cast %1147 : vector<1x16xf32> to vector<1x16x1xf32>
    %1149 = vector.broadcast %1146 : vector<1x1x64xf32> to vector<1x16x64xf32>
    %1150 = vector.broadcast %1148 : vector<1x16x1xf32> to vector<1x16x64xf32>
    %1151 = arith.mulf %1149, %1150 : vector<1x16x64xf32>
    %1152 = vector.shape_cast %1151 : vector<1x16x64xf32> to vector<16x64xf32>
    %1153 = vector.extract_strided_slice %98 {offsets = [47, 0], sizes = [1, 16], strides = [1, 1]} : vector<64x16xf32> to vector<1x16xf32>
    %1154 = vector.shape_cast %1153 : vector<1x16xf32> to vector<1x16x1xf32>
    %1155 = vector.shape_cast %1154 : vector<1x16x1xf32> to vector<16x1xf32>
    %1156 = arith.mulf %1135, %1144 : vector<16x64xf32>
    %1157 = arith.addf %1156, %1152 : vector<16x64xf32>
    %1158 = vector.broadcast %1155 : vector<16x1xf32> to vector<16x64xf32>
    %1159 = arith.mulf %1157, %1158 : vector<16x64xf32>
    %cst_136 = arith.constant dense<0.000000e+00> : vector<64xf32>
    %1160 = vector.multi_reduction <add>, %1159, %cst_136 [0] : vector<16x64xf32> to vector<64xf32>
    %1161 = vector.shape_cast %1160 : vector<64xf32> to vector<1x64xf32>
    %c47 = arith.constant 47 : index
    %c0_137 = arith.constant 0 : index
    %1162 = vector.load %arg17[%c47, %c0_137] : memref<64x64xf32, #tpu.memory_space<vmem>>, vector<1x64xf32>
    tpu.vector_store %arg17[%c47, %c0_137], %1161 {strides = array<i32>} : memref<64x64xf32, #tpu.memory_space<vmem>>, vector<1x64xf32>,
    %cst_138 = arith.constant 0.000000e+00 : f32
    %1163 = vector.broadcast %cst_138 : f32 to vector<16x64xf32>
    %1164 = vector.extract_strided_slice %96 {offsets = [48, 0], sizes = [1, 64], strides = [1, 1]} : vector<64x64xf32> to vector<1x64xf32>
    %1165 = vector.broadcast %1164 : vector<1x64xf32> to vector<16x64xf32>
    %1166 = arith.mulf %1165, %100 : vector<16x64xf32>
    %1167 = math.exp %1166 : vector<16x64xf32>
    %1168 = vector.extract_strided_slice %99 {offsets = [48, 0], sizes = [1, 64], strides = [1, 1]} : vector<64x64xf32> to vector<1x64xf32>
    %1169 = vector.shape_cast %1168 : vector<1x64xf32> to vector<1x1x64xf32>
    %1170 = vector.extract_strided_slice %97 {offsets = [48, 0], sizes = [1, 16], strides = [1, 1]} : vector<64x16xf32> to vector<1x16xf32>
    %1171 = vector.shape_cast %1170 : vector<1x16xf32> to vector<1x16x1xf32>
    %1172 = vector.broadcast %1169 : vector<1x1x64xf32> to vector<1x16x64xf32>
    %1173 = vector.broadcast %1171 : vector<1x16x1xf32> to vector<1x16x64xf32>
    %1174 = arith.mulf %1172, %1173 : vector<1x16x64xf32>
    %1175 = vector.shape_cast %1174 : vector<1x16x64xf32> to vector<16x64xf32>
    %1176 = vector.extract_strided_slice %98 {offsets = [48, 0], sizes = [1, 16], strides = [1, 1]} : vector<64x16xf32> to vector<1x16xf32>
    %1177 = vector.shape_cast %1176 : vector<1x16xf32> to vector<1x16x1xf32>
    %1178 = vector.shape_cast %1177 : vector<1x16x1xf32> to vector<16x1xf32>
    %1179 = arith.mulf %1163, %1167 : vector<16x64xf32>
    %1180 = arith.addf %1179, %1175 : vector<16x64xf32>
    %1181 = vector.broadcast %1178 : vector<16x1xf32> to vector<16x64xf32>
    %1182 = arith.mulf %1180, %1181 : vector<16x64xf32>
    %cst_139 = arith.constant dense<0.000000e+00> : vector<64xf32>
    %1183 = vector.multi_reduction <add>, %1182, %cst_139 [0] : vector<16x64xf32> to vector<64xf32>
    %1184 = vector.shape_cast %1183 : vector<64xf32> to vector<1x64xf32>
    %c48 = arith.constant 48 : index
    %c0_140 = arith.constant 0 : index
    %1185 = vector.load %arg17[%c48, %c0_140] : memref<64x64xf32, #tpu.memory_space<vmem>>, vector<1x64xf32>
    tpu.vector_store %arg17[%c48, %c0_140], %1184 {strides = array<i32>} : memref<64x64xf32, #tpu.memory_space<vmem>>, vector<1x64xf32>,
    %1186 = vector.extract_strided_slice %96 {offsets = [49, 0], sizes = [1, 64], strides = [1, 1]} : vector<64x64xf32> to vector<1x64xf32>
    %1187 = vector.broadcast %1186 : vector<1x64xf32> to vector<16x64xf32>
    %1188 = arith.mulf %1187, %100 : vector<16x64xf32>
    %1189 = math.exp %1188 : vector<16x64xf32>
    %1190 = vector.extract_strided_slice %99 {offsets = [49, 0], sizes = [1, 64], strides = [1, 1]} : vector<64x64xf32> to vector<1x64xf32>
    %1191 = vector.shape_cast %1190 : vector<1x64xf32> to vector<1x1x64xf32>
    %1192 = vector.extract_strided_slice %97 {offsets = [49, 0], sizes = [1, 16], strides = [1, 1]} : vector<64x16xf32> to vector<1x16xf32>
    %1193 = vector.shape_cast %1192 : vector<1x16xf32> to vector<1x16x1xf32>
    %1194 = vector.broadcast %1191 : vector<1x1x64xf32> to vector<1x16x64xf32>
    %1195 = vector.broadcast %1193 : vector<1x16x1xf32> to vector<1x16x64xf32>
    %1196 = arith.mulf %1194, %1195 : vector<1x16x64xf32>
    %1197 = vector.shape_cast %1196 : vector<1x16x64xf32> to vector<16x64xf32>
    %1198 = vector.extract_strided_slice %98 {offsets = [49, 0], sizes = [1, 16], strides = [1, 1]} : vector<64x16xf32> to vector<1x16xf32>
    %1199 = vector.shape_cast %1198 : vector<1x16xf32> to vector<1x16x1xf32>
    %1200 = vector.shape_cast %1199 : vector<1x16x1xf32> to vector<16x1xf32>
    %1201 = arith.mulf %1180, %1189 : vector<16x64xf32>
    %1202 = arith.addf %1201, %1197 : vector<16x64xf32>
    %1203 = vector.broadcast %1200 : vector<16x1xf32> to vector<16x64xf32>
    %1204 = arith.mulf %1202, %1203 : vector<16x64xf32>
    %cst_141 = arith.constant dense<0.000000e+00> : vector<64xf32>
    %1205 = vector.multi_reduction <add>, %1204, %cst_141 [0] : vector<16x64xf32> to vector<64xf32>
    %1206 = vector.shape_cast %1205 : vector<64xf32> to vector<1x64xf32>
    %c49 = arith.constant 49 : index
    %c0_142 = arith.constant 0 : index
    %1207 = vector.load %arg17[%c49, %c0_142] : memref<64x64xf32, #tpu.memory_space<vmem>>, vector<1x64xf32>
    tpu.vector_store %arg17[%c49, %c0_142], %1206 {strides = array<i32>} : memref<64x64xf32, #tpu.memory_space<vmem>>, vector<1x64xf32>,
    %1208 = vector.extract_strided_slice %96 {offsets = [50, 0], sizes = [1, 64], strides = [1, 1]} : vector<64x64xf32> to vector<1x64xf32>
    %1209 = vector.broadcast %1208 : vector<1x64xf32> to vector<16x64xf32>
    %1210 = arith.mulf %1209, %100 : vector<16x64xf32>
    %1211 = math.exp %1210 : vector<16x64xf32>
    %1212 = vector.extract_strided_slice %99 {offsets = [50, 0], sizes = [1, 64], strides = [1, 1]} : vector<64x64xf32> to vector<1x64xf32>
    %1213 = vector.shape_cast %1212 : vector<1x64xf32> to vector<1x1x64xf32>
    %1214 = vector.extract_strided_slice %97 {offsets = [50, 0], sizes = [1, 16], strides = [1, 1]} : vector<64x16xf32> to vector<1x16xf32>
    %1215 = vector.shape_cast %1214 : vector<1x16xf32> to vector<1x16x1xf32>
    %1216 = vector.broadcast %1213 : vector<1x1x64xf32> to vector<1x16x64xf32>
    %1217 = vector.broadcast %1215 : vector<1x16x1xf32> to vector<1x16x64xf32>
    %1218 = arith.mulf %1216, %1217 : vector<1x16x64xf32>
    %1219 = vector.shape_cast %1218 : vector<1x16x64xf32> to vector<16x64xf32>
    %1220 = vector.extract_strided_slice %98 {offsets = [50, 0], sizes = [1, 16], strides = [1, 1]} : vector<64x16xf32> to vector<1x16xf32>
    %1221 = vector.shape_cast %1220 : vector<1x16xf32> to vector<1x16x1xf32>
    %1222 = vector.shape_cast %1221 : vector<1x16x1xf32> to vector<16x1xf32>
    %1223 = arith.mulf %1202, %1211 : vector<16x64xf32>
    %1224 = arith.addf %1223, %1219 : vector<16x64xf32>
    %1225 = vector.broadcast %1222 : vector<16x1xf32> to vector<16x64xf32>
    %1226 = arith.mulf %1224, %1225 : vector<16x64xf32>
    %cst_143 = arith.constant dense<0.000000e+00> : vector<64xf32>
    %1227 = vector.multi_reduction <add>, %1226, %cst_143 [0] : vector<16x64xf32> to vector<64xf32>
    %1228 = vector.shape_cast %1227 : vector<64xf32> to vector<1x64xf32>
    %c50 = arith.constant 50 : index
    %c0_144 = arith.constant 0 : index
    %1229 = vector.load %arg17[%c50, %c0_144] : memref<64x64xf32, #tpu.memory_space<vmem>>, vector<1x64xf32>
    tpu.vector_store %arg17[%c50, %c0_144], %1228 {strides = array<i32>} : memref<64x64xf32, #tpu.memory_space<vmem>>, vector<1x64xf32>,
    %1230 = vector.extract_strided_slice %96 {offsets = [51, 0], sizes = [1, 64], strides = [1, 1]} : vector<64x64xf32> to vector<1x64xf32>
    %1231 = vector.broadcast %1230 : vector<1x64xf32> to vector<16x64xf32>
    %1232 = arith.mulf %1231, %100 : vector<16x64xf32>
    %1233 = math.exp %1232 : vector<16x64xf32>
    %1234 = vector.extract_strided_slice %99 {offsets = [51, 0], sizes = [1, 64], strides = [1, 1]} : vector<64x64xf32> to vector<1x64xf32>
    %1235 = vector.shape_cast %1234 : vector<1x64xf32> to vector<1x1x64xf32>
    %1236 = vector.extract_strided_slice %97 {offsets = [51, 0], sizes = [1, 16], strides = [1, 1]} : vector<64x16xf32> to vector<1x16xf32>
    %1237 = vector.shape_cast %1236 : vector<1x16xf32> to vector<1x16x1xf32>
    %1238 = vector.broadcast %1235 : vector<1x1x64xf32> to vector<1x16x64xf32>
    %1239 = vector.broadcast %1237 : vector<1x16x1xf32> to vector<1x16x64xf32>
    %1240 = arith.mulf %1238, %1239 : vector<1x16x64xf32>
    %1241 = vector.shape_cast %1240 : vector<1x16x64xf32> to vector<16x64xf32>
    %1242 = vector.extract_strided_slice %98 {offsets = [51, 0], sizes = [1, 16], strides = [1, 1]} : vector<64x16xf32> to vector<1x16xf32>
    %1243 = vector.shape_cast %1242 : vector<1x16xf32> to vector<1x16x1xf32>
    %1244 = vector.shape_cast %1243 : vector<1x16x1xf32> to vector<16x1xf32>
    %1245 = arith.mulf %1224, %1233 : vector<16x64xf32>
    %1246 = arith.addf %1245, %1241 : vector<16x64xf32>
    %1247 = vector.broadcast %1244 : vector<16x1xf32> to vector<16x64xf32>
    %1248 = arith.mulf %1246, %1247 : vector<16x64xf32>
    %cst_145 = arith.constant dense<0.000000e+00> : vector<64xf32>
    %1249 = vector.multi_reduction <add>, %1248, %cst_145 [0] : vector<16x64xf32> to vector<64xf32>
    %1250 = vector.shape_cast %1249 : vector<64xf32> to vector<1x64xf32>
    %c51 = arith.constant 51 : index
    %c0_146 = arith.constant 0 : index
    %1251 = vector.load %arg17[%c51, %c0_146] : memref<64x64xf32, #tpu.memory_space<vmem>>, vector<1x64xf32>
    tpu.vector_store %arg17[%c51, %c0_146], %1250 {strides = array<i32>} : memref<64x64xf32, #tpu.memory_space<vmem>>, vector<1x64xf32>,
    %1252 = vector.extract_strided_slice %96 {offsets = [52, 0], sizes = [1, 64], strides = [1, 1]} : vector<64x64xf32> to vector<1x64xf32>
    %1253 = vector.broadcast %1252 : vector<1x64xf32> to vector<16x64xf32>
    %1254 = arith.mulf %1253, %100 : vector<16x64xf32>
    %1255 = math.exp %1254 : vector<16x64xf32>
    %1256 = vector.extract_strided_slice %99 {offsets = [52, 0], sizes = [1, 64], strides = [1, 1]} : vector<64x64xf32> to vector<1x64xf32>
    %1257 = vector.shape_cast %1256 : vector<1x64xf32> to vector<1x1x64xf32>
    %1258 = vector.extract_strided_slice %97 {offsets = [52, 0], sizes = [1, 16], strides = [1, 1]} : vector<64x16xf32> to vector<1x16xf32>
    %1259 = vector.shape_cast %1258 : vector<1x16xf32> to vector<1x16x1xf32>
    %1260 = vector.broadcast %1257 : vector<1x1x64xf32> to vector<1x16x64xf32>
    %1261 = vector.broadcast %1259 : vector<1x16x1xf32> to vector<1x16x64xf32>
    %1262 = arith.mulf %1260, %1261 : vector<1x16x64xf32>
    %1263 = vector.shape_cast %1262 : vector<1x16x64xf32> to vector<16x64xf32>
    %1264 = vector.extract_strided_slice %98 {offsets = [52, 0], sizes = [1, 16], strides = [1, 1]} : vector<64x16xf32> to vector<1x16xf32>
    %1265 = vector.shape_cast %1264 : vector<1x16xf32> to vector<1x16x1xf32>
    %1266 = vector.shape_cast %1265 : vector<1x16x1xf32> to vector<16x1xf32>
    %1267 = arith.mulf %1246, %1255 : vector<16x64xf32>
    %1268 = arith.addf %1267, %1263 : vector<16x64xf32>
    %1269 = vector.broadcast %1266 : vector<16x1xf32> to vector<16x64xf32>
    %1270 = arith.mulf %1268, %1269 : vector<16x64xf32>
    %cst_147 = arith.constant dense<0.000000e+00> : vector<64xf32>
    %1271 = vector.multi_reduction <add>, %1270, %cst_147 [0] : vector<16x64xf32> to vector<64xf32>
    %1272 = vector.shape_cast %1271 : vector<64xf32> to vector<1x64xf32>
    %c52 = arith.constant 52 : index
    %c0_148 = arith.constant 0 : index
    %1273 = vector.load %arg17[%c52, %c0_148] : memref<64x64xf32, #tpu.memory_space<vmem>>, vector<1x64xf32>
    tpu.vector_store %arg17[%c52, %c0_148], %1272 {strides = array<i32>} : memref<64x64xf32, #tpu.memory_space<vmem>>, vector<1x64xf32>,
    %1274 = vector.extract_strided_slice %96 {offsets = [53, 0], sizes = [1, 64], strides = [1, 1]} : vector<64x64xf32> to vector<1x64xf32>
    %1275 = vector.broadcast %1274 : vector<1x64xf32> to vector<16x64xf32>
    %1276 = arith.mulf %1275, %100 : vector<16x64xf32>
    %1277 = math.exp %1276 : vector<16x64xf32>
    %1278 = vector.extract_strided_slice %99 {offsets = [53, 0], sizes = [1, 64], strides = [1, 1]} : vector<64x64xf32> to vector<1x64xf32>
    %1279 = vector.shape_cast %1278 : vector<1x64xf32> to vector<1x1x64xf32>
    %1280 = vector.extract_strided_slice %97 {offsets = [53, 0], sizes = [1, 16], strides = [1, 1]} : vector<64x16xf32> to vector<1x16xf32>
    %1281 = vector.shape_cast %1280 : vector<1x16xf32> to vector<1x16x1xf32>
    %1282 = vector.broadcast %1279 : vector<1x1x64xf32> to vector<1x16x64xf32>
    %1283 = vector.broadcast %1281 : vector<1x16x1xf32> to vector<1x16x64xf32>
    %1284 = arith.mulf %1282, %1283 : vector<1x16x64xf32>
    %1285 = vector.shape_cast %1284 : vector<1x16x64xf32> to vector<16x64xf32>
    %1286 = vector.extract_strided_slice %98 {offsets = [53, 0], sizes = [1, 16], strides = [1, 1]} : vector<64x16xf32> to vector<1x16xf32>
    %1287 = vector.shape_cast %1286 : vector<1x16xf32> to vector<1x16x1xf32>
    %1288 = vector.shape_cast %1287 : vector<1x16x1xf32> to vector<16x1xf32>
    %1289 = arith.mulf %1268, %1277 : vector<16x64xf32>
    %1290 = arith.addf %1289, %1285 : vector<16x64xf32>
    %1291 = vector.broadcast %1288 : vector<16x1xf32> to vector<16x64xf32>
    %1292 = arith.mulf %1290, %1291 : vector<16x64xf32>
    %cst_149 = arith.constant dense<0.000000e+00> : vector<64xf32>
    %1293 = vector.multi_reduction <add>, %1292, %cst_149 [0] : vector<16x64xf32> to vector<64xf32>
    %1294 = vector.shape_cast %1293 : vector<64xf32> to vector<1x64xf32>
    %c53 = arith.constant 53 : index
    %c0_150 = arith.constant 0 : index
    %1295 = vector.load %arg17[%c53, %c0_150] : memref<64x64xf32, #tpu.memory_space<vmem>>, vector<1x64xf32>
    tpu.vector_store %arg17[%c53, %c0_150], %1294 {strides = array<i32>} : memref<64x64xf32, #tpu.memory_space<vmem>>, vector<1x64xf32>,
    %1296 = vector.extract_strided_slice %96 {offsets = [54, 0], sizes = [1, 64], strides = [1, 1]} : vector<64x64xf32> to vector<1x64xf32>
    %1297 = vector.broadcast %1296 : vector<1x64xf32> to vector<16x64xf32>
    %1298 = arith.mulf %1297, %100 : vector<16x64xf32>
    %1299 = math.exp %1298 : vector<16x64xf32>
    %1300 = vector.extract_strided_slice %99 {offsets = [54, 0], sizes = [1, 64], strides = [1, 1]} : vector<64x64xf32> to vector<1x64xf32>
    %1301 = vector.shape_cast %1300 : vector<1x64xf32> to vector<1x1x64xf32>
    %1302 = vector.extract_strided_slice %97 {offsets = [54, 0], sizes = [1, 16], strides = [1, 1]} : vector<64x16xf32> to vector<1x16xf32>
    %1303 = vector.shape_cast %1302 : vector<1x16xf32> to vector<1x16x1xf32>
    %1304 = vector.broadcast %1301 : vector<1x1x64xf32> to vector<1x16x64xf32>
    %1305 = vector.broadcast %1303 : vector<1x16x1xf32> to vector<1x16x64xf32>
    %1306 = arith.mulf %1304, %1305 : vector<1x16x64xf32>
    %1307 = vector.shape_cast %1306 : vector<1x16x64xf32> to vector<16x64xf32>
    %1308 = vector.extract_strided_slice %98 {offsets = [54, 0], sizes = [1, 16], strides = [1, 1]} : vector<64x16xf32> to vector<1x16xf32>
    %1309 = vector.shape_cast %1308 : vector<1x16xf32> to vector<1x16x1xf32>
    %1310 = vector.shape_cast %1309 : vector<1x16x1xf32> to vector<16x1xf32>
    %1311 = arith.mulf %1290, %1299 : vector<16x64xf32>
    %1312 = arith.addf %1311, %1307 : vector<16x64xf32>
    %1313 = vector.broadcast %1310 : vector<16x1xf32> to vector<16x64xf32>
    %1314 = arith.mulf %1312, %1313 : vector<16x64xf32>
    %cst_151 = arith.constant dense<0.000000e+00> : vector<64xf32>
    %1315 = vector.multi_reduction <add>, %1314, %cst_151 [0] : vector<16x64xf32> to vector<64xf32>
    %1316 = vector.shape_cast %1315 : vector<64xf32> to vector<1x64xf32>
    %c54 = arith.constant 54 : index
    %c0_152 = arith.constant 0 : index
    %1317 = vector.load %arg17[%c54, %c0_152] : memref<64x64xf32, #tpu.memory_space<vmem>>, vector<1x64xf32>
    tpu.vector_store %arg17[%c54, %c0_152], %1316 {strides = array<i32>} : memref<64x64xf32, #tpu.memory_space<vmem>>, vector<1x64xf32>,
    %1318 = vector.extract_strided_slice %96 {offsets = [55, 0], sizes = [1, 64], strides = [1, 1]} : vector<64x64xf32> to vector<1x64xf32>
    %1319 = vector.broadcast %1318 : vector<1x64xf32> to vector<16x64xf32>
    %1320 = arith.mulf %1319, %100 : vector<16x64xf32>
    %1321 = math.exp %1320 : vector<16x64xf32>
    %1322 = vector.extract_strided_slice %99 {offsets = [55, 0], sizes = [1, 64], strides = [1, 1]} : vector<64x64xf32> to vector<1x64xf32>
    %1323 = vector.shape_cast %1322 : vector<1x64xf32> to vector<1x1x64xf32>
    %1324 = vector.extract_strided_slice %97 {offsets = [55, 0], sizes = [1, 16], strides = [1, 1]} : vector<64x16xf32> to vector<1x16xf32>
    %1325 = vector.shape_cast %1324 : vector<1x16xf32> to vector<1x16x1xf32>
    %1326 = vector.broadcast %1323 : vector<1x1x64xf32> to vector<1x16x64xf32>
    %1327 = vector.broadcast %1325 : vector<1x16x1xf32> to vector<1x16x64xf32>
    %1328 = arith.mulf %1326, %1327 : vector<1x16x64xf32>
    %1329 = vector.shape_cast %1328 : vector<1x16x64xf32> to vector<16x64xf32>
    %1330 = vector.extract_strided_slice %98 {offsets = [55, 0], sizes = [1, 16], strides = [1, 1]} : vector<64x16xf32> to vector<1x16xf32>
    %1331 = vector.shape_cast %1330 : vector<1x16xf32> to vector<1x16x1xf32>
    %1332 = vector.shape_cast %1331 : vector<1x16x1xf32> to vector<16x1xf32>
    %1333 = arith.mulf %1312, %1321 : vector<16x64xf32>
    %1334 = arith.addf %1333, %1329 : vector<16x64xf32>
    %1335 = vector.broadcast %1332 : vector<16x1xf32> to vector<16x64xf32>
    %1336 = arith.mulf %1334, %1335 : vector<16x64xf32>
    %cst_153 = arith.constant dense<0.000000e+00> : vector<64xf32>
    %1337 = vector.multi_reduction <add>, %1336, %cst_153 [0] : vector<16x64xf32> to vector<64xf32>
    %1338 = vector.shape_cast %1337 : vector<64xf32> to vector<1x64xf32>
    %c55 = arith.constant 55 : index
    %c0_154 = arith.constant 0 : index
    %1339 = vector.load %arg17[%c55, %c0_154] : memref<64x64xf32, #tpu.memory_space<vmem>>, vector<1x64xf32>
    tpu.vector_store %arg17[%c55, %c0_154], %1338 {strides = array<i32>} : memref<64x64xf32, #tpu.memory_space<vmem>>, vector<1x64xf32>,
    %cst_155 = arith.constant 0.000000e+00 : f32
    %1340 = vector.broadcast %cst_155 : f32 to vector<16x64xf32>
    %1341 = vector.extract_strided_slice %96 {offsets = [56, 0], sizes = [1, 64], strides = [1, 1]} : vector<64x64xf32> to vector<1x64xf32>
    %1342 = vector.broadcast %1341 : vector<1x64xf32> to vector<16x64xf32>
    %1343 = arith.mulf %1342, %100 : vector<16x64xf32>
    %1344 = math.exp %1343 : vector<16x64xf32>
    %1345 = vector.extract_strided_slice %99 {offsets = [56, 0], sizes = [1, 64], strides = [1, 1]} : vector<64x64xf32> to vector<1x64xf32>
    %1346 = vector.shape_cast %1345 : vector<1x64xf32> to vector<1x1x64xf32>
    %1347 = vector.extract_strided_slice %97 {offsets = [56, 0], sizes = [1, 16], strides = [1, 1]} : vector<64x16xf32> to vector<1x16xf32>
    %1348 = vector.shape_cast %1347 : vector<1x16xf32> to vector<1x16x1xf32>
    %1349 = vector.broadcast %1346 : vector<1x1x64xf32> to vector<1x16x64xf32>
    %1350 = vector.broadcast %1348 : vector<1x16x1xf32> to vector<1x16x64xf32>
    %1351 = arith.mulf %1349, %1350 : vector<1x16x64xf32>
    %1352 = vector.shape_cast %1351 : vector<1x16x64xf32> to vector<16x64xf32>
    %1353 = vector.extract_strided_slice %98 {offsets = [56, 0], sizes = [1, 16], strides = [1, 1]} : vector<64x16xf32> to vector<1x16xf32>
    %1354 = vector.shape_cast %1353 : vector<1x16xf32> to vector<1x16x1xf32>
    %1355 = vector.shape_cast %1354 : vector<1x16x1xf32> to vector<16x1xf32>
    %1356 = arith.mulf %1340, %1344 : vector<16x64xf32>
    %1357 = arith.addf %1356, %1352 : vector<16x64xf32>
    %1358 = vector.broadcast %1355 : vector<16x1xf32> to vector<16x64xf32>
    %1359 = arith.mulf %1357, %1358 : vector<16x64xf32>
    %cst_156 = arith.constant dense<0.000000e+00> : vector<64xf32>
    %1360 = vector.multi_reduction <add>, %1359, %cst_156 [0] : vector<16x64xf32> to vector<64xf32>
    %1361 = vector.shape_cast %1360 : vector<64xf32> to vector<1x64xf32>
    %c56 = arith.constant 56 : index
    %c0_157 = arith.constant 0 : index
    %1362 = vector.load %arg17[%c56, %c0_157] : memref<64x64xf32, #tpu.memory_space<vmem>>, vector<1x64xf32>
    tpu.vector_store %arg17[%c56, %c0_157], %1361 {strides = array<i32>} : memref<64x64xf32, #tpu.memory_space<vmem>>, vector<1x64xf32>,
    %1363 = vector.extract_strided_slice %96 {offsets = [57, 0], sizes = [1, 64], strides = [1, 1]} : vector<64x64xf32> to vector<1x64xf32>
    %1364 = vector.broadcast %1363 : vector<1x64xf32> to vector<16x64xf32>
    %1365 = arith.mulf %1364, %100 : vector<16x64xf32>
    %1366 = math.exp %1365 : vector<16x64xf32>
    %1367 = vector.extract_strided_slice %99 {offsets = [57, 0], sizes = [1, 64], strides = [1, 1]} : vector<64x64xf32> to vector<1x64xf32>
    %1368 = vector.shape_cast %1367 : vector<1x64xf32> to vector<1x1x64xf32>
    %1369 = vector.extract_strided_slice %97 {offsets = [57, 0], sizes = [1, 16], strides = [1, 1]} : vector<64x16xf32> to vector<1x16xf32>
    %1370 = vector.shape_cast %1369 : vector<1x16xf32> to vector<1x16x1xf32>
    %1371 = vector.broadcast %1368 : vector<1x1x64xf32> to vector<1x16x64xf32>
    %1372 = vector.broadcast %1370 : vector<1x16x1xf32> to vector<1x16x64xf32>
    %1373 = arith.mulf %1371, %1372 : vector<1x16x64xf32>
    %1374 = vector.shape_cast %1373 : vector<1x16x64xf32> to vector<16x64xf32>
    %1375 = vector.extract_strided_slice %98 {offsets = [57, 0], sizes = [1, 16], strides = [1, 1]} : vector<64x16xf32> to vector<1x16xf32>
    %1376 = vector.shape_cast %1375 : vector<1x16xf32> to vector<1x16x1xf32>
    %1377 = vector.shape_cast %1376 : vector<1x16x1xf32> to vector<16x1xf32>
    %1378 = arith.mulf %1357, %1366 : vector<16x64xf32>
    %1379 = arith.addf %1378, %1374 : vector<16x64xf32>
    %1380 = vector.broadcast %1377 : vector<16x1xf32> to vector<16x64xf32>
    %1381 = arith.mulf %1379, %1380 : vector<16x64xf32>
    %cst_158 = arith.constant dense<0.000000e+00> : vector<64xf32>
    %1382 = vector.multi_reduction <add>, %1381, %cst_158 [0] : vector<16x64xf32> to vector<64xf32>
    %1383 = vector.shape_cast %1382 : vector<64xf32> to vector<1x64xf32>
    %c57 = arith.constant 57 : index
    %c0_159 = arith.constant 0 : index
    %1384 = vector.load %arg17[%c57, %c0_159] : memref<64x64xf32, #tpu.memory_space<vmem>>, vector<1x64xf32>
    tpu.vector_store %arg17[%c57, %c0_159], %1383 {strides = array<i32>} : memref<64x64xf32, #tpu.memory_space<vmem>>, vector<1x64xf32>,
    %1385 = vector.extract_strided_slice %96 {offsets = [58, 0], sizes = [1, 64], strides = [1, 1]} : vector<64x64xf32> to vector<1x64xf32>
    %1386 = vector.broadcast %1385 : vector<1x64xf32> to vector<16x64xf32>
    %1387 = arith.mulf %1386, %100 : vector<16x64xf32>
    %1388 = math.exp %1387 : vector<16x64xf32>
    %1389 = vector.extract_strided_slice %99 {offsets = [58, 0], sizes = [1, 64], strides = [1, 1]} : vector<64x64xf32> to vector<1x64xf32>
    %1390 = vector.shape_cast %1389 : vector<1x64xf32> to vector<1x1x64xf32>
    %1391 = vector.extract_strided_slice %97 {offsets = [58, 0], sizes = [1, 16], strides = [1, 1]} : vector<64x16xf32> to vector<1x16xf32>
    %1392 = vector.shape_cast %1391 : vector<1x16xf32> to vector<1x16x1xf32>
    %1393 = vector.broadcast %1390 : vector<1x1x64xf32> to vector<1x16x64xf32>
    %1394 = vector.broadcast %1392 : vector<1x16x1xf32> to vector<1x16x64xf32>
    %1395 = arith.mulf %1393, %1394 : vector<1x16x64xf32>
    %1396 = vector.shape_cast %1395 : vector<1x16x64xf32> to vector<16x64xf32>
    %1397 = vector.extract_strided_slice %98 {offsets = [58, 0], sizes = [1, 16], strides = [1, 1]} : vector<64x16xf32> to vector<1x16xf32>
    %1398 = vector.shape_cast %1397 : vector<1x16xf32> to vector<1x16x1xf32>
    %1399 = vector.shape_cast %1398 : vector<1x16x1xf32> to vector<16x1xf32>
    %1400 = arith.mulf %1379, %1388 : vector<16x64xf32>
    %1401 = arith.addf %1400, %1396 : vector<16x64xf32>
    %1402 = vector.broadcast %1399 : vector<16x1xf32> to vector<16x64xf32>
    %1403 = arith.mulf %1401, %1402 : vector<16x64xf32>
    %cst_160 = arith.constant dense<0.000000e+00> : vector<64xf32>
    %1404 = vector.multi_reduction <add>, %1403, %cst_160 [0] : vector<16x64xf32> to vector<64xf32>
    %1405 = vector.shape_cast %1404 : vector<64xf32> to vector<1x64xf32>
    %c58 = arith.constant 58 : index
    %c0_161 = arith.constant 0 : index
    %1406 = vector.load %arg17[%c58, %c0_161] : memref<64x64xf32, #tpu.memory_space<vmem>>, vector<1x64xf32>
    tpu.vector_store %arg17[%c58, %c0_161], %1405 {strides = array<i32>} : memref<64x64xf32, #tpu.memory_space<vmem>>, vector<1x64xf32>,
    %1407 = vector.extract_strided_slice %96 {offsets = [59, 0], sizes = [1, 64], strides = [1, 1]} : vector<64x64xf32> to vector<1x64xf32>
    %1408 = vector.broadcast %1407 : vector<1x64xf32> to vector<16x64xf32>
    %1409 = arith.mulf %1408, %100 : vector<16x64xf32>
    %1410 = math.exp %1409 : vector<16x64xf32>
    %1411 = vector.extract_strided_slice %99 {offsets = [59, 0], sizes = [1, 64], strides = [1, 1]} : vector<64x64xf32> to vector<1x64xf32>
    %1412 = vector.shape_cast %1411 : vector<1x64xf32> to vector<1x1x64xf32>
    %1413 = vector.extract_strided_slice %97 {offsets = [59, 0], sizes = [1, 16], strides = [1, 1]} : vector<64x16xf32> to vector<1x16xf32>
    %1414 = vector.shape_cast %1413 : vector<1x16xf32> to vector<1x16x1xf32>
    %1415 = vector.broadcast %1412 : vector<1x1x64xf32> to vector<1x16x64xf32>
    %1416 = vector.broadcast %1414 : vector<1x16x1xf32> to vector<1x16x64xf32>
    %1417 = arith.mulf %1415, %1416 : vector<1x16x64xf32>
    %1418 = vector.shape_cast %1417 : vector<1x16x64xf32> to vector<16x64xf32>
    %1419 = vector.extract_strided_slice %98 {offsets = [59, 0], sizes = [1, 16], strides = [1, 1]} : vector<64x16xf32> to vector<1x16xf32>
    %1420 = vector.shape_cast %1419 : vector<1x16xf32> to vector<1x16x1xf32>
    %1421 = vector.shape_cast %1420 : vector<1x16x1xf32> to vector<16x1xf32>
    %1422 = arith.mulf %1401, %1410 : vector<16x64xf32>
    %1423 = arith.addf %1422, %1418 : vector<16x64xf32>
    %1424 = vector.broadcast %1421 : vector<16x1xf32> to vector<16x64xf32>
    %1425 = arith.mulf %1423, %1424 : vector<16x64xf32>
    %cst_162 = arith.constant dense<0.000000e+00> : vector<64xf32>
    %1426 = vector.multi_reduction <add>, %1425, %cst_162 [0] : vector<16x64xf32> to vector<64xf32>
    %1427 = vector.shape_cast %1426 : vector<64xf32> to vector<1x64xf32>
    %c59 = arith.constant 59 : index
    %c0_163 = arith.constant 0 : index
    %1428 = vector.load %arg17[%c59, %c0_163] : memref<64x64xf32, #tpu.memory_space<vmem>>, vector<1x64xf32>
    tpu.vector_store %arg17[%c59, %c0_163], %1427 {strides = array<i32>} : memref<64x64xf32, #tpu.memory_space<vmem>>, vector<1x64xf32>,
    %1429 = vector.extract_strided_slice %96 {offsets = [60, 0], sizes = [1, 64], strides = [1, 1]} : vector<64x64xf32> to vector<1x64xf32>
    %1430 = vector.broadcast %1429 : vector<1x64xf32> to vector<16x64xf32>
    %1431 = arith.mulf %1430, %100 : vector<16x64xf32>
    %1432 = math.exp %1431 : vector<16x64xf32>
    %1433 = vector.extract_strided_slice %99 {offsets = [60, 0], sizes = [1, 64], strides = [1, 1]} : vector<64x64xf32> to vector<1x64xf32>
    %1434 = vector.shape_cast %1433 : vector<1x64xf32> to vector<1x1x64xf32>
    %1435 = vector.extract_strided_slice %97 {offsets = [60, 0], sizes = [1, 16], strides = [1, 1]} : vector<64x16xf32> to vector<1x16xf32>
    %1436 = vector.shape_cast %1435 : vector<1x16xf32> to vector<1x16x1xf32>
    %1437 = vector.broadcast %1434 : vector<1x1x64xf32> to vector<1x16x64xf32>
    %1438 = vector.broadcast %1436 : vector<1x16x1xf32> to vector<1x16x64xf32>
    %1439 = arith.mulf %1437, %1438 : vector<1x16x64xf32>
    %1440 = vector.shape_cast %1439 : vector<1x16x64xf32> to vector<16x64xf32>
    %1441 = vector.extract_strided_slice %98 {offsets = [60, 0], sizes = [1, 16], strides = [1, 1]} : vector<64x16xf32> to vector<1x16xf32>
    %1442 = vector.shape_cast %1441 : vector<1x16xf32> to vector<1x16x1xf32>
    %1443 = vector.shape_cast %1442 : vector<1x16x1xf32> to vector<16x1xf32>
    %1444 = arith.mulf %1423, %1432 : vector<16x64xf32>
    %1445 = arith.addf %1444, %1440 : vector<16x64xf32>
    %1446 = vector.broadcast %1443 : vector<16x1xf32> to vector<16x64xf32>
    %1447 = arith.mulf %1445, %1446 : vector<16x64xf32>
    %cst_164 = arith.constant dense<0.000000e+00> : vector<64xf32>
    %1448 = vector.multi_reduction <add>, %1447, %cst_164 [0] : vector<16x64xf32> to vector<64xf32>
    %1449 = vector.shape_cast %1448 : vector<64xf32> to vector<1x64xf32>
    %c60 = arith.constant 60 : index
    %c0_165 = arith.constant 0 : index
    %1450 = vector.load %arg17[%c60, %c0_165] : memref<64x64xf32, #tpu.memory_space<vmem>>, vector<1x64xf32>
    tpu.vector_store %arg17[%c60, %c0_165], %1449 {strides = array<i32>} : memref<64x64xf32, #tpu.memory_space<vmem>>, vector<1x64xf32>,
    %1451 = vector.extract_strided_slice %96 {offsets = [61, 0], sizes = [1, 64], strides = [1, 1]} : vector<64x64xf32> to vector<1x64xf32>
    %1452 = vector.broadcast %1451 : vector<1x64xf32> to vector<16x64xf32>
    %1453 = arith.mulf %1452, %100 : vector<16x64xf32>
    %1454 = math.exp %1453 : vector<16x64xf32>
    %1455 = vector.extract_strided_slice %99 {offsets = [61, 0], sizes = [1, 64], strides = [1, 1]} : vector<64x64xf32> to vector<1x64xf32>
    %1456 = vector.shape_cast %1455 : vector<1x64xf32> to vector<1x1x64xf32>
    %1457 = vector.extract_strided_slice %97 {offsets = [61, 0], sizes = [1, 16], strides = [1, 1]} : vector<64x16xf32> to vector<1x16xf32>
    %1458 = vector.shape_cast %1457 : vector<1x16xf32> to vector<1x16x1xf32>
    %1459 = vector.broadcast %1456 : vector<1x1x64xf32> to vector<1x16x64xf32>
    %1460 = vector.broadcast %1458 : vector<1x16x1xf32> to vector<1x16x64xf32>
    %1461 = arith.mulf %1459, %1460 : vector<1x16x64xf32>
    %1462 = vector.shape_cast %1461 : vector<1x16x64xf32> to vector<16x64xf32>
    %1463 = vector.extract_strided_slice %98 {offsets = [61, 0], sizes = [1, 16], strides = [1, 1]} : vector<64x16xf32> to vector<1x16xf32>
    %1464 = vector.shape_cast %1463 : vector<1x16xf32> to vector<1x16x1xf32>
    %1465 = vector.shape_cast %1464 : vector<1x16x1xf32> to vector<16x1xf32>
    %1466 = arith.mulf %1445, %1454 : vector<16x64xf32>
    %1467 = arith.addf %1466, %1462 : vector<16x64xf32>
    %1468 = vector.broadcast %1465 : vector<16x1xf32> to vector<16x64xf32>
    %1469 = arith.mulf %1467, %1468 : vector<16x64xf32>
    %cst_166 = arith.constant dense<0.000000e+00> : vector<64xf32>
    %1470 = vector.multi_reduction <add>, %1469, %cst_166 [0] : vector<16x64xf32> to vector<64xf32>
    %1471 = vector.shape_cast %1470 : vector<64xf32> to vector<1x64xf32>
    %c61 = arith.constant 61 : index
    %c0_167 = arith.constant 0 : index
    %1472 = vector.load %arg17[%c61, %c0_167] : memref<64x64xf32, #tpu.memory_space<vmem>>, vector<1x64xf32>
    tpu.vector_store %arg17[%c61, %c0_167], %1471 {strides = array<i32>} : memref<64x64xf32, #tpu.memory_space<vmem>>, vector<1x64xf32>,
    %1473 = vector.extract_strided_slice %96 {offsets = [62, 0], sizes = [1, 64], strides = [1, 1]} : vector<64x64xf32> to vector<1x64xf32>
    %1474 = vector.broadcast %1473 : vector<1x64xf32> to vector<16x64xf32>
    %1475 = arith.mulf %1474, %100 : vector<16x64xf32>
    %1476 = math.exp %1475 : vector<16x64xf32>
    %1477 = vector.extract_strided_slice %99 {offsets = [62, 0], sizes = [1, 64], strides = [1, 1]} : vector<64x64xf32> to vector<1x64xf32>
    %1478 = vector.shape_cast %1477 : vector<1x64xf32> to vector<1x1x64xf32>
    %1479 = vector.extract_strided_slice %97 {offsets = [62, 0], sizes = [1, 16], strides = [1, 1]} : vector<64x16xf32> to vector<1x16xf32>
    %1480 = vector.shape_cast %1479 : vector<1x16xf32> to vector<1x16x1xf32>
    %1481 = vector.broadcast %1478 : vector<1x1x64xf32> to vector<1x16x64xf32>
    %1482 = vector.broadcast %1480 : vector<1x16x1xf32> to vector<1x16x64xf32>
    %1483 = arith.mulf %1481, %1482 : vector<1x16x64xf32>
    %1484 = vector.shape_cast %1483 : vector<1x16x64xf32> to vector<16x64xf32>
    %1485 = vector.extract_strided_slice %98 {offsets = [62, 0], sizes = [1, 16], strides = [1, 1]} : vector<64x16xf32> to vector<1x16xf32>
    %1486 = vector.shape_cast %1485 : vector<1x16xf32> to vector<1x16x1xf32>
    %1487 = vector.shape_cast %1486 : vector<1x16x1xf32> to vector<16x1xf32>
    %1488 = arith.mulf %1467, %1476 : vector<16x64xf32>
    %1489 = arith.addf %1488, %1484 : vector<16x64xf32>
    %1490 = vector.broadcast %1487 : vector<16x1xf32> to vector<16x64xf32>
    %1491 = arith.mulf %1489, %1490 : vector<16x64xf32>
    %cst_168 = arith.constant dense<0.000000e+00> : vector<64xf32>
    %1492 = vector.multi_reduction <add>, %1491, %cst_168 [0] : vector<16x64xf32> to vector<64xf32>
    %1493 = vector.shape_cast %1492 : vector<64xf32> to vector<1x64xf32>
    %c62 = arith.constant 62 : index
    %c0_169 = arith.constant 0 : index
    %1494 = vector.load %arg17[%c62, %c0_169] : memref<64x64xf32, #tpu.memory_space<vmem>>, vector<1x64xf32>
    tpu.vector_store %arg17[%c62, %c0_169], %1493 {strides = array<i32>} : memref<64x64xf32, #tpu.memory_space<vmem>>, vector<1x64xf32>,
    %1495 = vector.extract_strided_slice %96 {offsets = [63, 0], sizes = [1, 64], strides = [1, 1]} : vector<64x64xf32> to vector<1x64xf32>
    %1496 = vector.broadcast %1495 : vector<1x64xf32> to vector<16x64xf32>
    %1497 = arith.mulf %1496, %100 : vector<16x64xf32>
    %1498 = math.exp %1497 : vector<16x64xf32>
    %1499 = vector.extract_strided_slice %99 {offsets = [63, 0], sizes = [1, 64], strides = [1, 1]} : vector<64x64xf32> to vector<1x64xf32>
    %1500 = vector.shape_cast %1499 : vector<1x64xf32> to vector<1x1x64xf32>
    %1501 = vector.extract_strided_slice %97 {offsets = [63, 0], sizes = [1, 16], strides = [1, 1]} : vector<64x16xf32> to vector<1x16xf32>
    %1502 = vector.shape_cast %1501 : vector<1x16xf32> to vector<1x16x1xf32>
    %1503 = vector.broadcast %1500 : vector<1x1x64xf32> to vector<1x16x64xf32>
    %1504 = vector.broadcast %1502 : vector<1x16x1xf32> to vector<1x16x64xf32>
    %1505 = arith.mulf %1503, %1504 : vector<1x16x64xf32>
    %1506 = vector.shape_cast %1505 : vector<1x16x64xf32> to vector<16x64xf32>
    %1507 = vector.extract_strided_slice %98 {offsets = [63, 0], sizes = [1, 16], strides = [1, 1]} : vector<64x16xf32> to vector<1x16xf32>
    %1508 = vector.shape_cast %1507 : vector<1x16xf32> to vector<1x16x1xf32>
    %1509 = vector.shape_cast %1508 : vector<1x16x1xf32> to vector<16x1xf32>
    %1510 = arith.mulf %1489, %1498 : vector<16x64xf32>
    %1511 = arith.addf %1510, %1506 : vector<16x64xf32>
    %1512 = vector.broadcast %1509 : vector<16x1xf32> to vector<16x64xf32>
    %1513 = arith.mulf %1511, %1512 : vector<16x64xf32>
    %cst_170 = arith.constant dense<0.000000e+00> : vector<64xf32>
    %1514 = vector.multi_reduction <add>, %1513, %cst_170 [0] : vector<16x64xf32> to vector<64xf32>
    %1515 = vector.shape_cast %1514 : vector<64xf32> to vector<1x64xf32>
    %c63 = arith.constant 63 : index
    %c0_171 = arith.constant 0 : index
    %1516 = vector.load %arg17[%c63, %c0_171] : memref<64x64xf32, #tpu.memory_space<vmem>>, vector<1x64xf32>
    tpu.vector_store %arg17[%c63, %c0_171], %1515 {strides = array<i32>} : memref<64x64xf32, #tpu.memory_space<vmem>>, vector<1x64xf32>,
    %c0_172 = arith.constant 0 : index
    %c0_173 = arith.constant 0 : index
    %1517 = vector.load %arg17[%c0_172, %c0_173] : memref<64x64xf32, #tpu.memory_space<vmem>>, vector<64x64xf32>
    %c0_174 = arith.constant 0 : index
    %c0_175 = arith.constant 0 : index
    %1518 = vector.load %arg10[%c0_174, %c0_175] : memref<1x64xf32, #tpu.memory_space<vmem>>, vector<1x64xf32>
    %1519 = vector.broadcast %1518 : vector<1x64xf32> to vector<64x64xf32>
    %1520 = arith.mulf %80, %1519 : vector<64x64xf32>
    %1521 = arith.addf %1517, %1520 : vector<64x64xf32>
    %cst_176 = arith.constant 5.000000e-01 : f32
    %1522 = vector.broadcast %cst_176 : f32 to vector<64x64xf32>
    %1523 = arith.mulf %1522, %29 : vector<64x64xf32>
    %1524 = math.tanh %1523 : vector<64x64xf32>
    %cst_177 = arith.constant 1.000000e+00 : f32
    %1525 = vector.broadcast %cst_177 : f32 to vector<64x64xf32>
    %1526 = arith.addf %1525, %1524 : vector<64x64xf32>
    %cst_178 = arith.constant 5.000000e-01 : f32
    %1527 = vector.broadcast %cst_178 : f32 to vector<64x64xf32>
    %1528 = arith.mulf %1527, %1526 : vector<64x64xf32>
    %1529 = arith.mulf %29, %1528 : vector<64x64xf32>
    %1530 = arith.mulf %1521, %1529 : vector<64x64xf32>
    %1531 = arith.truncf %1530 : vector<64x64xf32> to vector<64x64xbf16>
    %c0_179 = arith.constant 0 : index
    %c0_180 = arith.constant 0 : index
    %1532 = vector.load %arg11[%c0_179, %c0_180] : memref<64x32xbf16, #tpu.memory_space<vmem>>, vector<64x32xbf16>
    %cst_181 = arith.constant dense<0.000000e+00> : vector<64x32xf32>
    %1533 = tpu.matmul %1531, %1532, %cst_181 {dimension_numbers = #tpu.dot_dimension_numbers<[1], [0], [0], [1], [0, 0, 1, 1], [], []>} : vector<64x64xbf16>, vector<64x32xbf16>, vector<64x32xf32> -> vector<64x32xf32>
    %1534 = arith.addf %0, %1533 : vector<64x32xf32>
    %c0_182 = arith.constant 0 : index
    %c0_183 = arith.constant 0 : index
    %1535 = vector.load %arg12[%c0_182, %c0_183] : memref<1x32xf32, #tpu.memory_space<vmem>>, vector<1x32xf32>
    %c0_184 = arith.constant 0 : index
    %c0_185 = arith.constant 0 : index
    %1536 = vector.load %arg13[%c0_184, %c0_185] : memref<1x32xf32, #tpu.memory_space<vmem>>, vector<1x32xf32>
    %cst_186 = arith.constant dense<0.000000e+00> : vector<64xf32>
    %1537 = vector.multi_reduction <add>, %1534, %cst_186 [1] : vector<64x32xf32> to vector<64xf32>
    %1538 = vector.shape_cast %1537 : vector<64xf32> to vector<64x1xf32>
    %cst_187 = arith.constant 3.200000e+01 : f32
    %1539 = vector.broadcast %cst_187 : f32 to vector<64x1xf32>
    %1540 = arith.divf %1538, %1539 : vector<64x1xf32>
    %1541 = vector.broadcast %1540 : vector<64x1xf32> to vector<64x32xf32>
    %1542 = arith.subf %1534, %1541 : vector<64x32xf32>
    %1543 = arith.mulf %1542, %1542 : vector<64x32xf32>
    %cst_188 = arith.constant dense<0.000000e+00> : vector<64xf32>
    %1544 = vector.multi_reduction <add>, %1543, %cst_188 [1] : vector<64x32xf32> to vector<64xf32>
    %1545 = vector.shape_cast %1544 : vector<64xf32> to vector<64x1xf32>
    %cst_189 = arith.constant 3.200000e+01 : f32
    %1546 = vector.broadcast %cst_189 : f32 to vector<64x1xf32>
    %1547 = arith.divf %1545, %1546 : vector<64x1xf32>
    %1548 = vector.broadcast %1540 : vector<64x1xf32> to vector<64x32xf32>
    %1549 = arith.subf %1534, %1548 : vector<64x32xf32>
    %cst_190 = arith.constant 9.99999974E-6 : f32
    %1550 = vector.broadcast %cst_190 : f32 to vector<64x1xf32>
    %1551 = arith.addf %1547, %1550 : vector<64x1xf32>
    %1552 = math.rsqrt %1551 : vector<64x1xf32>
    %1553 = vector.broadcast %1552 : vector<64x1xf32> to vector<64x32xf32>
    %1554 = arith.mulf %1549, %1553 : vector<64x32xf32>
    %1555 = vector.broadcast %1535 : vector<1x32xf32> to vector<64x32xf32>
    %1556 = arith.mulf %1554, %1555 : vector<64x32xf32>
    %1557 = vector.broadcast %1536 : vector<1x32xf32> to vector<64x32xf32>
    %1558 = arith.addf %1556, %1557 : vector<64x32xf32>
    %1559 = arith.truncf %1558 : vector<64x32xf32> to vector<64x32xbf16>
    %c0_191 = arith.constant 0 : index
    %c0_192 = arith.constant 0 : index
    %1560 = vector.load %arg14[%c0_191, %c0_192] : memref<32x128xbf16, #tpu.memory_space<vmem>>, vector<32x128xbf16>
    %cst_193 = arith.constant dense<0.000000e+00> : vector<64x128xf32>
    %1561 = tpu.matmul %1559, %1560, %cst_193 {dimension_numbers = #tpu.dot_dimension_numbers<[1], [0], [0], [1], [0, 0, 1, 1], [], []>} : vector<64x32xbf16>, vector<32x128xbf16>, vector<64x128xf32> -> vector<64x128xf32>
    %1562 = vector.extract_strided_slice %1561 {offsets = [0, 0], sizes = [64, 64], strides = [1, 1]} : vector<64x128xf32> to vector<64x64xf32>
    %1563 = vector.extract_strided_slice %1561 {offsets = [0, 64], sizes = [64, 64], strides = [1, 1]} : vector<64x128xf32> to vector<64x64xf32>
    %cst_194 = arith.constant 5.000000e-01 : f32
    %1564 = vector.broadcast %cst_194 : f32 to vector<64x64xf32>
    %1565 = arith.mulf %1564, %1562 : vector<64x64xf32>
    %1566 = math.tanh %1565 : vector<64x64xf32>
    %cst_195 = arith.constant 1.000000e+00 : f32
    %1567 = vector.broadcast %cst_195 : f32 to vector<64x64xf32>
    %1568 = arith.addf %1567, %1566 : vector<64x64xf32>
    %cst_196 = arith.constant 5.000000e-01 : f32
    %1569 = vector.broadcast %cst_196 : f32 to vector<64x64xf32>
    %1570 = arith.mulf %1569, %1568 : vector<64x64xf32>
    %1571 = arith.mulf %1562, %1570 : vector<64x64xf32>
    %1572 = arith.mulf %1563, %1571 : vector<64x64xf32>
    %1573 = arith.truncf %1572 : vector<64x64xf32> to vector<64x64xbf16>
    %c0_197 = arith.constant 0 : index
    %c0_198 = arith.constant 0 : index
    %1574 = vector.load %arg15[%c0_197, %c0_198] : memref<64x32xbf16, #tpu.memory_space<vmem>>, vector<64x32xbf16>
    %cst_199 = arith.constant dense<0.000000e+00> : vector<64x32xf32>
    %1575 = tpu.matmul %1573, %1574, %cst_199 {dimension_numbers = #tpu.dot_dimension_numbers<[1], [0], [0], [1], [0, 0, 1, 1], [], []>} : vector<64x64xbf16>, vector<64x32xbf16>, vector<64x32xf32> -> vector<64x32xf32>
    %1576 = arith.addf %1534, %1575 : vector<64x32xf32>
    %c0_200 = arith.constant 0 : index
    %c0_201 = arith.constant 0 : index
    %1577 = vector.load %arg16[%c0_200, %c0_201] : memref<64x32xf32, #tpu.memory_space<vmem>>, vector<64x32xf32>
    tpu.vector_store %arg16[%c0_200, %c0_201], %1576 {strides = array<i32>} : memref<64x32xf32, #tpu.memory_space<vmem>>, vector<64x32xf32>,
    return
  }
  func.func @transform_0(%arg0: i32) -> (i32, i32) {
    %c0_i32 = arith.constant 0 : i32
    %c0_i32_0 = arith.constant 0 : i32
    return %arg0, %c0_i32 : i32, i32
  }
  func.func @transform_1(%arg0: i32) -> (i32, i32) {
    %c0_i32 = arith.constant 0 : i32
    %c0_i32_0 = arith.constant 0 : i32
    %c0_i32_1 = arith.constant 0 : i32
    return %c0_i32, %c0_i32_0 : i32, i32
  }
  func.func @transform_2(%arg0: i32) -> (i32, i32) {
    %c0_i32 = arith.constant 0 : i32
    %c0_i32_0 = arith.constant 0 : i32
    %c0_i32_1 = arith.constant 0 : i32
    return %c0_i32, %c0_i32_0 : i32, i32
  }
  func.func @transform_3(%arg0: i32) -> (i32, i32) {
    %c0_i32 = arith.constant 0 : i32
    %c0_i32_0 = arith.constant 0 : i32
    %c0_i32_1 = arith.constant 0 : i32
    return %c0_i32, %c0_i32_0 : i32, i32
  }
  func.func @transform_4(%arg0: i32) -> (i32, i32) {
    %c0_i32 = arith.constant 0 : i32
    %c0_i32_0 = arith.constant 0 : i32
    %c0_i32_1 = arith.constant 0 : i32
    return %c0_i32, %c0_i32_0 : i32, i32
  }
  func.func @transform_5(%arg0: i32) -> (i32, i32) {
    %c0_i32 = arith.constant 0 : i32
    %c0_i32_0 = arith.constant 0 : i32
    %c0_i32_1 = arith.constant 0 : i32
    return %c0_i32, %c0_i32_0 : i32, i32
  }
  func.func @transform_6(%arg0: i32) -> (i32, i32) {
    %c0_i32 = arith.constant 0 : i32
    %c0_i32_0 = arith.constant 0 : i32
    %c0_i32_1 = arith.constant 0 : i32
    return %c0_i32, %c0_i32_0 : i32, i32
  }
  func.func @transform_7(%arg0: i32) -> (i32, i32) {
    %c0_i32 = arith.constant 0 : i32
    %c0_i32_0 = arith.constant 0 : i32
    %c0_i32_1 = arith.constant 0 : i32
    return %c0_i32, %c0_i32_0 : i32, i32
  }
  func.func @transform_8(%arg0: i32) -> (i32, i32) {
    %c0_i32 = arith.constant 0 : i32
    %c0_i32_0 = arith.constant 0 : i32
    %c0_i32_1 = arith.constant 0 : i32
    return %c0_i32, %c0_i32_0 : i32, i32
  }
  func.func @transform_9(%arg0: i32) -> (i32, i32) {
    %c0_i32 = arith.constant 0 : i32
    %c0_i32_0 = arith.constant 0 : i32
    %c0_i32_1 = arith.constant 0 : i32
    return %c0_i32, %c0_i32_0 : i32, i32
  }
  func.func @transform_10(%arg0: i32) -> (i32, i32) {
    %c0_i32 = arith.constant 0 : i32
    %c0_i32_0 = arith.constant 0 : i32
    %c0_i32_1 = arith.constant 0 : i32
    return %c0_i32, %c0_i32_0 : i32, i32
  }
  func.func @transform_11(%arg0: i32) -> (i32, i32) {
    %c0_i32 = arith.constant 0 : i32
    %c0_i32_0 = arith.constant 0 : i32
    %c0_i32_1 = arith.constant 0 : i32
    return %c0_i32, %c0_i32_0 : i32, i32
  }
  func.func @transform_12(%arg0: i32) -> (i32, i32) {
    %c0_i32 = arith.constant 0 : i32
    %c0_i32_0 = arith.constant 0 : i32
    %c0_i32_1 = arith.constant 0 : i32
    return %c0_i32, %c0_i32_0 : i32, i32
  }
  func.func @transform_13(%arg0: i32) -> (i32, i32) {
    %c0_i32 = arith.constant 0 : i32
    %c0_i32_0 = arith.constant 0 : i32
    %c0_i32_1 = arith.constant 0 : i32
    return %c0_i32, %c0_i32_0 : i32, i32
  }
  func.func @transform_14(%arg0: i32) -> (i32, i32) {
    %c0_i32 = arith.constant 0 : i32
    %c0_i32_0 = arith.constant 0 : i32
    %c0_i32_1 = arith.constant 0 : i32
    return %c0_i32, %c0_i32_0 : i32, i32
  }
  func.func @transform_15(%arg0: i32) -> (i32, i32) {
    %c0_i32 = arith.constant 0 : i32
    %c0_i32_0 = arith.constant 0 : i32
    return %arg0, %c0_i32 : i32, i32
  }
}

</mosaic_0001>

<bundles_post_ra>
// kernel: tpu_custom_call.1
= control target key start
LH: loop header
LB: loop body
LE: loop exit
PB: predicated region body
PF: predicated region fallthrough
CT: control target
= control target key end

     0   :  { %6 = vsyncpa [#allocation3], 0  ;;  %s125_s0 = inlined_call_operand.hbm [shape: f32[8,128], index: 0, kind: input, shape index: {}]   ;;  %s126_s1 = inlined_call_operand.hbm [shape: f32[8,128], index: 1, kind: output, shape index: {}]  }
   0x1   :  { %7 = vsyncpa [#allocation4], 0  ;;  %s89_s6 = smov [#allocation2]   ;;  %s41_s10 = scalar_lea.hbm %s125_s0, 128 }
   0x2   :  { %s14_s7 = sshll.u32 %s89_s6, 4  ;;  %p42_p0 = scmp.ne.s32.totalorder %s125_s0, %s41_s10  ;;  %s15_s7 = int_to_ptr.vmem [resolvable:$true] %s14_s7 }
   0x3   :  { %p45_p1 = scmp.lt.u32.totalorder %s41_s10, %s125_s0 }
   0x5   :  { %p47_p2 = pnand %p45_p1, %p42_p0 }
   0x7   :  { %50 = shalt.err (!%p47_p2)
}
   0x8   :  { %s51_s15 = scalar_lea.vmem %s15_s7, 128  ;;  %p56_p4 = scmp.lt.s32.totalorder %s15_s7, %s15_s7 }
   0x9   :  { %p52_p3 = scmp.ne.s32.totalorder %s15_s7, %s51_s15  ;;  %p57_p5 = scmp.lt.s32.totalorder %s51_s15, %s51_s15 }
   0xb   :  { %p58_p6 = por %p57_p5, %p56_p4 }
   0xd   :  { %p59_p7 = pnand %p58_p6, %p52_p3 }
   0xf   :  { %62 = shalt.err (!%p59_p7)
}
  0x10   :  { %17 = dma.hbm_to_vmem [thread:$0]  %s125_s0, 128, %s15_s7, [#allocation3]  }
  0x11   :  { %85 = dma.done.wait [#allocation3], 128  }
  0x12   :  { %86 = vsyncadd [#allocation3], 4294967168  ;;  %s90_s18 = smov [#allocation5]   ;;  %v21_v0 = vld [vmem:[#allocation2] sm:$0xff] }
  0x13   :  { %s30_s19 = sshll.u32 %s90_s18, 4  ;;  %v22_v1 = vrot.slane %v21_v0, 7  ;;  %s31_s19 = int_to_ptr.vmem [resolvable:$true] %s30_s19 }
  0x14   :  { %s63_s20 = scalar_lea.vmem %s31_s19, 128  ;;  %p68_p9 = scmp.lt.s32.totalorder %s31_s19, %s31_s19 }
  0x15   :  { %23 = vst [vmem:[#allocation5] sm:$0xff] %v22_v1  ;;  %p64_p8 = scmp.ne.s32.totalorder %s31_s19, %s63_s20  ;;  %p69_p10 = scmp.lt.s32.totalorder %s63_s20, %s63_s20 }
  0x17   :  { %p70_p11 = por %p69_p10, %p68_p9 }
  0x19   :  { %p71_p12 = pnand %p70_p11, %p64_p8 }
  0x1b   :  { %74 = shalt.err (!%p71_p12)
}
  0x1c   :  { %s75_s23 = scalar_lea.hbm %s126_s1, 128 }
  0x1d   :  { %p76_p13 = scmp.ne.s32.totalorder %s126_s1, %s75_s23  ;;  %p79_p0 = scmp.lt.u32.totalorder %s75_s23, %s126_s1 }
  0x1f   :  { %p81_p1 = pnand %p79_p0, %p76_p13 }
  0x21   :  { %84 = shalt.err (!%p81_p1)
}
  0x22   :  { %33 = dma.vmem_to_hbm [thread:$0]  %s31_s19, 128, %s126_s1, [#allocation4]  }
  0x23   :  { %87 = dma.done.wait [#allocation4], 128  }
  0x24   :  { %88 = vsyncadd [#allocation4], 4294967168 }
  0x25   :  { %37 = vsyncpa [#allocation3], 1 }
  0x26   :  { %38 = vsyncpa [#allocation4], 1 }

// kernel: tpu_custom_call.1
= control target key start
LH: loop header
LB: loop body
LE: loop exit
PB: predicated region body
PF: predicated region fallthrough
CT: control target
= control target key end

     0   :  { %s5948_s18 = smov 0   ;;  %s8516_s0 = inlined_call_operand.vmem [shape: f32[128,32], index: 0, kind: input, shape index: {}]   ;;  %s8517_s1 = inlined_call_operand.vmem [shape: f32[1,32], index: 1, kind: input, shape index: {}]   ;;  %s8518_s2 = inlined_call_operand.vmem [shape: f32[1,32], index: 2, kind: input, shape index: {}]   ;;  %s8519_s3 = inlined_call_operand.vmem [shape: bf16[32,128], index: 3, kind: input, shape index: {}]   ;;  %s8520_s4 = inlined_call_operand.vmem [shape: f32[4,64], index: 4, kind: input, shape index: {}]   ;;  %s8521_s5 = inlined_call_operand.vmem [shape: f32[1,64], index: 5, kind: input, shape index: {}]   ;;  %s8522_s6 = inlined_call_operand.vmem [shape: bf16[64,128], index: 6, kind: input, shape index: {}]   ;;  %s8523_s7 = inlined_call_operand.vmem [shape: f32[1,64], index: 7, kind: input, shape index: {}]   ;;  %s8524_s8 = inlined_call_operand.vmem [shape: f32[16,64], index: 8, kind: input, shape index: {}]   ;;  %s8525_s9 = inlined_call_operand.vmem [shape: f32[1,64], index: 9, kind: input, shape index: {}]   ;;  %s8526_s10 = inlined_call_operand.vmem [shape: bf16[64,32], index: 10, kind: input, shape index: {}]   ;;  %s8527_s11 = inlined_call_operand.vmem [shape: f32[1,32], index: 11, kind: input, shape index: {}]   ;;  %s8528_s12 = inlined_call_operand.vmem [shape: f32[1,32], index: 12, kind: input, shape index: {}]   ;;  %s8529_s13 = inlined_call_operand.vmem [shape: bf16[32,128], index: 13, kind: input, shape index: {}]   ;;  %s8530_s14 = inlined_call_operand.vmem [shape: bf16[64,32], index: 14, kind: input, shape index: {}]   ;;  %s8531_s15 = inlined_call_operand.vmem [shape: f32[128,32], index: 15, kind: output, shape index: {}]  }
   0x1 LB: > { %s5288_s19 = sadd.s32 4294967295, %s5865_s18   ;;  %p5292_p0 = scmp.ge.s32.totalorder %s5865_s18, 1  ;;  %s5865_s18 = sphi %s5948_s18, %s25_s18  }
   0x2   : > { %p438_p1 = scmp.lt.s32.totalorder %s5865_s18, 3 }
   0x4   : > { %p439_p2 = pnand %p5292_p0, %p438_p1 }
   0x6   : > { %442 = sbr.rel (%p439_p2) target bundleno = 2712 (0xa98), region = 80 }
   0xd   : > { %s5293_s20 = sshll.u32 %s5288_s19, 3  ;;  %vm8532_vm0 = vcmask 261120   ;;  %v5459_v56 = vld [vmem:[%s8519_s3] sm:$0xff]   ;;  %v5460_v57 = vld [vmem:[%s8519_s3 + $0x8] sm:$0xff]   ;;  %vm778_vm1 = vcmask 1042432   ;;  %vm839_vm3 = vcmask 1041408  }
   0xe   : > { %p487_p3 = scmp.lt.s32.totalorder %s5293_s20, 15  ;;  %5378 = vmatprep.subr.bf16.mxu0 %v5459_v56  ;;  %vm900_vm4 = vcmask 1040384   ;;  %s5867_s30 = smov 64  }
   0xf   : > { %5379 = vmatpush3.bf16.msra.mxu0 %v5459_v56 }
  0x10   : > { %s8717_s20 = smov (!%p487_p3, %s5293_s20), 15  ;;  %5380 = vmatprep.subr.bf16.mxu0 %v5460_v57 }
  0x11   : > { %s5294_s21 = sshll.u32 %s8717_s20, 3 }
  0x12   : > { %s5964_s24 = scalar_lea.vmem %s8516_s0, %s5294_s21  ;;  %s496_s16 = scalar_lea.vmem %s8531_s15, %s5294_s21 }
  0x13   : > { %v499_v0 = vld [vmem:[%s5964_s24] sm:$0xff]  ;;  %v501_v1 = vld [vmem:[%s5964_s24 + $0x10] sm:$0xff]  ;;  %v500_v2 = vld [vmem:[%s5964_s24 + $0x8] sm:$0xff]  ;;  %5381 = vmatpush3.bf16.msra.mxu0 %v5460_v57 }
  0x14   : > { %v510_v3 = vsel %vm8532_vm0, %v499_v0, 0.0  ;;  %v516_v4 = vsel %vm8532_vm0, %v501_v1, 0.0  ;;  %v502_v5 = vld [vmem:[%s5964_s24 + $0x18] sm:$0xff]  ;;  %v503_v6 = vld [vmem:[%s5964_s24 + $0x20] sm:$0xff]  ;;  %v504_v7 = vld [vmem:[%s5964_s24 + $0x28] sm:$0xff]  ;;  %v513_v8 = vsel %vm8532_vm0, %v500_v2, 0.0 }
  0x15   : > { %511 = vadd.xlane.f32.xlu0 %v510_v3  ;;  %517 = vadd.xlane.f32.xlu1 %v516_v4  ;;  %v519_v9 = vsel %vm8532_vm0, %v502_v5, 0.0  ;;  %v522_v10 = vsel %vm8532_vm0, %v503_v6, 0.0  ;;  %v525_v11 = vsel %vm8532_vm0, %v504_v7, 0.0  ;;  %v505_v12 = vld [vmem:[%s5964_s24 + $0x30] sm:$0xff]  ;;  %v506_v13 = vld [vmem:[%s5964_s24 + $0x38] sm:$0xff] }
  0x16   : > { %v528_v14 = vsel %vm8532_vm0, %v505_v12, 0.0  ;;  %v531_v15 = vsel %vm8532_vm0, %v506_v13, 0.0 }
  0x19   : > { %514 = vadd.xlane.f32.xlu0 %v513_v8  ;;  %520 = vadd.xlane.f32.xlu1 %v519_v9 }
  0x1d   : > { %523 = vadd.xlane.f32.xlu0 %v522_v10  ;;  %526 = vadd.xlane.f32.xlu1 %v525_v11 }
  0x21   : > { %529 = vadd.xlane.f32.xlu0 %v528_v14  ;;  %532 = vadd.xlane.f32.xlu1 %v531_v15 }
  0xa2   : > { %v512_v16 = vpop.xlane.xlu0 %511  ;;  %v518_v17 = vpop.xlane.xlu1 %517 }
  0xa3   : > { %v535_v18 = vmul.f32 0.03125, %v512_v16  ;;  %v537_v19 = vmul.f32 0.03125, %v518_v17 }
  0xa5   : > { %v5982_v20 = vsub.f32 %v499_v0, %v535_v18  ;;  %v5984_v21 = vsub.f32 %v501_v1, %v537_v19  ;;  %v5297_v19 = vld [vmem:[%s8517_s1] ss:$0 sm:$0xff] }
  0xa6   : > { %v515_v22 = vpop.xlane.xlu0 %514  ;;  %v521_v23 = vpop.xlane.xlu1 %520 }
  0xa7   : > { %v536_v24 = vmul.f32 0.03125, %v515_v22  ;;  %v538_v25 = vmul.f32 0.03125, %v521_v23  ;;  %v551_v26 = vmul.f32 %v5982_v20, %v5982_v20  ;;  %v553_v27 = vmul.f32 %v5984_v21, %v5984_v21 }
  0xa9   : > { %v5990_v28 = vsub.f32 %v500_v2, %v536_v24  ;;  %v5992_v29 = vsub.f32 %v502_v5, %v538_v25  ;;  %v559_v30 = vsel %vm8532_vm0, %v551_v26, 0.0  ;;  %v565_v33 = vsel %vm8532_vm0, %v553_v27, 0.0  ;;  %v5298_v27 = vld [vmem:[%s8518_s2] ss:$0 sm:$0xff] }
  0xaa   : > { %560 = vadd.xlane.f32.xlu0 %v559_v30  ;;  %v524_v31 = vpop.xlane.xlu0 %523  ;;  %v527_v32 = vpop.xlane.xlu1 %526 }
  0xab   : > { %v539_v34 = vmul.f32 0.03125, %v524_v31  ;;  %v540_v35 = vmul.f32 0.03125, %v527_v32  ;;  %v552_v36 = vmul.f32 %v5990_v28, %v5990_v28  ;;  %v554_v37 = vmul.f32 %v5992_v29, %v5992_v29 }
  0xad   : > { %v6000_v38 = vsub.f32 %v503_v6, %v539_v34  ;;  %v6002_v39 = vsub.f32 %v504_v7, %v540_v35  ;;  %v562_v40 = vsel %vm8532_vm0, %v552_v36, 0.0  ;;  %v568_v43 = vsel %vm8532_vm0, %v554_v37, 0.0 }
  0xae   : > { %566 = vadd.xlane.f32.xlu0 %v565_v33  ;;  %563 = vadd.xlane.f32.xlu1 %v562_v40  ;;  %v530_v41 = vpop.xlane.xlu0 %529  ;;  %v533_v42 = vpop.xlane.xlu1 %532 }
  0xaf   : > { %v541_v44 = vmul.f32 0.03125, %v530_v41  ;;  %v542_v45 = vmul.f32 0.03125, %v533_v42  ;;  %v555_v46 = vmul.f32 %v6000_v38, %v6000_v38  ;;  %v556_v47 = vmul.f32 %v6002_v39, %v6002_v39 }
  0xb1   : > { %v6010_v48 = vsub.f32 %v505_v12, %v541_v44  ;;  %v6012_v49 = vsub.f32 %v506_v13, %v542_v45  ;;  %v571_v50 = vsel %vm8532_vm0, %v555_v46, 0.0  ;;  %v574_v51 = vsel %vm8532_vm0, %v556_v47, 0.0 }
  0xb2   : > { %569 = vadd.xlane.f32.xlu1 %v568_v43  ;;  %572 = vadd.xlane.f32.xlu0 %v571_v50 }
  0xb3   : > { %v557_v52 = vmul.f32 %v6010_v48, %v6010_v48  ;;  %v558_v53 = vmul.f32 %v6012_v49, %v6012_v49 }
  0xb5   : > { %v577_v54 = vsel %vm8532_vm0, %v557_v52, 0.0  ;;  %v580_v55 = vsel %vm8532_vm0, %v558_v53, 0.0 }
  0xb6   : > { %575 = vadd.xlane.f32.xlu1 %v574_v51  ;;  %578 = vadd.xlane.f32.xlu0 %v577_v54 }
  0xba   : > { %581 = vadd.xlane.f32.xlu1 %v580_v55 }
 0x137   : > { %v561_v58 = vpop.xlane.xlu0 %560 }
 0x138   : > { %v583_v59 = vmul.f32 0.03125, %v561_v58  ;;  %v5462_v58 = vld [vmem:[%s8522_s6 + $0x8] sm:$0xff]  }
 0x13a   : > { %v591_v60 = vadd.f32 1e-05, %v583_v59  ;;  %v5464_v59 = vld [vmem:[%s8522_s6 + $0x18] sm:$0xff]  }
 0x13b   : > { %v564_v61 = vpop.xlane.xlu1 %563  ;;  %v567_v62 = vpop.xlane.xlu0 %566 }
 0x13c   : > { %5475 = vrsqrt.f32 %v591_v60  ;;  %v584_v63 = vmul.f32 0.03125, %v564_v61  ;;  %v585_v0 = vmul.f32 0.03125, %v567_v62  ;;  %v740_v60 = vlaneseq }
 0x13e   : > { %v592_v1 = vadd.f32 1e-05, %v584_v63  ;;  %v593_v2 = vadd.f32 1e-05, %v585_v0  ;;  %v6058_v61 = vshrl.u32 %v740_v60, 7 }
 0x13f   : > { %v570_v3 = vpop.xlane.xlu1 %569  ;;  %v573_v4 = vpop.xlane.xlu0 %572 }
 0x140   : > { %5477 = vrsqrt.f32 %v592_v1  ;;  %v586_v5 = vmul.f32 0.03125, %v570_v3  ;;  %v587_v6 = vmul.f32 0.03125, %v573_v4  ;;  %v744_v62 = vadd.s32 24, %v6058_v61  ;;  %v757_v1 = vld [vmem:[%s8520_s4] sm:$0xf] }
 0x141   : > { %5479 = vrsqrt.f32 %v593_v2  ;;  %v6062_v63 = vsub.s32 3, %v6058_v61  ;;  %v742_v0 = vadd.s32 8, %v6058_v61  ;;  %v6069_v2 = vand.u32 7, %v6058_v61 }
 0x142   : > { %v594_v7 = vadd.f32 1e-05, %v586_v5  ;;  %v595_v8 = vadd.f32 1e-05, %v587_v6  ;;  %v6072_v3 = vsub.s32 0, %v6058_v61  ;;  %v743_v4 = vadd.s32 16, %v6058_v61 }
 0x143   : > { %v576_v9 = vpop.xlane.xlu1 %575  ;;  %v579_v10 = vpop.xlane.xlu0 %578  ;;  %v6076_v5 = vsub.s32 1, %v6058_v61  ;;  %v6078_v6 = vand.u32 7, %v744_v62  ;;  %vm803_vm2 = vcmp.ge.s32.totalorder %v6069_v2, 3  ;;  %vm864_vm7 = vcmp.ge.s32.totalorder %v6069_v2, 2 }
 0x144   : > { %5481 = vrsqrt.f32 %v594_v7  ;;  %v588_v11 = vmul.f32 0.03125, %v576_v9  ;;  %v589_v12 = vmul.f32 0.03125, %v579_v10  ;;  %8590 = vst [vmem:[#allocation3_spill] sm:$0xff] %v6072_v3  ;;  %v6081_v7 = vrot.slane %v757_v1, %v6062_v63 }
 0x145   : > { %5483 = vrsqrt.f32 %v595_v8  ;;  %8591 = vst [vmem:[#allocation4_spill] sm:$0xff] %v6076_v5  ;;  %v6084_v8 = vsub.s32 2, %v6058_v61  ;;  %v6086_v9 = vand.u32 7, %v742_v0  ;;  %v745_v10 = vadd.s32 32, %v6058_v61 }
 0x146   : > { %v5476_v13 = vpop.eup %5475  ;;  %v596_v14 = vadd.f32 1e-05, %v588_v11  ;;  %v597_v15 = vadd.f32 1e-05, %v589_v12  ;;  %vm806_vm5 = vcmp.ge.s32.totalorder %v6078_v6, 3  ;;  %vm867_vm6 = vcmp.ge.s32.totalorder %v6078_v6, 2 }
 0x147   : > { %v582_v16 = vpop.xlane.xlu1 %581  ;;  %v607_v17 = vmul.f32 %v5476_v13, %v5982_v20  ;;  %8592 = vst [vmem:[#allocation5_spill] sm:$0xff] %v6084_v8  ;;  %v6095_v13 = vrot.slane %v757_v1, %v6072_v3  ;;  %vm928_vm8 = vcmp.ge.s32.totalorder %v6078_v6, 1  ;;  %vm804_vm9 = vcmp.ge.s32.totalorder %v6086_v9, 3 }
 0x148   : > { %5485 = vrsqrt.f32 %v596_v14  ;;  %v590_v18 = vmul.f32 0.03125, %v582_v16  ;;  %v6097_v14 = vand.u32 7, %v743_v4  ;;  %v746_v16 = vadd.s32 40, %v6058_v61 }
 0x149   : > { %5487 = vrsqrt.f32 %v597_v15  ;;  %v621_v26 = vmul.f32 %v5297_v19, %v607_v17  ;;  %v748_v15 = vadd.s32 56, %v6058_v61 }
 0x14a   : > { %v5478_v22 = vpop.eup %5477  ;;  %v598_v23 = vadd.f32 1e-05, %v590_v18  ;;  %vm805_vm10 = vcmp.ge.s32.totalorder %v6097_v14, 3  ;;  %vm866_vm11 = vcmp.ge.s32.totalorder %v6097_v14, 2 }
 0x14b   : > { %v5480_v24 = vpop.eup %5479  ;;  %v608_v25 = vmul.f32 %v5478_v22, %v5990_v28  ;;  %v635_v33 = vadd.f32 %v5298_v27, %v621_v26 }
 0x14c   : > { %5489 = vrsqrt.f32 %v598_v23  ;;  %v609_v20 = vmul.f32 %v5480_v24, %v5984_v21  ;;  %v6115_v24 = vand.u32 7, %v745_v10 }
 0x14d   : > { %v622_v30 = vmul.f32 %v5297_v19, %v608_v25  ;;  %v747_v25 = vadd.s32 48, %v6058_v61 }
 0x14e   : > { %v5482_v31 = vpop.eup %5481  ;;  %v623_v36 = vmul.f32 %v5297_v19, %v609_v20  ;;  %vm807_vm12 = vcmp.ge.s32.totalorder %v6115_v24, 3  ;;  %vm868_vm13 = vcmp.ge.s32.totalorder %v6115_v24, 2 }
 0x14f   : > { %v5484_v32 = vpop.eup %5483  ;;  %v636_v34 = vadd.f32 %v5298_v27, %v622_v30  ;;  %v610_v35 = vmul.f32 %v5482_v31, %v5992_v29  ;;  %v6124_v31 = vand.u32 7, %v748_v15 }
 0x150   : > { %v611_v37 = vmul.f32 %v5484_v32, %v6000_v38  ;;  %v637_v43 = vadd.f32 %v5298_v27, %v623_v36  ;;  %v6126_v32 = vand.u32 7, %v746_v16 }
 0x151   : > { %v643_v40 = vpack.c.bf16 %v636_v34, %v635_v33  ;;  %v624_v28 = vmul.f32 %v5297_v19, %v610_v35  ;;  %vm810_vm14 = vcmp.ge.s32.totalorder %v6124_v31, 3  ;;  %vm871_vm15 = vcmp.ge.s32.totalorder %v6124_v31, 2 }
 0x152   : > { %v5486_v41 = vpop.eup %5485  ;;  %v625_v45 = vmul.f32 %v5297_v19, %v611_v37 }
 0x153   : > { %v5488_v42 = vpop.eup %5487  ;;  %5382 = vmatprep.mubr.msk.bf16.mxu0 %vm8532_vm0, %v643_v40  ;;  %v638_v44 = vadd.f32 %v5298_v27, %v624_v28  ;;  %v612_v21 = vmul.f32 %v5486_v41, %v6002_v39 }
 0x154   : > { %v613_v46 = vmul.f32 %v5488_v42, %v6010_v48  ;;  %v639_v29 = vadd.f32 %v5298_v27, %v625_v45  ;;  %v5461_v48 = vld [vmem:[%s8522_s6] sm:$0xff]   ;;  %v6153_v45 = vand.u32 7, %v747_v25 }
 0x155   : > { %v644_v47 = vpack.c.bf16 %v638_v44, %v637_v43  ;;  %v626_v50 = vmul.f32 %v5297_v19, %v612_v21  ;;  %5390 = vmatprep.subr.bf16.mxu1 %v5461_v48 }
 0x156   : > { %v5490_v51 = vpop.eup %5489  ;;  %v627_v53 = vmul.f32 %v5297_v19, %v613_v46  ;;  %5391 = vmatpush3.bf16.msra.mxu1 %v5461_v48 }
 0x157   : > { %5383 = vmatmul.mubr.msk.bf16.vlgmr.msra.gmra.mrb[0].mxu0 %vm8532_vm0, %v644_v47  ;;  %v640_v38 = vadd.f32 %v5298_v27, %v626_v50  ;;  %v614_v52 = vmul.f32 %v5490_v51, %v6012_v49  ;;  %5392 = vmatprep.subr.bf16.mxu1 %v5462_v58  ;;  %v5463_v49 = vld [vmem:[%s8522_s6 + $0x10] sm:$0xff]  }
 0x158   : > { %v641_v56 = vadd.f32 %v5298_v27, %v627_v53 }
 0x159   : > { %v645_v54 = vpack.c.bf16 %v640_v38, %v639_v29  ;;  %v628_v55 = vmul.f32 %v5297_v19, %v614_v52  ;;  %v6107_v19 = vrot.slane %v757_v1, %v6076_v5  ;;  %v6162_v29 = vrot.slane %v757_v1, %v6084_v8 }
 0x15a   : > { %5393 = vmatpush3.bf16.msra.mxu1 %v5462_v58 }
 0x15b   : > { %5386 = vmatprep.mubr.msk.bf16.mxu0 %vm8532_vm0, %v645_v54  ;;  %v642_v57 = vadd.f32 %v5298_v27, %v628_v55  ;;  %5394 = vmatprep.subr.bf16.mxu1 %v5463_v49 }
 0x15d   : > { %v646_v39 = vpack.c.bf16 %v642_v57, %v641_v56 }
 0x15e   : > { %5395 = vmatpush3.bf16.msra.mxu1 %v5463_v49 }
 0x15f   : > { %5387 = vmatmul.mubr.msk.bf16.gmra.mrb[4].mxu0 %vm8532_vm0, %v646_v39  ;;  %5396 = vmatprep.subr.bf16.mxu1 %v5464_v59  ;;  %vm926_vm0 = vcmp.ge.s32.totalorder %v6086_v9, 1 }
 0x162   : > { %5397 = vmatpush3.bf16.msra.mxu1 %v5464_v59 }
 0x22a   : > { %v6089_v11 = vpop.f32.mrb[0].mxu0 }
 0x22b   : > { %8593 = vst [vmem:[#allocation6_spill] sm:$0xff] %v6089_v11  ;;  %v6092_v12 = vpop.f32.mrb[1].mxu0  ;;  %v782_v26 = vrot.slane %v6089_v11, 5  ;;  %v843_v27 = vrot.slane %v6089_v11, 6  ;;  %v904_v33 = vrot.slane %v6089_v11, 7  ;;  %v6183_v49 = vmul.f32 %v6089_v11, %v6081_v7 }
 0x22c   : > { %8594 = vst [vmem:[#allocation7_spill] sm:$0xff] %v6092_v12  ;;  %v779_v17 = vrot.slane %v6092_v12, 5  ;;  %v6102_v18 = vpop.f32.mrb[2].mxu0  ;;  %v840_v40 = vrot.slane %v6092_v12, 6  ;;  %v901_v46 = vrot.slane %v6092_v12, 7  ;;  %v762_v59 = vmul.f32 %v6081_v7, %v6092_v12 }
 0x22d   : > { %8595 = vst [vmem:[#allocation8_spill] sm:$0xff] %v6102_v18  ;;  %v784_v22 = vrot.slane %v6102_v18, 5  ;;  %v6112_v23 = vpop.f32.mrb[3].mxu0  ;;  %v845_v30 = vrot.slane %v6102_v18, 6  ;;  %v906_v36 = vrot.slane %v6102_v18, 7  ;;  %v765_v42 = vmul.f32 %v6102_v18, %v6081_v7 }
 0x22e   : > { %8596 = vst [vmem:[#allocation9_spill] sm:$0xff] %v6112_v23  ;;  %v802_v20 = vsel %vm778_vm1, 0.0, %v779_v17  ;;  %v780_v47 = vrot.slane %v6112_v23, 5  ;;  %v841_v50 = vrot.slane %v6112_v23, 6  ;;  %v902_v54 = vrot.slane %v6112_v23, 7 }
 0x22f   : > { %v785_v34 = vsel %vm778_vm1, %v782_v26, %v784_v22  ;;  %v846_v35 = vsel %vm839_vm3, %v843_v27, %v845_v30  ;;  %v811_v37 = vsel %vm803_vm2, %v802_v20, 0.0  ;;  %v907_v44 = vsel %vm900_vm4, %v904_v33, %v906_v36 }
 0x230   : > { %v814_v28 = vsel %vm806_vm5, %v785_v34, 0.0  ;;  %v875_v41 = vsel %vm867_vm6, %v846_v35, 0.0  ;;  %v823_v38 = vmul.f32 %v6095_v13, %v811_v37  ;;  %v863_v56 = vsel %vm839_vm3, 0.0, %v840_v40 }
 0x231   : > { %v826_v43 = vmul.f32 %v6095_v13, %v814_v28  ;;  %v887_v53 = vmul.f32 %v6107_v19, %v875_v41  ;;  %v781_v57 = vsel %vm778_vm1, %v779_v17, %v780_v47  ;;  %v783_v39 = vsel %vm778_vm1, %v780_v47, %v782_v26 }
 0x232   : > { %v6150_v21 = vpop.f32.mrb[4].mxu0  ;;  %v844_v48 = vsel %vm839_vm3, %v841_v50, %v843_v27  ;;  %vm927_vm2 = vcmp.ge.s32.totalorder %v6097_v14, 1  ;;  %v812_v62 = vsel %vm804_vm9, %v781_v57, 0.0  ;;  %vm929_vm5 = vcmp.ge.s32.totalorder %v6115_v24, 1 }
 0x233   : > { %8597 = vst [vmem:[#allocation10_spill] sm:$0xff] %v6150_v21  ;;  %v6158_v51 = vpop.f32.mrb[5].mxu0  ;;  %v834_v52 = vadd.f32 %v826_v43, %v765_v42  ;;  %v763_v0 = vmul.f32 %v6081_v7, %v6112_v23  ;;  %v813_v1 = vsel %vm805_vm10, %v783_v39, 0.0  ;;  %v824_v4 = vmul.f32 %v6095_v13, %v812_v62 }
 0x234   : > { %8598 = vst [vmem:[#allocation11_spill] sm:$0xff] %v6158_v51  ;;  %v6167_v55 = vpop.f32.mrb[6].mxu0  ;;  %v905_v10 = vsel %vm900_vm4, %v902_v54, %v904_v33  ;;  %v6200_v15 = vadd.f32 %v823_v38, %v762_v59  ;;  %v6204_v16 = vsel %vm864_vm7, %v863_v56, 0.0  ;;  %v6209_v17 = vsel %vm900_vm4, 0.0, %v901_v46 }
 0x235   : > { %8599 = vst [vmem:[#allocation12_spill] sm:$0xff] %v6167_v55  ;;  %v6179_v58 = vpop.f32.mrb[7].mxu0  ;;  %v6187_v60 = vadd.f32 %v887_v53, %v834_v52  ;;  %v6213_v25 = vsel %vm928_vm8, %v907_v44, 0.0  ;;  %vm808_vm6 = vcmp.ge.s32.totalorder %v6126_v32, 3  ;;  %vm809_vm9 = vcmp.ge.s32.totalorder %v6153_v45, 3 }
 0x236   : > { %8600 = vst [vmem:[#allocation13_spill] sm:$0xff] %v6179_v58  ;;  %v6217_v26 = vadd.f32 %v824_v4, %v763_v0  ;;  %v6221_v27 = vmul.f32 %v6150_v21, %v6081_v7  ;;  %v790_v20 = vrot.slane %v6150_v21, 5  ;;  %v786_v33 = vrot.slane %v6158_v51, 5 }
 0x237   : > { %vm932_vm7 = vcmp.ge.s32.totalorder %v6124_v31, 1  ;;  %v6227_v6 = vmul.f32 %v6095_v13, %v813_v1  ;;  %v874_v34 = vsel %vm866_vm11, %v844_v48, 0.0  ;;  %v847_v35 = vrot.slane %v6158_v51, 6 }
 0x238   : > { %v908_v37 = vrot.slane %v6158_v51, 7  ;;  %vm869_vm8 = vcmp.ge.s32.totalorder %v6126_v32, 2  ;;  %v851_v28 = vrot.slane %v6150_v21, 6  ;;  %v787_v41 = vsel %vm778_vm1, %v784_v22, %v786_v33 }
 0x239   : > { %v792_v42 = vrot.slane %v6167_v55, 5  ;;  %v853_v43 = vrot.slane %v6167_v55, 6  ;;  %v912_v44 = vrot.slane %v6150_v21, 7  ;;  %v815_v47 = vsel %vm807_vm12, %v787_v41, 0.0 }
 0x23a   : > { %v848_v38 = vsel %vm839_vm3, %v845_v30, %v847_v35  ;;  %v909_v52 = vsel %vm900_vm4, %v906_v36, %v908_v37  ;;  %vm930_vm11 = vcmp.ge.s32.totalorder %v6126_v32, 1  ;;  %v766_v22 = vmul.f32 %v6081_v7, %v6158_v51 }
 0x23b   : > { %v827_v53 = vmul.f32 %v6095_v13, %v815_v47  ;;  %v876_v56 = vsel %vm868_vm13, %v848_v38, 0.0  ;;  %v793_v57 = vsel %vm778_vm1, %v790_v20, %v792_v42  ;;  %vm865_vm12 = vcmp.ge.s32.totalorder %v6086_v9, 2 }
 0x23c   : > { %vm925_vm10 = vcmp.ge.s32.totalorder %v6069_v2, 1  ;;  %v769_v30 = vmul.f32 %v6167_v55, %v6081_v7  ;;  %v818_v36 = vsel %vm810_vm14, %v793_v57, 0.0  ;;  %v854_v39 = vsel %vm839_vm3, %v851_v28, %v853_v43 }
 0x23d   : > { %v914_v48 = vrot.slane %v6167_v55, 7  ;;  %v835_v59 = vadd.f32 %v827_v53, %v766_v22  ;;  %v888_v62 = vmul.f32 %v6107_v19, %v876_v56  ;;  %v830_v0 = vmul.f32 %v6095_v13, %v818_v36 }
 0x23e   : > { %v879_v1 = vsel %vm871_vm15, %v854_v39, 0.0  ;;  %v886_v4 = vmul.f32 %v6107_v19, %v874_v34  ;;  %v935_v41 = vsel %vm927_vm2, %v905_v10, 0.0  ;;  %v788_v43 = vrot.slane %v6179_v58, 5 }
 0x23f   : > { %v915_v42 = vsel %vm900_vm4, %v912_v44, %v914_v48  ;;  %v896_v47 = vadd.f32 %v888_v62, %v835_v59  ;;  %v937_v38 = vsel %vm929_vm5, %v909_v52, 0.0  ;;  %v838_v22 = vadd.f32 %v830_v0, %v769_v30 }
 0x240   : > { %v891_v53 = vmul.f32 %v6107_v19, %v879_v1  ;;  %v789_v56 = vsel %vm778_vm1, %v786_v33, %v788_v43  ;;  %v791_v57 = vsel %vm778_vm1, %v788_v43, %v790_v20  ;;  %v849_v34 = vrot.slane %v6179_v58, 6 }
 0x241   : > { %v910_v14 = vrot.slane %v6179_v58, 7  ;;  %v767_v36 = vmul.f32 %v6081_v7, %v6179_v58  ;;  %v816_v39 = vsel %vm808_vm6, %v789_v56, 0.0  ;;  %v817_v24 = vsel %vm809_vm9, %v791_v57, 0.0  ;;  %v5305_v56 = vld [vmem:[%s8521_s5] ss:$0 sm:$0xff] }
 0x242   : > { %v899_v10 = vadd.f32 %v891_v53, %v838_v22  ;;  %v940_v52 = vsel %vm932_vm7, %v915_v42, 0.0  ;;  %v828_v33 = vmul.f32 %v6095_v13, %v816_v39  ;;  %v850_v20 = vsel %vm839_vm3, %v847_v35, %v849_v34 }
 0x243   : > { %v852_v30 = vsel %vm839_vm3, %v849_v34, %v851_v28  ;;  %v877_v48 = vsel %vm869_vm8, %v850_v20, 0.0  ;;  %vm8601_vm1 = vcmp.ge.s32.totalorder %v6153_v45, 2  ;;  %v911_v59 = vsel %vm900_vm4, %v908_v37, %v910_v14 }
 0x244   : > { %v878_v7 = vsel %vm8601_vm1, %v852_v30, 0.0  ;;  %v913_v62 = vsel %vm900_vm4, %v910_v14, %v912_v44  ;;  %v829_v0 = vmul.f32 %v6095_v13, %v817_v24  ;;  %v836_v31 = vadd.f32 %v828_v33, %v767_v36 }
 0x245   : > { %v889_v1 = vmul.f32 %v6107_v19, %v877_v48  ;;  %v890_v42 = vmul.f32 %v6107_v19, %v878_v7  ;;  %v938_v35 = vsel %vm930_vm11, %v911_v59, 0.0  ;;  %vm8602_vm13 = vcmp.ge.s32.totalorder %v6153_v45, 1 }
 0x246   : > { %v939_v28 = vsel %vm8602_vm13, %v913_v62, 0.0  ;;  %v842_v37 = vsel %vm839_vm3, %v840_v40, %v841_v50  ;;  %v884_v13 = vmul.f32 %v6107_v19, %v6204_v16  ;;  %v903_v32 = vsel %vm900_vm4, %v901_v46, %v902_v54 }
 0x247   : > { %v897_v44 = vadd.f32 %v889_v1, %v836_v31  ;;  %v873_v43 = vsel %vm865_vm12, %v842_v37, 0.0  ;;  %v933_v45 = vsel %vm925_vm10, %v6209_v17, 0.0  ;;  %v934_v50 = vsel %vm926_vm0, %v903_v32, 0.0 }
 0x248   : > { %v885_v22 = vmul.f32 %v6107_v19, %v873_v43  ;;  %v892_v40 = vadd.f32 %v884_v13, %v6200_v15  ;;  %v945_v16 = vmul.f32 %v6162_v29, %v933_v45  ;;  %v946_v53 = vmul.f32 %v6162_v29, %v934_v50 }
 0x249   : > { %v833_v46 = vadd.f32 %v6227_v6, %v6183_v49  ;;  %v947_v2 = vmul.f32 %v6162_v29, %v935_v41  ;;  %v948_v19 = vmul.f32 %v6162_v29, %v6213_v25  ;;  %v949_v15 = vmul.f32 %v6162_v29, %v937_v38 }
 0x24a   : > { %v893_v54 = vadd.f32 %v885_v22, %v6217_v26  ;;  %v953_v9 = vadd.f32 %v945_v16, %v892_v40  ;;  %v950_v17 = vmul.f32 %v6162_v29, %v938_v35  ;;  %v837_v14 = vadd.f32 %v829_v0, %v6221_v27 }
 0x24b   : > { %v894_v57 = vadd.f32 %v886_v4, %v833_v46  ;;  %v956_v34 = vadd.f32 %v948_v19, %v6187_v60  ;;  %v951_v36 = vmul.f32 %v6162_v29, %v939_v28  ;;  %v957_v41 = vadd.f32 %v949_v15, %v896_v47 }
 0x24c   : > { %v954_v49 = vadd.f32 %v946_v53, %v893_v54  ;;  %v968_v6 = vadd.f32 %v5305_v56, %v953_v9  ;;  %v958_v39 = vadd.f32 %v950_v17, %v897_v44  ;;  %v898_v33 = vadd.f32 %v890_v42, %v837_v14 }
 0x24d   : > { %v955_v24 = vadd.f32 %v947_v2, %v894_v57  ;;  %v971_v25 = vadd.f32 %v5305_v56, %v956_v34  ;;  %v952_v26 = vmul.f32 %v6162_v29, %v940_v52  ;;  %v972_v30 = vadd.f32 %v5305_v56, %v957_v41 }
 0x24e   : > { %v969_v20 = vadd.f32 %v5305_v56, %v954_v49  ;;  %v976_v38 = vmul.f32 0.5, %v968_v6  ;;  %v973_v48 = vadd.f32 %v5305_v56, %v958_v39  ;;  %v959_v60 = vadd.f32 %v951_v36, %v898_v33 }
 0x24f   : > { %v970_v4 = vadd.f32 %v5305_v56, %v955_v24  ;;  %v979_v7 = vmul.f32 0.5, %v971_v25  ;;  %v960_v59 = vadd.f32 %v952_v26, %v899_v10  ;;  %v980_v62 = vmul.f32 0.5, %v972_v30 }
 0x250   : > { %v977_v27 = vmul.f32 0.5, %v969_v20  ;;  %5491 = vtanh.f32 %v976_v38  ;;  %v981_v0 = vmul.f32 0.5, %v973_v48  ;;  %v974_v47 = vadd.f32 %v5305_v56, %v959_v60  ;;  %v5314_v38 = vld [vmem:[%s8523_s7] ss:$0 sm:$0xff] }
 0x251   : > { %v978_v31 = vmul.f32 0.5, %v970_v4  ;;  %5493 = vtanh.f32 %v979_v7  ;;  %v975_v1 = vadd.f32 %v5305_v56, %v960_v59  ;;  %vm1052_vm0 = vcmask 523264  }
 0x252   : > { %5495 = vtanh.f32 %v977_v27  ;;  %v982_v42 = vmul.f32 0.5, %v974_v47  ;;  %vm1270_vm14 = vcmask 516096   ;;  %vm8689_vm8 = vcmask 261120  }
 0x253   : > { %5497 = vtanh.f32 %v978_v31  ;;  %v983_v29 = vmul.f32 0.5, %v975_v1  ;;  %vm8690_vm10 = vmmov %vm8689_vm8 }
 0x254   : > { %5499 = vtanh.f32 %v980_v62  ;;  %vm8691_vm11 = vmmov %vm8689_vm8 }
 0x255   : > { %5501 = vtanh.f32 %v981_v0  ;;  %vm8692_vm12 = vmmov %vm8689_vm8 }
 0x256   : > { %5503 = vtanh.f32 %v982_v42  ;;  %vm8693_vm1 = vmmov %vm8689_vm8 }
 0x257   : > { %5505 = vtanh.f32 %v983_v29  ;;  %vm8694_vm13 = vmmov %vm8693_vm1 }
 0x25a   : > { %v5492_v52 = vpop.eup %5491 }
 0x25b   : > { %v5494_v35 = vpop.eup %5493  ;;  %v992_v28 = vadd.f32 1.0, %v5492_v52 }
 0x25c   : > { %v5496_v10 = vpop.eup %5495  ;;  %v995_v37 = vadd.f32 1.0, %v5494_v35 }
 0x25d   : > { %v5498_v13 = vpop.eup %5497  ;;  %v993_v44 = vadd.f32 1.0, %v5496_v10  ;;  %v1000_v43 = vmul.f32 0.5, %v992_v28 }
 0x25e   : > { %v5500_v32 = vpop.eup %5499  ;;  %v994_v45 = vadd.f32 1.0, %v5498_v13  ;;  %v1003_v22 = vmul.f32 0.5, %v995_v37  ;;  %v6415_v37 = vsub.s32 4, %v6058_v61 }
 0x25f   : > { %v5502_v40 = vpop.eup %5501  ;;  %v1001_v50 = vmul.f32 0.5, %v993_v44  ;;  %v996_v16 = vadd.f32 1.0, %v5500_v32  ;;  %v6347_v54 = vmul.f32 %v1000_v43, %v968_v6  ;;  %v6419_v44 = vsub.s32 5, %v6058_v61 }
 0x260   : > { %v5504_v53 = vpop.eup %5503  ;;  %v1002_v56 = vmul.f32 0.5, %v994_v45  ;;  %v6345_v46 = vmul.f32 %v1003_v22, %v971_v25  ;;  %v997_v2 = vadd.f32 1.0, %v5502_v40  ;;  %v6423_v32 = vsub.s32 6, %v6058_v61 }
 0x261   : > { %v5506_v19 = vpop.eup %5505  ;;  %8604 = vst [vmem:[#allocation15_spill] sm:$0xff] %v6347_v54  ;;  %v6349_v9 = vmul.f32 %v1001_v50, %v969_v20  ;;  %v1004_v15 = vmul.f32 0.5, %v996_v16  ;;  %v998_v17 = vadd.f32 1.0, %v5504_v53  ;;  %8619 = vst [vmem:[#allocation30_spill] sm:$0xff] %v6419_v44  ;;  %v6427_v22 = vsub.s32 7, %v6058_v61 }
 0x262   : > { %8603 = vst [vmem:[#allocation14_spill] sm:$0xff] %v6345_v46  ;;  %v6351_v57 = vmul.f32 %v1002_v56, %v970_v4  ;;  %v1005_v34 = vmul.f32 0.5, %v997_v2  ;;  %v999_v14 = vadd.f32 1.0, %v5506_v19  ;;  %8620 = vst [vmem:[#allocation31_spill] sm:$0xff] %v6423_v32 }
 0x263   : > { %8605 = vst [vmem:[#allocation16_spill] sm:$0xff] %v6349_v9  ;;  %v1016_v36 = vpack.c.bf16 %v6349_v9, %v6347_v54  ;;  %v1006_v49 = vmul.f32 0.5, %v998_v17  ;;  %v6357_v39 = vmul.f32 %v1004_v15, %v972_v30  ;;  %8621 = vst [vmem:[#allocation32_spill] sm:$0xff] %v6427_v22 }
 0x264   : > { %8606 = vst [vmem:[#allocation17_spill] sm:$0xff] %v6351_v57  ;;  %v1017_v41 = vpack.c.bf16 %v6345_v46, %v6351_v57  ;;  %v6359_v6 = vmul.f32 %v1005_v34, %v973_v48  ;;  %v1007_v24 = vmul.f32 0.5, %v999_v14 }
 0x265   : > { %8607 = vst [vmem:[#allocation18_spill] sm:$0xff] %v6357_v39  ;;  %5398 = vmatprep.mubr.msk.bf16.mxu1 %vm1052_vm0, %v1016_v36  ;;  %v6365_v33 = vmul.f32 %v1006_v49, %v974_v47 }
 0x266   : > { %8608 = vst [vmem:[#allocation19_spill] sm:$0xff] %v6359_v6  ;;  %5399 = vmatmul.mubr.msk.bf16.vlgmr.msra.gmra.mrb[0].mxu1 %vm1052_vm0, %v1017_v41  ;;  %v1018_v25 = vpack.c.bf16 %v6359_v6, %v6357_v39  ;;  %v6367_v26 = vmul.f32 %v1007_v24, %v975_v1 }
 0x267   : > { %8609 = vst [vmem:[#allocation20_spill] sm:$0xff] %v6365_v33 }
 0x268   : > { %8610 = vst [vmem:[#allocation21_spill] sm:$0xff] %v6367_v26  ;;  %5402 = vmatprep.mubr.msk.bf16.mxu1 %vm1052_vm0, %v1018_v25  ;;  %v1019_v20 = vpack.c.bf16 %v6367_v26, %v6365_v33 }
 0x26e   : > { %5403 = vmatmul.mubr.msk.bf16.gmra.mrb[4].mxu1 %vm1052_vm0, %v1019_v20 }
 0x339   : > { %v5400_v30 = vpop.f32.mrb[0].mxu1 }
 0x33a   : > { %v6376_v48 = vpop.f32.mrb[1].mxu1  ;;  %v2065_v4 = vrot.slane %v5400_v30, %v6072_v3  ;;  %v2117_v0 = vrot.slane %v5400_v30, %v6076_v5  ;;  %v2169_v42 = vrot.slane %v5400_v30, %v6084_v8  ;;  %v2221_v13 = vrot.slane %v5400_v30, %v6062_v63 }
 0x33b   : > { %v6380_v7 = vadd.f32 %v5314_v38, %v6376_v48  ;;  %v6382_v60 = vpop.f32.mrb[2].mxu1  ;;  %v2273_v43 = vrot.slane %v5400_v30, %v6415_v37  ;;  %v2325_v45 = vrot.slane %v5400_v30, %v6419_v44  ;;  %v2377_v40 = vrot.slane %v5400_v30, %v6423_v32 }
 0x33c   : > { %v6385_v59 = vadd.f32 %v6382_v60, %v5314_v38  ;;  %2072 = vbcast.lane.b32.xlu1 %v2065_v4, 328  ;;  %2068 = vbcast.lane.b32.xlu0 %v2065_v4, 320  ;;  %v6387_v27 = vpop.f32.mrb[3].mxu1  ;;  %v2429_v50 = vrot.slane %v5400_v30, %v6427_v22  ;;  %v1139_v16 = vadd.f32 %v5400_v30, %v5314_v38  ;;  %v6460_v30 = vld [vmem:[%s8524_s8 + $0x8] sm:$0xff] }
 0x33d   : > { %v6390_v62 = vadd.f32 %v5314_v38, %v6387_v27  ;;  %v1232_v2 = vrot.slane %v6376_v48, %v6072_v3  ;;  %v1285_v15 = vrot.slane %v6376_v48, %v6076_v5  ;;  %v1337_v17 = vrot.slane %v6376_v48, %v6084_v8 }
 0x33e   : > { %v1155_v53 = vmin.f32 %v1139_v16, 20.0  ;;  %v1389_v34 = vrot.slane %v6376_v48, %v6062_v63  ;;  %v1441_v14 = vrot.slane %v6376_v48, %v6415_v37  ;;  %v1493_v41 = vrot.slane %v6376_v48, %v6419_v44 }
 0x33f   : > { %vm1147_vm3 = vcmp.gt.f32.partialorder %v1139_v16, 20.0  ;;  %v6447_v25 = vrot.slane %v6376_v48, %v6423_v32  ;;  %v6557_v55 = vrot.slane %v6382_v60, %v6062_v63  ;;  %vm1145_vm4 = vcmp.gt.f32.partialorder %v6380_v7, 20.0 }
 0x340   : > { %2124 = vbcast.lane.b32.xlu1 %v2117_v0, 328  ;;  %2120 = vbcast.lane.b32.xlu0 %v2117_v0, 320  ;;  %v1165_v61 = vmul.f32 1.442695, %v1155_v53  ;;  %vm1148_vm15 = vcmp.gt.f32.partialorder %v6385_v59, 20.0  ;;  %vm1146_vm2 = vcmp.gt.f32.partialorder %v6390_v62, 20.0 }
 0x341   : > { %v6393_v31 = vpop.f32.mrb[4].mxu1 }
 0x342   : > { %8611 = vst [vmem:[#allocation22_spill] sm:$0xff] %v6393_v31  ;;  %v6396_v47 = vadd.f32 %v6393_v31, %v5314_v38  ;;  %v6398_v1 = vpop.f32.mrb[5].mxu1  ;;  %5507 = vpow2.f32 %v1165_v61 }
 0x343   : > { %8613 = vst [vmem:[#allocation24_spill] sm:$0xff] %v6398_v1  ;;  %v6402_v29 = vadd.f32 %v5314_v38, %v6398_v1  ;;  %v6404_v52 = vpop.f32.mrb[6].mxu1 }
 0x344   : > { %8612 = vst [vmem:[#allocation23_spill] sm:$0xff] %v6396_v47  ;;  %8615 = vst [vmem:[#allocation26_spill] sm:$0xff] %v6404_v52  ;;  %v6407_v35 = vadd.f32 %v6404_v52, %v5314_v38  ;;  %2176 = vbcast.lane.b32.xlu1 %v2169_v42, 328  ;;  %2172 = vbcast.lane.b32.xlu0 %v2169_v42, 320  ;;  %v6409_v28 = vpop.f32.mrb[7].mxu1 }
 0x345   : > { %8614 = vst [vmem:[#allocation25_spill] sm:$0xff] %v6402_v29  ;;  %8617 = vst [vmem:[#allocation28_spill] sm:$0xff] %v6409_v28  ;;  %v6412_v10 = vadd.f32 %v5314_v38, %v6409_v28  ;;  %v6455_v38 = vrot.slane %v6376_v48, %v6427_v22 }
 0x346   : > { %8616 = vst [vmem:[#allocation27_spill] sm:$0xff] %v6407_v35 }
 0x347   : > { %8618 = vst [vmem:[#allocation29_spill] sm:$0xff] %v6412_v10 }
 0x348   : > { %2228 = vbcast.lane.b32.xlu1 %v2221_v13, 328  ;;  %2224 = vbcast.lane.b32.xlu0 %v2221_v13, 320 }
 0x34c   : > { %2280 = vbcast.lane.b32.xlu1 %v2273_v43, 328  ;;  %2276 = vbcast.lane.b32.xlu0 %v2273_v43, 320  ;;  %v5508_v56 = vpop.eup %5507 }
 0x34d   : > { %v1179_v19 = vadd.f32 1.0, %v5508_v56 }
 0x34f   : > { %5509 = vlog2.f32 %v1179_v19 }
 0x350   : > { %2332 = vbcast.lane.b32.xlu1 %v2325_v45, 328  ;;  %2328 = vbcast.lane.b32.xlu0 %v2325_v45, 320 }
 0x354   : > { %2384 = vbcast.lane.b32.xlu1 %v2377_v40, 328  ;;  %2380 = vbcast.lane.b32.xlu0 %v2377_v40, 320 }
 0x358   : > { %2436 = vbcast.lane.b32.xlu1 %v2429_v50, 328  ;;  %2432 = vbcast.lane.b32.xlu0 %v2429_v50, 320 }
 0x359   : > { %v5510_v36 = vpop.eup %5509 }
 0x35a   : > { %v1190_v49 = vmul.f32 0.6931472, %v5510_v36 }
 0x35c   : > { %2086 = vbcast.lane.b32.xlu1 %v2065_v4, 344  ;;  %2082 = vbcast.lane.b32.xlu0 %v2065_v4, 336  ;;  %v6443_v24 = vsel %vm1147_vm3, %v1139_v16, %v1190_v49  ;;  %v6465_v4 = vld [vmem:[%s8524_s8] sm:$0xff]  ;;  %vm8695_vm3 = vmmov %vm8693_vm1 }
 0x35d   : > { %v2055_v20 = vrot.slane %v6443_v24, %v6072_v3  ;;  %v2159_v61 = vrot.slane %v6443_v24, %v6084_v8  ;;  %v2211_v49 = vrot.slane %v6443_v24, %v6062_v63 }
 0x35f   : > { %v2161_v19 = vmul.f32 %v2159_v61, %v6460_v30 }
 0x360   : > { %2138 = vbcast.lane.b32.xlu1 %v2117_v0, 344  ;;  %2134 = vbcast.lane.b32.xlu0 %v2117_v0, 336  ;;  %v2057_v0 = vmul.f32 %v2055_v20, %v6460_v30 }
 0x362   : > { %v2060_v48 = vmul.f32 1.442695, %v2057_v0 }
 0x364   : > { %2190 = vbcast.lane.b32.xlu1 %v2169_v42, 344  ;;  %2186 = vbcast.lane.b32.xlu0 %v2169_v42, 336  ;;  %v2056_v42 = vmul.f32 %v2055_v20, %v6465_v4  ;;  %5511 = vpow2.f32 %v2060_v48  ;;  %v2164_v20 = vmul.f32 1.442695, %v2161_v19  ;;  %v2212_v19 = vmul.f32 %v2211_v49, %v6465_v4 }
 0x368   : > { %2242 = vbcast.lane.b32.xlu1 %v2221_v13, 344  ;;  %2238 = vbcast.lane.b32.xlu0 %v2221_v13, 336  ;;  %v2107_v13 = vrot.slane %v6443_v24, %v6076_v5 }
 0x36c   : > { %2294 = vbcast.lane.b32.xlu1 %v2273_v43, 344  ;;  %2290 = vbcast.lane.b32.xlu0 %v2273_v43, 336  ;;  %v2058_v43 = vmul.f32 1.442695, %v2056_v42 }
 0x36e   : > { %5513 = vpow2.f32 %v2058_v43  ;;  %v5512_v36 = vpop.eup %5511 }
 0x370   : > { %2346 = vbcast.lane.b32.xlu1 %v2325_v45, 344  ;;  %2342 = vbcast.lane.b32.xlu0 %v2325_v45, 336  ;;  %v1153_v45 = vmin.f32 %v6380_v7, 20.0 }
 0x372   : > { %v1161_v16 = vmul.f32 1.442695, %v1153_v45  ;;  %v2089_v45 = vmul.f32 0.0, %v5512_v36 }
 0x374   : > { %2398 = vbcast.lane.b32.xlu1 %v2377_v40, 344  ;;  %2394 = vbcast.lane.b32.xlu0 %v2377_v40, 336  ;;  %v2109_v40 = vmul.f32 %v2107_v13, %v6460_v30  ;;  %5515 = vpow2.f32 %v1161_v16 }
 0x376   : > { %v2112_v53 = vmul.f32 1.442695, %v2109_v40 }
 0x378   : > { %2450 = vbcast.lane.b32.xlu1 %v2429_v50, 344  ;;  %2446 = vbcast.lane.b32.xlu0 %v2429_v50, 336  ;;  %v2108_v50 = vmul.f32 %v2107_v13, %v6465_v4  ;;  %5517 = vpow2.f32 %v2112_v53 }
 0x37a   : > { %v2110_v56 = vmul.f32 1.442695, %v2108_v50  ;;  %v2213_v50 = vmul.f32 %v2211_v49, %v6460_v30 }
 0x37c   : > { %1239 = vbcast.lane.b32.xlu1 %v1232_v2, 328  ;;  %1235 = vbcast.lane.b32.xlu0 %v1232_v2, 320  ;;  %5519 = vpow2.f32 %v2110_v56 }
 0x37d   : > { %5521 = vpow2.f32 %v2164_v20 }
 0x380   : > { %1292 = vbcast.lane.b32.xlu1 %v1285_v15, 328  ;;  %1288 = vbcast.lane.b32.xlu0 %v1285_v15, 320 }
 0x384   : > { %1344 = vbcast.lane.b32.xlu1 %v1337_v17, 328  ;;  %1340 = vbcast.lane.b32.xlu0 %v1337_v17, 320 }
 0x388   : > { %1396 = vbcast.lane.b32.xlu1 %v1389_v34, 328  ;;  %1392 = vbcast.lane.b32.xlu0 %v1389_v34, 320 }
 0x38c   : > { %1448 = vbcast.lane.b32.xlu1 %v1441_v14, 328  ;;  %1444 = vbcast.lane.b32.xlu0 %v1441_v14, 320 }
 0x390   : > { %1500 = vbcast.lane.b32.xlu1 %v1493_v41, 328  ;;  %1496 = vbcast.lane.b32.xlu0 %v1493_v41, 320 }
 0x394   : > { %1552 = vbcast.lane.b32.xlu1 %v6447_v25, 328  ;;  %1548 = vbcast.lane.b32.xlu0 %v6447_v25, 320 }
 0x398   : > { %1604 = vbcast.lane.b32.xlu1 %v6455_v38, 328  ;;  %1600 = vbcast.lane.b32.xlu0 %v6455_v38, 320 }
 0x39c   : > { %1253 = vbcast.lane.b32.xlu1 %v1232_v2, 344  ;;  %1249 = vbcast.lane.b32.xlu0 %v1232_v2, 336  ;;  %v6480_v2 = vmul.f32 %v6443_v24, %v6351_v57 }
 0x39e   : > { %v2129_v36 = vrot.slane %v6480_v2, %v6076_v5  ;;  %v2233_v26 = vrot.slane %v6480_v2, %v6062_v63 }
 0x3a0   : > { %1306 = vbcast.lane.b32.xlu1 %v1285_v15, 344  ;;  %1302 = vbcast.lane.b32.xlu0 %v1285_v15, 336  ;;  %v2160_v15 = vmul.f32 %v2159_v61, %v6465_v4 }
 0x3a2   : > { %v2162_v48 = vmul.f32 1.442695, %v2160_v15 }
 0x3a4   : > { %1358 = vbcast.lane.b32.xlu1 %v1337_v17, 344  ;;  %1354 = vbcast.lane.b32.xlu0 %v1337_v17, 336  ;;  %v5514_v17 = vpop.eup %5513  ;;  %5523 = vpow2.f32 %v2162_v48 }
 0x3a5   : > { %v2088_v40 = vmul.f32 0.0, %v5514_v17  ;;  %v5516_v53 = vpop.eup %5515 }
 0x3a6   : > { %v5518_v15 = vpop.eup %5517 }
 0x3a7   : > { %v5520_v17 = vpop.eup %5519 }
 0x3a8   : > { %1410 = vbcast.lane.b32.xlu1 %v1389_v34, 344  ;;  %1406 = vbcast.lane.b32.xlu0 %v1389_v34, 336  ;;  %v2077_v34 = vrot.slane %v6480_v2, %v6072_v3 }
 0x3ac   : > { %1462 = vbcast.lane.b32.xlu1 %v1441_v14, 344  ;;  %1458 = vbcast.lane.b32.xlu0 %v1441_v14, 336 }
 0x3ae   : > { %v2073_v0 = vpop.permute.xlu1 %2072  ;;  %v2069_v42 = vpop.permute.xlu0 %2068 }
 0x3af   : > { %v2079_v13 = vmul.f32 %v2077_v34, %v2073_v0  ;;  %v2078_v43 = vmul.f32 %v2077_v34, %v2069_v42  ;;  %v2263_v34 = vrot.slane %v6443_v24, %v6415_v37 }
 0x3b0   : > { %1514 = vbcast.lane.b32.xlu1 %v1493_v41, 344  ;;  %1510 = vbcast.lane.b32.xlu0 %v1493_v41, 336  ;;  %v2216_v41 = vmul.f32 1.442695, %v2213_v50 }
 0x3b1   : > { %v6489_v16 = vadd.f32 %v2089_v45, %v2079_v13  ;;  %v6491_v14 = vadd.f32 %v2088_v40, %v2078_v43  ;;  %v2214_v43 = vmul.f32 1.442695, %v2212_v19  ;;  %v1177_v45 = vadd.f32 1.0, %v5516_v53  ;;  %v5522_v19 = vpop.eup %5521 }
 0x3b2   : > { %v2125_v61 = vpop.permute.xlu1 %2124  ;;  %v2121_v56 = vpop.permute.xlu0 %2120  ;;  %5525 = vpow2.f32 %v2216_v41  ;;  %v2264_v53 = vmul.f32 %v2263_v34, %v6465_v4  ;;  %v2315_v41 = vrot.slane %v6443_v24, %v6419_v44 }
 0x3b3   : > { %v2131_v20 = vmul.f32 %v2129_v36, %v2125_v61  ;;  %v2130_v0 = vmul.f32 %v2129_v36, %v2121_v56  ;;  %v2141_v42 = vmul.f32 %v5518_v15, %v6489_v16  ;;  %v2140_v48 = vmul.f32 %v5520_v17, %v6491_v14  ;;  %v5524_v36 = vpop.eup %5523 }
 0x3b4   : > { %1566 = vbcast.lane.b32.xlu1 %v6447_v25, 344  ;;  %1562 = vbcast.lane.b32.xlu0 %v6447_v25, 336  ;;  %v2265_v25 = vmul.f32 %v2263_v34, %v6460_v30  ;;  %v6511_v15 = vrot.slane %v6382_v60, %v6072_v3  ;;  %5527 = vpow2.f32 %v2214_v43  ;;  %v2266_v57 = vmul.f32 1.442695, %v2264_v53 }
 0x3b5   : > { %v6505_v40 = vadd.f32 %v2141_v42, %v2131_v20  ;;  %v6507_v50 = vadd.f32 %v2140_v48, %v2130_v0  ;;  %5529 = vlog2.f32 %v1177_v45  ;;  %v6524_v45 = vrot.slane %v6382_v60, %v6076_v5 }
 0x3b6   : > { %v2177_v49 = vpop.permute.xlu1 %2176  ;;  %v2173_v13 = vpop.permute.xlu0 %2172  ;;  %v2268_v17 = vmul.f32 1.442695, %v2265_v25  ;;  %v2317_v25 = vmul.f32 %v2315_v41, %v6460_v30  ;;  %v2316_v53 = vmul.f32 %v2315_v41, %v6465_v4 }
 0x3b7   : > { %v2193_v42 = vmul.f32 %v5522_v19, %v6505_v40  ;;  %v2192_v34 = vmul.f32 %v5524_v36, %v6507_v50 }
 0x3b8   : > { %1618 = vbcast.lane.b32.xlu1 %v6455_v38, 344  ;;  %1614 = vbcast.lane.b32.xlu0 %v6455_v38, 336  ;;  %v2181_v38 = vrot.slane %v6480_v2, %v6084_v8  ;;  %5531 = vpow2.f32 %v2268_v17  ;;  %v2320_v17 = vmul.f32 1.442695, %v2317_v25  ;;  %v2318_v51 = vmul.f32 1.442695, %v2316_v53 }
 0x3b9   : > { %5533 = vpow2.f32 %v2266_v57  ;;  %v2419_v25 = vrot.slane %v6443_v24, %v6427_v22 }
 0x3ba   : > { %v2229_v61 = vpop.permute.xlu1 %2228  ;;  %v2225_v56 = vpop.permute.xlu0 %2224  ;;  %v2183_v20 = vmul.f32 %v2181_v38, %v2177_v49  ;;  %v2182_v0 = vmul.f32 %v2181_v38, %v2173_v13  ;;  %v6539_v38 = vrot.slane %v6382_v60, %v6084_v8  ;;  %5535 = vpow2.f32 %v2320_v17 }
 0x3bb   : > { %v2235_v10 = vmul.f32 %v2233_v26, %v2229_v61  ;;  %v2234_v57 = vmul.f32 %v2233_v26, %v2225_v56  ;;  %5537 = vpow2.f32 %v2318_v51  ;;  %v6588_v51 = vrot.slane %v6382_v60, %v6419_v44 }
 0x3bc   : > { %2488 = vbcast.lane.b32.xlu1 %v6511_v15, 328  ;;  %2484 = vbcast.lane.b32.xlu0 %v6511_v15, 320  ;;  %v6529_v6 = vadd.f32 %v2193_v42, %v2183_v20  ;;  %v6531_v49 = vadd.f32 %v2192_v34, %v2182_v0  ;;  %v5526_v36 = vpop.eup %5525  ;;  %v1156_v0 = vmin.f32 %v6385_v59, 20.0  ;;  %v2367_v42 = vrot.slane %v6443_v24, %v6423_v32 }
 0x3bd   : > { %v6574_v24 = vrot.slane %v6382_v60, %v6415_v37  ;;  %v2420_v52 = vmul.f32 %v2419_v25, %v6465_v4 }
 0x3be   : > { %v2281_v48 = vpop.permute.xlu1 %2280  ;;  %v2277_v43 = vpop.permute.xlu0 %2276  ;;  %v2245_v41 = vmul.f32 %v5526_v36, %v6529_v6  ;;  %v1167_v23 = vmul.f32 1.442695, %v1156_v0  ;;  %v2369_v26 = vmul.f32 %v2367_v42, %v6460_v30  ;;  %v2368_v53 = vmul.f32 %v2367_v42, %v6465_v4 }
 0x3bf   : > { %v5528_v20 = vpop.eup %5527 }
 0x3c0   : > { %2540 = vbcast.lane.b32.xlu1 %v6524_v45, 328  ;;  %2536 = vbcast.lane.b32.xlu0 %v6524_v45, 320  ;;  %v5530_v34 = vpop.eup %5529  ;;  %v2244_v28 = vmul.f32 %v5528_v20, %v6531_v49  ;;  %v6564_v61 = vadd.f32 %v2245_v41, %v2235_v10  ;;  %v2285_v10 = vrot.slane %v6480_v2, %v6415_v37  ;;  %5539 = vpow2.f32 %v1167_v23 }
 0x3c1   : > { %v1186_v21 = vmul.f32 0.6931472, %v5530_v34  ;;  %v2372_v42 = vmul.f32 1.442695, %v2369_v26  ;;  %v6594_v23 = vrot.slane %v6382_v60, %v6423_v32 }
 0x3c2   : > { %v6533_v13 = vpop.permute.xlu1 %2332  ;;  %v6535_v19 = vpop.permute.xlu0 %2328  ;;  %v6566_v56 = vadd.f32 %v2244_v28, %v2234_v57  ;;  %v2421_v28 = vmul.f32 %v2419_v25, %v6460_v30  ;;  %v2287_v57 = vmul.f32 %v2285_v10, %v2281_v48  ;;  %v2286_v41 = vmul.f32 %v2285_v10, %v2277_v43 }
 0x3c3   : > { %v5532_v0 = vpop.eup %5531  ;;  %v6582_v34 = vsel %vm1145_vm4, %v6380_v7, %v1186_v21  ;;  %v6598_v21 = vrot.slane %v6382_v60, %v6427_v22  ;;  %v2370_v7 = vmul.f32 1.442695, %v2368_v53  ;;  %v2337_v48 = vrot.slane %v6480_v2, %v6419_v44  ;;  %vm8696_vm4 = vmmov %vm8693_vm1 }
 0x3c4   : > { %2592 = vbcast.lane.b32.xlu1 %v6539_v38, 328  ;;  %2588 = vbcast.lane.b32.xlu0 %v6539_v38, 320  ;;  %v5534_v17 = vpop.eup %5533  ;;  %v2297_v18 = vmul.f32 %v5532_v0, %v6564_v61  ;;  %v2424_v0 = vmul.f32 1.442695, %v2421_v28  ;;  %v6607_v10 = vrot.slane %v6480_v2, %v6423_v32  ;;  %5541 = vpow2.f32 %v2372_v42 }
 0x3c5   : > { %v2296_v12 = vmul.f32 %v5534_v17, %v6566_v56  ;;  %v6611_v17 = vrot.slane %v6480_v2, %v6427_v22  ;;  %v1222_v60 = vrot.slane %v6582_v34, %v6072_v3  ;;  %5543 = vpow2.f32 %v2370_v7  ;;  %v5536_v42 = vpop.eup %5535 }
 0x3c6   : > { %v6551_v39 = vpop.permute.xlu1 %2384  ;;  %v6553_v58 = vpop.permute.xlu0 %2380  ;;  %v2422_v28 = vmul.f32 1.442695, %v2420_v52  ;;  %v6625_v33 = vmul.f32 %v6582_v34, %v6347_v54  ;;  %5545 = vpow2.f32 %v2424_v0 }
 0x3c7   : > { %v1224_v52 = vmul.f32 %v1222_v60, %v6460_v30 }
 0x3c8   : > { %2644 = vbcast.lane.b32.xlu1 %v6557_v55, 328  ;;  %2640 = vbcast.lane.b32.xlu0 %v6557_v55, 320  ;;  %5547 = vpow2.f32 %v2422_v28 }
 0x3ca   : > { %v6568_v36 = vpop.permute.xlu1 %2436  ;;  %v6570_v20 = vpop.permute.xlu0 %2432 }
 0x3cc   : > { %2696 = vbcast.lane.b32.xlu1 %v6574_v24, 328  ;;  %2692 = vbcast.lane.b32.xlu0 %v6574_v24, 320 }
 0x3ce   : > { %v2087_v11 = vpop.permute.xlu1 %2086  ;;  %v2083_v35 = vpop.permute.xlu0 %2082 }
 0x3cf   : > { %v2093_v43 = vmul.f32 %v6489_v16, %v2087_v11  ;;  %v2092_v26 = vmul.f32 %v6491_v14, %v2083_v35  ;;  %v6619_v16 = vadd.f32 %v2297_v18, %v2287_v57  ;;  %v6621_v14 = vadd.f32 %v2296_v12, %v2286_v41  ;;  %v5538_v12 = vpop.eup %5537 }
 0x3d0   : > { %2748 = vbcast.lane.b32.xlu1 %v6588_v51, 328  ;;  %2744 = vbcast.lane.b32.xlu0 %v6588_v51, 320  ;;  %v1275_v18 = vrot.slane %v6582_v34, %v6076_v5  ;;  %v2339_v57 = vmul.f32 %v2337_v48, %v6533_v13  ;;  %v2338_v41 = vmul.f32 %v2337_v48, %v6535_v19 }
 0x3d1   : > { %v2095_v11 = vsel %vm1052_vm0, %v2093_v43, 0.0  ;;  %v2094_v35 = vsel %vm1052_vm0, %v2092_v26, 0.0  ;;  %v2349_v26 = vmul.f32 %v5536_v42, %v6619_v16  ;;  %v2348_v0 = vmul.f32 %v5538_v12, %v6621_v14 }
 0x3d2   : > { %v2096_v25 = vadd.f32 %v2095_v11, %v2094_v35  ;;  %v2139_v53 = vpop.permute.xlu1 %2138  ;;  %v2135_v2 = vpop.permute.xlu0 %2134  ;;  %v1277_v42 = vmul.f32 %v1275_v18, %v6460_v30  ;;  %v1276_v28 = vmul.f32 %v1275_v18, %v6465_v4 }
 0x3d3   : > { %v2145_v29 = vmul.f32 %v6505_v40, %v2139_v53  ;;  %v2144_v43 = vmul.f32 %v6507_v50, %v2135_v2  ;;  %v6640_v11 = vpop.eup %5539  ;;  %v6644_v53 = vrot.slane %v6582_v34, %v6084_v8 }
 0x3d4   : > { %v2097_v7 = vrot.slane %v2096_v25, 4  ;;  %2800 = vbcast.lane.b32.xlu1 %v6594_v23, 328  ;;  %2796 = vbcast.lane.b32.xlu0 %v6594_v23, 320  ;;  %v1280_v31 = vmul.f32 1.442695, %v1277_v42 }
 0x3d5   : > { %v2147_v40 = vsel %vm1052_vm0, %v2145_v29, 0.0  ;;  %v2146_v50 = vsel %vm1052_vm0, %v2144_v43, 0.0  ;;  %v1223_v43 = vmul.f32 %v1222_v60, %v6465_v4  ;;  %v6657_v47 = vmul.f32 %v6644_v53, %v6460_v30 }
 0x3d6   : > { %v2098_v13 = vadd.f32 %v2097_v7, %v2096_v25  ;;  %v2148_v19 = vadd.f32 %v2147_v40, %v2146_v50  ;;  %v2191_v48 = vpop.permute.xlu1 %2190  ;;  %v2187_v35 = vpop.permute.xlu0 %2186  ;;  %v1227_v25 = vmul.f32 1.442695, %v1224_v52  ;;  %v2350_v50 = vadd.f32 %v2348_v0, %v2338_v41 }
 0x3d7   : > { %v2197_v2 = vmul.f32 %v6529_v6, %v2191_v48  ;;  %v2196_v29 = vmul.f32 %v6531_v49, %v2187_v35  ;;  %v2351_v6 = vadd.f32 %v2349_v26, %v2339_v57  ;;  %v5542_v49 = vpop.eup %5541  ;;  %v2391_v52 = vmul.f32 %v6607_v10, %v6551_v39 }
 0x3d8   : > { %v2099_v12 = vrot.slane %v2098_v13, 2  ;;  %v2149_v54 = vrot.slane %v2148_v19, 4  ;;  %2852 = vbcast.lane.b32.xlu1 %v6598_v21, 328  ;;  %2848 = vbcast.lane.b32.xlu0 %v6598_v21, 320  ;;  %v5544_v57 = vpop.eup %5543  ;;  %v2390_v41 = vmul.f32 %v6607_v10, %v6553_v58  ;;  %5549 = vpow2.f32 %v1227_v25 }
 0x3d9   : > { %v2199_v7 = vsel %vm1052_vm0, %v2197_v2, 0.0  ;;  %v2198_v40 = vsel %vm1052_vm0, %v2196_v29, 0.0  ;;  %v1225_v29 = vmul.f32 1.442695, %v1223_v43 }
 0x3da   : > { %v2100_v48 = vadd.f32 %v2099_v12, %v2098_v13  ;;  %v2150_v60 = vadd.f32 %v2149_v54, %v2148_v19  ;;  %v2200_v35 = vadd.f32 %v2199_v7, %v2198_v40  ;;  %v2243_v1 = vpop.permute.xlu1 %2242  ;;  %v2239_v9 = vpop.permute.xlu0 %2238 }
 0x3db   : > { %v2249_v18 = vmul.f32 %v6564_v61, %v2243_v1  ;;  %v2248_v2 = vmul.f32 %v6566_v56, %v2239_v9  ;;  %v5546_v13 = vpop.eup %5545  ;;  %v2401_v1 = vmul.f32 %v5542_v49, %v2351_v6  ;;  %v2400_v61 = vmul.f32 %v5544_v57, %v2350_v50 }
 0x3dc   : > { %v2101_v54 = vrot.slane %v2100_v48, 1  ;;  %v2151_v26 = vrot.slane %v2150_v60, 2  ;;  %v2201_v0 = vrot.slane %v2200_v35, 4  ;;  %2502 = vbcast.lane.b32.xlu1 %v6511_v15, 344  ;;  %2498 = vbcast.lane.b32.xlu0 %v6511_v15, 336  ;;  %v5548_v15 = vpop.eup %5547  ;;  %5551 = vpow2.f32 %v1225_v29 }
 0x3dd   : > { %v2251_v19 = vsel %vm1052_vm0, %v2249_v18, 0.0  ;;  %v2250_v39 = vsel %vm1052_vm0, %v2248_v2, 0.0  ;;  %5553 = vpow2.f32 %v1280_v31 }
 0x3de   : > { %v2102_v9 = vadd.f32 %v2101_v54, %v2100_v48  ;;  %v2152_v56 = vadd.f32 %v2151_v26, %v2150_v60  ;;  %v2202_v43 = vadd.f32 %v2201_v0, %v2200_v35  ;;  %v2252_v12 = vadd.f32 %v2251_v19, %v2250_v39  ;;  %v2295_v7 = vpop.permute.xlu1 %2294  ;;  %v2291_v58 = vpop.permute.xlu0 %2290 }
 0x3df   : > { %v2301_v10 = vmul.f32 %v6619_v16, %v2295_v7  ;;  %v2300_v40 = vmul.f32 %v6621_v14, %v2291_v58  ;;  %v2403_v16 = vadd.f32 %v2401_v1, %v2391_v52  ;;  %v2402_v60 = vadd.f32 %v2400_v61, %v2390_v41 }
 0x3e0   : > { %2103 = vst.msk [vmem:[#allocation2 + $0x10] sm:$0x1] %vm1270_vm14, %v2102_v9  ;;  %v2153_v18 = vrot.slane %v2152_v56, 1  ;;  %v2203_v46 = vrot.slane %v2202_v43, 2  ;;  %v2253_v2 = vrot.slane %v2252_v12, 4  ;;  %2554 = vbcast.lane.b32.xlu1 %v6524_v45, 344  ;;  %v2443_v26 = vmul.f32 %v6611_v17, %v6568_v36 }
 0x3e1   : > { %2550 = vbcast.lane.b32.xlu0 %v6524_v45, 336  ;;  %v2303_v49 = vsel %vm1052_vm0, %v2301_v10, 0.0  ;;  %v2302_v48 = vsel %vm1052_vm0, %v2300_v40, 0.0  ;;  %v1278_v39 = vmul.f32 1.442695, %v1276_v28  ;;  %v2442_v45 = vmul.f32 %v6611_v17, %v6570_v20 }
 0x3e2   : > { %v2154_v14 = vadd.f32 %v2153_v18, %v2152_v56  ;;  %v2204_v25 = vadd.f32 %v2203_v46, %v2202_v43  ;;  %v2254_v42 = vadd.f32 %v2253_v2, %v2252_v12  ;;  %v2304_v35 = vadd.f32 %v2303_v49, %v2302_v48  ;;  %v2347_v57 = vpop.permute.xlu1 %2346  ;;  %v2343_v54 = vpop.permute.xlu0 %2342 }
 0x3e3   : > { %v2353_v0 = vmul.f32 %v2351_v6, %v2347_v57  ;;  %v2352_v19 = vmul.f32 %v2350_v50, %v2343_v54  ;;  %v2453_v36 = vmul.f32 %v5546_v13, %v2403_v16  ;;  %v2452_v6 = vmul.f32 %v5548_v15, %v2402_v60  ;;  %v5550_v13 = vpop.eup %5549 }
 0x3e4   : > { %2155 = vst.msk [vmem:[#allocation2 + $0x11] sm:$0x1] %vm1270_vm14, %v2154_v14  ;;  %v2205_v29 = vrot.slane %v2204_v25, 1  ;;  %v2255_v52 = vrot.slane %v2254_v42, 2  ;;  %v2305_v41 = vrot.slane %v2304_v35, 4  ;;  %2606 = vbcast.lane.b32.xlu1 %v6539_v38, 344  ;;  %v1328_v12 = vmul.f32 %v6644_v53, %v6465_v4 }
 0x3e5   : > { %2602 = vbcast.lane.b32.xlu0 %v6539_v38, 336  ;;  %v2355_v46 = vsel %vm1052_vm0, %v2353_v0, 0.0  ;;  %v2354_v1 = vsel %vm1052_vm0, %v2352_v19, 0.0  ;;  %5555 = vpow2.f32 %v1278_v39  ;;  %v2455_v15 = vadd.f32 %v2453_v36, %v2443_v26 }
 0x3e6   : > { %v2206_v50 = vadd.f32 %v2205_v29, %v2204_v25  ;;  %v2256_v28 = vadd.f32 %v2255_v52, %v2254_v42  ;;  %v2306_v61 = vadd.f32 %v2305_v41, %v2304_v35  ;;  %v2356_v9 = vadd.f32 %v2355_v46, %v2354_v1  ;;  %v2399_v20 = vpop.permute.xlu1 %2398  ;;  %v2395_v17 = vpop.permute.xlu0 %2394 }
 0x3e7   : > { %v2405_v56 = vmul.f32 %v2403_v16, %v2399_v20  ;;  %v2404_v43 = vmul.f32 %v2402_v60, %v2395_v17  ;;  %v2454_v31 = vadd.f32 %v2452_v6, %v2442_v45  ;;  %v5552_v18 = vpop.eup %5551  ;;  %v1379_v54 = vrot.slane %v6582_v34, %v6062_v63 }
 0x3e8   : > { %2207 = vst.msk [vmem:[#allocation2 + $0x12] sm:$0x1] %vm1270_vm14, %v2206_v50  ;;  %v2257_v38 = vrot.slane %v2256_v28, 1  ;;  %v2307_v7 = vrot.slane %v2306_v61, 2  ;;  %v2357_v58 = vrot.slane %v2356_v9, 4  ;;  %2658 = vbcast.lane.b32.xlu1 %v6557_v55, 344  ;;  %v5554_v20 = vpop.eup %5553 }
 0x3e9   : > { %2654 = vbcast.lane.b32.xlu0 %v6557_v55, 336  ;;  %v2407_v10 = vsel %vm1052_vm0, %v2405_v56, 0.0  ;;  %v2406_v40 = vsel %vm1052_vm0, %v2404_v43, 0.0  ;;  %v1244_v55 = vrot.slane %v6625_v33, %v6072_v3  ;;  %v1332_v19 = vmul.f32 1.442695, %v6657_v47 }
 0x3ea   : > { %v2258_v2 = vadd.f32 %v2257_v38, %v2256_v28  ;;  %v2308_v53 = vadd.f32 %v2307_v7, %v2306_v61  ;;  %v2358_v49 = vadd.f32 %v2357_v58, %v2356_v9  ;;  %v2408_v48 = vadd.f32 %v2407_v10, %v2406_v40  ;;  %v2451_v16 = vpop.permute.xlu1 %2450  ;;  %v2447_v60 = vpop.permute.xlu0 %2446 }
 0x3eb   : > { %v2457_v14 = vmul.f32 %v2455_v15, %v2451_v16  ;;  %v2456_v25 = vmul.f32 %v2454_v31, %v2447_v60  ;;  %v1330_v39 = vmul.f32 1.442695, %v1328_v12  ;;  %v1256_v50 = vmul.f32 0.0, %v5550_v13 }
 0x3ec   : > { %2259 = vst.msk [vmem:[#allocation2 + $0x13] sm:$0x1] %vm1270_vm14, %v2258_v2  ;;  %v2309_v42 = vrot.slane %v2308_v53, 1  ;;  %v2359_v35 = vrot.slane %v2358_v49, 2  ;;  %v2409_v57 = vrot.slane %v2408_v48, 4  ;;  %2710 = vbcast.lane.b32.xlu1 %v6574_v24, 344  ;;  %v1381_v47 = vmul.f32 %v1379_v54, %v6460_v30 }
 0x3ed   : > { %2706 = vbcast.lane.b32.xlu0 %v6574_v24, 336  ;;  %v2459_v26 = vsel %vm1052_vm0, %v2457_v14, 0.0  ;;  %v2458_v0 = vsel %vm1052_vm0, %v2456_v25, 0.0  ;;  %v1255_v24 = vmul.f32 0.0, %v5552_v18  ;;  %5557 = vpow2.f32 %v1332_v19 }
 0x3ee   : > { %v2310_v45 = vadd.f32 %v2309_v42, %v2308_v53  ;;  %v2360_v29 = vadd.f32 %v2359_v35, %v2358_v49  ;;  %v2410_v52 = vadd.f32 %v2409_v57, %v2408_v48  ;;  %v2460_v41 = vadd.f32 %v2459_v26, %v2458_v0  ;;  %v1240_v46 = vpop.permute.xlu1 %1239  ;;  %v1236_v1 = vpop.permute.xlu0 %1235 }
 0x3ef   : > { %v1246_v36 = vmul.f32 %v1244_v55, %v1240_v46  ;;  %v1245_v6 = vmul.f32 %v1244_v55, %v1236_v1  ;;  %v1380_v43 = vmul.f32 %v1379_v54, %v6465_v4  ;;  %v5556_v12 = vpop.eup %5555  ;;  %5559 = vpow2.f32 %v1330_v39 }
 0x3f0   : > { %2311 = vst.msk [vmem:[#allocation2 + $0x14] sm:$0x1] %vm1270_vm14, %v2310_v45  ;;  %v2361_v28 = vrot.slane %v2360_v29, 1  ;;  %v2411_v61 = vrot.slane %v2410_v52, 2  ;;  %v2461_v9 = vrot.slane %v2460_v41, 4  ;;  %2762 = vbcast.lane.b32.xlu1 %v6588_v51, 344  ;;  %v1431_v18 = vrot.slane %v6582_v34, %v6415_v37 }
 0x3f1   : > { %2758 = vbcast.lane.b32.xlu0 %v6588_v51, 336  ;;  %v6706_v17 = vadd.f32 %v1256_v50, %v1246_v36  ;;  %v6708_v56 = vadd.f32 %v1255_v24, %v1245_v6  ;;  %v1297_v51 = vrot.slane %v6625_v33, %v6076_v5  ;;  %v1384_v31 = vmul.f32 1.442695, %v1381_v47 }
 0x3f2   : > { %v2362_v38 = vadd.f32 %v2361_v28, %v2360_v29  ;;  %v2412_v7 = vadd.f32 %v2411_v61, %v2410_v52  ;;  %v2462_v58 = vadd.f32 %v2461_v9, %v2460_v41  ;;  %v1293_v13 = vpop.permute.xlu1 %1292  ;;  %v1289_v10 = vpop.permute.xlu0 %1288  ;;  %v1382_v55 = vmul.f32 1.442695, %v1380_v43 }
 0x3f3   : > { %v1299_v2 = vmul.f32 %v1297_v51, %v1293_v13  ;;  %v1298_v53 = vmul.f32 %v1297_v51, %v1289_v10  ;;  %v1309_v49 = vmul.f32 %v5554_v20, %v6706_v17  ;;  %v1308_v48 = vmul.f32 %v5556_v12, %v6708_v56 }
 0x3f4   : > { %2363 = vst.msk [vmem:[#allocation2 + $0x15] sm:$0x1] %vm1270_vm14, %v2362_v38  ;;  %v2413_v40 = vrot.slane %v2412_v7, 1  ;;  %v2463_v15 = vrot.slane %v2462_v58, 2  ;;  %2814 = vbcast.lane.b32.xlu1 %v6594_v23, 344  ;;  %v1180_v42 = vadd.f32 1.0, %v6640_v11  ;;  %v1433_v35 = vmul.f32 %v1431_v18, %v6460_v30 }
 0x3f5   : > { %2810 = vbcast.lane.b32.xlu0 %v6594_v23, 336  ;;  %v6727_v57 = vrot.slane %v6387_v27, %v6072_v3  ;;  %v6729_v54 = vadd.f32 %v1309_v49, %v1299_v2  ;;  %v6731_v26 = vadd.f32 %v1308_v48, %v1298_v53  ;;  %5561 = vpow2.f32 %v1384_v31 }
 0x3f6   : > { %v2414_v16 = vadd.f32 %v2413_v40, %v2412_v7  ;;  %v2464_v60 = vadd.f32 %v2463_v15, %v2462_v58  ;;  %v1345_v14 = vpop.permute.xlu1 %1344  ;;  %v1341_v25 = vpop.permute.xlu0 %1340  ;;  %v6735_v39 = vrot.slane %v6387_v27, %v6076_v5  ;;  %5563 = vpow2.f32 %v1382_v55 }
 0x3f7   : > { %v5558_v45 = vpop.eup %5557  ;;  %5565 = vlog2.f32 %v1180_v42  ;;  %v1349_v29 = vrot.slane %v6625_v33, %v6084_v8  ;;  %v1436_v41 = vmul.f32 1.442695, %v1433_v35  ;;  %v1483_v46 = vrot.slane %v6582_v34, %v6419_v44 }
 0x3f8   : > { %2415 = vst.msk [vmem:[#allocation2 + $0x16] sm:$0x1] %vm1270_vm14, %v2414_v16  ;;  %v2465_v23 = vrot.slane %v2464_v60, 1  ;;  %2866 = vbcast.lane.b32.xlu1 %v6598_v21, 344  ;;  %v1361_v6 = vmul.f32 %v5558_v45, %v6729_v54  ;;  %v6749_v61 = vrot.slane %v6387_v27, %v6084_v8  ;;  %v6764_v7 = vrot.slane %v6387_v27, %v6062_v63 }
 0x3f9   : > { %2862 = vbcast.lane.b32.xlu0 %v6598_v21, 336  ;;  %v1432_v21 = vmul.f32 %v1431_v18, %v6465_v4  ;;  %v5560_v52 = vpop.eup %5559  ;;  %v1351_v1 = vmul.f32 %v1349_v29, %v1345_v14  ;;  %v1350_v36 = vmul.f32 %v1349_v29, %v1341_v25  ;;  %v1485_v47 = vmul.f32 %v1483_v46, %v6460_v30 }
 0x3fa   : > { %v2466_v0 = vadd.f32 %v2465_v23, %v2464_v60  ;;  %v1397_v11 = vpop.permute.xlu1 %1396  ;;  %v1393_v19 = vpop.permute.xlu0 %1392  ;;  %v1360_v50 = vmul.f32 %v5560_v52, %v6731_v26  ;;  %5567 = vpow2.f32 %v1436_v41  ;;  %v1484_v58 = vmul.f32 %v1483_v46, %v6465_v4 }
 0x3fb   : > { %v1434_v9 = vmul.f32 1.442695, %v1432_v21  ;;  %v6754_v20 = vadd.f32 %v1361_v6, %v1351_v1  ;;  %v1401_v10 = vrot.slane %v6625_v33, %v6062_v63  ;;  %v1488_v40 = vmul.f32 1.442695, %v1485_v47 }
 0x3fc   : > { %2467 = vst.msk [vmem:[#allocation2 + $0x17] sm:$0x1] %vm1270_vm14, %v2466_v0  ;;  %1652 = vbcast.lane.b32.xlu1 %v6727_v57, 320  ;;  %v6756_v43 = vadd.f32 %v1360_v50, %v1350_v36  ;;  %v1535_v15 = vrot.slane %v6582_v34, %v6423_v32  ;;  %v6781_v60 = vrot.slane %v6387_v27, %v6415_v37  ;;  %v1486_v14 = vmul.f32 1.442695, %v1484_v58 }
 0x3fd   : > { %1704 = vbcast.lane.b32.xlu0 %v6735_v39, 320  ;;  %5569 = vpow2.f32 %v1434_v9  ;;  %v1403_v18 = vmul.f32 %v1401_v10, %v1397_v11  ;;  %v1402_v2 = vmul.f32 %v1401_v10, %v1393_v19  ;;  %v1154_v55 = vmin.f32 %v6390_v62, 20.0 }
 0x3fe   : > { %v1449_v24 = vpop.permute.xlu1 %1448  ;;  %v1445_v28 = vpop.permute.xlu0 %1444  ;;  %v1537_v42 = vmul.f32 %v1535_v15, %v6460_v30  ;;  %5571 = vpow2.f32 %v1488_v40  ;;  %v6797_v19 = vrot.slane %v6387_v27, %v6419_v44  ;;  %v1536_v21 = vmul.f32 %v1535_v15, %v6465_v4 }
 0x3ff   : > { %v5562_v13 = vpop.eup %5561  ;;  %5573 = vpow2.f32 %v1486_v14  ;;  %v1587_v45 = vrot.slane %v6582_v34, %v6427_v22  ;;  %v1453_v52 = vrot.slane %v6625_v33, %v6415_v37  ;;  %v6808_v1 = vmul.f32 1.442695, %v1154_v55 }
 0x400   : > { %1656 = vbcast.lane.b32.xlu1 %v6727_v57, 328  ;;  %v5564_v51 = vpop.eup %5563  ;;  %v1413_v53 = vmul.f32 %v5562_v13, %v6754_v20  ;;  %v6814_v36 = vrot.slane %v6387_v27, %v6423_v32  ;;  %v1540_v34 = vmul.f32 1.442695, %v1537_v42  ;;  %v6822_v10 = vrot.slane %v6387_v27, %v6427_v22 }
 0x401   : > { %1756 = vbcast.lane.b32.xlu0 %v6749_v61, 320  ;;  %v5566_v31 = vpop.eup %5565  ;;  %v1412_v49 = vmul.f32 %v5564_v51, %v6756_v43  ;;  %v1455_v6 = vmul.f32 %v1453_v52, %v1449_v24  ;;  %v1454_v50 = vmul.f32 %v1453_v52, %v1445_v28  ;;  %v1538_v51 = vmul.f32 1.442695, %v1536_v21 }
 0x402   : > { %v6758_v12 = vpop.permute.xlu1 %1500  ;;  %v6760_v38 = vpop.permute.xlu0 %1496  ;;  %v1192_v25 = vmul.f32 0.6931472, %v5566_v31  ;;  %v6787_v23 = vadd.f32 %v1413_v53, %v1403_v18  ;;  %v1589_v40 = vmul.f32 %v1587_v45, %v6460_v30  ;;  %v1588_v28 = vmul.f32 %v1587_v45, %v6465_v4 }
 0x403   : > { %v6789_v35 = vadd.f32 %v1412_v49, %v1402_v2  ;;  %v6832_v18 = vrot.slane %v6625_v33, %v6423_v32  ;;  %v6836_v27 = vrot.slane %v6625_v33, %v6427_v22  ;;  %5575 = vpow2.f32 %v1540_v34 }
 0x404   : > { %1708 = vbcast.lane.b32.xlu1 %v6735_v39, 328  ;;  %v5568_v29 = vpop.eup %5567  ;;  %v6806_v46 = vsel %vm1148_vm15, %v6385_v59, %v1192_v25  ;;  %v1505_v59 = vrot.slane %v6625_v33, %v6419_v44  ;;  %5577 = vpow2.f32 %v1538_v51  ;;  %v1592_v42 = vmul.f32 1.442695, %v1589_v40  ;;  %vm8698_vm15 = vmmov %vm8693_vm1 }
 0x405   : > { %1808 = vbcast.lane.b32.xlu0 %v6764_v7, 320  ;;  %v1465_v9 = vmul.f32 %v5568_v29, %v6787_v23  ;;  %v2471_v31 = vrot.slane %v6806_v46, %v6072_v3  ;;  %v2523_v21 = vrot.slane %v6806_v46, %v6076_v5 }
 0x406   : > { %v6775_v48 = vpop.permute.xlu1 %1552  ;;  %v6777_v16 = vpop.permute.xlu0 %1548  ;;  %5579 = vpow2.f32 %v1592_v42 }
 0x407   : > { %v5570_v41 = vpop.eup %5569  ;;  %v6846_v49 = vadd.f32 %v1465_v9, %v1455_v6  ;;  %v2473_v34 = vmul.f32 %v2471_v31, %v6460_v30  ;;  %v1506_v9 = vmul.f32 %v1505_v59, %v6760_v38  ;;  %v2525_v38 = vmul.f32 %v2523_v21, %v6460_v30 }
 0x408   : > { %1760 = vbcast.lane.b32.xlu1 %v6749_v61, 328  ;;  %v1464_v47 = vmul.f32 %v5570_v41, %v6789_v35  ;;  %v5572_v45 = vpop.eup %5571  ;;  %v1590_v41 = vmul.f32 1.442695, %v1588_v28 }
 0x409   : > { %1860 = vbcast.lane.b32.xlu0 %v6781_v60, 320  ;;  %v5574_v6 = vpop.eup %5573 }
 0x40a   : > { %v6791_v0 = vpop.permute.xlu1 %1604  ;;  %v6793_v11 = vpop.permute.xlu0 %1600  ;;  %v6848_v14 = vadd.f32 %v1464_v47, %v1454_v50  ;;  %v1507_v50 = vmul.f32 %v1505_v59, %v6758_v12  ;;  %v2524_v59 = vmul.f32 %v2523_v21, %v6465_v4  ;;  %5581 = vpow2.f32 %v1590_v41 }
 0x40b   : > { %v1559_v41 = vmul.f32 %v6832_v18, %v6775_v48 }
 0x40c   : > { %1812 = vbcast.lane.b32.xlu1 %v6764_v7, 328  ;;  %v1516_v51 = vmul.f32 %v5574_v6, %v6848_v14 }
 0x40d   : > { %1912 = vbcast.lane.b32.xlu0 %v6797_v19, 320 }
 0x40e   : > { %v1254_v58 = vpop.permute.xlu1 %1253  ;;  %v1250_v13 = vpop.permute.xlu0 %1249 }
 0x40f   : > { %v1260_v15 = vmul.f32 %v6706_v17, %v1254_v58  ;;  %v1259_v24 = vmul.f32 %v6708_v56, %v1250_v13  ;;  %v8622_v17 = vld [vmem:[#allocation14_spill] sm:$0xff]  ;;  %v2472_v58 = vmul.f32 %v2471_v31, %v6465_v4 }
 0x410   : > { %1864 = vbcast.lane.b32.xlu1 %v6781_v60, 328  ;;  %v6842_v56 = vmul.f32 %v6806_v46, %v8622_v17 }
 0x411   : > { %1964 = vbcast.lane.b32.xlu0 %v6814_v36, 320  ;;  %v1262_v2 = vsel %vm1052_vm0, %v1260_v15, 0.0  ;;  %v1261_v53 = vsel %vm1052_vm0, %v1259_v24, 0.0 }
 0x412   : > { %v1263_v25 = vadd.f32 %v1262_v2, %v1261_v53  ;;  %v1307_v33 = vpop.permute.xlu1 %1306  ;;  %v1303_v55 = vpop.permute.xlu0 %1302  ;;  %v2476_v2 = vmul.f32 1.442695, %v2473_v34  ;;  %v2474_v34 = vmul.f32 1.442695, %v2472_v58 }
 0x413   : > { %v1313_v29 = vmul.f32 %v6729_v54, %v1307_v33  ;;  %v1312_v52 = vmul.f32 %v6731_v26, %v1303_v55  ;;  %v1517_v26 = vmul.f32 %v5572_v45, %v6846_v49  ;;  %v1518_v55 = vadd.f32 %v1516_v51, %v1506_v9 }
 0x414   : > { %v1264_v47 = vrot.slane %v1263_v25, 4  ;;  %1916 = vbcast.lane.b32.xlu1 %v6797_v19, 328  ;;  %5583 = vpow2.f32 %v2476_v2 }
 0x415   : > { %2016 = vbcast.lane.b32.xlu0 %v6822_v10, 320  ;;  %v1315_v13 = vsel %vm1052_vm0, %v1313_v29, 0.0  ;;  %v1314_v54 = vsel %vm1052_vm0, %v1312_v52, 0.0  ;;  %5585 = vpow2.f32 %v2474_v34  ;;  %v6900_v34 = vld [vmem:[%s8524_s8 + $0x8] sm:$0xff] }
 0x416   : > { %v1265_v40 = vadd.f32 %v1264_v47, %v1263_v25  ;;  %v1316_v15 = vadd.f32 %v1315_v13, %v1314_v54  ;;  %v1359_v12 = vpop.permute.xlu1 %1358  ;;  %v1355_v24 = vpop.permute.xlu0 %1354  ;;  %v6872_v25 = vrot.slane %v6806_v46, %v6084_v8  ;;  %v6880_v13 = vmul.f32 1.442695, %v2525_v38 }
 0x417   : > { %v1365_v28 = vmul.f32 %v6754_v20, %v1359_v12  ;;  %v1364_v31 = vmul.f32 %v6756_v43, %v1355_v24  ;;  %v1519_v20 = vadd.f32 %v1517_v26, %v1507_v50  ;;  %v5576_v43 = vpop.eup %5575  ;;  %v1558_v50 = vmul.f32 %v6832_v18, %v6777_v16 }
 0x418   : > { %v1266_v53 = vrot.slane %v1265_v40, 2  ;;  %v1317_v33 = vrot.slane %v1316_v15, 4  ;;  %1968 = vbcast.lane.b32.xlu1 %v6814_v36, 328  ;;  %v5578_v54 = vpop.eup %5577  ;;  %5587 = vpow2.f32 %v6880_v13 }
 0x419   : > { %1666 = vbcast.lane.b32.xlu0 %v6727_v57, 336  ;;  %v1367_v30 = vsel %vm1052_vm0, %v1365_v28, 0.0  ;;  %v1366_v4 = vsel %vm1052_vm0, %v1364_v31, 0.0  ;;  %v2526_v31 = vmul.f32 1.442695, %v2524_v59 }
 0x41a   : > { %v1267_v42 = vadd.f32 %v1266_v53, %v1265_v40  ;;  %v1318_v21 = vadd.f32 %v1317_v33, %v1316_v15  ;;  %v1368_v45 = vadd.f32 %v1367_v30, %v1366_v4  ;;  %v1411_v29 = vpop.permute.xlu1 %1410  ;;  %v1407_v52 = vpop.permute.xlu0 %1406  ;;  %v1568_v40 = vmul.f32 %v5578_v54, %v1518_v55 }
 0x41b   : > { %v1417_v6 = vmul.f32 %v6787_v23, %v1411_v29  ;;  %v1416_v47 = vmul.f32 %v6789_v35, %v1407_v52  ;;  %v1569_v23 = vmul.f32 %v5576_v43, %v1519_v20  ;;  %v5580_v4 = vpop.eup %5579  ;;  %5589 = vpow2.f32 %v2526_v31 }
 0x41c   : > { %v1268_v9 = vrot.slane %v1267_v42, 1  ;;  %v1319_v26 = vrot.slane %v1318_v21, 2  ;;  %v1369_v51 = vrot.slane %v1368_v45, 4  ;;  %2020 = vbcast.lane.b32.xlu1 %v6822_v10, 328  ;;  %5591 = vpow2.f32 %v6808_v1 }
 0x41d   : > { %1718 = vbcast.lane.b32.xlu0 %v6735_v39, 336  ;;  %v1419_v58 = vsel %vm1052_vm0, %v1417_v6, 0.0  ;;  %v1418_v48 = vsel %vm1052_vm0, %v1416_v47, 0.0  ;;  %v2493_v31 = vrot.slane %v6842_v56, %v6072_v3 }
 0x41e   : > { %v1269_v35 = vadd.f32 %v1268_v9, %v1267_v42  ;;  %v1320_v15 = vadd.f32 %v1319_v26, %v1318_v21  ;;  %v1370_v12 = vadd.f32 %v1369_v51, %v1368_v45  ;;  %v1420_v24 = vadd.f32 %v1419_v58, %v1418_v48  ;;  %v1463_v38 = vpop.permute.xlu1 %1462  ;;  %v1459_v28 = vpop.permute.xlu0 %1458 }
 0x41f   : > { %v1469_v16 = vmul.f32 %v6846_v49, %v1463_v38  ;;  %v1468_v18 = vmul.f32 %v6848_v14, %v1459_v28  ;;  %v1571_v49 = vadd.f32 %v1569_v23, %v1559_v41  ;;  %v1570_v21 = vadd.f32 %v1568_v40, %v1558_v50  ;;  %v5582_v14 = vpop.eup %5581 }
 0x420   : > { %1271 = vst.msk [vmem:[#allocation2] sm:$0x1] %vm1270_vm14, %v1269_v35  ;;  %v1321_v53 = vrot.slane %v1320_v15, 1  ;;  %v1371_v33 = vrot.slane %v1370_v12, 2  ;;  %v1421_v30 = vrot.slane %v1420_v24, 4  ;;  %1670 = vbcast.lane.b32.xlu1 %v6727_v57, 344  ;;  %v1611_v57 = vmul.f32 %v6836_v27, %v6791_v0 }
 0x421   : > { %1770 = vbcast.lane.b32.xlu0 %v6749_v61, 336  ;;  %v1471_v43 = vsel %vm1052_vm0, %v1469_v16, 0.0  ;;  %v1470_v42 = vsel %vm1052_vm0, %v1468_v18, 0.0  ;;  %v2577_v41 = vmul.f32 %v6900_v34, %v6872_v25  ;;  %v1610_v50 = vmul.f32 %v6836_v27, %v6793_v11  ;;  %v5584_v18 = vpop.eup %5583 }
 0x422   : > { %v1322_v2 = vadd.f32 %v1321_v53, %v1320_v15  ;;  %v1372_v59 = vadd.f32 %v1371_v33, %v1370_v12  ;;  %v1422_v45 = vadd.f32 %v1421_v30, %v1420_v24  ;;  %v1472_v29 = vadd.f32 %v1471_v43, %v1470_v42  ;;  %v1515_v52 = vpop.permute.xlu1 %1514  ;;  %v1511_v6 = vpop.permute.xlu0 %1510 }
 0x423   : > { %v1521_v47 = vmul.f32 %v1519_v20, %v1515_v52  ;;  %v1520_v54 = vmul.f32 %v1518_v55, %v1511_v6  ;;  %v1621_v55 = vmul.f32 %v5580_v4, %v1571_v49  ;;  %v1620_v58 = vmul.f32 %v5582_v14, %v1570_v21  ;;  %v5586_v4 = vpop.eup %5585 }
 0x424   : > { %1323 = vst.msk [vmem:[#allocation2 + $0x1] sm:$0x1] %vm1270_vm14, %v1322_v2  ;;  %v1373_v9 = vrot.slane %v1372_v59, 1  ;;  %v1423_v26 = vrot.slane %v1422_v45, 2  ;;  %v1473_v51 = vrot.slane %v1472_v29, 4  ;;  %1722 = vbcast.lane.b32.xlu1 %v6735_v39, 344  ;;  %v2627_v52 = vrot.slane %v6806_v46, %v6062_v63 }
 0x425   : > { %1822 = vbcast.lane.b32.xlu0 %v6764_v7, 336  ;;  %v1523_v0 = vsel %vm1052_vm0, %v1521_v47, 0.0  ;;  %v1522_v20 = vsel %vm1052_vm0, %v1520_v54, 0.0  ;;  %v6915_v39 = vld [vmem:[%s8524_s8] sm:$0xff]  ;;  %v1623_v33 = vadd.f32 %v1621_v55, %v1611_v57  ;;  %v1622_v30 = vadd.f32 %v1620_v58, %v1610_v50 }
 0x426   : > { %v1374_v48 = vadd.f32 %v1373_v9, %v1372_v59  ;;  %v1424_v23 = vadd.f32 %v1423_v26, %v1422_v45  ;;  %v1474_v40 = vadd.f32 %v1473_v51, %v1472_v29  ;;  %v1524_v35 = vadd.f32 %v1523_v0, %v1522_v20  ;;  %v1567_v11 = vpop.permute.xlu1 %1566  ;;  %v1563_v27 = vpop.permute.xlu0 %1562 }
 0x427   : > { %v1573_v15 = vmul.f32 %v1571_v49, %v1567_v11  ;;  %v1572_v12 = vmul.f32 %v1570_v21, %v1563_v27  ;;  %v2576_v24 = vmul.f32 %v6915_v39, %v6872_v25  ;;  %v2580_v57 = vmul.f32 1.442695, %v2577_v41 }
 0x428   : > { %1375 = vst.msk [vmem:[#allocation2 + $0x2] sm:$0x1] %vm1270_vm14, %v1374_v48  ;;  %v1425_v38 = vrot.slane %v1424_v23, 1  ;;  %v1475_v28 = vrot.slane %v1474_v40, 2  ;;  %v1525_v16 = vrot.slane %v1524_v35, 4  ;;  %1774 = vbcast.lane.b32.xlu1 %v6749_v61, 344  ;;  %v2629_v41 = vmul.f32 %v6900_v34, %v2627_v52 }
 0x429   : > { %1874 = vbcast.lane.b32.xlu0 %v6781_v60, 336  ;;  %v1575_v13 = vsel %vm1052_vm0, %v1573_v15, 0.0  ;;  %v1574_v53 = vsel %vm1052_vm0, %v1572_v12, 0.0  ;;  %v2578_v47 = vmul.f32 1.442695, %v2576_v24  ;;  %v2504_v58 = vmul.f32 0.0, %v5586_v4 }
 0x42a   : > { %v1426_v43 = vadd.f32 %v1425_v38, %v1424_v23  ;;  %v1476_v25 = vadd.f32 %v1475_v28, %v1474_v40  ;;  %v1526_v42 = vadd.f32 %v1525_v16, %v1524_v35  ;;  %v1576_v49 = vadd.f32 %v1575_v13, %v1574_v53  ;;  %v1619_v21 = vpop.permute.xlu1 %1618  ;;  %v1615_v14 = vpop.permute.xlu0 %1614 }
 0x42b   : > { %v1625_v61 = vmul.f32 %v1623_v33, %v1619_v21  ;;  %v1624_v2 = vmul.f32 %v1622_v30, %v1615_v14  ;;  %v5588_v35 = vpop.eup %5587  ;;  %5593 = vpow2.f32 %v2580_v57  ;;  %v2628_v15 = vmul.f32 %v6915_v39, %v2627_v52 }
 0x42c   : > { %1427 = vst.msk [vmem:[#allocation2 + $0x3] sm:$0x1] %vm1270_vm14, %v1426_v43  ;;  %v1477_v59 = vrot.slane %v1476_v25, 1  ;;  %v1527_v45 = vrot.slane %v1526_v42, 2  ;;  %v1577_v29 = vrot.slane %v1576_v49, 4  ;;  %1826 = vbcast.lane.b32.xlu1 %v6764_v7, 344  ;;  %v5590_v12 = vpop.eup %5589  ;;  %5595 = vpow2.f32 %v2578_v47 }
 0x42d   : > { %1926 = vbcast.lane.b32.xlu0 %v6797_v19, 336  ;;  %v1627_v6 = vsel %vm1052_vm0, %v1625_v61, 0.0  ;;  %v1626_v1 = vsel %vm1052_vm0, %v1624_v2, 0.0  ;;  %v2505_v7 = vmul.f32 0.0, %v5584_v18  ;;  %v2632_v33 = vmul.f32 1.442695, %v2629_v41  ;;  %v5592_v4 = vpop.eup %5591 }
 0x42e   : > { %v1478_v54 = vadd.f32 %v1477_v59, %v1476_v25  ;;  %v1528_v50 = vadd.f32 %v1527_v45, %v1526_v42  ;;  %v1578_v9 = vadd.f32 %v1577_v29, %v1576_v49  ;;  %v1628_v26 = vadd.f32 %v1627_v6, %v1626_v1  ;;  %v2489_v51 = vpop.permute.xlu1 %2488  ;;  %v2485_v0 = vpop.permute.xlu0 %2484 }
 0x42f   : > { %v2495_v20 = vmul.f32 %v2493_v31, %v2489_v51  ;;  %v2494_v55 = vmul.f32 %v2493_v31, %v2485_v0  ;;  %v2679_v30 = vrot.slane %v6806_v46, %v6415_v37  ;;  %v8623_v31 = vld [vmem:[#allocation22_spill] sm:$0xff]  ;;  %v2630_v59 = vmul.f32 1.442695, %v2628_v15 }
 0x430   : > { %1479 = vst.msk [vmem:[#allocation2 + $0x4] sm:$0x1] %vm1270_vm14, %v1478_v54  ;;  %v1529_v48 = vrot.slane %v1528_v50, 1  ;;  %v1579_v23 = vrot.slane %v1578_v9, 2  ;;  %v1629_v40 = vrot.slane %v1628_v26, 4  ;;  %1878 = vbcast.lane.b32.xlu1 %v6781_v60, 344  ;;  %v2545_v60 = vrot.slane %v6842_v56, %v6076_v5 }
 0x431   : > { %1978 = vbcast.lane.b32.xlu0 %v6814_v36, 336  ;;  %v6938_v11 = vadd.f32 %v2505_v7, %v2495_v20  ;;  %v6940_v27 = vadd.f32 %v2504_v58, %v2494_v55  ;;  %v2681_v29 = vmul.f32 %v6900_v34, %v2679_v30  ;;  %5597 = vpow2.f32 %v2632_v33 }
 0x432   : > { %v1530_v24 = vadd.f32 %v1529_v48, %v1528_v50  ;;  %v1580_v38 = vadd.f32 %v1579_v23, %v1578_v9  ;;  %v1630_v28 = vadd.f32 %v1629_v40, %v1628_v26  ;;  %v2541_v16 = vpop.permute.xlu1 %2540  ;;  %v2537_v18 = vpop.permute.xlu0 %2536  ;;  %v6966_v54 = vrot.slane %v8623_v31, %v6076_v5 }
 0x433   : > { %v2547_v43 = vmul.f32 %v2545_v60, %v2541_v16  ;;  %v2546_v25 = vmul.f32 %v2545_v60, %v2537_v18  ;;  %v2557_v42 = vmul.f32 %v5588_v35, %v6938_v11  ;;  %v2556_v49 = vmul.f32 %v5590_v12, %v6940_v27 }
 0x434   : > { %1531 = vst.msk [vmem:[#allocation2 + $0x5] sm:$0x1] %vm1270_vm14, %v1530_v24  ;;  %v1581_v13 = vrot.slane %v1580_v38, 1  ;;  %v1631_v53 = vrot.slane %v1630_v28, 2  ;;  %1930 = vbcast.lane.b32.xlu1 %v6797_v19, 344  ;;  %v6954_v19 = vrot.slane %v8623_v31, %v6072_v3  ;;  %5599 = vpow2.f32 %v2630_v59  ;;  %v8624_v59 = vld [vmem:[#allocation23_spill] sm:$0xff] }
 0x435   : > { %2030 = vbcast.lane.b32.xlu0 %v6822_v10, 336  ;;  %v6960_v52 = vadd.f32 %v2557_v42, %v2547_v43  ;;  %v6962_v6 = vadd.f32 %v2556_v49, %v2546_v25  ;;  %v2680_v50 = vmul.f32 %v6915_v39, %v2679_v30  ;;  %v1178_v9 = vadd.f32 1.0, %v5592_v4 }
 0x436   : > { %v1582_v21 = vadd.f32 %v1581_v13, %v1580_v38  ;;  %v1632_v14 = vadd.f32 %v1631_v53, %v1630_v28  ;;  %v2593_v61 = vpop.permute.xlu1 %2592  ;;  %v2589_v2 = vpop.permute.xlu0 %2588  ;;  %v2597_v26 = vrot.slane %v6842_v56, %v6084_v8  ;;  %v2684_v0 = vmul.f32 1.442695, %v2681_v29 }
 0x437   : > { %v2731_v20 = vrot.slane %v6806_v46, %v6419_v44  ;;  %v6980_v41 = vrot.slane %v8623_v31, %v6084_v8  ;;  %v2682_v35 = vmul.f32 1.442695, %v2680_v50  ;;  %5601 = vlog2.f32 %v1178_v9 }
 0x438   : > { %1583 = vst.msk [vmem:[#allocation2 + $0x6] sm:$0x1] %vm1270_vm14, %v1582_v21  ;;  %v1633_v45 = vrot.slane %v1632_v14, 1  ;;  %1982 = vbcast.lane.b32.xlu1 %v6814_v36, 344  ;;  %v5594_v36 = vpop.eup %5593  ;;  %v2599_v55 = vmul.f32 %v2597_v26, %v2593_v61  ;;  %v2598_v7 = vmul.f32 %v2597_v26, %v2589_v2  ;;  %5603 = vpow2.f32 %v2684_v0 }
 0x439   : > { %3732 = vbcast.lane.b32.xlu0 %v6954_v19, 320  ;;  %v5596_v51 = vpop.eup %5595  ;;  %v2609_v58 = vmul.f32 %v5594_v36, %v6960_v52  ;;  %v6995_v28 = vrot.slane %v8623_v31, %v6062_v63  ;;  %5605 = vpow2.f32 %v2682_v35  ;;  %v2732_v16 = vmul.f32 %v6915_v39, %v2731_v20 }
 0x43a   : > { %v1634_v1 = vadd.f32 %v1633_v45, %v1632_v14  ;;  %v2645_v57 = vpop.permute.xlu1 %2644  ;;  %v2641_v47 = vpop.permute.xlu0 %2640  ;;  %v2608_v48 = vmul.f32 %v5596_v51, %v6962_v6  ;;  %v2649_v60 = vrot.slane %v6842_v56, %v6062_v63  ;;  %v2783_v33 = vrot.slane %v6806_v46, %v6423_v32 }
 0x43b   : > { %v6985_v15 = vadd.f32 %v2609_v58, %v2599_v55  ;;  %v5598_v18 = vpop.eup %5597  ;;  %v7012_v21 = vrot.slane %v8623_v31, %v6415_v37  ;;  %v2734_v14 = vmul.f32 1.442695, %v2732_v16  ;;  %v1159_v45 = vmin.f32 %v8624_v59, 20.0 }
 0x43c   : > { %1635 = vst.msk [vmem:[#allocation2 + $0x7] sm:$0x1] %vm1270_vm14, %v1634_v1  ;;  %2034 = vbcast.lane.b32.xlu1 %v6822_v10, 344  ;;  %v2733_v10 = vmul.f32 %v6900_v34, %v2731_v20  ;;  %v6987_v12 = vadd.f32 %v2608_v48, %v2598_v7  ;;  %v2651_v30 = vmul.f32 %v2649_v60, %v2645_v57  ;;  %vm1151_vm5 = vcmp.gt.f32.partialorder %v8624_v59, 20.0 }
 0x43d   : > { %3784 = vbcast.lane.b32.xlu0 %v6966_v54, 320  ;;  %v2650_v4 = vmul.f32 %v2649_v60, %v2641_v47  ;;  %v2661_v43 = vmul.f32 %v5598_v18, %v6985_v15  ;;  %v2785_v61 = vmul.f32 %v6900_v34, %v2783_v33  ;;  %v7028_v50 = vrot.slane %v8623_v31, %v6419_v44 }
 0x43e   : > { %v2697_v23 = vpop.permute.xlu1 %2696  ;;  %v2693_v40 = vpop.permute.xlu0 %2692  ;;  %v2736_v53 = vmul.f32 1.442695, %v2733_v10  ;;  %v2784_v36 = vmul.f32 %v6915_v39, %v2783_v33  ;;  %v2835_v9 = vrot.slane %v6806_v46, %v6427_v22  ;;  %v2701_v51 = vrot.slane %v6842_v56, %v6415_v37 }
 0x43f   : > { %v5600_v13 = vpop.eup %5599  ;;  %v7018_v29 = vadd.f32 %v2661_v43, %v2651_v30  ;;  %v2788_v55 = vmul.f32 1.442695, %v2785_v61  ;;  %v7040_v46 = vmul.f32 1.442695, %v1159_v45  ;;  %v7044_v18 = vrot.slane %v8623_v31, %v6423_v32 }
 0x440   : > { %3736 = vbcast.lane.b32.xlu1 %v6954_v19, 328  ;;  %v2660_v25 = vmul.f32 %v5600_v13, %v6987_v12  ;;  %5607 = vpow2.f32 %v2736_v53  ;;  %v2703_v7 = vmul.f32 %v2701_v51, %v2697_v23  ;;  %v2702_v58 = vmul.f32 %v2701_v51, %v2693_v40 }
 0x441   : > { %3836 = vbcast.lane.b32.xlu0 %v6980_v41, 320  ;;  %v5602_v2 = vpop.eup %5601  ;;  %5609 = vpow2.f32 %v2734_v14  ;;  %v2786_v60 = vmul.f32 1.442695, %v2784_v36  ;;  %v2837_v13 = vmul.f32 %v6900_v34, %v2835_v9  ;;  %v7051_v40 = vrot.slane %v8623_v31, %v6427_v22 }
 0x442   : > { %v6989_v24 = vpop.permute.xlu1 %2748  ;;  %v6991_v38 = vpop.permute.xlu0 %2744  ;;  %v7020_v1 = vadd.f32 %v2660_v25, %v2650_v4  ;;  %v1188_v20 = vmul.f32 0.6931472, %v5602_v2  ;;  %v2836_v33 = vmul.f32 %v6915_v39, %v2835_v9  ;;  %v2753_v4 = vrot.slane %v6842_v56, %v6419_v44 }
 0x443   : > { %v5604_v26 = vpop.eup %5603  ;;  %v2805_v43 = vrot.slane %v6842_v56, %v6423_v32  ;;  %5611 = vpow2.f32 %v2788_v55  ;;  %v2840_v45 = vmul.f32 1.442695, %v2837_v13 }
 0x444   : > { %3788 = vbcast.lane.b32.xlu1 %v6966_v54, 328  ;;  %v5606_v0 = vpop.eup %5605  ;;  %v2713_v48 = vmul.f32 %v5604_v26, %v7018_v29  ;;  %v7057_v30 = vsel %vm1146_vm2, %v6390_v62, %v1188_v20  ;;  %v7073_v62 = vrot.slane %v6842_v56, %v6427_v22  ;;  %5613 = vpow2.f32 %v2786_v60  ;;  %v8625_v60 = vld [vmem:[#allocation16_spill] sm:$0xff]  ;;  %vm8699_vm2 = vmmov %vm8693_vm1 }
 0x445   : > { %3888 = vbcast.lane.b32.xlu0 %v6995_v28, 320  ;;  %v2712_v35 = vmul.f32 %v5606_v0, %v7020_v1  ;;  %v2838_v51 = vmul.f32 1.442695, %v2836_v33  ;;  %v1639_v0 = vrot.slane %v7057_v30, %v6072_v3  ;;  %v2755_v55 = vmul.f32 %v2753_v4, %v6989_v24 }
 0x446   : > { %v7006_v42 = vpop.permute.xlu1 %2800  ;;  %v7008_v49 = vpop.permute.xlu0 %2796  ;;  %v7067_v31 = vadd.f32 %v2713_v48, %v2703_v7  ;;  %v2754_v56 = vmul.f32 %v2753_v4, %v6991_v38  ;;  %v7091_v13 = vmul.f32 %v7057_v30, %v8625_v60  ;;  %5615 = vpow2.f32 %v2840_v45 }
 0x447   : > { %v7069_v25 = vadd.f32 %v2712_v35, %v2702_v58  ;;  %v1691_v58 = vrot.slane %v7057_v30, %v6076_v5  ;;  %v1640_v4 = vmul.f32 %v6915_v39, %v1639_v0  ;;  %5617 = vpow2.f32 %v2838_v51 }
 0x448   : > { %3840 = vbcast.lane.b32.xlu1 %v6980_v41, 328 }
 0x449   : > { %3940 = vbcast.lane.b32.xlu0 %v7012_v21, 320 }
 0x44a   : > { %v7022_v57 = vpop.permute.xlu1 %2852  ;;  %v7024_v47 = vpop.permute.xlu0 %2848 }
 0x44b   : > { %v5608_v36 = vpop.eup %5607 }
 0x44c   : > { %3892 = vbcast.lane.b32.xlu1 %v6995_v28, 328  ;;  %v5610_v20 = vpop.eup %5609  ;;  %v2765_v48 = vmul.f32 %v5608_v36, %v7067_v31 }
 0x44d   : > { %3992 = vbcast.lane.b32.xlu0 %v7028_v50, 320  ;;  %v2764_v35 = vmul.f32 %v5610_v20, %v7069_v25 }
 0x44e   : > { %v2503_v10 = vpop.permute.xlu1 %2502  ;;  %v2499_v16 = vpop.permute.xlu0 %2498 }
 0x44f   : > { %v2509_v53 = vmul.f32 %v6938_v11, %v2503_v10  ;;  %v2508_v23 = vmul.f32 %v6940_v27, %v2499_v16  ;;  %v2766_v36 = vadd.f32 %v2764_v35, %v2754_v56 }
 0x450   : > { %3944 = vbcast.lane.b32.xlu1 %v7012_v21, 328 }
 0x451   : > { %4044 = vbcast.lane.b32.xlu0 %v7044_v18, 320  ;;  %v2511_v11 = vsel %vm1052_vm0, %v2509_v53, 0.0  ;;  %v2510_v27 = vsel %vm1052_vm0, %v2508_v23, 0.0  ;;  %v7095_v53 = vrot.slane %v7057_v30, %v6084_v8 }
 0x452   : > { %v2512_v14 = vadd.f32 %v2511_v11, %v2510_v27  ;;  %v2555_v61 = vpop.permute.xlu1 %2554 }
 0x453   : > { %v2551_v2 = vpop.permute.xlu0 %2550  ;;  %v2561_v9 = vmul.f32 %v6960_v52, %v2555_v61 }
 0x454   : > { %v2560_v26 = vmul.f32 %v6962_v6, %v2551_v2  ;;  %v2513_v7 = vrot.slane %v2512_v14, 4  ;;  %3996 = vbcast.lane.b32.xlu1 %v7028_v50, 328 }
 0x455   : > { %4096 = vbcast.lane.b32.xlu0 %v7051_v40, 320  ;;  %v2563_v52 = vsel %vm1052_vm0, %v2561_v9, 0.0 }
 0x456   : > { %v2562_v6 = vsel %vm1052_vm0, %v2560_v26, 0.0  ;;  %v2514_v10 = vadd.f32 %v2513_v7, %v2512_v14  ;;  %v2607_v16 = vpop.permute.xlu1 %2606  ;;  %v7103_v14 = vmul.f32 %v6915_v39, %v1691_v58 }
 0x457   : > { %v2564_v24 = vadd.f32 %v2563_v52, %v2562_v6  ;;  %v2603_v38 = vpop.permute.xlu0 %2602  ;;  %v2613_v23 = vmul.f32 %v6985_v15, %v2607_v16  ;;  %v2767_v15 = vadd.f32 %v2765_v48, %v2755_v55  ;;  %v1641_v52 = vmul.f32 %v6900_v34, %v1639_v0 }
 0x458   : > { %v2612_v33 = vmul.f32 %v6987_v12, %v2603_v38  ;;  %v2515_v11 = vrot.slane %v2514_v10, 2  ;;  %4048 = vbcast.lane.b32.xlu1 %v7044_v18, 328  ;;  %v5612_v12 = vpop.eup %5611  ;;  %v2807_v6 = vmul.f32 %v2805_v43, %v7006_v42  ;;  %v1642_v38 = vmul.f32 1.442695, %v1640_v4 }
 0x459   : > { %v2565_v27 = vrot.slane %v2564_v24, 4  ;;  %3746 = vbcast.lane.b32.xlu0 %v6954_v19, 336  ;;  %v2615_v61 = vsel %vm1052_vm0, %v2613_v23, 0.0  ;;  %v5614_v23 = vpop.eup %5613  ;;  %v2817_v42 = vmul.f32 %v5612_v12, %v2767_v15 }
 0x45a   : > { %v2614_v2 = vsel %vm1052_vm0, %v2612_v33, 0.0  ;;  %v2516_v45 = vadd.f32 %v2515_v11, %v2514_v10  ;;  %v2659_v20 = vpop.permute.xlu1 %2658  ;;  %v2806_v33 = vmul.f32 %v2805_v43, %v7008_v49  ;;  %v2816_v10 = vmul.f32 %v5614_v23, %v2766_v36  ;;  %v5616_v12 = vpop.eup %5615 }
 0x45b   : > { %v2566_v9 = vadd.f32 %v2565_v27, %v2564_v24  ;;  %v2616_v26 = vadd.f32 %v2615_v61, %v2614_v2  ;;  %v2655_v7 = vpop.permute.xlu0 %2654  ;;  %v2665_v51 = vmul.f32 %v7018_v29, %v2659_v20  ;;  %v1644_v61 = vmul.f32 1.442695, %v1641_v52 }
 0x45c   : > { %v2664_v16 = vmul.f32 %v7020_v1, %v2655_v7  ;;  %v2517_v55 = vrot.slane %v2516_v45, 1  ;;  %4100 = vbcast.lane.b32.xlu1 %v7051_v40, 328  ;;  %v1693_v2 = vmul.f32 %v6900_v34, %v1691_v58  ;;  %5619 = vpow2.f32 %v1642_v38 }
 0x45d   : > { %v2567_v56 = vrot.slane %v2566_v9, 2  ;;  %v2617_v48 = vrot.slane %v2616_v26, 4  ;;  %3798 = vbcast.lane.b32.xlu0 %v6966_v54, 336  ;;  %v2667_v35 = vsel %vm1052_vm0, %v2665_v51, 0.0  ;;  %5621 = vpow2.f32 %v1644_v61 }
 0x45e   : > { %v2666_v0 = vsel %vm1052_vm0, %v2664_v16, 0.0  ;;  %v2518_v29 = vadd.f32 %v2517_v55, %v2516_v45  ;;  %v2711_v11 = vpop.permute.xlu1 %2710  ;;  %v2858_v38 = vmul.f32 %v7073_v62, %v7024_v47  ;;  %5623 = vpow2.f32 %v7040_v46 }
 0x45f   : > { %v2568_v24 = vadd.f32 %v2567_v56, %v2566_v9  ;;  %v2618_v1 = vadd.f32 %v2617_v48, %v2616_v26  ;;  %v2668_v4 = vadd.f32 %v2667_v35, %v2666_v0  ;;  %v2707_v27 = vpop.permute.xlu0 %2706  ;;  %v2717_v49 = vmul.f32 %v7067_v31, %v2711_v11  ;;  %v5618_v26 = vpop.eup %5617 }
 0x460   : > { %v2716_v43 = vmul.f32 %v7069_v25, %v2707_v27  ;;  %2519 = vst.msk [vmem:[#allocation2 + $0x18] sm:$0x1] %vm1270_vm14, %v2518_v29  ;;  %3750 = vbcast.lane.b32.xlu1 %v6954_v19, 344  ;;  %v2819_v9 = vadd.f32 %v2817_v42, %v2807_v6  ;;  %v2818_v25 = vadd.f32 %v2816_v10, %v2806_v33  ;;  %v1694_v27 = vmul.f32 1.442695, %v7103_v14 }
 0x461   : > { %v2569_v20 = vrot.slane %v2568_v24, 1  ;;  %v2619_v7 = vrot.slane %v2618_v1, 2  ;;  %v2669_v51 = vrot.slane %v2668_v4, 4  ;;  %3850 = vbcast.lane.b32.xlu0 %v6980_v41, 336  ;;  %v2719_v45 = vsel %vm1052_vm0, %v2717_v49, 0.0 }
 0x462   : > { %v2718_v31 = vsel %vm1052_vm0, %v2716_v43, 0.0  ;;  %v2763_v55 = vpop.permute.xlu1 %2762  ;;  %v2859_v19 = vmul.f32 %v7073_v62, %v7022_v57  ;;  %v2869_v57 = vmul.f32 %v5616_v12, %v2819_v9  ;;  %v1696_v49 = vmul.f32 1.442695, %v1693_v2 }
 0x463   : > { %v2570_v52 = vadd.f32 %v2569_v20, %v2568_v24  ;;  %v2620_v58 = vadd.f32 %v2619_v7, %v2618_v1  ;;  %v2670_v16 = vadd.f32 %v2669_v51, %v2668_v4  ;;  %v2720_v23 = vadd.f32 %v2719_v45, %v2718_v31  ;;  %v2759_v56 = vpop.permute.xlu0 %2758 }
 0x464   : > { %v2769_v48 = vmul.f32 %v2767_v15, %v2763_v55  ;;  %v2768_v35 = vmul.f32 %v2766_v36, %v2759_v56  ;;  %3802 = vbcast.lane.b32.xlu1 %v6966_v54, 344  ;;  %v2868_v15 = vmul.f32 %v5618_v26, %v2818_v25  ;;  %v2871_v51 = vadd.f32 %v2869_v57, %v2859_v19 }
 0x465   : > { %2571 = vst.msk [vmem:[#allocation2 + $0x19] sm:$0x1] %vm1270_vm14, %v2570_v52  ;;  %v2621_v6 = vrot.slane %v2620_v58, 1  ;;  %v2671_v33 = vrot.slane %v2670_v16, 2  ;;  %v2721_v0 = vrot.slane %v2720_v23, 4  ;;  %3902 = vbcast.lane.b32.xlu0 %v6995_v28, 336  ;;  %5625 = vpow2.f32 %v1694_v27 }
 0x466   : > { %v2771_v42 = vsel %vm1052_vm0, %v2769_v48, 0.0  ;;  %v2770_v10 = vsel %vm1052_vm0, %v2768_v35, 0.0  ;;  %v2815_v47 = vpop.permute.xlu1 %2814  ;;  %v2870_v12 = vadd.f32 %v2868_v15, %v2858_v38  ;;  %v5620_v45 = vpop.eup %5619  ;;  %5627 = vpow2.f32 %v1696_v49 }
 0x467   : > { %v2622_v36 = vadd.f32 %v2621_v6, %v2620_v58  ;;  %v2672_v29 = vadd.f32 %v2671_v33, %v2670_v16  ;;  %v2722_v24 = vadd.f32 %v2721_v0, %v2720_v23  ;;  %v2772_v1 = vadd.f32 %v2771_v42, %v2770_v10  ;;  %v2811_v62 = vpop.permute.xlu0 %2810  ;;  %v5622_v56 = vpop.eup %5621 }
 0x468   : > { %v2821_v4 = vmul.f32 %v2819_v9, %v2815_v47  ;;  %v2820_v11 = vmul.f32 %v2818_v25, %v2811_v62  ;;  %3854 = vbcast.lane.b32.xlu1 %v6980_v41, 344  ;;  %v1661_v41 = vrot.slane %v7091_v13, %v6072_v3  ;;  %v1744_v58 = vmul.f32 %v6915_v39, %v7095_v53 }
 0x469   : > { %2623 = vst.msk [vmem:[#allocation2 + $0x1a] sm:$0x1] %vm1270_vm14, %v2622_v36  ;;  %v2673_v54 = vrot.slane %v2672_v29, 1  ;;  %v2723_v43 = vrot.slane %v2722_v24, 2  ;;  %v2773_v61 = vrot.slane %v2772_v1, 4  ;;  %3954 = vbcast.lane.b32.xlu0 %v7012_v21, 336  ;;  %v1745_v35 = vmul.f32 %v6900_v34, %v7095_v53 }
 0x46a   : > { %v2823_v20 = vsel %vm1052_vm0, %v2821_v4, 0.0  ;;  %v2822_v7 = vsel %vm1052_vm0, %v2820_v11, 0.0  ;;  %v2867_v9 = vpop.permute.xlu1 %2866  ;;  %v1795_v53 = vrot.slane %v7057_v30, %v6062_v63 }
 0x46b   : > { %v2674_v14 = vadd.f32 %v2673_v54, %v2672_v29  ;;  %v2724_v2 = vadd.f32 %v2723_v43, %v2722_v24  ;;  %v2774_v31 = vadd.f32 %v2773_v61, %v2772_v1  ;;  %v2824_v46 = vadd.f32 %v2823_v20, %v2822_v7  ;;  %v2863_v25 = vpop.permute.xlu0 %2862  ;;  %v5624_v1 = vpop.eup %5623 }
 0x46c   : > { %v2873_v26 = vmul.f32 %v2871_v51, %v2867_v9  ;;  %v2872_v52 = vmul.f32 %v2870_v12, %v2863_v25  ;;  %3906 = vbcast.lane.b32.xlu1 %v6995_v28, 344  ;;  %v1746_v28 = vmul.f32 1.442695, %v1744_v58  ;;  %v1672_v24 = vmul.f32 0.0, %v5620_v45  ;;  %v8626_v51 = vld [vmem:[#allocation24_spill] sm:$0xff] }
 0x46d   : > { %2675 = vst.msk [vmem:[#allocation2 + $0x1b] sm:$0x1] %vm1270_vm14, %v2674_v14  ;;  %v2725_v16 = vrot.slane %v2724_v2, 1  ;;  %v2775_v23 = vrot.slane %v2774_v31, 2  ;;  %v2825_v55 = vrot.slane %v2824_v46, 4  ;;  %4006 = vbcast.lane.b32.xlu0 %v7028_v50, 336  ;;  %v1796_v7 = vmul.f32 %v6915_v39, %v1795_v53 }
 0x46e   : > { %v2875_v19 = vsel %vm1052_vm0, %v2873_v26, 0.0  ;;  %v2874_v48 = vsel %vm1052_vm0, %v2872_v52, 0.0  ;;  %v1653_v42 = vpop.permute.xlu1 %1652  ;;  %v1748_v49 = vmul.f32 1.442695, %v1745_v35  ;;  %v1673_v61 = vmul.f32 0.0, %v5622_v56 }
 0x46f   : > { %v2726_v38 = vadd.f32 %v2725_v16, %v2724_v2  ;;  %v2776_v6 = vadd.f32 %v2775_v23, %v2774_v31  ;;  %v2826_v33 = vadd.f32 %v2825_v55, %v2824_v46  ;;  %v2876_v0 = vadd.f32 %v2875_v19, %v2874_v48  ;;  %v1705_v10 = vpop.permute.xlu0 %1704  ;;  %v5626_v14 = vpop.eup %5625 }
 0x470   : > { %v1662_v57 = vmul.f32 %v1661_v41, %v1653_v42  ;;  %3958 = vbcast.lane.b32.xlu1 %v7012_v21, 344  ;;  %5629 = vpow2.f32 %v1746_v28  ;;  %v7164_v12 = vrot.slane %v8626_v51, %v6072_v3  ;;  %v5628_v25 = vpop.eup %5627  ;;  %v1713_v26 = vrot.slane %v7091_v13, %v6076_v5 }
 0x471   : > { %2727 = vst.msk [vmem:[#allocation2 + $0x1c] sm:$0x1] %vm1270_vm14, %v2726_v38  ;;  %v2777_v15 = vrot.slane %v2776_v6, 1  ;;  %v2827_v36 = vrot.slane %v2826_v33, 2  ;;  %v2877_v29 = vrot.slane %v2876_v0, 4  ;;  %4058 = vbcast.lane.b32.xlu0 %v7044_v18, 336  ;;  %5631 = vpow2.f32 %v1748_v49 }
 0x472   : > { %v1657_v11 = vpop.permute.xlu1 %1656  ;;  %v7156_v43 = vadd.f32 %v1672_v24, %v1662_v57  ;;  %v1798_v58 = vmul.f32 1.442695, %v1796_v7  ;;  %v1847_v16 = vrot.slane %v7057_v30, %v6415_v37  ;;  %v1183_v23 = vadd.f32 1.0, %v5624_v1 }
 0x473   : > { %v2778_v47 = vadd.f32 %v2777_v15, %v2776_v6  ;;  %v2828_v62 = vadd.f32 %v2827_v36, %v2826_v33  ;;  %v2878_v4 = vadd.f32 %v2877_v29, %v2876_v0  ;;  %v1757_v27 = vpop.permute.xlu0 %1756  ;;  %v1663_v54 = vmul.f32 %v1661_v41, %v1657_v11 }
 0x474   : > { %4010 = vbcast.lane.b32.xlu1 %v7028_v50, 344  ;;  %v1797_v50 = vmul.f32 %v6900_v34, %v1795_v53  ;;  %v1724_v52 = vmul.f32 %v5626_v14, %v7156_v43  ;;  %v1714_v55 = vmul.f32 %v1713_v26, %v1705_v10  ;;  %v7184_v6 = vrot.slane %v8626_v51, %v6076_v5 }
 0x475   : > { %2779 = vst.msk [vmem:[#allocation2 + $0x1d] sm:$0x1] %vm1270_vm14, %v2778_v47  ;;  %v2829_v21 = vrot.slane %v2828_v62, 1  ;;  %v2879_v20 = vrot.slane %v2878_v4, 2  ;;  %4110 = vbcast.lane.b32.xlu0 %v7051_v40, 336  ;;  %v7166_v45 = vadd.f32 %v1673_v61, %v1663_v54  ;;  %5633 = vpow2.f32 %v1798_v58 }
 0x476   : > { %v1709_v46 = vpop.permute.xlu1 %1708  ;;  %v7186_v33 = vadd.f32 %v1724_v52, %v1714_v55  ;;  %v1848_v0 = vmul.f32 %v6915_v39, %v1847_v16  ;;  %5635 = vlog2.f32 %v1183_v23  ;;  %v7198_v15 = vrot.slane %v8626_v51, %v6084_v8 }
 0x477   : > { %v2830_v2 = vadd.f32 %v2829_v21, %v2828_v62  ;;  %v2880_v31 = vadd.f32 %v2879_v20, %v2878_v4  ;;  %v7168_v9 = vpop.permute.xlu0 %1808  ;;  %v1715_v56 = vmul.f32 %v1713_v26, %v1709_v46  ;;  %v1725_v19 = vmul.f32 %v5628_v25, %v7166_v45 }
 0x478   : > { %4062 = vbcast.lane.b32.xlu1 %v7044_v18, 344  ;;  %v1800_v18 = vmul.f32 1.442695, %v1797_v50  ;;  %v1849_v36 = vmul.f32 %v6900_v34, %v1847_v16  ;;  %v1850_v24 = vmul.f32 1.442695, %v1848_v0  ;;  %v1899_v1 = vrot.slane %v7057_v30, %v6419_v44 }
 0x479   : > { %2831 = vst.msk [vmem:[#allocation2 + $0x1e] sm:$0x1] %vm1270_vm14, %v2830_v2  ;;  %v2881_v41 = vrot.slane %v2880_v31, 1  ;;  %2900 = vbcast.lane.b32.xlu0 %v7164_v12, 320  ;;  %v7192_v42 = vadd.f32 %v1725_v19, %v1715_v56  ;;  %v7213_v54 = vrot.slane %v8626_v51, %v6062_v63  ;;  %v1817_v25 = vrot.slane %v7091_v13, %v6062_v63 }
 0x47a   : > { %v1761_v35 = vpop.permute.xlu1 %1760  ;;  %v5630_v10 = vpop.eup %5629  ;;  %5637 = vpow2.f32 %v1800_v18  ;;  %v1852_v61 = vmul.f32 1.442695, %v1849_v36  ;;  %v1901_v46 = vmul.f32 %v6900_v34, %v1899_v1  ;;  %v1951_v23 = vrot.slane %v7057_v30, %v6423_v32 }
 0x47b   : > { %v2882_v48 = vadd.f32 %v2881_v41, %v2880_v31  ;;  %v7180_v38 = vpop.permute.xlu0 %1860  ;;  %v1776_v29 = vmul.f32 %v5630_v10, %v7186_v33  ;;  %v5632_v53 = vpop.eup %5631  ;;  %5639 = vpow2.f32 %v1850_v24  ;;  %v7228_v31 = vrot.slane %v8626_v51, %v6415_v37  ;;  %v8627_v41 = vld [vmem:[#allocation25_spill] sm:$0xff] }
 0x47c   : > { %4114 = vbcast.lane.b32.xlu1 %v7051_v40, 344  ;;  %v1765_v40 = vrot.slane %v7091_v13, %v6084_v8  ;;  %v1777_v4 = vmul.f32 %v5632_v53, %v7192_v42  ;;  %5641 = vpow2.f32 %v1852_v61  ;;  %v1157_v58 = vmin.f32 %v8627_v41, 20.0 }
 0x47d   : > { %2883 = vst.msk [vmem:[#allocation2 + $0x1f] sm:$0x1] %vm1270_vm14, %v2882_v48  ;;  %2952 = vbcast.lane.b32.xlu0 %v7184_v6, 320  ;;  %v1818_v55 = vmul.f32 %v1817_v25, %v7168_v9  ;;  %v7245_v18 = vrot.slane %v8626_v51, %v6419_v44  ;;  %v1904_v0 = vmul.f32 1.442695, %v1901_v46  ;;  %v1952_v9 = vmul.f32 %v6915_v39, %v1951_v23 }
 0x47e   : > { %v1813_v57 = vpop.permute.xlu1 %1812  ;;  %v1766_v47 = vmul.f32 %v1765_v40, %v1757_v27  ;;  %v1767_v62 = vmul.f32 %v1765_v40, %v1761_v35  ;;  %v1900_v27 = vmul.f32 %v6915_v39, %v1899_v1  ;;  %v1169_v40 = vmul.f32 1.442695, %v1157_v58 }
 0x47f   : > { %v7194_v28 = vpop.permute.xlu0 %1912  ;;  %v5634_v7 = vpop.eup %5633  ;;  %v1819_v56 = vmul.f32 %v1817_v25, %v1813_v57  ;;  %v2003_v57 = vrot.slane %v7057_v30, %v6427_v22  ;;  %v1869_v30 = vrot.slane %v7091_v13, %v6415_v37  ;;  %vm1149_vm6 = vcmp.gt.f32.partialorder %v8627_v41, 20.0 }
 0x480   : > { %2904 = vbcast.lane.b32.xlu1 %v7164_v12, 328  ;;  %v7215_v21 = vadd.f32 %v1776_v29, %v1766_v47  ;;  %v7220_v20 = vadd.f32 %v1777_v4, %v1767_v62  ;;  %v5636_v50 = vpop.eup %5635  ;;  %v1902_v16 = vmul.f32 1.442695, %v1900_v27  ;;  %v7261_v47 = vrot.slane %v8626_v51, %v6423_v32 }
 0x481   : > { %3004 = vbcast.lane.b32.xlu0 %v7198_v15, 320  ;;  %v1198_v10 = vmul.f32 0.6931472, %v5636_v50  ;;  %v1953_v62 = vmul.f32 %v6900_v34, %v1951_v23  ;;  %v2004_v46 = vmul.f32 %v6915_v39, %v2003_v57  ;;  %v1870_v50 = vmul.f32 %v1869_v30, %v7180_v38 }
 0x482   : > { %v1865_v11 = vpop.permute.xlu1 %1864  ;;  %v1828_v26 = vmul.f32 %v5634_v7, %v7215_v21  ;;  %5643 = vpow2.f32 %v1902_v16  ;;  %v1954_v7 = vmul.f32 1.442695, %v1952_v9  ;;  %v7280_v16 = vrot.slane %v8626_v51, %v6427_v22 }
 0x483   : > { %v7209_v49 = vpop.permute.xlu0 %1964  ;;  %5645 = vpow2.f32 %v1904_v0  ;;  %v7265_v4 = vsel %vm1151_vm5, %v8624_v59, %v1198_v10  ;;  %v1871_v34 = vmul.f32 %v1869_v30, %v1865_v11  ;;  %v1956_v23 = vmul.f32 1.442695, %v1953_v62  ;;  %vm8700_vm5 = vmmov %vm8693_vm1 }
 0x484   : > { %2956 = vbcast.lane.b32.xlu1 %v7184_v6, 328  ;;  %v5638_v52 = vpop.eup %5637  ;;  %v7247_v36 = vadd.f32 %v1828_v26, %v1818_v55  ;;  %5647 = vpow2.f32 %v1169_v40  ;;  %v1921_v26 = vrot.slane %v7091_v13, %v6419_v44  ;;  %v8628_v55 = vld [vmem:[#allocation20_spill] sm:$0xff]  ;;  %v7288_v38 = vrot.slane %v7091_v13, %v6423_v32 }
 0x485   : > { %3056 = vbcast.lane.b32.xlu0 %v7213_v54, 320  ;;  %v1829_v19 = vmul.f32 %v5638_v52, %v7220_v20  ;;  %v5640_v53 = vpop.eup %5639  ;;  %v7284_v39 = vmul.f32 %v7265_v4, %v8628_v55  ;;  %5649 = vpow2.f32 %v1954_v7  ;;  %v7322_v7 = vrot.slane %v7265_v4, %v6084_v8 }
 0x486   : > { %v7222_v14 = vpop.permute.xlu1 %1916  ;;  %v1880_v61 = vmul.f32 %v5640_v53, %v7247_v36  ;;  %v5642_v27 = vpop.eup %5641  ;;  %5651 = vpow2.f32 %v1956_v23  ;;  %v1974_v60 = vmul.f32 %v7288_v38, %v7209_v49 }
 0x487   : > { %v7224_v2 = vpop.permute.xlu0 %2016  ;;  %v7254_v29 = vadd.f32 %v1829_v19, %v1819_v56  ;;  %v7296_v56 = vld [vmem:[%s8524_s8 + $0x8] sm:$0xff]  ;;  %v7301_v19 = vrot.slane %v7091_v13, %v6427_v22  ;;  %v7314_v30 = vrot.slane %v7284_v39, %v6072_v3 }
 0x488   : > { %3008 = vbcast.lane.b32.xlu1 %v7198_v15, 328  ;;  %v7291_v11 = vadd.f32 %v1880_v61, %v1870_v50  ;;  %v2005_v51 = vmul.f32 %v7296_v56, %v2003_v57  ;;  %v3771_v61 = vrot.slane %v7265_v4, %v6076_v5  ;;  %v1922_v50 = vmul.f32 %v1921_v26, %v7194_v28 }
 0x489   : > { %3108 = vbcast.lane.b32.xlu0 %v7228_v31, 320  ;;  %v1881_v25 = vmul.f32 %v5642_v27, %v7254_v29 }
 0x48a   : > { %v7241_v48 = vpop.permute.xlu1 %1968 }
 0x48b   : > { %v1667_v35 = vpop.permute.xlu0 %1666  ;;  %v7310_v9 = vadd.f32 %v1881_v25, %v1871_v34  ;;  %v1923_v34 = vmul.f32 %v1921_v26, %v7222_v14 }
 0x48c   : > { %3060 = vbcast.lane.b32.xlu1 %v7213_v54, 328  ;;  %v1676_v59 = vmul.f32 %v7156_v43, %v1667_v35  ;;  %v2006_v35 = vmul.f32 1.442695, %v2004_v46  ;;  %v5644_v57 = vpop.eup %5643 }
 0x48d   : > { %3160 = vbcast.lane.b32.xlu0 %v7245_v18, 320  ;;  %v5646_v46 = vpop.eup %5645 }
 0x48e   : > { %v7257_v24 = vpop.permute.xlu1 %2020  ;;  %v1678_v0 = vsel %vm1052_vm0, %v1676_v59, 0.0  ;;  %v1933_v14 = vmul.f32 %v5646_v46, %v7310_v9  ;;  %v7338_v26 = vpop.eup %5647  ;;  %5653 = vpow2.f32 %v2006_v35 }
 0x48f   : > { %v1719_v1 = vpop.permute.xlu0 %1718 }
 0x490   : > { %3112 = vbcast.lane.b32.xlu1 %v7228_v31, 328  ;;  %v1728_v10 = vmul.f32 %v7186_v33, %v1719_v1  ;;  %v1932_v33 = vmul.f32 %v5644_v57, %v7291_v11  ;;  %v2008_v1 = vmul.f32 1.442695, %v2005_v51  ;;  %v1935_v46 = vadd.f32 %v1933_v14, %v1923_v34 }
 0x491   : > { %3212 = vbcast.lane.b32.xlu0 %v7261_v47, 320 }
 0x492   : > { %v1671_v52 = vpop.permute.xlu1 %1670  ;;  %v1934_v17 = vadd.f32 %v1932_v33, %v1922_v50  ;;  %v5650_v50 = vpop.eup %5649  ;;  %5655 = vpow2.f32 %v2008_v1 }
 0x493   : > { %v1771_v58 = vpop.permute.xlu0 %1770  ;;  %v1677_v43 = vmul.f32 %v7166_v45, %v1671_v52  ;;  %v3719_v45 = vrot.slane %v7265_v4, %v6072_v3  ;;  %v1730_v52 = vsel %vm1052_vm0, %v1728_v10, 0.0 }
 0x494   : > { %3164 = vbcast.lane.b32.xlu1 %v7245_v18, 328  ;;  %v1780_v23 = vmul.f32 %v7215_v21, %v1771_v58  ;;  %v7348_v58 = vmul.f32 %v7296_v56, %v3771_v61 }
 0x495   : > { %3264 = vbcast.lane.b32.xlu0 %v7280_v16, 320  ;;  %v1679_v40 = vsel %vm1052_vm0, %v1677_v43, 0.0 }
 0x496   : > { %v1680_v13 = vadd.f32 %v1679_v40, %v1678_v0  ;;  %v1723_v53 = vpop.permute.xlu1 %1722 }
 0x497   : > { %v1823_v62 = vpop.permute.xlu0 %1822  ;;  %v1729_v27 = vmul.f32 %v7192_v42, %v1723_v53  ;;  %v7331_v42 = vld [vmem:[%s8524_s8] sm:$0xff]  ;;  %v3721_v53 = vmul.f32 %v7296_v56, %v3719_v45 }
 0x498   : > { %v1681_v59 = vrot.slane %v1680_v13, 4  ;;  %3216 = vbcast.lane.b32.xlu1 %v7261_v47, 328  ;;  %v3720_v25 = vmul.f32 %v7331_v42, %v3719_v45  ;;  %v3772_v57 = vmul.f32 %v7331_v42, %v3771_v61  ;;  %v7345_v21 = vmul.f32 %v7331_v42, %v7322_v7 }
 0x499   : > { %2914 = vbcast.lane.b32.xlu0 %v7164_v12, 336  ;;  %v1731_v28 = vsel %vm1052_vm0, %v1729_v27, 0.0  ;;  %v1782_v45 = vsel %vm1052_vm0, %v1780_v23, 0.0  ;;  %v3724_v22 = vmul.f32 1.442695, %v3721_v53  ;;  %v5652_v23 = vpop.eup %5651 }
 0x49a   : > { %v1682_v43 = vadd.f32 %v1681_v59, %v1680_v13  ;;  %v1732_v51 = vadd.f32 %v1731_v28, %v1730_v52  ;;  %v1775_v0 = vpop.permute.xlu1 %1774  ;;  %v3722_v13 = vmul.f32 1.442695, %v3720_v25  ;;  %v1984_v25 = vmul.f32 %v5650_v50, %v1934_v17 }
 0x49b   : > { %v1875_v40 = vpop.permute.xlu0 %1874  ;;  %v1781_v55 = vmul.f32 %v7220_v20, %v1775_v0  ;;  %v1832_v20 = vmul.f32 %v7247_v36, %v1823_v62  ;;  %v1975_v36 = vmul.f32 %v7288_v38, %v7241_v48 }
 0x49c   : > { %v1683_v10 = vrot.slane %v1682_v43, 2  ;;  %v1733_v27 = vrot.slane %v1732_v51, 4  ;;  %3268 = vbcast.lane.b32.xlu1 %v7280_v16, 328  ;;  %v1884_v14 = vmul.f32 %v7291_v11, %v1875_v40  ;;  %5657 = vpow2.f32 %v3722_v13 }
 0x49d   : > { %2966 = vbcast.lane.b32.xlu0 %v7184_v6, 336  ;;  %v1783_v33 = vsel %vm1052_vm0, %v1781_v55, 0.0  ;;  %v1834_v1 = vsel %vm1052_vm0, %v1832_v20, 0.0  ;;  %5659 = vpow2.f32 %v3724_v22  ;;  %v3776_v22 = vmul.f32 1.442695, %v7348_v58 }
 0x49e   : > { %v1684_v59 = vadd.f32 %v1683_v10, %v1682_v43  ;;  %v1734_v52 = vadd.f32 %v1733_v27, %v1732_v51  ;;  %v1784_v61 = vadd.f32 %v1783_v33, %v1782_v45  ;;  %v1827_v28 = vpop.permute.xlu1 %1826  ;;  %v1986_v45 = vadd.f32 %v1984_v25, %v1974_v60 }
 0x49f   : > { %v1927_v0 = vpop.permute.xlu0 %1926  ;;  %v1833_v35 = vmul.f32 %v7254_v29, %v1827_v28  ;;  %v1985_v29 = vmul.f32 %v5652_v23, %v1935_v46  ;;  %v1886_v11 = vsel %vm1052_vm0, %v1884_v14, 0.0  ;;  %v2026_v25 = vmul.f32 %v7301_v19, %v7224_v2 }
 0x4a0   : > { %v1685_v55 = vrot.slane %v1684_v59, 1  ;;  %v1735_v62 = vrot.slane %v1734_v52, 2  ;;  %v1785_v34 = vrot.slane %v1784_v61, 4  ;;  %2918 = vbcast.lane.b32.xlu1 %v7164_v12, 344  ;;  %v3774_v12 = vmul.f32 1.442695, %v3772_v57 }
 0x4a1   : > { %3018 = vbcast.lane.b32.xlu0 %v7198_v15, 336  ;;  %v1835_v49 = vsel %vm1052_vm0, %v1833_v35, 0.0  ;;  %v1936_v40 = vmul.f32 %v1934_v17, %v1927_v0  ;;  %v2027_v17 = vmul.f32 %v7301_v19, %v7257_v24 }
 0x4a2   : > { %v1686_v43 = vadd.f32 %v1685_v55, %v1684_v59  ;;  %v1736_v51 = vadd.f32 %v1735_v62, %v1734_v52  ;;  %v1786_v53 = vadd.f32 %v1785_v34, %v1784_v61  ;;  %v1836_v10 = vadd.f32 %v1835_v49, %v1834_v1  ;;  %v1879_v27 = vpop.permute.xlu1 %1878 }
 0x4a3   : > { %v1979_v48 = vpop.permute.xlu0 %1978  ;;  %v1885_v38 = vmul.f32 %v7310_v9, %v1879_v27  ;;  %v1987_v52 = vadd.f32 %v1985_v29, %v1975_v36  ;;  %v5654_v9 = vpop.eup %5653  ;;  %v1938_v34 = vsel %vm1052_vm0, %v1936_v40, 0.0  ;;  %5661 = vpow2.f32 %v3774_v12 }
 0x4a4   : > { %1687 = vst.msk [vmem:[#allocation2 + $0x8] sm:$0x1] %vm1270_vm14, %v1686_v43  ;;  %v1737_v33 = vrot.slane %v1736_v51, 1  ;;  %v1787_v20 = vrot.slane %v1786_v53, 2  ;;  %v1837_v50 = vrot.slane %v1836_v10, 4  ;;  %2970 = vbcast.lane.b32.xlu1 %v7184_v6, 344  ;;  %v2036_v23 = vmul.f32 %v5654_v9, %v1986_v45  ;;  %v5656_v55 = vpop.eup %5655 }
 0x4a5   : > { %3070 = vbcast.lane.b32.xlu0 %v7213_v54, 336  ;;  %v1887_v59 = vsel %vm1052_vm0, %v1885_v38, 0.0  ;;  %v1988_v2 = vmul.f32 %v1986_v45, %v1979_v48  ;;  %v2037_v1 = vmul.f32 %v5656_v55, %v1987_v52  ;;  %5663 = vpow2.f32 %v3776_v22 }
 0x4a6   : > { %v1738_v60 = vadd.f32 %v1737_v33, %v1736_v51  ;;  %v1788_v13 = vadd.f32 %v1787_v20, %v1786_v53  ;;  %v1838_v57 = vadd.f32 %v1837_v50, %v1836_v10  ;;  %v1888_v61 = vadd.f32 %v1887_v59, %v1886_v11  ;;  %v1931_v28 = vpop.permute.xlu1 %1930  ;;  %v5658_v48 = vpop.eup %5657 }
 0x4a7   : > { %v2031_v35 = vpop.permute.xlu0 %2030  ;;  %v1937_v6 = vmul.f32 %v1935_v46, %v1931_v28  ;;  %v2038_v43 = vadd.f32 %v2036_v23, %v2026_v25  ;;  %v1990_v38 = vsel %vm1052_vm0, %v1988_v2, 0.0  ;;  %v2039_v12 = vadd.f32 %v2037_v1, %v2027_v17  ;;  %v5660_v20 = vpop.eup %5659 }
 0x4a8   : > { %1739 = vst.msk [vmem:[#allocation2 + $0x9] sm:$0x1] %vm1270_vm14, %v1738_v60  ;;  %v1789_v0 = vrot.slane %v1788_v13, 1  ;;  %v1839_v36 = vrot.slane %v1838_v57, 2  ;;  %v1889_v62 = vrot.slane %v1888_v61, 4  ;;  %3022 = vbcast.lane.b32.xlu1 %v7198_v15, 344  ;;  %v3825_v15 = vmul.f32 %v7296_v56, %v7322_v7 }
 0x4a9   : > { %3122 = vbcast.lane.b32.xlu0 %v7228_v31, 336  ;;  %v1939_v46 = vsel %vm1052_vm0, %v1937_v6, 0.0  ;;  %v2040_v45 = vmul.f32 %v2038_v43, %v2031_v35  ;;  %v3826_v60 = vmul.f32 1.442695, %v7345_v21  ;;  %v3752_v6 = vmul.f32 0.0, %v5658_v48 }
 0x4aa   : > { %v1790_v58 = vadd.f32 %v1789_v0, %v1788_v13  ;;  %v1840_v14 = vadd.f32 %v1839_v36, %v1838_v57  ;;  %v1890_v49 = vadd.f32 %v1889_v62, %v1888_v61  ;;  %v1940_v29 = vadd.f32 %v1939_v46, %v1938_v34  ;;  %v1983_v24 = vpop.permute.xlu1 %1982 }
 0x4ab   : > { %v3733_v19 = vpop.permute.xlu0 %3732  ;;  %v1989_v51 = vmul.f32 %v1987_v52, %v1983_v24  ;;  %v3875_v13 = vrot.slane %v7265_v4, %v6062_v63  ;;  %v2042_v35 = vsel %vm1052_vm0, %v2040_v45, 0.0  ;;  %v3828_v23 = vmul.f32 1.442695, %v3825_v15 }
 0x4ac   : > { %1791 = vst.msk [vmem:[#allocation2 + $0xa] sm:$0x1] %vm1270_vm14, %v1790_v58  ;;  %v1841_v53 = vrot.slane %v1840_v14, 1  ;;  %v1891_v10 = vrot.slane %v1890_v49, 2  ;;  %v1941_v27 = vrot.slane %v1940_v29, 4  ;;  %3074 = vbcast.lane.b32.xlu1 %v7213_v54, 344  ;;  %v3742_v9 = vmul.f32 %v7314_v30, %v3733_v19 }
 0x4ad   : > { %3174 = vbcast.lane.b32.xlu0 %v7245_v18, 336  ;;  %v1991_v33 = vsel %vm1052_vm0, %v1989_v51, 0.0  ;;  %v3876_v2 = vmul.f32 %v7331_v42, %v3875_v13  ;;  %5665 = vpow2.f32 %v3826_v60  ;;  %v3877_v19 = vmul.f32 %v7296_v56, %v3875_v13 }
 0x4ae   : > { %v1842_v50 = vadd.f32 %v1841_v53, %v1840_v14  ;;  %v1892_v7 = vadd.f32 %v1891_v10, %v1890_v49  ;;  %v1942_v11 = vadd.f32 %v1941_v27, %v1940_v29  ;;  %v1992_v40 = vadd.f32 %v1991_v33, %v1990_v38  ;;  %v2035_v59 = vpop.permute.xlu1 %2034  ;;  %v5662_v14 = vpop.eup %5661 }
 0x4af   : > { %v3785_v52 = vpop.permute.xlu0 %3784  ;;  %v2041_v54 = vmul.f32 %v2039_v12, %v2035_v59  ;;  %v7400_v34 = vadd.f32 %v3752_v6, %v3742_v9  ;;  %v3793_v49 = vrot.slane %v7284_v39, %v6076_v5  ;;  %v5664_v43 = vpop.eup %5663  ;;  %5667 = vpow2.f32 %v3828_v23 }
 0x4b0   : > { %1843 = vst.msk [vmem:[#allocation2 + $0xb] sm:$0x1] %vm1270_vm14, %v1842_v50  ;;  %v1893_v57 = vrot.slane %v1892_v7, 1  ;;  %v1943_v61 = vrot.slane %v1942_v11, 2  ;;  %v1993_v28 = vrot.slane %v1992_v40, 4  ;;  %3126 = vbcast.lane.b32.xlu1 %v7228_v31, 344 }
 0x4b1   : > { %3226 = vbcast.lane.b32.xlu0 %v7261_v47, 336  ;;  %v2043_v25 = vsel %vm1052_vm0, %v2041_v54, 0.0  ;;  %v3753_v31 = vmul.f32 0.0, %v5660_v20  ;;  %v1181_v27 = vadd.f32 1.0, %v7338_v26  ;;  %v3794_v48 = vmul.f32 %v3793_v49, %v3785_v52  ;;  %v8630_v50 = vld [vmem:[#allocation27_spill] sm:$0xff] }
 0x4b2   : > { %v1894_v22 = vadd.f32 %v1893_v57, %v1892_v7  ;;  %v1944_v21 = vadd.f32 %v1943_v61, %v1942_v11  ;;  %v1994_v55 = vadd.f32 %v1993_v28, %v1992_v40  ;;  %v2044_v17 = vadd.f32 %v2043_v25, %v2042_v35  ;;  %v3737_v0 = vpop.permute.xlu1 %3736  ;;  %v8631_v61 = vld [vmem:[#allocation6_spill] sm:$0xff] }
 0x4b3   : > { %v7397_v36 = vpop.permute.xlu0 %3836  ;;  %v3743_v62 = vmul.f32 %v7314_v30, %v3737_v0  ;;  %v8629_v30 = vld [vmem:[#allocation26_spill] sm:$0xff]  ;;  %v3804_v38 = vmul.f32 %v5662_v14, %v7400_v34  ;;  %v3878_v12 = vmul.f32 1.442695, %v3876_v2  ;;  %v3927_v20 = vrot.slane %v7265_v4, %v6415_v37  ;;  %v8632_v0 = vld [vmem:[#allocation7_spill] sm:$0xff] }
 0x4b4   : > { %1895 = vst.msk [vmem:[#allocation2 + $0xc] sm:$0x1] %vm1270_vm14, %v1894_v22  ;;  %v1945_v46 = vrot.slane %v1944_v21, 1  ;;  %v1995_v1 = vrot.slane %v1994_v55, 2  ;;  %v2045_v58 = vrot.slane %v2044_v17, 4  ;;  %3178 = vbcast.lane.b32.xlu1 %v7245_v18, 344  ;;  %v7410_v29 = vrot.slane %v8629_v30, %v6072_v3 }
 0x4b5   : > { %3278 = vbcast.lane.b32.xlu0 %v7280_v16, 336  ;;  %v7412_v24 = vadd.f32 %v3753_v31, %v3743_v62  ;;  %v1160_v7 = vmin.f32 %v8630_v50, 20.0  ;;  %v7430_v54 = vrot.slane %v8629_v30, %v6076_v5  ;;  %5669 = vlog2.f32 %v1181_v27 }
 0x4b6   : > { %v1946_v51 = vadd.f32 %v1945_v46, %v1944_v21  ;;  %v1996_v15 = vadd.f32 %v1995_v1, %v1994_v55  ;;  %v2046_v53 = vadd.f32 %v2045_v58, %v2044_v17  ;;  %v3789_v18 = vpop.permute.xlu1 %3788  ;;  %v7432_v60 = vadd.f32 %v3804_v38, %v3794_v48  ;;  %v8634_v38 = vld [vmem:[#allocation9_spill] sm:$0xff] }
 0x4b7   : > { %v7415_v10 = vpop.permute.xlu0 %3888  ;;  %v3795_v11 = vmul.f32 %v3793_v49, %v3789_v18  ;;  %v3805_v26 = vmul.f32 %v5664_v43, %v7412_v24  ;;  %5671 = vpow2.f32 %v3878_v12  ;;  %v3928_v57 = vmul.f32 %v7331_v42, %v3927_v20  ;;  %v5666_v23 = vpop.eup %5665 }
 0x4b8   : > { %1947 = vst.msk [vmem:[#allocation2 + $0xd] sm:$0x1] %vm1270_vm14, %v1946_v51  ;;  %v1997_v45 = vrot.slane %v1996_v15, 1  ;;  %v2047_v33 = vrot.slane %v2046_v53, 2  ;;  %3230 = vbcast.lane.b32.xlu1 %v7261_v47, 344  ;;  %v4581_v28 = vmul.f32 0.5, %v8631_v61  ;;  %v3845_v25 = vrot.slane %v7284_v39, %v6084_v8 }
 0x4b9   : > { %4148 = vbcast.lane.b32.xlu0 %v7410_v29, 320  ;;  %v3880_v47 = vmul.f32 1.442695, %v3877_v19  ;;  %v1175_v35 = vmul.f32 1.442695, %v1160_v7  ;;  %v7441_v6 = vadd.f32 %v3805_v26, %v3795_v11  ;;  %v3929_v17 = vmul.f32 %v7296_v56, %v3927_v20  ;;  %v5668_v46 = vpop.eup %5667  ;;  %v8635_v7 = vld [vmem:[#allocation10_spill] sm:$0xff] }
 0x4ba   : > { %v1998_v40 = vadd.f32 %v1997_v45, %v1996_v15  ;;  %v2048_v59 = vadd.f32 %v2047_v33, %v2046_v53  ;;  %v3841_v52 = vpop.permute.xlu1 %3840  ;;  %v4579_v62 = vmul.f32 0.5, %v8632_v0  ;;  %v3846_v31 = vmul.f32 %v3845_v25, %v7397_v36  ;;  %v8633_v53 = vld [vmem:[#allocation8_spill] sm:$0xff] }
 0x4bb   : > { %v7426_v9 = vpop.permute.xlu0 %3940  ;;  %5673 = vpow2.f32 %v3880_v47  ;;  %v3856_v2 = vmul.f32 %v5666_v23, %v7432_v60  ;;  %v3930_v1 = vmul.f32 1.442695, %v3928_v57  ;;  %v3979_v58 = vrot.slane %v7265_v4, %v6419_v44  ;;  %v8636_v47 = vld [vmem:[#allocation11_spill] sm:$0xff] }
 0x4bc   : > { %1999 = vst.msk [vmem:[#allocation2 + $0xe] sm:$0x1] %vm1270_vm14, %v1998_v40  ;;  %v2049_v13 = vrot.slane %v2048_v59, 1  ;;  %3282 = vbcast.lane.b32.xlu1 %v7280_v16, 344  ;;  %v7447_v16 = vrot.slane %v8629_v30, %v6084_v8  ;;  %5675 = vpow2.f32 %v1175_v35  ;;  %v3847_v14 = vmul.f32 %v3845_v25, %v3841_v52 }
 0x4bd   : > { %4200 = vbcast.lane.b32.xlu0 %v7430_v54, 320  ;;  %v3857_v49 = vmul.f32 %v5668_v46, %v7441_v6  ;;  %5677 = vtanh.f32 %v4581_v28  ;;  %v7465_v43 = vrot.slane %v8629_v30, %v6062_v63  ;;  %v3932_v51 = vmul.f32 1.442695, %v3929_v17 }
 0x4be   : > { %v2050_v22 = vadd.f32 %v2049_v13, %v2048_v59  ;;  %v3893_v21 = vpop.permute.xlu1 %3892  ;;  %5679 = vtanh.f32 %v4579_v62  ;;  %v7467_v15 = vadd.f32 %v3856_v2, %v3846_v31  ;;  %v4582_v18 = vmul.f32 0.5, %v8633_v53 }
 0x4bf   : > { %v7443_v55 = vpop.permute.xlu0 %3992  ;;  %5681 = vpow2.f32 %v3930_v1  ;;  %v3980_v27 = vmul.f32 %v7331_v42, %v3979_v58  ;;  %v5670_v48 = vpop.eup %5669  ;;  %v4580_v45 = vmul.f32 0.5, %v8634_v38  ;;  %v3897_v33 = vrot.slane %v7284_v39, %v6062_v63 }
 0x4c0   : > { %2051 = vst.msk [vmem:[#allocation2 + $0xf] sm:$0x1] %vm1270_vm14, %v2050_v22  ;;  %4152 = vbcast.lane.b32.xlu1 %v7410_v29, 328  ;;  %v7476_v12 = vadd.f32 %v3857_v49, %v3847_v14  ;;  %v4585_v11 = vmul.f32 0.5, %v8635_v7  ;;  %v7485_v59 = vrot.slane %v8629_v30, %v6415_v37  ;;  %5683 = vpow2.f32 %v3932_v51 }
 0x4c1   : > { %4252 = vbcast.lane.b32.xlu0 %v7447_v16, 320  ;;  %v5672_v20 = vpop.eup %5671  ;;  %v3981_v52 = vmul.f32 %v7296_v56, %v3979_v58  ;;  %v4583_v13 = vmul.f32 0.5, %v8636_v47  ;;  %v3898_v57 = vmul.f32 %v3897_v33, %v7415_v10  ;;  %5685 = vtanh.f32 %v4582_v18  ;;  %v8637_v58 = vld [vmem:[#allocation12_spill] sm:$0xff] }
 0x4c2   : > { %v7459_v19 = vpop.permute.xlu1 %3944  ;;  %v3908_v28 = vmul.f32 %v5672_v20, %v7467_v15  ;;  %v3982_v25 = vmul.f32 1.442695, %v3980_v27  ;;  %v4031_v23 = vrot.slane %v7265_v4, %v6423_v32  ;;  %5687 = vtanh.f32 %v4580_v45 }
 0x4c3   : > { %v7461_v36 = vpop.permute.xlu0 %4044  ;;  %v1194_v22 = vmul.f32 0.6931472, %v5670_v48  ;;  %v3899_v17 = vmul.f32 %v3897_v33, %v3893_v21  ;;  %5689 = vtanh.f32 %v4585_v11  ;;  %v7500_v2 = vrot.slane %v8629_v30, %v6419_v44 }
 0x4c4   : > { %4204 = vbcast.lane.b32.xlu1 %v7430_v54, 328  ;;  %v3984_v46 = vmul.f32 1.442695, %v3981_v52  ;;  %5691 = vtanh.f32 %v4583_v13  ;;  %v4586_v14 = vmul.f32 0.5, %v8637_v58  ;;  %v7503_v49 = vadd.f32 %v3908_v28, %v3898_v57  ;;  %v8638_v57 = vld [vmem:[#allocation32_spill] sm:$0xff] }
 0x4c5   : > { %4304 = vbcast.lane.b32.xlu0 %v7465_v43, 320  ;;  %v5674_v35 = vpop.eup %5673  ;;  %5693 = vpow2.f32 %v3982_v25  ;;  %v4032_v21 = vmul.f32 %v7331_v42, %v4031_v23  ;;  %v7510_v27 = vsel %vm1149_vm6, %v8627_v41, %v1194_v22  ;;  %v3949_v48 = vrot.slane %v7284_v39, %v6415_v37  ;;  %vm8701_vm6 = vmmov %vm8693_vm1 }
 0x4c6   : > { %v7479_v26 = vpop.permute.xlu1 %3996  ;;  %v3909_v62 = vmul.f32 %v5674_v35, %v7476_v12  ;;  %v5676_v1 = vpop.eup %5675  ;;  %v7516_v45 = vrot.slane %v8629_v30, %v6423_v32  ;;  %5695 = vpow2.f32 %v3984_v46  ;;  %v4083_v28 = vrot.slane %v7265_v4, %v8638_v57  ;;  %v8639_v35 = vld [vmem:[#allocation13_spill] sm:$0xff] }
 0x4c7   : > { %v7481_v40 = vpop.permute.xlu0 %4096  ;;  %v5678_v51 = vpop.eup %5677  ;;  %v1184_v11 = vadd.f32 1.0, %v5676_v1  ;;  %v4033_v41 = vmul.f32 %v7296_v56, %v4031_v23  ;;  %5697 = vtanh.f32 %v4586_v14  ;;  %v7526_v25 = vmul.f32 0.5, %v8639_v35 }
 0x4c8   : > { %4256 = vbcast.lane.b32.xlu1 %v7447_v16, 328  ;;  %v5680_v18 = vpop.eup %5679  ;;  %v7518_v33 = vadd.f32 %v3909_v62, %v3899_v17  ;;  %v3950_v22 = vmul.f32 %v3949_v48, %v7426_v9  ;;  %v4034_v1 = vmul.f32 1.442695, %v4032_v21  ;;  %v7534_v46 = vrot.slane %v7510_v27, %v6072_v3 }
 0x4c9   : > { %4356 = vbcast.lane.b32.xlu0 %v7485_v59, 320  ;;  %v5682_v20 = vpop.eup %5681  ;;  %v7536_v4 = vadd.f32 1.0, %v5680_v18  ;;  %v7538_v23 = vadd.f32 1.0, %v5678_v51  ;;  %v3951_v14 = vmul.f32 %v3949_v48, %v7459_v19  ;;  %5699 = vlog2.f32 %v1184_v11 }
 0x4ca   : > { %v7496_v31 = vpop.permute.xlu1 %4048  ;;  %v3960_v17 = vmul.f32 %v5682_v20, %v7503_v49  ;;  %v5684_v62 = vpop.eup %5683  ;;  %v7544_v20 = vrot.slane %v8629_v30, %v8638_v57  ;;  %v4001_v21 = vrot.slane %v7284_v39, %v6419_v44  ;;  %v4084_v51 = vmul.f32 %v7331_v42, %v4083_v28 }
 0x4cb   : > { %v3747_v10 = vpop.permute.xlu0 %3746  ;;  %v3961_v58 = vmul.f32 %v5684_v62, %v7518_v33  ;;  %v7547_v35 = vpop.eup %5685  ;;  %v4036_v53 = vmul.f32 1.442695, %v4033_v41  ;;  %v4085_v48 = vmul.f32 %v7296_v56, %v4083_v28  ;;  %v7566_v62 = vrot.slane %v7284_v39, %v8638_v57  ;;  %v8643_v41 = vld [vmem:[#allocation18_spill] sm:$0xff] }
 0x4cc   : > { %4308 = vbcast.lane.b32.xlu1 %v7465_v43, 328  ;;  %v3756_v9 = vmul.f32 %v7400_v34, %v3747_v10  ;;  %8640 = vst [vmem:[#allocation22_spill] sm:$0xff] %v7544_v20  ;;  %8641 = vst [vmem:[#allocation23_spill] sm:$0xff] %v7547_v35  ;;  %v7552_v19 = vpop.eup %5687  ;;  %v7556_v34 = vrot.slane %v7284_v39, %v6423_v32  ;;  %v7559_v10 = vadd.f32 %v3960_v17, %v3950_v22 }
 0x4cd   : > { %4408 = vbcast.lane.b32.xlu0 %v7500_v2, 320  ;;  %v7562_v11 = vpop.eup %5689  ;;  %5701 = vpow2.f32 %v4034_v1  ;;  %v7572_v47 = vmul.f32 %v7510_v27, %v8643_v41  ;;  %v4086_v0 = vmul.f32 1.442695, %v4084_v51  ;;  %v7585_v41 = vrot.slane %v7510_v27, %v6076_v5 }
 0x4ce   : > { %v7520_v52 = vpop.permute.xlu1 %4100  ;;  %8642 = vst [vmem:[#allocation24_spill] sm:$0xff] %v7562_v11  ;;  %v7576_v22 = vpop.eup %5691  ;;  %v3758_v28 = vsel %vm1052_vm0, %v3756_v9, 0.0  ;;  %5703 = vpow2.f32 %v4036_v53  ;;  %v4002_v11 = vmul.f32 %v4001_v21, %v7443_v55  ;;  %vm1152_vm9 = vcmp.gt.f32.partialorder %v8630_v50, 20.0 }
 0x4cf   : > { %v3799_v13 = vpop.permute.xlu0 %3798  ;;  %v5694_v57 = vpop.eup %5693  ;;  %v7595_v53 = vrot.slane %v7572_v47, %v6072_v3  ;;  %5705 = vpow2.f32 %v4086_v0  ;;  %v2940_v35 = vmul.f32 %v7331_v42, %v7585_v41  ;;  %v7614_v0 = vrot.slane %v7510_v27, %v6084_v8 }
 0x4d0   : > { %4360 = vbcast.lane.b32.xlu1 %v7485_v59, 328  ;;  %v3808_v17 = vmul.f32 %v7432_v60, %v3799_v13  ;;  %v4012_v60 = vmul.f32 %v5694_v57, %v7559_v10  ;;  %v4088_v13 = vmul.f32 1.442695, %v4085_v48 }
 0x4d1   : > { %4460 = vbcast.lane.b32.xlu0 %v7516_v45, 320 }
 0x4d2   : > { %v3751_v18 = vpop.permute.xlu1 %3750  ;;  %v4014_v32 = vadd.f32 %v4012_v60, %v4002_v11  ;;  %5707 = vpow2.f32 %v4088_v13 }
 0x4d3   : > { %v3851_v7 = vpop.permute.xlu0 %3850  ;;  %v3757_v30 = vmul.f32 %v7412_v24, %v3751_v18  ;;  %v2888_v24 = vmul.f32 %v7331_v42, %v7534_v46  ;;  %v7581_v18 = vadd.f32 %v3961_v58, %v3951_v14  ;;  %v4003_v58 = vmul.f32 %v4001_v21, %v7479_v26 }
 0x4d4   : > { %4412 = vbcast.lane.b32.xlu1 %v7500_v2, 328  ;;  %v3860_v55 = vmul.f32 %v7467_v15, %v3851_v7 }
 0x4d5   : > { %4512 = vbcast.lane.b32.xlu0 %v7544_v20, 320  ;;  %v3759_v39 = vsel %vm1052_vm0, %v3757_v30, 0.0  ;;  %v5696_v30 = vpop.eup %5695  ;;  %v2890_v51 = vmul.f32 1.442695, %v2888_v24 }
 0x4d6   : > { %v3760_v38 = vadd.f32 %v3759_v39, %v3758_v28  ;;  %v3803_v1 = vpop.permute.xlu1 %3802  ;;  %v7597_v28 = vpop.eup %5697  ;;  %v4013_v26 = vmul.f32 %v5696_v30, %v7581_v18 }
 0x4d7   : > { %v3903_v61 = vpop.permute.xlu0 %3902  ;;  %v3809_v9 = vmul.f32 %v7441_v6, %v3803_v1  ;;  %8644 = vst [vmem:[#allocation25_spill] sm:$0xff] %v7597_v28  ;;  %v3810_v6 = vsel %vm1052_vm0, %v3808_v17, 0.0  ;;  %v2889_v17 = vmul.f32 %v7296_v56, %v7534_v46  ;;  %v7608_v15 = vpop.eup %5699  ;;  %5709 = vpow2.f32 %v2890_v51 }
 0x4d8   : > { %v3761_v14 = vrot.slane %v3760_v38, 4  ;;  %4464 = vbcast.lane.b32.xlu1 %v7516_v45, 328  ;;  %v4015_v46 = vadd.f32 %v4013_v26, %v4003_v58  ;;  %v5702_v60 = vpop.eup %5701  ;;  %v4054_v51 = vmul.f32 %v7556_v34, %v7461_v36 }
 0x4d9   : > { %4162 = vbcast.lane.b32.xlu0 %v7410_v29, 336  ;;  %v3811_v57 = vsel %vm1052_vm0, %v3809_v9, 0.0  ;;  %v2892_v44 = vmul.f32 1.442695, %v2889_v17 }
 0x4da   : > { %v3762_v21 = vadd.f32 %v3761_v14, %v3760_v38  ;;  %v3812_v48 = vadd.f32 %v3811_v57, %v3810_v6  ;;  %v3855_v39 = vpop.permute.xlu1 %3854  ;;  %v3862_v38 = vsel %vm1052_vm0, %v3860_v55, 0.0  ;;  %v5704_v55 = vpop.eup %5703 }
 0x4db   : > { %v3955_v1 = vpop.permute.xlu0 %3954  ;;  %v3861_v24 = vmul.f32 %v7476_v12, %v3855_v39  ;;  %v3912_v12 = vmul.f32 %v7503_v49, %v3903_v61  ;;  %v2942_v39 = vmul.f32 1.442695, %v2940_v35  ;;  %v4055_v61 = vmul.f32 %v7556_v34, %v7496_v31 }
 0x4dc   : > { %v3763_v7 = vrot.slane %v3762_v21, 2  ;;  %v3813_v9 = vrot.slane %v3812_v48, 4  ;;  %4516 = vbcast.lane.b32.xlu1 %v7544_v20, 328  ;;  %v4064_v20 = vmul.f32 %v5702_v60, %v4014_v32 }
 0x4dd   : > { %4214 = vbcast.lane.b32.xlu0 %v7430_v54, 336  ;;  %v3863_v11 = vsel %vm1052_vm0, %v3861_v24, 0.0  ;;  %v3914_v35 = vsel %vm1052_vm0, %v3912_v12, 0.0  ;;  %5711 = vpow2.f32 %v2942_v39 }
 0x4de   : > { %v3764_v13 = vadd.f32 %v3763_v7, %v3762_v21  ;;  %v3814_v30 = vadd.f32 %v3813_v9, %v3812_v48  ;;  %v3864_v14 = vadd.f32 %v3863_v11, %v3862_v38  ;;  %v3907_v6 = vpop.permute.xlu1 %3906  ;;  %v3964_v21 = vmul.f32 %v7559_v10, %v3955_v1  ;;  %v5706_v11 = vpop.eup %5705 }
 0x4df   : > { %v4007_v57 = vpop.permute.xlu0 %4006  ;;  %v3913_v28 = vmul.f32 %v7518_v33, %v3907_v6  ;;  %v4065_v33 = vmul.f32 %v5704_v55, %v4015_v46  ;;  %v4066_v38 = vadd.f32 %v4064_v20, %v4054_v51  ;;  %5713 = vpow2.f32 %v2892_v44  ;;  %v5708_v12 = vpop.eup %5707 }
 0x4e0   : > { %v3765_v49 = vrot.slane %v3764_v13, 1  ;;  %v3815_v58 = vrot.slane %v3814_v30, 2  ;;  %v3865_v26 = vrot.slane %v3864_v14, 4  ;;  %4166 = vbcast.lane.b32.xlu1 %v7410_v29, 344  ;;  %v2941_v29 = vmul.f32 %v7296_v56, %v7585_v41 }
 0x4e1   : > { %4266 = vbcast.lane.b32.xlu0 %v7447_v16, 336  ;;  %v3915_v36 = vsel %vm1052_vm0, %v3913_v28, 0.0  ;;  %v3966_v60 = vsel %vm1052_vm0, %v3964_v21, 0.0  ;;  %v4116_v44 = vmul.f32 %v5706_v11, %v4066_v38 }
 0x4e2   : > { %v3766_v48 = vadd.f32 %v3765_v49, %v3764_v13  ;;  %v3816_v24 = vadd.f32 %v3815_v58, %v3814_v30  ;;  %v3866_v17 = vadd.f32 %v3865_v26, %v3864_v14  ;;  %v3916_v7 = vadd.f32 %v3915_v36, %v3914_v35  ;;  %v3959_v9 = vpop.permute.xlu1 %3958  ;;  %v7637_v30 = vpop.eup %5709 }
 0x4e3   : > { %v4059_v31 = vpop.permute.xlu0 %4058  ;;  %v3965_v34 = vmul.f32 %v7581_v18, %v3959_v9  ;;  %v4016_v18 = vmul.f32 %v4014_v32, %v4007_v57  ;;  %v4067_v13 = vadd.f32 %v4065_v33, %v4055_v61  ;;  %v2944_v58 = vmul.f32 1.442695, %v2941_v29 }
 0x4e4   : > { %3767 = vst.msk [vmem:[#allocation2 + $0x30] sm:$0x1] %vm1270_vm14, %v3766_v48  ;;  %v3817_v10 = vrot.slane %v3816_v24, 1  ;;  %v3867_v1 = vrot.slane %v3866_v17, 2  ;;  %v3917_v28 = vrot.slane %v3916_v7, 4  ;;  %4218 = vbcast.lane.b32.xlu1 %v7430_v54, 344  ;;  %v4106_v54 = vmul.f32 %v7566_v62, %v7481_v40 }
 0x4e5   : > { %4318 = vbcast.lane.b32.xlu0 %v7465_v43, 336  ;;  %v3967_v20 = vsel %vm1052_vm0, %v3965_v34, 0.0  ;;  %v4107_v32 = vmul.f32 %v7566_v62, %v7520_v52  ;;  %v4018_v35 = vsel %vm1052_vm0, %v4016_v18, 0.0  ;;  %v4068_v21 = vmul.f32 %v4066_v38, %v4059_v31 }
 0x4e6   : > { %v3818_v41 = vadd.f32 %v3817_v10, %v3816_v24  ;;  %v3868_v14 = vadd.f32 %v3867_v1, %v3866_v17  ;;  %v3918_v6 = vadd.f32 %v3917_v28, %v3916_v7  ;;  %v3968_v39 = vadd.f32 %v3967_v20, %v3966_v60  ;;  %v4011_v51 = vpop.permute.xlu1 %4010 }
 0x4e7   : > { %v4111_v55 = vpop.permute.xlu0 %4110  ;;  %v4017_v49 = vmul.f32 %v4015_v46, %v4011_v51  ;;  %v4117_v46 = vmul.f32 %v5708_v12, %v4067_v13  ;;  %v4118_v17 = vadd.f32 %v4116_v44, %v4106_v54  ;;  %v2992_v9 = vmul.f32 %v7331_v42, %v7614_v0  ;;  %v5712_v29 = vpop.eup %5711  ;;  %v8645_v54 = vld [vmem:[#allocation28_spill] sm:$0xff] }
 0x4e8   : > { %3819 = vst.msk [vmem:[#allocation2 + $0x31] sm:$0x1] %vm1270_vm14, %v3818_v41  ;;  %v3869_v57 = vrot.slane %v3868_v14, 1  ;;  %v3919_v61 = vrot.slane %v3918_v6, 2  ;;  %v3969_v26 = vrot.slane %v3968_v39, 4  ;;  %4270 = vbcast.lane.b32.xlu1 %v7447_v16, 344  ;;  %v2993_v16 = vmul.f32 %v7296_v56, %v7614_v0 }
 0x4e9   : > { %4370 = vbcast.lane.b32.xlu0 %v7485_v59, 336  ;;  %v4019_v40 = vsel %vm1052_vm0, %v4017_v49, 0.0  ;;  %5715 = vpow2.f32 %v2944_v58  ;;  %v4070_v11 = vsel %vm1052_vm0, %v4068_v21, 0.0  ;;  %v4120_v10 = vmul.f32 %v4118_v17, %v4111_v55  ;;  %v5714_v12 = vpop.eup %5713 }
 0x4ea   : > { %v3870_v36 = vadd.f32 %v3869_v57, %v3868_v14  ;;  %v3920_v33 = vadd.f32 %v3919_v61, %v3918_v6  ;;  %v3970_v48 = vadd.f32 %v3969_v26, %v3968_v39  ;;  %v4020_v24 = vadd.f32 %v4019_v40, %v4018_v35  ;;  %v4063_v52 = vpop.permute.xlu1 %4062 }
 0x4eb   : > { %v2901_v62 = vpop.permute.xlu0 %2900  ;;  %v4069_v7 = vmul.f32 %v4067_v13, %v4063_v52  ;;  %v4119_v28 = vadd.f32 %v4117_v46, %v4107_v32  ;;  %v2994_v14 = vmul.f32 1.442695, %v2992_v9  ;;  %v3043_v6 = vrot.slane %v7510_v27, %v6062_v63 }
 0x4ec   : > { %3871 = vst.msk [vmem:[#allocation2 + $0x32] sm:$0x1] %vm1270_vm14, %v3870_v36  ;;  %v3921_v31 = vrot.slane %v3920_v33, 1  ;;  %v3971_v34 = vrot.slane %v3970_v48, 2  ;;  %v4021_v38 = vrot.slane %v4020_v24, 4  ;;  %4322 = vbcast.lane.b32.xlu1 %v7465_v43, 344  ;;  %v2910_v41 = vmul.f32 %v7595_v53, %v2901_v62 }
 0x4ed   : > { %4422 = vbcast.lane.b32.xlu0 %v7500_v2, 336  ;;  %v4071_v1 = vsel %vm1052_vm0, %v4069_v7, 0.0  ;;  %v7665_v49 = vrot.slane %v8645_v54, %v6072_v3  ;;  %v4122_v44 = vsel %vm1052_vm0, %v4120_v10, 0.0  ;;  %v2920_v32 = vmul.f32 0.0, %v7637_v30 }
 0x4ee   : > { %v3922_v60 = vadd.f32 %v3921_v31, %v3920_v33  ;;  %v3972_v56 = vadd.f32 %v3971_v34, %v3970_v48  ;;  %v4022_v0 = vadd.f32 %v4021_v38, %v4020_v24  ;;  %v4072_v18 = vadd.f32 %v4071_v1, %v4070_v11  ;;  %v4115_v20 = vpop.permute.xlu1 %4114 }
 0x4ef   : > { %v2953_v13 = vpop.permute.xlu0 %2952  ;;  %v4121_v43 = vmul.f32 %v4119_v28, %v4115_v20  ;;  %v2996_v57 = vmul.f32 1.442695, %v2993_v16  ;;  %v7673_v36 = vadd.f32 %v2920_v32, %v2910_v41  ;;  %v2921_v33 = vmul.f32 0.0, %v5714_v12 }
 0x4f0   : > { %3923 = vst.msk [vmem:[#allocation2 + $0x33] sm:$0x1] %vm1270_vm14, %v3922_v60  ;;  %v3973_v39 = vrot.slane %v3972_v56, 1  ;;  %v4023_v51 = vrot.slane %v4022_v0, 2  ;;  %v4073_v55 = vrot.slane %v4072_v18, 4  ;;  %4374 = vbcast.lane.b32.xlu1 %v7485_v59, 344  ;;  %v3044_v48 = vmul.f32 %v7331_v42, %v3043_v6 }
 0x4f1   : > { %4474 = vbcast.lane.b32.xlu0 %v7516_v45, 336  ;;  %v4123_v58 = vsel %vm1052_vm0, %v4121_v43, 0.0  ;;  %5717 = vpow2.f32 %v2994_v14  ;;  %v2961_v62 = vrot.slane %v7572_v47, %v6076_v5  ;;  %v7686_v42 = vld [vmem:[%s8524_s8 + $0x8] sm:$0xff]  ;;  %v7693_v38 = vrot.slane %v8645_v54, %v6076_v5 }
 0x4f2   : > { %v3974_v61 = vadd.f32 %v3973_v39, %v3972_v56  ;;  %v4024_v26 = vadd.f32 %v4023_v51, %v4022_v0  ;;  %v4074_v35 = vadd.f32 %v4073_v55, %v4072_v18  ;;  %v4124_v21 = vadd.f32 %v4123_v58, %v4122_v44  ;;  %v2905_v40 = vpop.permute.xlu1 %2904 }
 0x4f3   : > { %v7670_v46 = vpop.permute.xlu0 %3004  ;;  %v2911_v59 = vmul.f32 %v7595_v53, %v2905_v40  ;;  %5719 = vpow2.f32 %v2996_v57  ;;  %v3045_v53 = vmul.f32 %v7686_v42, %v3043_v6  ;;  %v5716_v7 = vpop.eup %5715  ;;  %v2962_v11 = vmul.f32 %v2961_v62, %v2953_v13  ;;  %v8646_v13 = vld [vmem:[#allocation29_spill] sm:$0xff] }
 0x4f4   : > { %3975 = vst.msk [vmem:[#allocation2 + $0x34] sm:$0x1] %vm1270_vm14, %v3974_v61  ;;  %v4025_v24 = vrot.slane %v4024_v26, 1  ;;  %v4075_v52 = vrot.slane %v4074_v35, 2  ;;  %v4125_v30 = vrot.slane %v4124_v21, 4  ;;  %4426 = vbcast.lane.b32.xlu1 %v7500_v2, 344  ;;  %v2972_v10 = vmul.f32 %v5712_v29, %v7673_v36 }
 0x4f5   : > { %3316 = vbcast.lane.b32.xlu0 %v7665_v49, 320  ;;  %v7681_v17 = vadd.f32 %v2921_v33, %v2911_v59  ;;  %v3046_v1 = vmul.f32 1.442695, %v3044_v48  ;;  %v3095_v28 = vrot.slane %v7510_v27, %v6415_v37  ;;  %5721 = vtanh.f32 %v7526_v25 }
 0x4f6   : > { %v4026_v9 = vadd.f32 %v4025_v24, %v4024_v26  ;;  %v4076_v16 = vadd.f32 %v4075_v52, %v4074_v35  ;;  %v4126_v2 = vadd.f32 %v4125_v30, %v4124_v21  ;;  %v2957_v31 = vpop.permute.xlu1 %2956  ;;  %v3048_v18 = vmul.f32 1.442695, %v3045_v53  ;;  %v8647_v52 = vld [vmem:[#allocation30_spill] sm:$0xff] }
 0x4f7   : > { %v7689_v34 = vpop.permute.xlu0 %3056  ;;  %v2963_v56 = vmul.f32 %v2961_v62, %v2957_v31  ;;  %v2973_v0 = vmul.f32 %v5716_v7, %v7681_v17  ;;  %v4596_v29 = vadd.f32 1.0, %v7552_v19  ;;  %v4599_v20 = vadd.f32 1.0, %v7576_v22 }
 0x4f8   : > { %4027 = vst.msk [vmem:[#allocation2 + $0x35] sm:$0x1] %vm1270_vm14, %v4026_v9  ;;  %v4077_v12 = vrot.slane %v4076_v16, 1  ;;  %v4127_v60 = vrot.slane %v4126_v2, 2  ;;  %4478 = vbcast.lane.b32.xlu1 %v7516_v45, 344  ;;  %v1158_v41 = vmin.f32 %v8646_v13, 20.0  ;;  %v7710_v45 = vrot.slane %v8645_v54, %v6084_v8 }
 0x4f9   : > { %3368 = vbcast.lane.b32.xlu0 %v7693_v38, 320  ;;  %v1200_v51 = vmul.f32 0.6931472, %v7608_v15  ;;  %v7713_v55 = vadd.f32 %v2972_v10, %v2962_v11  ;;  %v4603_v25 = vmul.f32 0.5, %v7536_v4  ;;  %v4605_v19 = vmul.f32 0.5, %v7538_v23  ;;  %v7725_v15 = vld [vmem:[%s8524_s8] sm:$0xff] }
 0x4fa   : > { %v4078_v43 = vadd.f32 %v4077_v12, %v4076_v16  ;;  %v4128_v14 = vadd.f32 %v4127_v60, %v4126_v2  ;;  %v3009_v6 = vpop.permute.xlu1 %3008  ;;  %v7720_v44 = vadd.f32 %v2973_v0, %v2963_v56  ;;  %5723 = vpow2.f32 %v3046_v1  ;;  %v8648_v9 = vld [vmem:[#allocation31_spill] sm:$0xff]  ;;  %v8652_v11 = vld [vmem:[#allocation24_spill] sm:$0xff]  ;;  %v8655_v0 = vld [vmem:[#allocation6_spill] sm:$0xff] }
 0x4fb   : > { %v7706_v39 = vpop.permute.xlu0 %3108  ;;  %v3096_v58 = vmul.f32 %v7725_v15, %v3095_v28  ;;  %v3013_v4 = vrot.slane %v7572_v47, %v6084_v8  ;;  %5725 = vpow2.f32 %v3048_v18  ;;  %v3097_v23 = vmul.f32 %v7686_v42, %v3095_v28  ;;  %v5718_v57 = vpop.eup %5717  ;;  %v8650_v2 = vld [vmem:[#allocation23_spill] sm:$0xff] }
 0x4fc   : > { %4079 = vst.msk [vmem:[#allocation2 + $0x36] sm:$0x1] %vm1270_vm14, %v4078_v43  ;;  %v4129_v22 = vrot.slane %v4128_v14, 1  ;;  %3320 = vbcast.lane.b32.xlu1 %v7665_v49, 328  ;;  %v4604_v32 = vmul.f32 0.5, %v4596_v29  ;;  %v7736_v40 = vrot.slane %v8645_v54, %v6062_v63  ;;  %v7739_v33 = vsel %vm1152_vm9, %v8630_v50, %v1200_v51  ;;  %v8654_v60 = vld [vmem:[#allocation7_spill] sm:$0xff]  ;;  %vm8702_vm9 = vmmov %vm8693_vm1 }
 0x4fd   : > { %3420 = vbcast.lane.b32.xlu0 %v7710_v45, 320  ;;  %v1171_v61 = vmul.f32 1.442695, %v1158_v41  ;;  %v5720_v59 = vpop.eup %5719  ;;  %v3014_v48 = vmul.f32 %v3013_v4, %v7670_v46  ;;  %v3024_v24 = vmul.f32 %v5718_v57, %v7713_v55  ;;  %v3147_v30 = vrot.slane %v7510_v27, %v8647_v52 }
 0x4fe   : > { %v4130_v26 = vadd.f32 %v4129_v22, %v4128_v14  ;;  %v3061_v35 = vpop.permute.xlu1 %3060  ;;  %v3015_v62 = vmul.f32 %v3013_v4, %v3009_v6  ;;  %v3025_v53 = vmul.f32 %v5720_v59, %v7720_v44  ;;  %v3098_v7 = vmul.f32 1.442695, %v3096_v58  ;;  %v8658_v14 = vld [vmem:[#allocation9_spill] sm:$0xff]  ;;  %v8660_v4 = vld [vmem:[#allocation32_spill] sm:$0xff] }
 0x4ff   : > { %v7732_v21 = vpop.permute.xlu0 %3160  ;;  %v3199_v50 = vrot.slane %v7510_v27, %v8648_v9  ;;  %v3100_v16 = vmul.f32 1.442695, %v3097_v23  ;;  %v7751_v46 = vmul.f32 0.5, %v4599_v20  ;;  %v7754_v31 = vadd.f32 1.0, %v8650_v2  ;;  %v7775_v20 = vpop.eup %5721 }
 0x500   : > { %4131 = vst.msk [vmem:[#allocation2 + $0x37] sm:$0x1] %vm1270_vm14, %v4130_v26  ;;  %3372 = vbcast.lane.b32.xlu1 %v7693_v38, 328  ;;  %v7757_v10 = vadd.f32 1.0, %v8652_v11  ;;  %v7765_v12 = vrot.slane %v8645_v54, %v6415_v37  ;;  %v7768_v56 = vmul.f32 %v4603_v25, %v8654_v60  ;;  %v7771_v18 = vmul.f32 %v8655_v0, %v4605_v19 }
 0x501   : > { %3472 = vbcast.lane.b32.xlu0 %v7736_v40, 320  ;;  %8649 = vst [vmem:[#allocation26_spill] sm:$0xff] %v7751_v46  ;;  %8651 = vst [vmem:[#allocation27_spill] sm:$0xff] %v7754_v31  ;;  %v4135_v29 = vrot.slane %v7739_v33, %v6072_v3  ;;  %5727 = vpow2.f32 %v1171_v61  ;;  %v7777_v41 = vadd.f32 %v3024_v24, %v3014_v48 }
 0x502   : > { %8653 = vst [vmem:[#allocation28_spill] sm:$0xff] %v7757_v10  ;;  %v7759_v1 = vpop.permute.xlu1 %3112  ;;  %8656 = vst [vmem:[#allocation30_spill] sm:$0xff] %v7771_v18  ;;  %v3148_v43 = vmul.f32 %v7725_v15, %v3147_v30  ;;  %v7781_v6 = vmul.f32 %v4604_v32, %v8658_v14  ;;  %v7787_v51 = vrot.slane %v8645_v54, %v8647_v52  ;;  %5729 = vpow2.f32 %v3098_v7 }
 0x503   : > { %v7761_v28 = vpop.permute.xlu0 %3212  ;;  %8657 = vst [vmem:[#allocation31_spill] sm:$0xff] %v7775_v20  ;;  %v7789_v25 = vadd.f32 %v3025_v53, %v3015_v62  ;;  %v3200_v19 = vmul.f32 %v7725_v15, %v3199_v50  ;;  %v3065_v22 = vrot.slane %v7572_v47, %v6062_v63  ;;  %5731 = vpow2.f32 %v3100_v16 }
 0x504   : > { %8659 = vst [vmem:[#allocation23_spill] sm:$0xff] %v7781_v6  ;;  %3424 = vbcast.lane.b32.xlu1 %v7710_v45, 328  ;;  %v3149_v58 = vmul.f32 %v7686_v42, %v3147_v30  ;;  %v3251_v23 = vrot.slane %v7510_v27, %v8660_v4  ;;  %v5724_v32 = vpop.eup %5723  ;;  %v3117_v57 = vrot.slane %v7572_v47, %v6415_v37  ;;  %v3150_v53 = vmul.f32 1.442695, %v3148_v43 }
 0x505   : > { %3524 = vbcast.lane.b32.xlu0 %v7765_v12, 320  ;;  %v7805_v59 = vrot.slane %v8645_v54, %v8648_v9  ;;  %v7809_v48 = vrot.slane %v8645_v54, %v8660_v4  ;;  %v4136_v24 = vmul.f32 %v7725_v15, %v4135_v29  ;;  %v5726_v30 = vpop.eup %5725  ;;  %v3066_v27 = vmul.f32 %v3065_v22, %v7689_v34 }
 0x506   : > { %v7799_v61 = vpop.permute.xlu1 %3164  ;;  %v3076_v62 = vmul.f32 %v5724_v32, %v7777_v41  ;;  %v4137_v7 = vmul.f32 %v7686_v42, %v4135_v29  ;;  %v3067_v16 = vmul.f32 %v3065_v22, %v3061_v35  ;;  %v3077_v2 = vmul.f32 %v5726_v30, %v7789_v25 }
 0x507   : > { %v7801_v26 = vpop.permute.xlu0 %3264  ;;  %v3202_v11 = vmul.f32 1.442695, %v3200_v19  ;;  %v4187_v54 = vrot.slane %v7739_v33, %v6076_v5  ;;  %v7822_v60 = vrot.slane %v7572_v47, %v8647_v52  ;;  %v3152_v34 = vmul.f32 1.442695, %v3149_v58 }
 0x508   : > { %3476 = vbcast.lane.b32.xlu1 %v7736_v40, 328  ;;  %v3252_v0 = vmul.f32 %v7725_v15, %v3251_v23  ;;  %v4239_v35 = vrot.slane %v7739_v33, %v6084_v8  ;;  %v7829_v29 = vrot.slane %v7572_v47, %v8648_v9  ;;  %v3201_v19 = vmul.f32 %v7686_v42, %v3199_v50 }
 0x509   : > { %3576 = vbcast.lane.b32.xlu0 %v7787_v51, 320  ;;  %v3253_v22 = vmul.f32 %v7686_v42, %v3251_v23  ;;  %v4138_v32 = vmul.f32 1.442695, %v4136_v24  ;;  %v7837_v58 = vrot.slane %v7572_v47, %v8660_v4  ;;  %v7839_v30 = vadd.f32 %v3076_v62, %v3066_v27  ;;  %v8662_v27 = vld [vmem:[#allocation21_spill] sm:$0xff] }
 0x50a   : > { %v7831_v43 = vpop.permute.xlu1 %3216  ;;  %5733 = vpow2.f32 %v3150_v53  ;;  %v4140_v13 = vmul.f32 1.442695, %v4137_v7  ;;  %v7843_v6 = vadd.f32 %v3077_v2, %v3067_v16  ;;  %v4188_v50 = vmul.f32 %v7725_v15, %v4187_v54 }
 0x50b   : > { %v2915_v14 = vpop.permute.xlu0 %2914  ;;  %5735 = vpow2.f32 %v3202_v11  ;;  %v7848_v23 = vrot.slane %v7739_v33, %v6062_v63  ;;  %v7850_v24 = vpop.eup %5727  ;;  %v3254_v47 = vmul.f32 1.442695, %v3252_v0  ;;  %v7854_v62 = vmul.f32 %v7739_v33, %v8662_v27 }
 0x50c   : > { %3528 = vbcast.lane.b32.xlu1 %v7765_v12, 328  ;;  %8661 = vst [vmem:[#allocation24_spill] sm:$0xff] %v7850_v24  ;;  %5737 = vpow2.f32 %v3152_v34  ;;  %v4240_v53 = vmul.f32 %v7725_v15, %v4239_v35  ;;  %v5730_v7 = vpop.eup %5729  ;;  %v3204_v11 = vmul.f32 1.442695, %v3201_v19  ;;  %v3256_v20 = vmul.f32 1.442695, %v3253_v22 }
 0x50d   : > { %3628 = vbcast.lane.b32.xlu0 %v7805_v59, 320  ;;  %5739 = vpow2.f32 %v4138_v32  ;;  %v4189_v10 = vmul.f32 %v7686_v42, %v4187_v54  ;;  %v5732_v31 = vpop.eup %5731  ;;  %v3118_v18 = vmul.f32 %v3117_v57, %v7706_v39  ;;  %v3128_v34 = vmul.f32 %v5730_v7, %v7839_v30 }
 0x50e   : > { %v7857_v16 = vpop.permute.xlu1 %3268  ;;  %5741 = vpow2.f32 %v4140_v13  ;;  %v7864_v0 = vrot.slane %v7739_v33, %v6415_v37  ;;  %v3119_v27 = vmul.f32 %v3117_v57, %v7759_v1  ;;  %v3129_v19 = vmul.f32 %v5732_v31, %v7843_v6 }
 0x50f   : > { %v2967_v2 = vpop.permute.xlu0 %2966  ;;  %v4190_v22 = vmul.f32 1.442695, %v4188_v50  ;;  %v4292_v54 = vmul.f32 %v7725_v15, %v7848_v23  ;;  %v2924_v39 = vmul.f32 %v7673_v36, %v2915_v14  ;;  %5743 = vpow2.f32 %v3254_v47 }
 0x510   : > { %3580 = vbcast.lane.b32.xlu1 %v7787_v51, 328  ;;  %v7875_v13 = vrot.slane %v7854_v62, %v6072_v3  ;;  %v4242_v32 = vmul.f32 1.442695, %v4240_v53  ;;  %5745 = vpow2.f32 %v3204_v11  ;;  %v7879_v57 = vrot.slane %v7854_v62, %v6076_v5 }
 0x511   : > { %3680 = vbcast.lane.b32.xlu0 %v7809_v48, 320  ;;  %v4192_v31 = vmul.f32 1.442695, %v4189_v10  ;;  %v4241_v50 = vmul.f32 %v7686_v42, %v4239_v35  ;;  %v7883_v46 = vadd.f32 %v3128_v34, %v3118_v18  ;;  %5747 = vpow2.f32 %v3256_v20 }
 0x512   : > { %v2919_v7 = vpop.permute.xlu1 %2918  ;;  %v4344_v36 = vmul.f32 %v7725_v15, %v7864_v0  ;;  %v7889_v14 = vadd.f32 %v3129_v19, %v3119_v27  ;;  %v7893_v47 = vrot.slane %v7854_v62, %v6084_v8  ;;  %5749 = vpow2.f32 %v4190_v22 }
 0x513   : > { %v3019_v1 = vpop.permute.xlu0 %3018  ;;  %v2925_v24 = vmul.f32 %v7681_v17, %v2919_v7  ;;  %v4294_v10 = vmul.f32 1.442695, %v4292_v54  ;;  %v2926_v17 = vsel %vm1052_vm0, %v2924_v39, 0.0  ;;  %v2976_v18 = vmul.f32 %v7713_v55, %v2967_v2 }
 0x514   : > { %3632 = vbcast.lane.b32.xlu1 %v7805_v59, 328  ;;  %v5734_v35 = vpop.eup %5733  ;;  %5751 = vpow2.f32 %v4242_v32  ;;  %v4244_v27 = vmul.f32 1.442695, %v4241_v50  ;;  %v7900_v19 = vrot.slane %v7739_v33, %v8647_v52  ;;  %v3170_v54 = vmul.f32 %v7822_v60, %v7732_v21 }
 0x515   : > { %3330 = vbcast.lane.b32.xlu0 %v7665_v49, 336  ;;  %v2927_v20 = vsel %vm1052_vm0, %v2925_v24, 0.0  ;;  %v5736_v53 = vpop.eup %5735  ;;  %5753 = vpow2.f32 %v4192_v31  ;;  %v3180_v55 = vmul.f32 %v5734_v35, %v7883_v46  ;;  %v4346_v24 = vmul.f32 1.442695, %v4344_v36 }
 0x516   : > { %v2928_v11 = vadd.f32 %v2927_v20, %v2926_v17  ;;  %v2971_v34 = vpop.permute.xlu1 %2970  ;;  %v5738_v22 = vpop.eup %5737  ;;  %v3171_v32 = vmul.f32 %v7822_v60, %v7799_v61  ;;  %5755 = vpow2.f32 %v4294_v10  ;;  %v2978_v21 = vsel %vm1052_vm0, %v2976_v18, 0.0 }
 0x517   : > { %v3071_v7 = vpop.permute.xlu0 %3070  ;;  %v2977_v39 = vmul.f32 %v7720_v44, %v2971_v34  ;;  %v5740_v2 = vpop.eup %5739  ;;  %v3181_v31 = vmul.f32 %v5738_v22, %v7889_v14  ;;  %v3028_v44 = vmul.f32 %v7777_v41, %v3019_v1  ;;  %v4293_v36 = vmul.f32 %v7686_v42, %v7848_v23 }
 0x518   : > { %v2929_v17 = vrot.slane %v2928_v11, 4  ;;  %3684 = vbcast.lane.b32.xlu1 %v7809_v48, 328  ;;  %v5742_v50 = vpop.eup %5741  ;;  %5757 = vpow2.f32 %v4244_v27  ;;  %v4396_v8 = vmul.f32 %v7725_v15, %v7900_v19  ;;  %v3182_v18 = vadd.f32 %v3180_v55, %v3170_v54 }
 0x519   : > { %3382 = vbcast.lane.b32.xlu0 %v7693_v38, 336  ;;  %v2979_v35 = vsel %vm1052_vm0, %v2977_v39, 0.0  ;;  %v7918_v22 = vpop.eup %5743  ;;  %v7921_v5 = vmul.f32 0.0, %v5740_v2  ;;  %5759 = vpow2.f32 %v4346_v24  ;;  %v3183_v23 = vadd.f32 %v3181_v31, %v3171_v32 }
 0x51a   : > { %v2930_v20 = vadd.f32 %v2929_v17, %v2928_v11  ;;  %v2980_v61 = vadd.f32 %v2979_v35, %v2978_v21  ;;  %v3023_v60 = vpop.permute.xlu1 %3022  ;;  %v5746_v41 = vpop.eup %5745  ;;  %v7925_v11 = vmul.f32 0.0, %v5742_v50  ;;  %v3030_v17 = vsel %vm1052_vm0, %v3028_v44, 0.0 }
 0x51b   : > { %v3123_v34 = vpop.permute.xlu0 %3122  ;;  %v3029_v10 = vmul.f32 %v7789_v25, %v3023_v60  ;;  %v7927_v27 = vpop.eup %5747  ;;  %v3080_v25 = vmul.f32 %v7839_v30, %v3071_v7  ;;  %v4296_v55 = vmul.f32 1.442695, %v4293_v36  ;;  %v4398_v3 = vmul.f32 1.442695, %v4396_v8 }
 0x51c   : > { %v2931_v1 = vrot.slane %v2930_v20, 2  ;;  %v2981_v39 = vrot.slane %v2980_v61, 4  ;;  %3334 = vbcast.lane.b32.xlu1 %v7665_v49, 344  ;;  %v7932_v24 = vpop.eup %5749  ;;  %v3222_v31 = vmul.f32 %v7829_v29, %v7761_v28  ;;  %v3223_v50 = vmul.f32 %v7829_v29, %v7831_v43 }
 0x51d   : > { %3434 = vbcast.lane.b32.xlu0 %v7710_v45, 336  ;;  %v3031_v54 = vsel %vm1052_vm0, %v3029_v10, 0.0  ;;  %v3232_v7 = vmul.f32 %v5736_v53, %v3182_v18  ;;  %v3233_v8 = vmul.f32 %v5746_v41, %v3183_v23  ;;  %v3082_v10 = vsel %vm1052_vm0, %v3080_v25, 0.0 }
 0x51e   : > { %v2932_v2 = vadd.f32 %v2931_v1, %v2930_v20  ;;  %v2982_v21 = vadd.f32 %v2981_v39, %v2980_v61  ;;  %v3032_v35 = vadd.f32 %v3031_v54, %v3030_v17  ;;  %v3075_v49 = vpop.permute.xlu1 %3074  ;;  %v7934_v32 = vpop.eup %5751  ;;  %v3132_v28 = vmul.f32 %v7883_v46, %v3123_v34 }
 0x51f   : > { %v3175_v60 = vpop.permute.xlu0 %3174  ;;  %v3081_v30 = vmul.f32 %v7843_v6, %v3075_v49  ;;  %v7941_v44 = vpop.eup %5753  ;;  %5761 = vpow2.f32 %v4296_v55  ;;  %v3234_v49 = vadd.f32 %v3232_v7, %v3222_v31  ;;  %v4345_v41 = vmul.f32 %v7686_v42, %v7864_v0 }
 0x520   : > { %v2933_v36 = vrot.slane %v2932_v2, 1  ;;  %v2983_v20 = vrot.slane %v2982_v21, 2  ;;  %v3033_v61 = vrot.slane %v3032_v35, 4  ;;  %3386 = vbcast.lane.b32.xlu1 %v7693_v38, 344  ;;  %v7948_v29 = vpop.eup %5755  ;;  %5763 = vpow2.f32 %v4398_v3 }
 0x521   : > { %3486 = vbcast.lane.b32.xlu0 %v7736_v40, 336  ;;  %v3083_v1 = vsel %vm1052_vm0, %v3081_v30, 0.0  ;;  %v3184_v3 = vmul.f32 %v3182_v18, %v3175_v60  ;;  %v7964_v0 = vrot.slane %v7739_v33, %v8648_v9  ;;  %v3284_v18 = vmul.f32 %v7918_v22, %v3234_v49 }
 0x522   : > { %v2934_v6 = vadd.f32 %v2933_v36, %v2932_v2  ;;  %v2984_v43 = vadd.f32 %v2983_v20, %v2982_v21  ;;  %v3034_v53 = vadd.f32 %v3033_v61, %v3032_v35  ;;  %v3084_v39 = vadd.f32 %v3083_v1, %v3082_v10  ;;  %v3127_v17 = vpop.permute.xlu1 %3126  ;;  %v7953_v25 = vpop.eup %5757 }
 0x523   : > { %v3227_v54 = vpop.permute.xlu0 %3226  ;;  %v3133_v38 = vmul.f32 %v7889_v14, %v3127_v17  ;;  %v3235_v2 = vadd.f32 %v3233_v8, %v3223_v50  ;;  %v7958_v21 = vpop.eup %5759  ;;  %v3134_v14 = vsel %vm1052_vm0, %v3132_v28, 0.0  ;;  %v3274_v50 = vmul.f32 %v7837_v58, %v7801_v26 }
 0x524   : > { %2935 = vst.msk [vmem:[#allocation2 + $0x20] sm:$0x1] %vm1270_vm14, %v2934_v6  ;;  %v2985_v46 = vrot.slane %v2984_v43, 1  ;;  %v3035_v34 = vrot.slane %v3034_v53, 2  ;;  %v3085_v55 = vrot.slane %v3084_v39, 4  ;;  %3438 = vbcast.lane.b32.xlu1 %v7710_v45, 344  ;;  %v3275_v61 = vmul.f32 %v7837_v58, %v7857_v16 }
 0x525   : > { %3538 = vbcast.lane.b32.xlu0 %v7765_v12, 336  ;;  %v3135_v35 = vsel %vm1052_vm0, %v3133_v38, 0.0  ;;  %v3285_v1 = vmul.f32 %v7927_v27, %v3235_v2  ;;  %v3186_v6 = vsel %vm1052_vm0, %v3184_v3, 0.0  ;;  %v3236_v26 = vmul.f32 %v3234_v49, %v3227_v54 }
 0x526   : > { %v2986_v31 = vadd.f32 %v2985_v46, %v2984_v43  ;;  %v3036_v30 = vadd.f32 %v3035_v34, %v3034_v53  ;;  %v3086_v7 = vadd.f32 %v3085_v55, %v3084_v39  ;;  %v3136_v36 = vadd.f32 %v3135_v35, %v3134_v14  ;;  %v3179_v20 = vpop.permute.xlu1 %3178 }
 0x527   : > { %v3279_v45 = vpop.permute.xlu0 %3278  ;;  %v3185_v8 = vmul.f32 %v3183_v23, %v3179_v20  ;;  %v4348_v58 = vmul.f32 1.442695, %v4345_v41  ;;  %v3286_v46 = vadd.f32 %v3284_v18, %v3274_v50  ;;  %v4448_v27 = vmul.f32 %v7725_v15, %v7964_v0 }
 0x528   : > { %2987 = vst.msk [vmem:[#allocation2 + $0x21] sm:$0x1] %vm1270_vm14, %v2986_v31  ;;  %v3037_v60 = vrot.slane %v3036_v30, 1  ;;  %v3087_v10 = vrot.slane %v3086_v7, 2  ;;  %v3137_v28 = vrot.slane %v3136_v36, 4  ;;  %3490 = vbcast.lane.b32.xlu1 %v7736_v40, 344  ;;  %v3287_v55 = vadd.f32 %v3285_v1, %v3275_v61 }
 0x529   : > { %3590 = vbcast.lane.b32.xlu0 %v7787_v51, 336  ;;  %v3187_v43 = vsel %vm1052_vm0, %v3185_v8, 0.0  ;;  %v7977_v38 = vpop.eup %5761  ;;  %v3238_v3 = vsel %vm1052_vm0, %v3236_v26, 0.0  ;;  %5765 = vpow2.f32 %v4348_v58 }
 0x52a   : > { %v3038_v16 = vadd.f32 %v3037_v60, %v3036_v30  ;;  %v3088_v23 = vadd.f32 %v3087_v10, %v3086_v7  ;;  %v3138_v22 = vadd.f32 %v3137_v28, %v3136_v36  ;;  %v3188_v53 = vadd.f32 %v3187_v43, %v3186_v6  ;;  %v3231_v39 = vpop.permute.xlu1 %3230  ;;  %v7985_v14 = vpop.eup %5763 }
 0x52b   : > { %v4149_v17 = vpop.permute.xlu0 %4148  ;;  %v3237_v40 = vmul.f32 %v3235_v2, %v3231_v39  ;;  %v3288_v2 = vmul.f32 %v3286_v46, %v3279_v45  ;;  %v4397_v45 = vmul.f32 %v7686_v42, %v7900_v19  ;;  %v8002_v28 = vrot.slane %v7739_v33, %v8660_v4 }
 0x52c   : > { %v4158_v34 = vmul.f32 %v7875_v13, %v4149_v17  ;;  %3039 = vst.msk [vmem:[#allocation2 + $0x22] sm:$0x1] %vm1270_vm14, %v3038_v16  ;;  %v3089_v54 = vrot.slane %v3088_v23, 1  ;;  %v3139_v49 = vrot.slane %v3138_v22, 2  ;;  %v3189_v41 = vrot.slane %v3188_v53, 4  ;;  %3542 = vbcast.lane.b32.xlu1 %v7765_v12, 344 }
 0x52d   : > { %3642 = vbcast.lane.b32.xlu0 %v7805_v59, 336  ;;  %v3239_v35 = vsel %vm1052_vm0, %v3237_v40, 0.0  ;;  %v3290_v1 = vsel %vm1052_vm0, %v3288_v2, 0.0  ;;  %v4450_v19 = vmul.f32 1.442695, %v4448_v27  ;;  %v4500_v27 = vmul.f32 %v7725_v15, %v8002_v28 }
 0x52e   : > { %v7990_v31 = vadd.f32 %v7921_v5, %v4158_v34  ;;  %v3090_v30 = vadd.f32 %v3089_v54, %v3088_v23  ;;  %v3140_v7 = vadd.f32 %v3139_v49, %v3138_v22  ;;  %v3190_v36 = vadd.f32 %v3189_v41, %v3188_v53  ;;  %v3283_v50 = vpop.permute.xlu1 %3282  ;;  %v8663_v34 = vld [vmem:[#allocation22_spill] sm:$0xff] }
 0x52f   : > { %v3240_v20 = vadd.f32 %v3239_v35, %v3238_v3  ;;  %v4201_v8 = vpop.permute.xlu0 %4200  ;;  %v3289_v12 = vmul.f32 %v3287_v55, %v3283_v50  ;;  %5767 = vpow2.f32 %v4450_v19  ;;  %v8664_v50 = vld [vmem:[#allocation11_spill] sm:$0xff] }
 0x530   : > { %v4210_v18 = vmul.f32 %v7879_v57, %v4201_v8  ;;  %v4220_v61 = vmul.f32 %v7932_v24, %v7990_v31  ;;  %3091 = vst.msk [vmem:[#allocation2 + $0x23] sm:$0x1] %vm1270_vm14, %v3090_v30  ;;  %v3141_v60 = vrot.slane %v3140_v7, 1  ;;  %v3191_v5 = vrot.slane %v3190_v36, 2  ;;  %3594 = vbcast.lane.b32.xlu1 %v7787_v51, 344  ;;  %v8665_v8 = vld [vmem:[#allocation26_spill] sm:$0xff] }
 0x531   : > { %v3241_v10 = vrot.slane %v3240_v20, 4  ;;  %3694 = vbcast.lane.b32.xlu0 %v7809_v48, 336  ;;  %v3291_v24 = vsel %vm1052_vm0, %v3289_v12, 0.0 }
 0x532   : > { %v8006_v6 = vadd.f32 %v4220_v61, %v4210_v18  ;;  %v3142_v26 = vadd.f32 %v3141_v60, %v3140_v7  ;;  %v3192_v43 = vadd.f32 %v3191_v5, %v3190_v36  ;;  %v3292_v23 = vadd.f32 %v3291_v24, %v3290_v1  ;;  %v4153_v22 = vpop.permute.xlu1 %4152  ;;  %v8666_v61 = vld [vmem:[#allocation24_spill] sm:$0xff] }
 0x533   : > { %v3242_v16 = vadd.f32 %v3241_v10, %v3240_v20  ;;  %v4253_v53 = vpop.permute.xlu0 %4252  ;;  %v4159_v51 = vmul.f32 %v7875_v13, %v4153_v22  ;;  %v4313_v13 = vrot.slane %v7854_v62, %v6062_v63  ;;  %v4502_v20 = vmul.f32 1.442695, %v4500_v27 }
 0x534   : > { %v4262_v39 = vmul.f32 %v7893_v47, %v4253_v53  ;;  %v4272_v33 = vmul.f32 %v7934_v32, %v8006_v6  ;;  %3143 = vst.msk [vmem:[#allocation2 + $0x24] sm:$0x1] %vm1270_vm14, %v3142_v26  ;;  %v3193_v17 = vrot.slane %v3192_v43, 1  ;;  %v3293_v40 = vrot.slane %v3292_v23, 4  ;;  %3646 = vbcast.lane.b32.xlu1 %v7805_v59, 344  ;;  %v8667_v26 = vld [vmem:[#allocation30_spill] sm:$0xff] }
 0x535   : > { %v3243_v46 = vrot.slane %v3242_v16, 2  ;;  %4526 = vbcast.lane.b32.xlu0 %v8663_v34, 336  ;;  %v8020_v54 = vadd.f32 %v7925_v11, %v4159_v51  ;;  %v4400_v59 = vmul.f32 1.442695, %v4397_v45 }
 0x536   : > { %v8022_v32 = vadd.f32 %v4272_v33, %v4262_v39  ;;  %v3194_v58 = vadd.f32 %v3193_v17, %v3192_v43  ;;  %v3294_v41 = vadd.f32 %v3293_v40, %v3292_v23  ;;  %v4205_v55 = vpop.permute.xlu1 %4204  ;;  %v8668_v23 = vld [vmem:[#allocation27_spill] sm:$0xff] }
 0x537   : > { %v3244_v49 = vadd.f32 %v3243_v46, %v3242_v16  ;;  %v4305_v3 = vpop.permute.xlu0 %4304  ;;  %v4211_v2 = vmul.f32 %v7879_v57, %v4205_v55  ;;  %v4221_v30 = vmul.f32 %v7941_v44, %v8020_v54  ;;  %v4449_v57 = vmul.f32 %v7686_v42, %v7964_v0  ;;  %v5766_v16 = vpop.eup %5765  ;;  %v8669_v46 = vld [vmem:[#allocation28_spill] sm:$0xff] }
 0x538   : > { %v4314_v35 = vmul.f32 %v4313_v13, %v4305_v3  ;;  %v4324_v7 = vmul.f32 %v7948_v29, %v8022_v32  ;;  %3195 = vst.msk [vmem:[#allocation2 + $0x25] sm:$0x1] %vm1270_vm14, %v3194_v58  ;;  %v3295_v36 = vrot.slane %v3294_v41, 2  ;;  %3698 = vbcast.lane.b32.xlu1 %v7809_v48, 344  ;;  %v4365_v44 = vrot.slane %v7854_v62, %v6415_v37  ;;  %v8671_v3 = vld [vmem:[#allocation23_spill] sm:$0xff] }
 0x539   : > { %v3245_v11 = vrot.slane %v3244_v49, 1  ;;  %4627 = vrot.lane.b32.xlu0 %v7768_v56, %s5867_s30  ;;  %v4615_v29 = vmul.f32 %v8665_v8, %v8664_v50  ;;  %v8039_v12 = vadd.f32 %v4221_v30, %v4211_v2  ;;  %v1182_v48 = vadd.f32 1.0, %v8666_v61  ;;  %v8674_v8 = vld [vmem:[#allocation25_spill] sm:$0xff] }
 0x53a   : > { %v8041_v18 = vadd.f32 %v4324_v7, %v4314_v35  ;;  %v3296_v60 = vadd.f32 %v3295_v36, %v3294_v41  ;;  %v4257_v5 = vpop.permute.xlu1 %4256  ;;  %5769 = vpow2.f32 %v4400_v59  ;;  %v4452_v43 = vmul.f32 1.442695, %v4449_v57  ;;  %v5467_v35 = vld [vmem:[%s8526_s10 + $0x10] sm:$0xff]   ;;  %v8673_v57 = vld [vmem:[#allocation10_spill] sm:$0xff] }
 0x53b   : > { %v3246_v45 = vadd.f32 %v3245_v11, %v3244_v49  ;;  %v4357_v56 = vpop.permute.xlu0 %4356  ;;  %v4263_v0 = vmul.f32 %v7893_v47, %v4257_v5  ;;  %v4273_v1 = vmul.f32 %v7953_v25, %v8039_v12  ;;  %5771 = vpow2.f32 %v4502_v20  ;;  %v5465_v47 = vld [vmem:[%s8526_s10] sm:$0xff]   ;;  %v8672_v11 = vld [vmem:[#allocation8_spill] sm:$0xff] }
 0x53c   : > { %v4366_v10 = vmul.f32 %v4365_v44, %v4357_v56  ;;  %v4376_v24 = vmul.f32 %v7958_v21, %v8041_v18  ;;  %v3297_v19 = vrot.slane %v3296_v60, 1  ;;  %4530 = vbcast.lane.b32.xlu1 %v8663_v34, 344  ;;  %v4501_v25 = vmul.f32 %v7686_v42, %v8002_v28  ;;  %v8670_v34 = vld [vmem:[#allocation31_spill] sm:$0xff]  ;;  %5406 = vmatprep.subr.bf16.mxu0 %v5465_v47  ;;  %v5768_v28 = vpop.eup %5767  ;;  %v5468_v56 = vld [vmem:[%s8526_s10 + $0x18] sm:$0xff]  }
 0x53d   : > { %3247 = vst.msk [vmem:[#allocation2 + $0x26] sm:$0x1] %vm1270_vm14, %v3246_v45  ;;  %4631 = vrot.lane.b32.xlu0 %v8667_v26, %s5867_s30  ;;  %v4417_v21 = vrot.slane %v7854_v62, %v8647_v52  ;;  %v4606_v22 = vmul.f32 0.5, %v8668_v23  ;;  %v8061_v53 = vadd.f32 %v4273_v1, %v4263_v0  ;;  %5773 = vlog2.f32 %v1182_v48  ;;  %5407 = vmatpush3.bf16.msra.mxu0 %v5465_v47  ;;  %v8675_v26 = vld [vmem:[#allocation13_spill] sm:$0xff] }
 0x53e   : > { %v8063_v51 = vadd.f32 %v4376_v24, %v4366_v10  ;;  %v3298_v39 = vadd.f32 %v3297_v19, %v3296_v60  ;;  %v4309_v33 = vpop.permute.xlu1 %4308  ;;  %v4609_v40 = vmul.f32 0.5, %v8669_v46  ;;  %v4600_v27 = vadd.f32 1.0, %v8670_v34  ;;  %v8676_v34 = vld [vmem:[#allocation12_spill] sm:$0xff] }
 0x53f   : > { %v4409_v17 = vpop.permute.xlu0 %4408  ;;  %v4315_v58 = vmul.f32 %v4313_v13, %v4309_v33  ;;  %v4325_v41 = vmul.f32 %v7977_v38, %v8061_v53  ;;  %5775 = vpow2.f32 %v4452_v43  ;;  %v4504_v59 = vmul.f32 1.442695, %v4501_v25  ;;  %v5466_v13 = vld [vmem:[%s8526_s10 + $0x8] sm:$0xff]  }
 0x540   : > { %v4418_v49 = vmul.f32 %v4417_v21, %v4409_v17  ;;  %v4428_v55 = vmul.f32 %v7985_v14, %v8063_v51  ;;  %3299 = vst.msk [vmem:[#allocation2 + $0x27] sm:$0x1] %vm1270_vm14, %v3298_v39  ;;  %4629 = vrot.lane.b32.xlu1 %v8671_v3, %s5867_s30  ;;  %v4469_v38 = vrot.slane %v7854_v62, %v8648_v9  ;;  %v4608_v50 = vmul.f32 0.5, %v4600_v27 }
 0x541   : > { %4635 = vrot.lane.b32.xlu0 %v4615_v29, %s5867_s30  ;;  %v8080_v2 = vadd.f32 %v4325_v41, %v4315_v58  ;;  %v4614_v36 = vmul.f32 %v8672_v11, %v4606_v22  ;;  %v4617_v20 = vmul.f32 %v8673_v57, %v4609_v40  ;;  %v4602_v29 = vadd.f32 1.0, %v8674_v8  ;;  %5408 = vmatprep.subr.bf16.mxu0 %v5466_v13 }
 0x542   : > { %v8082_v14 = vadd.f32 %v4428_v55, %v4418_v49  ;;  %v4361_v30 = vpop.permute.xlu1 %4360  ;;  %5409 = vmatpush3.bf16.msra.mxu0 %v5466_v13  ;;  %5777 = vpow2.f32 %v4504_v59  ;;  %v4521_v0 = vrot.slane %v7854_v62, %v8660_v4  ;;  %v4616_v43 = vmul.f32 %v4608_v50, %v8675_v26 }
 0x543   : > { %v4461_v7 = vpop.permute.xlu0 %4460  ;;  %v4367_v61 = vmul.f32 %v4365_v44, %v4361_v30  ;;  %v4377_v45 = vmul.f32 %v5766_v16, %v8080_v2  ;;  %5410 = vmatprep.subr.bf16.mxu0 %v5467_v35  ;;  %v4610_v47 = vmul.f32 0.5, %v4602_v29 }
 0x544   : > { %v4470_v48 = vmul.f32 %v4469_v38, %v4461_v7  ;;  %v4480_v60 = vmul.f32 %v5768_v28, %v8082_v14  ;;  %v5770_v5 = vpop.eup %5769  ;;  %4633 = vrot.lane.b32.xlu1 %v4614_v36, %s5867_s30 }
 0x545   : > { %4639 = vrot.lane.b32.xlu0 %v4617_v20, %s5867_s30  ;;  %v8099_v44 = vadd.f32 %v4377_v45, %v4367_v61  ;;  %v5772_v1 = vpop.eup %5771  ;;  %v4618_v27 = vmul.f32 %v8676_v34, %v4610_v47  ;;  %v8678_v20 = vld [vmem:[#allocation3_spill] sm:$0xff] }
 0x546   : > { %v8101_v10 = vadd.f32 %v4480_v60, %v4470_v48  ;;  %v4413_v24 = vpop.permute.xlu1 %4412  ;;  %5411 = vmatpush3.bf16.msra.mxu0 %v5467_v35  ;;  %v8677_v35 = vld [vmem:[#allocation29_spill] sm:$0xff] }
 0x547   : > { %v4513_v19 = vpop.permute.xlu0 %4512  ;;  %v4419_v25 = vmul.f32 %v4417_v21, %v4413_v24  ;;  %v4429_v23 = vmul.f32 %v5770_v5, %v8099_v44  ;;  %v5774_v39 = vpop.eup %5773  ;;  %5412 = vmatprep.subr.bf16.mxu0 %v5468_v56  ;;  %vm1150_vm7 = vcmp.gt.f32.partialorder %v8677_v35, 20.0 }
 0x548   : > { %v4522_v16 = vmul.f32 %v4521_v0, %v4513_v19  ;;  %v4532_v22 = vmul.f32 %v5772_v1, %v8101_v10  ;;  %4637 = vrot.lane.b32.xlu1 %v4616_v43, %s5867_s30  ;;  %v1196_v58 = vmul.f32 0.6931472, %v5774_v39 }
 0x549   : > { %v8107_v62 = vadd.f32 %v4429_v23, %v4419_v25  ;;  %v5776_v17 = vpop.eup %5775  ;;  %v8679_v25 = vld [vmem:[#allocation4_spill] sm:$0xff] }
 0x54a   : > { %v8109_v33 = vadd.f32 %v4532_v22, %v4522_v16  ;;  %v4465_v46 = vpop.permute.xlu1 %4464  ;;  %5413 = vmatpush3.bf16.msra.mxu0 %v5468_v56  ;;  %v8119_v30 = vsel %vm1150_vm7, %v8677_v35, %v1196_v58  ;;  %v8147_v58 = vld [vmem:[%s8524_s8 + $0x8] sm:$0xff]  ;;  %vm8703_vm7 = vmmov %vm8693_vm1 }
 0x54b   : > { %v4163_v40 = vpop.permute.xlu0 %4162  ;;  %v4471_v21 = vmul.f32 %v4469_v38, %v4465_v46  ;;  %v4481_v28 = vmul.f32 %v5776_v17, %v8107_v62  ;;  %v3303_v50 = vrot.slane %v8119_v30, %v8678_v20 }
 0x54c   : > { %4641 = vrot.lane.b32.xlu1 %v4618_v27, %s5867_s30  ;;  %v5778_v41 = vpop.eup %5777  ;;  %v4172_v38 = vmul.f32 %v7990_v31, %v4163_v40 }
 0x54d   : > { %v8114_v49 = vadd.f32 %v4481_v28, %v4471_v21  ;;  %v3304_v56 = vmul.f32 %v7725_v15, %v3303_v50  ;;  %v3305_v24 = vmul.f32 %v7686_v42, %v3303_v50 }
 0x54e   : > { %v4517_v55 = vpop.permute.xlu1 %4516  ;;  %v4174_v8 = vsel %vm1052_vm0, %v4172_v38, 0.0 }
 0x54f   : > { %v4215_v3 = vpop.permute.xlu0 %4214  ;;  %v4523_v59 = vmul.f32 %v4521_v0, %v4517_v55  ;;  %v4533_v13 = vmul.f32 %v5778_v41, %v8114_v49  ;;  %v3306_v22 = vmul.f32 1.442695, %v3304_v56  ;;  %v3308_v46 = vmul.f32 1.442695, %v3305_v24 }
 0x550   : > { %v4224_v29 = vmul.f32 %v8006_v6, %v4215_v3 }
 0x551   : > { %v8122_v7 = vadd.f32 %v4533_v13, %v4523_v59  ;;  %5779 = vpow2.f32 %v3306_v22 }
 0x552   : > { %v4167_v11 = vpop.permute.xlu1 %4166  ;;  %v4226_v0 = vsel %vm1052_vm0, %v4224_v29, 0.0  ;;  %5781 = vpow2.f32 %v3308_v46  ;;  %v8680_v29 = vld [vmem:[#allocation19_spill] sm:$0xff] }
 0x553   : > { %v4267_v36 = vpop.permute.xlu0 %4266  ;;  %v4173_v57 = vmul.f32 %v8020_v54, %v4167_v11 }
 0x554   : > { %v4276_v54 = vmul.f32 %v8022_v32, %v4267_v36 }
 0x555   : > { %v4175_v61 = vsel %vm1052_vm0, %v4173_v57, 0.0 }
 0x556   : > { %v4176_v48 = vadd.f32 %v4175_v61, %v4174_v8  ;;  %v4219_v45 = vpop.permute.xlu1 %4218  ;;  %v4278_v39 = vsel %vm1052_vm0, %v4276_v54, 0.0  ;;  %v8156_v61 = vmul.f32 %v8119_v30, %v8680_v29 }
 0x557   : > { %v4319_v60 = vpop.permute.xlu0 %4318  ;;  %v4225_v31 = vmul.f32 %v8039_v12, %v4219_v45  ;;  %v3355_v12 = vrot.slane %v8119_v30, %v8679_v25 }
 0x558   : > { %v4177_v5 = vrot.slane %v4176_v48, 4  ;;  %v4328_v32 = vmul.f32 %v8041_v18, %v4319_v60 }
 0x559   : > { %v4227_v1 = vsel %vm1052_vm0, %v4225_v31, 0.0  ;;  %v3356_v28 = vmul.f32 %v7725_v15, %v3355_v12  ;;  %v3357_v41 = vmul.f32 %v8147_v58, %v3355_v12  ;;  %v3325_v12 = vrot.slane %v8156_v61, %v8678_v20 }
 0x55a   : > { %v4178_v19 = vadd.f32 %v4177_v5, %v4176_v48  ;;  %v4228_v6 = vadd.f32 %v4227_v1, %v4226_v0  ;;  %v4271_v26 = vpop.permute.xlu1 %4270  ;;  %v4330_v59 = vsel %vm1052_vm0, %v4328_v32, 0.0  ;;  %v8681_v48 = vld [vmem:[#allocation5_spill] sm:$0xff] }
 0x55b   : > { %v4371_v43 = vpop.permute.xlu0 %4370  ;;  %v4277_v47 = vmul.f32 %v8061_v53, %v4271_v26  ;;  %v3407_v45 = vrot.slane %v8119_v30, %v8681_v48  ;;  %v3358_v5 = vmul.f32 1.442695, %v3356_v28 }
 0x55c   : > { %v4179_v16 = vrot.slane %v4178_v19, 2  ;;  %v4229_v23 = vrot.slane %v4228_v6, 4  ;;  %v4380_v13 = vmul.f32 %v8063_v51, %v4371_v43 }
 0x55d   : > { %v4279_v17 = vsel %vm1052_vm0, %v4277_v47, 0.0  ;;  %5783 = vpow2.f32 %v3358_v5 }
 0x55e   : > { %v4180_v42 = vadd.f32 %v4179_v16, %v4178_v19  ;;  %v4230_v40 = vadd.f32 %v4229_v23, %v4228_v6  ;;  %v4280_v34 = vadd.f32 %v4279_v17, %v4278_v39  ;;  %v4323_v27 = vpop.permute.xlu1 %4322  ;;  %v4382_v56 = vsel %vm1052_vm0, %v4380_v13, 0.0 }
 0x55f   : > { %v4423_v21 = vpop.permute.xlu0 %4422  ;;  %v4329_v53 = vmul.f32 %v8080_v2, %v4323_v27  ;;  %v3408_v16 = vmul.f32 %v7725_v15, %v3407_v45  ;;  %v3409_v23 = vmul.f32 %v8147_v58, %v3407_v45 }
 0x560   : > { %v4181_v18 = vrot.slane %v4180_v42, 1  ;;  %v4231_v55 = vrot.slane %v4230_v40, 2  ;;  %v4281_v3 = vrot.slane %v4280_v34, 4  ;;  %v4432_v0 = vmul.f32 %v8082_v14, %v4423_v21 }
 0x561   : > { %v4331_v35 = vsel %vm1052_vm0, %v4329_v53, 0.0 }
 0x562   : > { %v4182_v2 = vadd.f32 %v4181_v18, %v4180_v42  ;;  %v4232_v38 = vadd.f32 %v4231_v55, %v4230_v40  ;;  %v4282_v11 = vadd.f32 %v4281_v3, %v4280_v34  ;;  %v4332_v36 = vadd.f32 %v4331_v35, %v4330_v59  ;;  %v4375_v57 = vpop.permute.xlu1 %4374 }
 0x563   : > { %v4475_v50 = vpop.permute.xlu0 %4474  ;;  %v4381_v8 = vmul.f32 %v8099_v44, %v4375_v57  ;;  %v3360_v44 = vmul.f32 1.442695, %v3357_v41  ;;  %v4434_v32 = vsel %vm1052_vm0, %v4432_v0, 0.0  ;;  %v3459_v41 = vrot.slane %v8119_v30, %v6062_v63 }
 0x564   : > { %4183 = vst.msk [vmem:[#allocation2 + $0x38] sm:$0x1] %vm1270_vm14, %v4182_v2  ;;  %v4233_v51 = vrot.slane %v4232_v38, 1  ;;  %v4283_v60 = vrot.slane %v4282_v11, 2  ;;  %v4333_v31 = vrot.slane %v4332_v36, 4  ;;  %v4484_v17 = vmul.f32 %v8101_v10, %v4475_v50 }
 0x565   : > { %v4383_v54 = vsel %vm1052_vm0, %v4381_v8, 0.0  ;;  %5785 = vpow2.f32 %v3360_v44  ;;  %v3410_v3 = vmul.f32 1.442695, %v3408_v16  ;;  %v3412_v2 = vmul.f32 1.442695, %v3409_v23 }
 0x566   : > { %v4234_v1 = vadd.f32 %v4233_v51, %v4232_v38  ;;  %v4284_v24 = vadd.f32 %v4283_v60, %v4282_v11  ;;  %v4334_v19 = vadd.f32 %v4333_v31, %v4332_v36  ;;  %v4384_v6 = vadd.f32 %v4383_v54, %v4382_v56  ;;  %v4427_v26 = vpop.permute.xlu1 %4426  ;;  %v8184_v60 = vld [vmem:[%s8524_s8] sm:$0xff] }
 0x567   : > { %v3317_v43 = vpop.permute.xlu0 %3316  ;;  %v4433_v47 = vmul.f32 %v8107_v62, %v4427_v26  ;;  %v5780_v62 = vpop.eup %5779  ;;  %v4486_v59 = vsel %vm1052_vm0, %v4484_v17, 0.0  ;;  %v3460_v31 = vmul.f32 %v8184_v60, %v3459_v41  ;;  %5787 = vpow2.f32 %v3410_v3 }
 0x568   : > { %4235 = vst.msk [vmem:[#allocation2 + $0x39] sm:$0x1] %vm1270_vm14, %v4234_v1  ;;  %v4285_v14 = vrot.slane %v4284_v24, 1  ;;  %v4335_v22 = vrot.slane %v4334_v19, 2  ;;  %v4385_v39 = vrot.slane %v4384_v6, 4  ;;  %v5782_v21 = vpop.eup %5781  ;;  %v3326_v53 = vmul.f32 %v3325_v12, %v3317_v43 }
 0x569   : > { %v4435_v46 = vsel %vm1052_vm0, %v4433_v47, 0.0  ;;  %v3336_v35 = vmul.f32 0.0, %v5780_v62  ;;  %v3337_v51 = vmul.f32 0.0, %v5782_v21  ;;  %v3377_v54 = vrot.slane %v8156_v61, %v8679_v25 }
 0x56a   : > { %v4286_v42 = vadd.f32 %v4285_v14, %v4284_v24  ;;  %v4336_v20 = vadd.f32 %v4335_v22, %v4334_v19  ;;  %v4386_v40 = vadd.f32 %v4385_v39, %v4384_v6  ;;  %v4436_v15 = vadd.f32 %v4435_v46, %v4434_v32  ;;  %v4479_v34 = vpop.permute.xlu1 %4478  ;;  %v5784_v24 = vpop.eup %5783 }
 0x56b   : > { %v3369_v27 = vpop.permute.xlu0 %3368  ;;  %v4485_v28 = vmul.f32 %v8114_v49, %v4479_v34  ;;  %v8179_v45 = vadd.f32 %v3336_v35, %v3326_v53  ;;  %v3461_v1 = vmul.f32 %v8147_v58, %v3459_v41  ;;  %5789 = vpow2.f32 %v3412_v2 }
 0x56c   : > { %4287 = vst.msk [vmem:[#allocation2 + $0x3a] sm:$0x1] %vm1270_vm14, %v4286_v42  ;;  %v4337_v10 = vrot.slane %v4336_v20, 1  ;;  %v4387_v18 = vrot.slane %v4386_v40, 2  ;;  %v4437_v55 = vrot.slane %v4436_v15, 4  ;;  %v3378_v16 = vmul.f32 %v3377_v54, %v3369_v27 }
 0x56d   : > { %v4487_v13 = vsel %vm1052_vm0, %v4485_v28, 0.0  ;;  %v3388_v23 = vmul.f32 %v5784_v24, %v8179_v45  ;;  %v3462_v25 = vmul.f32 1.442695, %v3460_v31  ;;  %v3511_v39 = vrot.slane %v8119_v30, %v6415_v37 }
 0x56e   : > { %v4338_v38 = vadd.f32 %v4337_v10, %v4336_v20  ;;  %v4388_v11 = vadd.f32 %v4387_v18, %v4386_v40  ;;  %v4438_v36 = vadd.f32 %v4437_v55, %v4436_v15  ;;  %v4488_v57 = vadd.f32 %v4487_v13, %v4486_v59  ;;  %v3321_v49 = vpop.permute.xlu1 %3320 }
 0x56f   : > { %v3421_v50 = vpop.permute.xlu0 %3420  ;;  %v3327_v8 = vmul.f32 %v3325_v12, %v3321_v49  ;;  %v5786_v12 = vpop.eup %5785  ;;  %v3464_v40 = vmul.f32 1.442695, %v3461_v1  ;;  %v8198_v15 = vadd.f32 %v3388_v23, %v3378_v16  ;;  %5791 = vpow2.f32 %v3462_v25 }
 0x570   : > { %4339 = vst.msk [vmem:[#allocation2 + $0x3b] sm:$0x1] %vm1270_vm14, %v4338_v38  ;;  %v4389_v5 = vrot.slane %v4388_v11, 1  ;;  %v4439_v56 = vrot.slane %v4438_v36, 2  ;;  %v4489_v0 = vrot.slane %v4488_v57, 4  ;;  %v3512_v27 = vmul.f32 %v8184_v60, %v3511_v39 }
 0x571   : > { %v8190_v44 = vadd.f32 %v3337_v51, %v3327_v8  ;;  %v3429_v21 = vrot.slane %v8156_v61, %v8681_v48  ;;  %v5788_v28 = vpop.eup %5787  ;;  %5793 = vpow2.f32 %v3464_v40  ;;  %v3513_v55 = vmul.f32 %v8147_v58, %v3511_v39 }
 0x572   : > { %v4390_v19 = vadd.f32 %v4389_v5, %v4388_v11  ;;  %v4440_v6 = vadd.f32 %v4439_v56, %v4438_v36  ;;  %v4490_v26 = vadd.f32 %v4489_v0, %v4488_v57  ;;  %v3373_v43 = vpop.permute.xlu1 %3372  ;;  %v3440_v59 = vmul.f32 %v5788_v28, %v8198_v15 }
 0x573   : > { %v3473_v47 = vpop.permute.xlu0 %3472  ;;  %v3379_v32 = vmul.f32 %v3377_v54, %v3373_v43  ;;  %v3389_v17 = vmul.f32 %v5786_v12, %v8190_v44  ;;  %v3430_v3 = vmul.f32 %v3429_v21, %v3421_v50  ;;  %v3514_v35 = vmul.f32 1.442695, %v3512_v27 }
 0x574   : > { %4391 = vst.msk [vmem:[#allocation2 + $0x3c] sm:$0x1] %vm1270_vm14, %v4390_v19  ;;  %v4441_v14 = vrot.slane %v4440_v6, 1  ;;  %v4491_v22 = vrot.slane %v4490_v26, 2  ;;  %v3563_v48 = vrot.slane %v8119_v30, %v8647_v52  ;;  %v3516_v57 = vmul.f32 1.442695, %v3513_v55 }
 0x575   : > { %v8204_v53 = vadd.f32 %v3389_v17, %v3379_v32  ;;  %v5790_v13 = vpop.eup %5789  ;;  %v8216_v49 = vadd.f32 %v3440_v59, %v3430_v3  ;;  %5795 = vpow2.f32 %v3514_v35  ;;  %v3481_v8 = vrot.slane %v8156_v61, %v6062_v63 }
 0x576   : > { %v4442_v46 = vadd.f32 %v4441_v14, %v4440_v6  ;;  %v4492_v62 = vadd.f32 %v4491_v22, %v4490_v26  ;;  %v3425_v42 = vpop.permute.xlu1 %3424  ;;  %v3564_v50 = vmul.f32 %v8184_v60, %v3563_v48  ;;  %5797 = vpow2.f32 %v3516_v57 }
 0x577   : > { %v3525_v20 = vpop.permute.xlu0 %3524  ;;  %v3431_v2 = vmul.f32 %v3429_v21, %v3425_v42  ;;  %v3441_v38 = vmul.f32 %v5790_v13, %v8204_v53  ;;  %v3565_v0 = vmul.f32 %v8147_v58, %v3563_v48  ;;  %v3482_v54 = vmul.f32 %v3481_v8, %v3473_v47 }
 0x578   : > { %4443 = vst.msk [vmem:[#allocation2 + $0x3d] sm:$0x1] %vm1270_vm14, %v4442_v46  ;;  %v4493_v34 = vrot.slane %v4492_v62, 1  ;;  %v3566_v19 = vmul.f32 1.442695, %v3564_v50  ;;  %v3615_v6 = vrot.slane %v8119_v30, %v8648_v9  ;;  %v3533_v47 = vrot.slane %v8156_v61, %v6415_v37 }
 0x579   : > { %v8221_v51 = vadd.f32 %v3441_v38, %v3431_v2  ;;  %v5792_v31 = vpop.eup %5791  ;;  %v3568_v16 = vmul.f32 1.442695, %v3565_v0 }
 0x57a   : > { %v4494_v41 = vadd.f32 %v4493_v34, %v4492_v62  ;;  %v3477_v10 = vpop.permute.xlu1 %3476  ;;  %v3492_v1 = vmul.f32 %v5792_v31, %v8216_v49  ;;  %5799 = vpow2.f32 %v3566_v19  ;;  %v3616_v14 = vmul.f32 %v8184_v60, %v3615_v6 }
 0x57b   : > { %v8206_v18 = vpop.permute.xlu0 %3576  ;;  %v5794_v24 = vpop.eup %5793  ;;  %v3483_v26 = vmul.f32 %v3481_v8, %v3477_v10  ;;  %5801 = vpow2.f32 %v3568_v16  ;;  %v3617_v17 = vmul.f32 %v8147_v58, %v3615_v6  ;;  %v3534_v46 = vmul.f32 %v3533_v47, %v3525_v20 }
 0x57c   : > { %4495 = vst.msk [vmem:[#allocation2 + $0x3e] sm:$0x1] %vm1270_vm14, %v4494_v41  ;;  %v3493_v63 = vmul.f32 %v5794_v24, %v8221_v51  ;;  %v3494_v23 = vadd.f32 %v3492_v1, %v3482_v54  ;;  %v3618_v40 = vmul.f32 1.442695, %v3616_v14  ;;  %v3667_v34 = vrot.slane %v8119_v30, %v8660_v4 }
 0x57d   : > { %v3620_v10 = vmul.f32 1.442695, %v3617_v17  ;;  %v3585_v20 = vrot.slane %v8156_v61, %v8647_v52 }
 0x57e   : > { %v3529_v11 = vpop.permute.xlu1 %3528  ;;  %v8235_v22 = vadd.f32 %v3493_v63, %v3483_v26  ;;  %5803 = vpow2.f32 %v3618_v40  ;;  %v3668_v59 = vmul.f32 %v8184_v60, %v3667_v34 }
 0x57f   : > { %v8214_v36 = vpop.permute.xlu0 %3628  ;;  %v5796_v25 = vpop.eup %5795  ;;  %v3535_v27 = vmul.f32 %v3533_v47, %v3529_v11  ;;  %5805 = vpow2.f32 %v3620_v10  ;;  %v3586_v57 = vmul.f32 %v3585_v20, %v8206_v18 }
 0x580   : > { %v3544_v62 = vmul.f32 %v5796_v25, %v3494_v23  ;;  %v5798_v42 = vpop.eup %5797  ;;  %v3670_v0 = vmul.f32 1.442695, %v3668_v59 }
 0x581   : > { %v3545_v37 = vmul.f32 %v5798_v42, %v8235_v22 }
 0x582   : > { %v3581_v5 = vpop.permute.xlu1 %3580  ;;  %v3546_v3 = vadd.f32 %v3544_v62, %v3534_v46  ;;  %5807 = vpow2.f32 %v3670_v0 }
 0x583   : > { %v8223_v56 = vpop.permute.xlu0 %3680  ;;  %v3547_v35 = vadd.f32 %v3545_v37, %v3535_v27  ;;  %v3587_v8 = vmul.f32 %v3585_v20, %v3581_v5  ;;  %v3637_v5 = vrot.slane %v8156_v61, %v8648_v9 }
 0x584   : > { %v5800_v48 = vpop.eup %5799 }
 0x585   : > { %v3596_v50 = vmul.f32 %v5800_v48, %v3546_v3  ;;  %v5802_v60 = vpop.eup %5801 }
 0x586   : > { %v8230_v43 = vpop.permute.xlu1 %3632  ;;  %v3597_v24 = vmul.f32 %v5802_v60, %v3547_v35 }
 0x587   : > { %v3331_v12 = vpop.permute.xlu0 %3330 }
 0x588   : > { %v3340_v21 = vmul.f32 %v8179_v45, %v3331_v12  ;;  %v3599_v25 = vadd.f32 %v3597_v24, %v3587_v8 }
 0x58a   : > { %v8237_v39 = vpop.permute.xlu1 %3684  ;;  %v3342_v13 = vsel %vm1052_vm0, %v3340_v21, 0.0  ;;  %v3639_v21 = vmul.f32 %v3637_v5, %v8230_v43  ;;  %v3689_v43 = vrot.slane %v8156_v61, %v8660_v4 }
 0x58b   : > { %v3383_v32 = vpop.permute.xlu0 %3382 }
 0x58c   : > { %v3392_v30 = vmul.f32 %v8198_v15, %v3383_v32  ;;  %v5804_v32 = vpop.eup %5803  ;;  %v3690_v4 = vmul.f32 %v3689_v43, %v8223_v56 }
 0x58d   : > { %v5806_v27 = vpop.eup %5805 }
 0x58e   : > { %v3335_v28 = vpop.permute.xlu1 %3334  ;;  %v3394_v15 = vsel %vm1052_vm0, %v3392_v30, 0.0  ;;  %v3649_v20 = vmul.f32 %v5806_v27, %v3599_v25  ;;  %v5808_v60 = vpop.eup %5807 }
 0x58f   : > { %v3435_v41 = vpop.permute.xlu0 %3434  ;;  %v3341_v55 = vmul.f32 %v8190_v44, %v3335_v28  ;;  %v3669_v44 = vmul.f32 %v8147_v58, %v3667_v34 }
 0x590   : > { %v3444_v54 = vmul.f32 %v8216_v49, %v3435_v41 }
 0x591   : > { %v3343_v45 = vsel %vm1052_vm0, %v3341_v55, 0.0  ;;  %v3672_v63 = vmul.f32 1.442695, %v3669_v44 }
 0x592   : > { %v3344_v2 = vadd.f32 %v3343_v45, %v3342_v13  ;;  %v3387_v38 = vpop.permute.xlu1 %3386  ;;  %v3446_v14 = vsel %vm1052_vm0, %v3444_v54, 0.0 }
 0x593   : > { %v3487_v11 = vpop.permute.xlu0 %3486  ;;  %v3393_v52 = vmul.f32 %v8204_v53, %v3387_v38  ;;  %v3598_v53 = vadd.f32 %v3596_v50, %v3586_v57  ;;  %5809 = vpow2.f32 %v3672_v63  ;;  %v3651_v50 = vadd.f32 %v3649_v20, %v3639_v21 }
 0x594   : > { %v3345_v31 = vrot.slane %v3344_v2, 4  ;;  %v3496_v49 = vmul.f32 %v3494_v23, %v3487_v11 }
 0x595   : > { %v3395_v1 = vsel %vm1052_vm0, %v3393_v52, 0.0  ;;  %v3648_v34 = vmul.f32 %v5804_v32, %v3598_v53 }
 0x596   : > { %v3346_v19 = vadd.f32 %v3345_v31, %v3344_v2  ;;  %v3396_v6 = vadd.f32 %v3395_v1, %v3394_v15  ;;  %v3439_v26 = vpop.permute.xlu1 %3438  ;;  %v3498_v41 = vsel %vm1052_vm0, %v3496_v49, 0.0 }
 0x597   : > { %v3539_v58 = vpop.permute.xlu0 %3538  ;;  %v3445_v18 = vmul.f32 %v8221_v51, %v3439_v26  ;;  %v3638_v51 = vmul.f32 %v3637_v5, %v8214_v36 }
 0x598   : > { %v3347_v12 = vrot.slane %v3346_v19, 2  ;;  %v3397_v16 = vrot.slane %v3396_v6, 4  ;;  %v3548_v10 = vmul.f32 %v3546_v3, %v3539_v58 }
 0x599   : > { %v3447_v47 = vsel %vm1052_vm0, %v3445_v18, 0.0  ;;  %v3650_v2 = vadd.f32 %v3648_v34, %v3638_v51 }
 0x59a   : > { %v3348_v17 = vadd.f32 %v3347_v12, %v3346_v19  ;;  %v3398_v46 = vadd.f32 %v3397_v16, %v3396_v6  ;;  %v3448_v62 = vadd.f32 %v3447_v47, %v3446_v14  ;;  %v3491_v42 = vpop.permute.xlu1 %3490  ;;  %v3550_v3 = vsel %vm1052_vm0, %v3548_v10, 0.0 }
 0x59b   : > { %v3591_v40 = vpop.permute.xlu0 %3590  ;;  %v3497_v9 = vmul.f32 %v8235_v22, %v3491_v42  ;;  %v3700_v1 = vmul.f32 %v5808_v60, %v3650_v2  ;;  %v3691_v19 = vmul.f32 %v3689_v43, %v8237_v39 }
 0x59c   : > { %v3349_v37 = vrot.slane %v3348_v17, 1  ;;  %v3399_v23 = vrot.slane %v3398_v46, 2  ;;  %v3449_v28 = vrot.slane %v3448_v62, 4  ;;  %v3600_v57 = vmul.f32 %v3598_v53, %v3591_v40 }
 0x59d   : > { %v3499_v55 = vsel %vm1052_vm0, %v3497_v9, 0.0  ;;  %v5810_v24 = vpop.eup %5809  ;;  %v3702_v47 = vadd.f32 %v3700_v1, %v3690_v4  ;;  %v4550_v1 = vld [vmem:[#allocation2 + $0x10] sm:$0xff] }
 0x59e   : > { %v3350_v59 = vadd.f32 %v3349_v37, %v3348_v17  ;;  %v3400_v13 = vadd.f32 %v3399_v23, %v3398_v46  ;;  %v3450_v30 = vadd.f32 %v3449_v28, %v3448_v62  ;;  %v3500_v45 = vadd.f32 %v3499_v55, %v3498_v41  ;;  %v3543_v36 = vpop.permute.xlu1 %3542  ;;  %v8284_v55 = vld [vmem:[%s8525_s9] ss:$0 sm:$0xff] }
 0x59f   : > { %v3643_v48 = vpop.permute.xlu0 %3642  ;;  %v3549_v22 = vmul.f32 %v3547_v35, %v3543_v36  ;;  %v3602_v63 = vsel %vm1052_vm0, %v3600_v57, 0.0  ;;  %v3701_v5 = vmul.f32 %v5810_v24, %v3651_v50  ;;  %v8683_v57 = vld [vmem:[#allocation16_spill] sm:$0xff]  ;;  %v4551_v24 = vld [vmem:[#allocation2 + $0x18] sm:$0xff] }
 0x5a0   : > { %3351 = vst.msk [vmem:[#allocation2 + $0x28] sm:$0x1] %vm1270_vm14, %v3350_v59  ;;  %v3401_v38 = vrot.slane %v3400_v13, 1  ;;  %v3451_v11 = vrot.slane %v3450_v30, 2  ;;  %v3501_v44 = vrot.slane %v3500_v45, 4  ;;  %v3652_v18 = vmul.f32 %v3650_v2, %v3643_v48 }
 0x5a1   : > { %v3551_v52 = vsel %vm1052_vm0, %v3549_v22, 0.0  ;;  %v3703_v51 = vadd.f32 %v3701_v5, %v3691_v19  ;;  %v4548_v22 = vld [vmem:[#allocation2] sm:$0xff] }
 0x5a2   : > { %v3402_v8 = vadd.f32 %v3401_v38, %v3400_v13  ;;  %v3452_v31 = vadd.f32 %v3451_v11, %v3450_v30  ;;  %v3502_v0 = vadd.f32 %v3501_v44, %v3500_v45  ;;  %v3552_v35 = vadd.f32 %v3551_v52, %v3550_v3  ;;  %v3595_v15 = vpop.permute.xlu1 %3594  ;;  %v4549_v38 = vld [vmem:[#allocation2 + $0x8] sm:$0xff]  ;;  %v8682_v11 = vld [vmem:[#allocation15_spill] sm:$0xff] }
 0x5a3   : > { %v3695_v54 = vpop.permute.xlu0 %3694  ;;  %v3601_v61 = vmul.f32 %v3599_v25, %v3595_v15  ;;  %v3654_v62 = vsel %vm1052_vm0, %v3652_v18, 0.0  ;;  %v4563_v44 = vmul.f32 %v8284_v55, %v8682_v11  ;;  %v4564_v52 = vmul.f32 %v8284_v55, %v8683_v57 }
 0x5a4   : > { %3403 = vst.msk [vmem:[#allocation2 + $0x29] sm:$0x1] %vm1270_vm14, %v3402_v8  ;;  %v3453_v6 = vrot.slane %v3452_v31, 1  ;;  %v3503_v26 = vrot.slane %v3502_v0, 2  ;;  %v3553_v58 = vrot.slane %v3552_v35, 4  ;;  %v3704_v42 = vmul.f32 %v3702_v47, %v3695_v54 }
 0x5a5   : > { %v3603_v53 = vsel %vm1052_vm0, %v3601_v61, 0.0 }
 0x5a6   : > { %v3454_v12 = vadd.f32 %v3453_v6, %v3452_v31  ;;  %v3504_v16 = vadd.f32 %v3503_v26, %v3502_v0  ;;  %v3554_v14 = vadd.f32 %v3553_v58, %v3552_v35  ;;  %v3604_v56 = vadd.f32 %v3603_v53, %v3602_v63  ;;  %v3647_v49 = vpop.permute.xlu1 %3646  ;;  %v8684_v6 = vld [vmem:[#allocation17_spill] sm:$0xff]  ;;  %v8685_v63 = vld [vmem:[#allocation14_spill] sm:$0xff] }
 0x5a7   : > { %v3653_v25 = vmul.f32 %v3651_v50, %v3647_v49  ;;  %v4527_v46 = vpop.permute.xlu0 %4526  ;;  %v3706_v20 = vsel %vm1052_vm0, %v3704_v42, 0.0  ;;  %v4571_v31 = vadd.f32 %v4563_v44, %v4548_v22  ;;  %v4572_v35 = vadd.f32 %v4564_v52, %v4549_v38 }
 0x5a8   : > { %3455 = vst.msk [vmem:[#allocation2 + $0x2a] sm:$0x1] %vm1270_vm14, %v3454_v12  ;;  %v3505_v39 = vrot.slane %v3504_v16, 1  ;;  %v3555_v32 = vrot.slane %v3554_v14, 2  ;;  %v3605_v17 = vrot.slane %v3604_v56, 4  ;;  %v4536_v59 = vmul.f32 %v8109_v33, %v4527_v46 }
 0x5a9   : > { %v3655_v40 = vsel %vm1052_vm0, %v3653_v25, 0.0  ;;  %v4565_v26 = vmul.f32 %v8284_v55, %v8684_v6  ;;  %v4566_v18 = vmul.f32 %v8284_v55, %v8685_v63 }
 0x5aa   : > { %v3506_v9 = vadd.f32 %v3505_v39, %v3504_v16  ;;  %v3556_v34 = vadd.f32 %v3555_v32, %v3554_v14  ;;  %v3606_v27 = vadd.f32 %v3605_v17, %v3604_v56  ;;  %v3656_v21 = vadd.f32 %v3655_v40, %v3654_v62  ;;  %v3699_v37 = vpop.permute.xlu1 %3698 }
 0x5ab   : > { %v3705_v23 = vmul.f32 %v3703_v51, %v3699_v37  ;;  %v4628_v2 = vpop.permute.xlu0 %4627  ;;  %v4538_v8 = vsel %vm1052_vm0, %v4536_v59, 0.0  ;;  %v4573_v14 = vadd.f32 %v4565_v26, %v4550_v1  ;;  %v4574_v49 = vadd.f32 %v4566_v18, %v4551_v24  ;;  %v5854_v24 = vld [vmem:[%s5964_s24 + $0x18] sm:$0xff]  ;;  %v5855_v18 = vld [vmem:[%s5964_s24 + $0x20] sm:$0xff] }
 0x5ac   : > { %3507 = vst.msk [vmem:[#allocation2 + $0x2b] sm:$0x1] %vm1270_vm14, %v3506_v9  ;;  %v3557_v28 = vrot.slane %v3556_v34, 1  ;;  %v3607_v41 = vrot.slane %v3606_v27, 2  ;;  %v3657_v10 = vrot.slane %v3656_v21, 4  ;;  %v4651_v19 = vmul.f32 %v4628_v2, %v4571_v31  ;;  %v8688_v2 = vld [vmem:[#allocation21_spill] sm:$0xff] }
 0x5ad   : > { %v3707_v13 = vsel %vm1052_vm0, %v3705_v23, 0.0  ;;  %v8686_v23 = vld [vmem:[#allocation18_spill] sm:$0xff]  ;;  %v5851_v31 = vld [vmem:[%s5964_s24] sm:$0xff] }
 0x5ae   : > { %v3558_v30 = vadd.f32 %v3557_v28, %v3556_v34  ;;  %v3608_v45 = vadd.f32 %v3607_v41, %v3606_v27  ;;  %v3658_v36 = vadd.f32 %v3657_v10, %v3656_v21  ;;  %v3708_v48 = vadd.f32 %v3707_v13, %v3706_v20  ;;  %v4531_v43 = vpop.permute.xlu1 %4530  ;;  %v4552_v21 = vld [vmem:[#allocation2 + $0x20] sm:$0xff] }
 0x5af   : > { %v4537_v3 = vmul.f32 %v8122_v7, %v4531_v43  ;;  %v4632_v16 = vpop.permute.xlu0 %4631  ;;  %v4567_v28 = vmul.f32 %v8284_v55, %v8686_v23  ;;  %v4568_v41 = vmul.f32 %v8284_v55, %v8680_v29  ;;  %v4570_v43 = vmul.f32 %v8284_v55, %v8688_v2 }
 0x5b0   : > { %3559 = vst.msk [vmem:[#allocation2 + $0x2c] sm:$0x1] %vm1270_vm14, %v3558_v30  ;;  %v3609_v33 = vrot.slane %v3608_v45, 1  ;;  %v3659_v50 = vrot.slane %v3658_v36, 2  ;;  %v3709_v60 = vrot.slane %v3708_v48, 4  ;;  %v4653_v17 = vmul.f32 %v4632_v16, %v4573_v14  ;;  %v4554_v30 = vld [vmem:[#allocation2 + $0x30] sm:$0xff] }
 0x5b1   : > { %v4539_v0 = vsel %vm1052_vm0, %v4537_v3, 0.0  ;;  %v4575_v59 = vadd.f32 %v4567_v28, %v4552_v21  ;;  %v5856_v16 = vld [vmem:[%s5964_s24 + $0x30] sm:$0xff] }
 0x5b2   : > { %v3610_v15 = vadd.f32 %v3609_v33, %v3608_v45  ;;  %v3660_v54 = vadd.f32 %v3659_v50, %v3658_v36  ;;  %v3710_v4 = vadd.f32 %v3709_v60, %v3708_v48  ;;  %v4540_v61 = vadd.f32 %v4539_v0, %v4538_v8  ;;  %v4630_v7 = vpop.permute.xlu1 %4629  ;;  %v8687_v36 = vld [vmem:[#allocation20_spill] sm:$0xff] }
 0x5b3   : > { %v4652_v58 = vmul.f32 %v4630_v7, %v4572_v35  ;;  %v4636_v37 = vpop.permute.xlu0 %4635  ;;  %v4569_v48 = vmul.f32 %v8284_v55, %v8687_v36 }
 0x5b4   : > { %3611 = vst.msk [vmem:[#allocation2 + $0x2d] sm:$0x1] %vm1270_vm14, %v3610_v15  ;;  %v3661_v53 = vrot.slane %v3660_v54, 1  ;;  %v3711_v5 = vrot.slane %v3710_v4, 2  ;;  %v4541_v12 = vrot.slane %v4540_v61, 4  ;;  %v4655_v45 = vmul.f32 %v4636_v37, %v4575_v59  ;;  %v5852_v15 = vld [vmem:[%s5964_s24 + $0x10] sm:$0xff] }
 0x5b5   : > { %v4659_v56 = vpack.c.bf16 %v4652_v58, %v4651_v19  ;;  %v4577_v44 = vadd.f32 %v4569_v48, %v4554_v30 }
 0x5b6   : > { %v3662_v47 = vadd.f32 %v3661_v53, %v3660_v54  ;;  %v3712_v25 = vadd.f32 %v3711_v5, %v3710_v4  ;;  %v4542_v39 = vadd.f32 %v4541_v12, %v4540_v61  ;;  %v4634_v32 = vpop.permute.xlu1 %4633  ;;  %v5853_v4 = vld [vmem:[%s5964_s24 + $0x8] sm:$0xff] }
 0x5b7   : > { %v4654_v46 = vmul.f32 %v4634_v32, %v4574_v49  ;;  %5414 = vmatprep.mubr.msk.bf16.mxu0 %vm1052_vm0, %v4659_v56  ;;  %v4640_v38 = vpop.permute.xlu0 %4639  ;;  %v5857_v56 = vld [vmem:[%s5964_s24 + $0x28] sm:$0xff] }
 0x5b8   : > { %3663 = vst.msk [vmem:[#allocation2 + $0x2e] sm:$0x1] %vm1270_vm14, %v3662_v47  ;;  %v3713_v62 = vrot.slane %v3712_v25, 1  ;;  %v4543_v42 = vrot.slane %v4542_v39, 2  ;;  %v4657_v52 = vmul.f32 %v4640_v38, %v4577_v44 }
 0x5b9   : > { %v4660_v40 = vpack.c.bf16 %v4654_v46, %v4653_v17 }
 0x5ba   : > { %v3714_v51 = vadd.f32 %v3713_v62, %v3712_v25  ;;  %v4544_v9 = vadd.f32 %v4543_v42, %v4542_v39  ;;  %v4638_v10 = vpop.permute.xlu1 %4637  ;;  %v5858_v25 = vld [vmem:[%s5964_s24 + $0x38] sm:$0xff] }
 0x5bb   : > { %5415 = vmatmul.mubr.msk.bf16.vlgmr.msra.gmra.mrb[8].mxu0 %vm1052_vm0, %v4660_v40 }
 0x5bc   : > { %3715 = vst.msk [vmem:[#allocation2 + $0x2f] sm:$0x1] %vm1270_vm14, %v3714_v51  ;;  %v4545_v34 = vrot.slane %v4544_v9, 1 }
 0x5be   : > { %v4546_v27 = vadd.f32 %v4545_v34, %v4544_v9  ;;  %v4642_v57 = vpop.permute.xlu1 %4641 }
 0x5c0   : > { %4547 = vst.msk [vmem:[#allocation2 + $0x3f] sm:$0x1] %vm1270_vm14, %v4546_v27  ;;  %vm8697_vm14 = vmmov %vm8693_vm1 }
 0x5c3   : > { %v4553_v20 = vld [vmem:[#allocation2 + $0x28] sm:$0xff] }
 0x5c4   : > { %v4576_v13 = vadd.f32 %v4568_v41, %v4553_v20 }
 0x5c6   : > { %v4656_v22 = vmul.f32 %v4638_v10, %v4576_v13 }
 0x5c7   : > { %v4555_v11 = vld [vmem:[#allocation2 + $0x38] sm:$0xff] }
 0x5c8   : > { %v4661_v3 = vpack.c.bf16 %v4656_v22, %v4655_v45  ;;  %v4578_v29 = vadd.f32 %v4570_v43, %v4555_v11 }
 0x5ca   : > { %v4658_v33 = vmul.f32 %v4642_v57, %v4578_v29  ;;  %5418 = vmatprep.mubr.msk.bf16.mxu0 %vm1052_vm0, %v4661_v3 }
 0x5cc   : > { %v4662_v50 = vpack.c.bf16 %v4658_v33, %v4657_v52 }
 0x5ce   : > { %5419 = vmatmul.mubr.msk.bf16.gmra.mrb[12].mxu0 %vm1052_vm0, %v4662_v50 }
 0x68e   : > { %v5416_v60 = vpop.f32.mrb[8].mxu0 }
 0x68f   : > { %v4741_v8 = vpop.f32.mrb[9].mxu0  ;;  %v8321_v54 = vadd.f32 %v5852_v15, %v5416_v60 }
 0x690   : > { %v8318_v55 = vadd.f32 %v5851_v31, %v4741_v8  ;;  %v5417_v0 = vpop.f32.mrb[10].mxu0 }
 0x691   : > { %v4744_v35 = vpop.f32.mrb[11].mxu0  ;;  %v8331_v19 = vadd.f32 %v5854_v24, %v5417_v0  ;;  %v4788_v6 = vsel %vm8691_vm11, %v8321_v54, 0.0  ;;  %v5470_v24 = vld [vmem:[%s8529_s13 + $0x8] sm:$0xff]   ;;  %vm8706_vm11 = vmmov %vm8693_vm1 }
 0x692   : > { %v8324_v61 = vadd.f32 %v5853_v4, %v4744_v35  ;;  %v4782_v1 = vsel %vm8689_vm8, %v8318_v55, 0.0  ;;  %vm8704_vm8 = vmmov %vm8693_vm1 }
 0x693   : > { %4783 = vadd.xlane.f32.xlu0 %v4782_v1  ;;  %v4791_v26 = vsel %vm8692_vm12, %v8331_v19, 0.0  ;;  %vm8707_vm12 = vmmov %vm8693_vm1 }
 0x694   : > { %v4785_v7 = vsel %vm8690_vm10, %v8324_v61, 0.0  ;;  %vm8705_vm10 = vmmov %vm8693_vm1 }
 0x695   : > { %4786 = vadd.xlane.f32.xlu1 %v4785_v7  ;;  %v5469_v7 = vld [vmem:[%s8529_s13] sm:$0xff]  }
 0x696   : > { %5422 = vmatprep.subr.bf16.mxu1 %v5469_v7 }
 0x697   : > { %4789 = vadd.xlane.f32.xlu0 %v4788_v6  ;;  %5423 = vmatpush3.bf16.msra.mxu1 %v5469_v7 }
 0x698   : > { %5424 = vmatprep.subr.bf16.mxu1 %v5470_v24 }
 0x69b   : > { %4792 = vadd.xlane.f32.xlu0 %v4791_v26  ;;  %5425 = vmatpush3.bf16.msra.mxu1 %v5470_v24 }
 0x6a1   : > { %v5420_v58 = vpop.f32.mrb[12].mxu0 }
 0x6a2   : > { %v4757_v63 = vpop.f32.mrb[13].mxu0  ;;  %v8341_v14 = vadd.f32 %v5856_v16, %v5420_v58 }
 0x6a3   : > { %v8338_v53 = vadd.f32 %v5855_v18, %v4757_v63  ;;  %v5421_v5 = vpop.f32.mrb[14].mxu0 }
 0x6a4   : > { %v4760_v12 = vpop.f32.mrb[15].mxu0  ;;  %v8349_v39 = vadd.f32 %v5858_v25, %v5421_v5  ;;  %v4800_v17 = vsel %vm8695_vm3, %v8341_v14, 0.0  ;;  %vm8709_vm3 = vmmov %vm8693_vm1 }
 0x6a5   : > { %v8344_v49 = vadd.f32 %v5857_v56, %v4760_v12  ;;  %v4794_v47 = vsel %vm8693_vm1, %v8338_v53, 0.0 }
 0x6a6   : > { %4795 = vadd.xlane.f32.xlu0 %v4794_v47  ;;  %v4803_v46 = vsel %vm8696_vm4, %v8349_v39, 0.0 }
 0x6a7   : > { %v4797_v32 = vsel %vm8694_vm13, %v8344_v49, 0.0  ;;  %vm8708_vm13 = vmmov %vm8693_vm1 }
 0x6a8   : > { %4798 = vadd.xlane.f32.xlu1 %v4797_v32 }
 0x6aa   : > { %4801 = vadd.xlane.f32.xlu0 %v4800_v17 }
 0x6ac   : > { %4804 = vadd.xlane.f32.xlu1 %v4803_v46 }
 0x720   : > { %v4784_v62 = vpop.xlane.xlu0 %4783 }
 0x721   : > { %v4806_v42 = vmul.f32 0.03125, %v4784_v62  ;;  %v5324_v62 = vld [vmem:[%s8527_s11] ss:$0 sm:$0xff] }
 0x722   : > { %v4787_v40 = vpop.xlane.xlu1 %4786 }
 0x723   : > { %v8358_v51 = vsub.f32 %v8318_v55, %v4806_v42  ;;  %v4807_v9 = vmul.f32 0.03125, %v4787_v40 }
 0x724   : > { %v4790_v34 = vpop.xlane.xlu0 %4789 }
 0x725   : > { %v8361_v27 = vsub.f32 %v8324_v61, %v4807_v9  ;;  %v4808_v21 = vmul.f32 0.03125, %v4790_v34  ;;  %v4822_v37 = vmul.f32 %v8358_v51, %v8358_v51 }
 0x727   : > { %v8366_v23 = vsub.f32 %v8321_v54, %v4808_v21  ;;  %v4830_v28 = vsel %vm8697_vm14, %v4822_v37, 0.0  ;;  %v4823_v41 = vmul.f32 %v8361_v27, %v8361_v27  ;;  %v5325_v37 = vld [vmem:[%s8528_s12] ss:$0 sm:$0xff] }
 0x728   : > { %4831 = vadd.xlane.f32.xlu0 %v4830_v28  ;;  %v4793_v10 = vpop.xlane.xlu0 %4792 }
 0x729   : > { %v4809_v20 = vmul.f32 0.03125, %v4793_v10  ;;  %v4833_v59 = vsel %vm8698_vm15, %v4823_v41, 0.0  ;;  %v4824_v13 = vmul.f32 %v8366_v23, %v8366_v23 }
 0x72a   : > { %4834 = vadd.xlane.f32.xlu1 %v4833_v59 }
 0x72b   : > { %v8375_v30 = vsub.f32 %v8331_v19, %v4809_v20  ;;  %v4836_v45 = vsel %vm8699_vm2, %v4824_v13, 0.0 }
 0x72c   : > { %4837 = vadd.xlane.f32.xlu0 %v4836_v45 }
 0x72d   : > { %v4825_v36 = vmul.f32 %v8375_v30, %v8375_v30 }
 0x72f   : > { %v4839_v48 = vsel %vm8700_vm5, %v4825_v36, 0.0 }
 0x730   : > { %4840 = vadd.xlane.f32.xlu1 %v4839_v48 }
 0x733   : > { %v4796_v22 = vpop.xlane.xlu0 %4795 }
 0x734   : > { %v4810_v2 = vmul.f32 0.03125, %v4796_v22 }
 0x735   : > { %v4799_v43 = vpop.xlane.xlu1 %4798 }
 0x736   : > { %v8382_v38 = vsub.f32 %v8338_v53, %v4810_v2  ;;  %v4811_v11 = vmul.f32 0.03125, %v4799_v43 }
 0x737   : > { %v4802_v44 = vpop.xlane.xlu0 %4801 }
 0x738   : > { %v8385_v3 = vsub.f32 %v8344_v49, %v4811_v11  ;;  %v4812_v29 = vmul.f32 0.03125, %v4802_v44  ;;  %v4826_v57 = vmul.f32 %v8382_v38, %v8382_v38 }
 0x739   : > { %v4805_v52 = vpop.xlane.xlu1 %4804 }
 0x73a   : > { %v8390_v33 = vsub.f32 %v8341_v14, %v4812_v29  ;;  %v4813_v50 = vmul.f32 0.03125, %v4805_v52  ;;  %v4842_v60 = vsel %vm8701_vm6, %v4826_v57, 0.0  ;;  %v4827_v8 = vmul.f32 %v8385_v3, %v8385_v3 }
 0x73b   : > { %4843 = vadd.xlane.f32.xlu0 %v4842_v60 }
 0x73c   : > { %v8396_v31 = vsub.f32 %v8349_v39, %v4813_v50  ;;  %v4845_v0 = vsel %vm8702_vm9, %v4827_v8, 0.0  ;;  %v4828_v35 = vmul.f32 %v8390_v33, %v8390_v33 }
 0x73d   : > { %4846 = vadd.xlane.f32.xlu1 %v4845_v0 }
 0x73e   : > { %v4848_v15 = vsel %vm8703_vm7, %v4828_v35, 0.0  ;;  %v4829_v4 = vmul.f32 %v8396_v31, %v8396_v31 }
 0x73f   : > { %4849 = vadd.xlane.f32.xlu0 %v4848_v15 }
 0x740   : > { %v4851_v1 = vsel %vm8704_vm8, %v4829_v4, 0.0 }
 0x741   : > { %4852 = vadd.xlane.f32.xlu1 %v4851_v1 }
 0x7b5   : > { %v4832_v6 = vpop.xlane.xlu0 %4831 }
 0x7b6   : > { %v4854_v26 = vmul.f32 0.03125, %v4832_v6 }
 0x7b7   : > { %v4835_v58 = vpop.xlane.xlu1 %4834 }
 0x7b8   : > { %v4862_v63 = vadd.f32 1e-05, %v4854_v26  ;;  %v4855_v18 = vmul.f32 0.03125, %v4835_v58 }
 0x7b9   : > { %v4838_v5 = vpop.xlane.xlu0 %4837 }
 0x7ba   : > { %5811 = vrsqrt.f32 %v4862_v63  ;;  %v4863_v12 = vadd.f32 1e-05, %v4855_v18  ;;  %v4856_v16 = vmul.f32 0.03125, %v4838_v5 }
 0x7bc   : > { %5813 = vrsqrt.f32 %v4863_v12  ;;  %v4864_v56 = vadd.f32 1e-05, %v4856_v16 }
 0x7bd   : > { %v4841_v47 = vpop.xlane.xlu1 %4840 }
 0x7be   : > { %5815 = vrsqrt.f32 %v4864_v56  ;;  %v4857_v25 = vmul.f32 0.03125, %v4841_v47 }
 0x7c0   : > { %v4865_v32 = vadd.f32 1e-05, %v4857_v25 }
 0x7c2   : > { %5817 = vrsqrt.f32 %v4865_v32 }
 0x7c4   : > { %v5812_v17 = vpop.eup %5811 }
 0x7c5   : > { %v4878_v46 = vmul.f32 %v5812_v17, %v8358_v51 }
 0x7c6   : > { %v5814_v42 = vpop.eup %5813 }
 0x7c7   : > { %v4879_v40 = vmul.f32 %v5814_v42, %v8361_v27  ;;  %v4892_v21 = vmul.f32 %v5324_v62, %v4878_v46 }
 0x7c8   : > { %v5816_v9 = vpop.eup %5815  ;;  %v4844_v34 = vpop.xlane.xlu0 %4843 }
 0x7c9   : > { %v4880_v28 = vmul.f32 %v5816_v9, %v8366_v23  ;;  %v4858_v41 = vmul.f32 0.03125, %v4844_v34  ;;  %v4893_v10 = vmul.f32 %v5324_v62, %v4879_v40  ;;  %v4906_v48 = vadd.f32 %v5325_v37, %v4892_v21 }
 0x7ca   : > { %v4847_v20 = vpop.xlane.xlu1 %4846 }
 0x7cb   : > { %v4866_v51 = vadd.f32 1e-05, %v4858_v41  ;;  %v4859_v59 = vmul.f32 0.03125, %v4847_v20  ;;  %v4907_v13 = vadd.f32 %v5325_v37, %v4893_v10  ;;  %v4894_v22 = vmul.f32 %v5324_v62, %v4880_v28 }
 0x7cc   : > { %v5818_v45 = vpop.eup %5817  ;;  %v4850_v36 = vpop.xlane.xlu0 %4849 }
 0x7cd   : > { %v4881_v27 = vmul.f32 %v5818_v45, %v8375_v30  ;;  %5819 = vrsqrt.f32 %v4866_v51  ;;  %v4867_v2 = vadd.f32 1e-05, %v4859_v59  ;;  %v4860_v43 = vmul.f32 0.03125, %v4850_v36 }
 0x7ce   : > { %v4853_v11 = vpop.xlane.xlu1 %4852  ;;  %v4914_v44 = vpack.c.bf16 %v4907_v13, %v4906_v48  ;;  %v4908_v52 = vadd.f32 %v5325_v37, %v4894_v22 }
 0x7cf   : > { %v4895_v29 = vmul.f32 %v5324_v62, %v4881_v27  ;;  %5821 = vrsqrt.f32 %v4867_v2  ;;  %v4861_v23 = vmul.f32 0.03125, %v4853_v11  ;;  %v4868_v57 = vadd.f32 1e-05, %v4860_v43 }
 0x7d0   : > { %5426 = vmatprep.mubr.msk.bf16.mxu1 %vm8705_vm10, %v4914_v44 }
 0x7d1   : > { %v4909_v50 = vadd.f32 %v5325_v37, %v4895_v29  ;;  %v4869_v60 = vadd.f32 1e-05, %v4861_v23  ;;  %5823 = vrsqrt.f32 %v4868_v57 }
 0x7d3   : > { %5825 = vrsqrt.f32 %v4869_v60  ;;  %v4915_v8 = vpack.c.bf16 %v4909_v50, %v4908_v52 }
 0x7d5   : > { %5427 = vmatmul.mubr.msk.bf16.vlgmr.msra.gmra.mrb[8].mxu1 %vm8706_vm11, %v4915_v8 }
 0x7d7   : > { %v5820_v30 = vpop.eup %5819 }
 0x7d8   : > { %v4882_v0 = vmul.f32 %v5820_v30, %v8382_v38 }
 0x7d9   : > { %v5822_v35 = vpop.eup %5821 }
 0x7da   : > { %v4883_v15 = vmul.f32 %v5822_v35, %v8385_v3  ;;  %v4896_v4 = vmul.f32 %v5324_v62, %v4882_v0 }
 0x7db   : > { %v5824_v1 = vpop.eup %5823 }
 0x7dc   : > { %v4897_v7 = vmul.f32 %v5324_v62, %v4883_v15  ;;  %v4884_v6 = vmul.f32 %v5824_v1, %v8390_v33  ;;  %v4910_v58 = vadd.f32 %v5325_v37, %v4896_v4  ;;  %v5471_v15 = vld [vmem:[%s8530_s14] sm:$0xff]   ;;  %v5472_v4 = vld [vmem:[%s8530_s14 + $0x8] sm:$0xff]  }
 0x7dd   : > { %v5826_v24 = vpop.eup %5825  ;;  %5434 = vmatprep.subr.bf16.mxu0 %v5471_v15 }
 0x7de   : > { %v4885_v26 = vmul.f32 %v5826_v24, %v8396_v31  ;;  %v4911_v63 = vadd.f32 %v5325_v37, %v4897_v7  ;;  %v4898_v18 = vmul.f32 %v5324_v62, %v4884_v6  ;;  %5435 = vmatpush3.bf16.msra.mxu0 %v5471_v15 }
 0x7df   : > { %5436 = vmatprep.subr.bf16.mxu0 %v5472_v4 }
 0x7e0   : > { %v4916_v5 = vpack.c.bf16 %v4911_v63, %v4910_v58  ;;  %v4899_v12 = vmul.f32 %v5324_v62, %v4885_v26  ;;  %v4912_v16 = vadd.f32 %v5325_v37, %v4898_v18  ;;  %v5473_v58 = vld [vmem:[%s8530_s14 + $0x10] sm:$0xff]  }
 0x7e2   : > { %5430 = vmatprep.mubr.msk.bf16.mxu1 %vm8707_vm12, %v4916_v5  ;;  %v4913_v38 = vadd.f32 %v5325_v37, %v4899_v12  ;;  %5437 = vmatpush3.bf16.msra.mxu0 %v5472_v4  ;;  %v5474_v5 = vld [vmem:[%s8530_s14 + $0x18] sm:$0xff]  }
 0x7e3   : > { %5438 = vmatprep.subr.bf16.mxu0 %v5473_v58 }
 0x7e4   : > { %v4917_v56 = vpack.c.bf16 %v4913_v38, %v4912_v16 }
 0x7e6   : > { %5431 = vmatmul.mubr.msk.bf16.gmra.mrb[12].mxu1 %vm8693_vm1, %v4917_v56  ;;  %5439 = vmatpush3.bf16.msra.mxu0 %v5473_v58 }
 0x7e7   : > { %5440 = vmatprep.subr.bf16.mxu0 %v5474_v5 }
 0x7ea   : > { %5441 = vmatpush3.bf16.msra.mxu0 %v5474_v5 }
 0x8a8   : > { %v8429_v3 = vpop.f32.mrb[8].mxu1 }
 0x8a9   : > { %v5013_v47 = vmul.f32 0.5, %v8429_v3  ;;  %v8432_v25 = vpop.f32.mrb[9].mxu1 }
 0x8aa   : > { %v5011_v33 = vmul.f32 0.5, %v8432_v25  ;;  %v8435_v31 = vpop.f32.mrb[10].mxu1 }
 0x8ab   : > { %5827 = vtanh.f32 %v5013_v47  ;;  %v5014_v32 = vmul.f32 0.5, %v8435_v31  ;;  %v8438_v17 = vpop.f32.mrb[11].mxu1 }
 0x8ac   : > { %5829 = vtanh.f32 %v5011_v33  ;;  %v5012_v46 = vmul.f32 0.5, %v8438_v17 }
 0x8ad   : > { %5831 = vtanh.f32 %v5014_v32 }
 0x8ae   : > { %5833 = vtanh.f32 %v5012_v46 }
 0x8b5   : > { %v5828_v62 = vpop.eup %5827 }
 0x8b6   : > { %v5830_v42 = vpop.eup %5829  ;;  %v5029_v40 = vadd.f32 1.0, %v5828_v62 }
 0x8b7   : > { %v5832_v9 = vpop.eup %5831  ;;  %v5027_v34 = vadd.f32 1.0, %v5830_v42 }
 0x8b8   : > { %v5834_v21 = vpop.eup %5833  ;;  %v5037_v37 = vmul.f32 0.5, %v5029_v40  ;;  %v5030_v51 = vadd.f32 1.0, %v5832_v9 }
 0x8b9   : > { %v5035_v28 = vmul.f32 0.5, %v5027_v34  ;;  %v5028_v41 = vadd.f32 1.0, %v5834_v21  ;;  %v8441_v10 = vpop.f32.mrb[12].mxu1 }
 0x8ba   : > { %v5045_v20 = vmul.f32 %v8429_v3, %v5037_v37  ;;  %v5017_v59 = vmul.f32 0.5, %v8441_v10  ;;  %v8445_v13 = vpop.f32.mrb[13].mxu1  ;;  %v5038_v44 = vmul.f32 0.5, %v5030_v51 }
 0x8bb   : > { %v5043_v45 = vmul.f32 %v5035_v28, %v8432_v25  ;;  %v5036_v36 = vmul.f32 0.5, %v5028_v41  ;;  %v5015_v48 = vmul.f32 0.5, %v8445_v13  ;;  %v8449_v22 = vpop.f32.mrb[14].mxu1 }
 0x8bc   : > { %5835 = vtanh.f32 %v5017_v59  ;;  %v5018_v27 = vmul.f32 0.5, %v8449_v22  ;;  %5063 = vrot.lane.b32.xlu1 %v5045_v20, %s5867_s30  ;;  %v4999_v2 = vpop.f32.mrb[15].mxu1  ;;  %v5046_v29 = vmul.f32 %v8435_v31, %v5038_v44 }
 0x8bd   : > { %v5044_v43 = vmul.f32 %v5036_v36, %v8438_v17  ;;  %5837 = vtanh.f32 %v5015_v48  ;;  %v5016_v11 = vmul.f32 0.5, %v4999_v2  ;;  %5059 = vrot.lane.b32.xlu0 %v5043_v45, %s5867_s30 }
 0x8be   : > { %5839 = vtanh.f32 %v5018_v27 }
 0x8bf   : > { %5841 = vtanh.f32 %v5016_v11 }
 0x8c0   : > { %5061 = vrot.lane.b32.xlu1 %v5044_v43, %s5867_s30 }
 0x8c4   : > { %5065 = vrot.lane.b32.xlu1 %v5046_v29, %s5867_s30 }
 0x8c6   : > { %v5836_v23 = vpop.eup %5835 }
 0x8c7   : > { %v5838_v57 = vpop.eup %5837  ;;  %v5033_v50 = vadd.f32 1.0, %v5836_v23 }
 0x8c8   : > { %v5840_v52 = vpop.eup %5839  ;;  %v5031_v60 = vadd.f32 1.0, %v5838_v57 }
 0x8c9   : > { %v5842_v8 = vpop.eup %5841  ;;  %v5034_v0 = vadd.f32 1.0, %v5840_v52  ;;  %v5041_v1 = vmul.f32 0.5, %v5033_v50 }
 0x8ca   : > { %v5039_v30 = vmul.f32 0.5, %v5031_v60  ;;  %v5032_v35 = vadd.f32 1.0, %v5842_v8 }
 0x8cb   : > { %v5042_v6 = vmul.f32 0.5, %v5034_v0  ;;  %v5049_v63 = vmul.f32 %v8441_v10, %v5041_v1 }
 0x8cc   : > { %v5047_v7 = vmul.f32 %v5039_v30, %v8445_v13  ;;  %v5040_v24 = vmul.f32 0.5, %v5032_v35 }
 0x8cd   : > { %v5050_v18 = vmul.f32 %v8449_v22, %v5042_v6 }
 0x8ce   : > { %v5048_v26 = vmul.f32 %v5040_v24, %v4999_v2  ;;  %5067 = vrot.lane.b32.xlu0 %v5047_v7, %s5867_s30 }
 0x8d0   : > { %5069 = vrot.lane.b32.xlu1 %v5048_v26, %s5867_s30 }
 0x8d2   : > { %5071 = vrot.lane.b32.xlu0 %v5049_v63, %s5867_s30 }
 0x8d4   : > { %5073 = vrot.lane.b32.xlu1 %v5050_v18, %s5867_s30 }
 0x92e   : > { %v5064_v12 = vpop.permute.xlu1 %5063 }
 0x92f   : > { %v5060_v16 = vpop.permute.xlu0 %5059  ;;  %v5085_v46 = vmul.f32 %v8429_v3, %v5064_v12 }
 0x930   : > { %v5083_v56 = vmul.f32 %v5060_v16, %v8432_v25 }
 0x932   : > { %v5062_v38 = vpop.permute.xlu1 %5061 }
 0x933   : > { %v5084_v47 = vmul.f32 %v5062_v38, %v8438_v17 }
 0x935   : > { %v5091_v33 = vpack.c.bf16 %v5084_v47, %v5083_v56 }
 0x936   : > { %v5066_v32 = vpop.permute.xlu1 %5065 }
 0x937   : > { %v5086_v62 = vmul.f32 %v8435_v31, %v5066_v32  ;;  %5107 = vrot.lane.b32.xlu0 %v5091_v33, %s5867_s30 }
 0x939   : > { %v5092_v42 = vpack.c.bf16 %v5086_v62, %v5085_v46 }
 0x93b   : > { %5109 = vrot.lane.b32.xlu1 %v5092_v42, %s5867_s30 }
 0x940   : > { %v5068_v40 = vpop.permute.xlu0 %5067 }
 0x941   : > { %v5087_v34 = vmul.f32 %v5068_v40, %v8445_v13 }
 0x942   : > { %v5070_v9 = vpop.permute.xlu1 %5069 }
 0x943   : > { %v5088_v21 = vmul.f32 %v5070_v9, %v4999_v2 }
 0x944   : > { %v5072_v37 = vpop.permute.xlu0 %5071 }
 0x945   : > { %v5093_v25 = vpack.c.bf16 %v5088_v21, %v5087_v34  ;;  %v5089_v28 = vmul.f32 %v8441_v10, %v5072_v37 }
 0x946   : > { %v5074_v17 = vpop.permute.xlu1 %5073 }
 0x947   : > { %v5090_v3 = vmul.f32 %v8449_v22, %v5074_v17  ;;  %5111 = vrot.lane.b32.xlu0 %v5093_v25, %s5867_s30 }
 0x949   : > { %v5094_v31 = vpack.c.bf16 %v5090_v3, %v5089_v28 }
 0x94b   : > { %5113 = vrot.lane.b32.xlu1 %v5094_v31, %s5867_s30 }
 0x9a9   : > { %v5108_v41 = vpop.permute.xlu0 %5107 }
 0x9aa   : > { %5442 = vmatprep.mubr.msk.bf16.mxu0 %vm1052_vm0, %v5108_v41 }
 0x9ad   : > { %v5110_v20 = vpop.permute.xlu1 %5109 }
 0x9ae   : > { %5443 = vmatmul.mubr.msk.bf16.vlgmr.msra.gmra.mrb[16].mxu0 %vm1052_vm0, %v5110_v20 }
 0x9b9   : > { %v5112_v51 = vpop.permute.xlu0 %5111 }
 0x9ba   : > { %5446 = vmatprep.mubr.msk.bf16.mxu0 %vm1052_vm0, %v5112_v51 }
 0x9bd   : > { %v5114_v59 = vpop.permute.xlu1 %5113 }
 0x9be   : > { %5447 = vmatmul.mubr.msk.bf16.gmra.mrb[20].mxu0 %vm1052_vm0, %v5114_v59  ;;  %vm8710_vm0 = vmmov %vm8693_vm1 }
 0x9bf   : > { %vm8711_vm4 = vmmov %vm8710_vm0 }
 0x9c0   : > { %vm8712_vm14 = vmmov %vm8710_vm0 }
 0x9c1   : > { %vm8713_vm15 = vmmov %vm8710_vm0 }
 0x9c2   : > { %vm8714_vm2 = vmmov %vm8710_vm0 }
 0x9c3   : > { %vm8715_vm5 = vmmov %vm8710_vm0 }
 0xa81   : > { %v5444_v10 = vpop.f32.mrb[16].mxu0 }
 0xa82   : > { %v5218_v13 = vadd.f32 %v5444_v10, %v8321_v54  ;;  %v5185_v45 = vpop.f32.mrb[17].mxu0 }
 0xa83   : > { %v5216_v36 = vadd.f32 %v5185_v45, %v8318_v55  ;;  %v5445_v48 = vpop.f32.mrb[18].mxu0 }
 0xa84   : > { %5226 = vst.msk [vmem:[%s496_s16 + $0x10] sm:$0xff] %vm8708_vm13, %v5218_v13  ;;  %v5219_v22 = vadd.f32 %v5445_v48, %v8331_v19  ;;  %v5188_v27 = vpop.f32.mrb[19].mxu0 }
 0xa85   : > { %5224 = vst.msk [vmem:[%s496_s16] sm:$0xff] %vm8709_vm3, %v5216_v36  ;;  %v5217_v2 = vadd.f32 %v5188_v27, %v8324_v61 }
 0xa86   : > { %5227 = vst.msk [vmem:[%s496_s16 + $0x18] sm:$0xff] %vm8710_vm0, %v5219_v22 }
 0xa87   : > { %5225 = vst.msk [vmem:[%s496_s16 + $0x8] sm:$0xff] %vm8711_vm4, %v5217_v2 }
 0xa91   : > { %v5448_v43 = vpop.f32.mrb[20].mxu0 }
 0xa92   : > { %v5222_v54 = vadd.f32 %v5448_v43, %v8341_v14  ;;  %v5201_v11 = vpop.f32.mrb[21].mxu0 }
 0xa93   : > { %v5220_v55 = vadd.f32 %v5201_v11, %v8338_v53  ;;  %v5449_v44 = vpop.f32.mrb[22].mxu0 }
 0xa94   : > { %5230 = vst.msk [vmem:[%s496_s16 + $0x30] sm:$0xff] %vm8712_vm14, %v5222_v54  ;;  %v5223_v19 = vadd.f32 %v5449_v44, %v8349_v39  ;;  %v5204_v29 = vpop.f32.mrb[23].mxu0 }
 0xa95   : > { %5228 = vst.msk [vmem:[%s496_s16 + $0x20] sm:$0xff] %vm8713_vm15, %v5220_v55  ;;  %v5221_v61 = vadd.f32 %v5204_v29, %v8344_v49 }
 0xa96   : > { %5231 = vst.msk [vmem:[%s496_s16 + $0x38] sm:$0xff] %vm8714_vm2, %v5223_v19 }
 0xa97   : > { %5229 = vst.msk [vmem:[%s496_s16 + $0x28] sm:$0xff] %vm8715_vm5, %v5221_v61 }
 0xa98 PF: > { %s25_s18 = sadd.s32 1, %s5865_s18  }
 0xa99   : > { %p22_p4 = scmp.ge.s32.totalorder %s25_s18, 4  }
 0xa9b   :  { %24 = sbr.rel (!%p22_p4) target bundleno = 1 (0x1), region = 110 }

</bundles_post_ra>
